<compile_context>
chip_gen: v5e
topology: v5e:2x2
jax: 0.10.0
libtpu: 0.0.40
codegen_flags: <defaults>
</compile_context>

<pallas_src>
import functools

import jax
import jax.numpy as jnp
from jax.experimental import pallas as pl
from jax.experimental.pallas import tpu as pltpu

# CAModel2(channel_n=16, fire_rate=0.5, hidden_chanels=16, hidden_size=128)
CHANNEL_N = 16      # state channels (== conv in-channels == fc1 out-features)
HIDDEN_CH = 16      # conv out-channels (== fc0 in-features)
HIDDEN_SIZE = 128   # fc0 out / fc1 in
S = 16              # spatial size; torch's raw NCHW reshape requires S == HIDDEN_CH

SP = S + 2                    # padded spatial width (18)
Q = SP * SP                   # flattened padded spatial size (324)
MARGIN = SP + 1               # >= largest |tap shift| in flattened padded space (19)
XW = Q + 2 * MARGIN           # width of the shift-able padded state buffer (362)


def _row_q0(h):
    # flattened padded-space index of pixel (h, w=0)
    return (h + 1) * SP + 1


# ----------------------------------------------------------------------------
# Fused Pallas kernel: conv3x3 -> fc0 -> relu -> fc1 -> life-mask, `steps` times
# ----------------------------------------------------------------------------
def _ca_fused_kernel(x_ref, wc_ref, bc_ref, w0_ref, b0_ref, w1_ref, b1_ref,
                     o_ref, xbig, colbuf, ypbuf, ybuf, dbuf, *, steps):
    C = CHANNEL_N

    # Weights: loaded once per batch program, resident for all steps.
    wc = wc_ref[...]          # (C, 9*C)   im2col conv weight
    bc = bc_ref[...]          # (C, 1)     conv bias (per out-channel)
    w0 = w0_ref[...]          # (C, HIDDEN_SIZE)   fc0 weight (pre-transposed)
    b0 = b0_ref[...]          # (1, HIDDEN_SIZE)
    w1 = w1_ref[...]          # (HIDDEN_SIZE, C)   fc1 weight (pre-transposed)
    b1 = b1_ref[...]          # (1, C)

    # Zero-initialised padded state: column MARGIN + (h+1)*SP + (w+1) holds the
    # NCHW state[c, h, w]; everything else stays 0 and acts as the conv halo.
    xbig[...] = jnp.zeros_like(xbig)
    for h in range(S):
        col = MARGIN + _row_q0(h)
        xbig[:, col:col + S] = x_ref[0, :, h * S:(h + 1) * S]

    def one_step(_, carry):
        # --- 3x3 conv as ONE im2col contraction: (C, 9C) @ (9C, Q) ----------
        for ky in range(3):
            for kx in range(3):
                t = ky * 3 + kx
                start = MARGIN + (ky - 1) * SP + (kx - 1)
                colbuf[t * C:(t + 1) * C, :] = xbig[:, start:start + Q]
        ypbuf[...] = jnp.dot(wc, colbuf[...],
                             preferred_element_type=jnp.float32) + bc   # (C, Q)

        # --- gather valid pixels into (oc, h, w); torch rows are (oc*S + h) --
        for h in range(S):
            q0 = _row_q0(h)
            ybuf[:, h, :] = ypbuf[:, q0:q0 + S]
        y2 = ybuf[...].reshape(C * S, S)      # raw torch reshape: rows=(oc,h), cols=w

        # --- fc0 -> relu -> fc1 (contracts over the *width* axis) -----------
        hid = jnp.maximum(
            jnp.dot(y2, w0, preferred_element_type=jnp.float32) + b0, 0.0)
        d = jnp.dot(hid, w1, preferred_element_type=jnp.float32) + b1    # (C*S, C)

        # dx back to NCHW layout (c, h, new-w) through a VMEM scratch.
        for c in range(C):
            dbuf[c, :, :] = d[c * S:(c + 1) * S, :]

        # --- x = (x + dx) * (dx[:, 4:5] > 0.05), written back in place ------
        for h in range(S):
            col = MARGIN + _row_q0(h)
            xrow = xbig[:, col:col + S]       # (C, S)
            drow = dbuf[:, h, :]              # (C, S)
            alive = (drow[4:5, :] > 0.05).astype(jnp.float32)   # (1, S)
            xbig[:, col:col + S] = (xrow + drow) * alive
        return carry

    jax.lax.fori_loop(0, steps, one_step, 0)

    # Lane-dense (1, C, S*S) output block (DMA'd back as one dense tile).
    for h in range(S):
        col = MARGIN + _row_q0(h)
        o_ref[0, :, h * S:(h + 1) * S] = xbig[:, col:col + S]


# ----------------------------------------------------------------------------
# Wrapper (entry/exit layout plumbing only; all hot work is in the kernel)
# ----------------------------------------------------------------------------
@functools.partial(jax.jit, static_argnames=("steps",))
def ca_forward(x, params, steps=1):
    """CAModel2.forward: x is (B, S, S, 16) float32, returns the same shape."""
    steps = int(steps)
    B, s1, s2, C = x.shape
    assert s1 == S and s2 == S and C == CHANNEL_N == HIDDEN_CH, (
        "kernel is specialised to the 16x16x16 state implied by the torch reshape")
    HW = S * S
    # torch: x.transpose(1, 3) -> NCHW; flatten spatial so blocks are lane-dense.
    x2 = jnp.transpose(x, (0, 3, 2, 1)).reshape(B, C, HW)
    out2 = pl.pallas_call(
        functools.partial(_ca_fused_kernel, steps=steps),
        out_shape=jax.ShapeDtypeStruct((B, C, HW), x.dtype),
        grid_spec=pltpu.PrefetchScalarGridSpec(
            num_scalar_prefetch=0,
            grid=(B,),
            in_specs=[
                pl.BlockSpec((1, C, HW), lambda b: (b, 0, 0)),
                pl.BlockSpec((CHANNEL_N, 9 * CHANNEL_N), lambda b: (0, 0)),
                pl.BlockSpec((CHANNEL_N, 1), lambda b: (0, 0)),
                pl.BlockSpec((HIDDEN_CH, HIDDEN_SIZE), lambda b: (0, 0)),
                pl.BlockSpec((1, HIDDEN_SIZE), lambda b: (0, 0)),
                pl.BlockSpec((HIDDEN_SIZE, CHANNEL_N), lambda b: (0, 0)),
                pl.BlockSpec((1, CHANNEL_N), lambda b: (0, 0)),
            ],
            out_specs=pl.BlockSpec((1, C, HW), lambda b: (b, 0, 0)),
            scratch_shapes=[
                pltpu.VMEM((CHANNEL_N, XW), jnp.float32),      # padded NCHW state
                pltpu.VMEM((9 * CHANNEL_N, Q), jnp.float32),   # im2col slab
                pltpu.VMEM((CHANNEL_N, Q), jnp.float32),       # conv output (oc, q)
                pltpu.VMEM((CHANNEL_N, S, S), jnp.float32),    # conv out (oc, h, w)
                pltpu.VMEM((CHANNEL_N, S, S), jnp.float32),    # dx (c, h, w)
            ],
        ),
        compiler_params=pltpu.CompilerParams(
            dimension_semantics=("parallel",)),
    )(x2, params["conv_w_mat"], params["conv_b_col"],
      params["fc0_wt"], params["fc0_b_row"],
      params["fc1_wt"], params["fc1_b_row"])
    # undo the NCHW flattening and the torch-style transpose.
    return jnp.transpose(out2.reshape(B, C, S, S), (0, 3, 2, 1))


# ----------------------------------------------------------------------------
# Parameters (matches nn.Module shapes; fc1 weight zeroed at init like torch)
# ----------------------------------------------------------------------------
def make_param_dict(conv_w, conv_b, fc0_w, fc0_b, fc1_w, fc1_b):
    return {
        # kernel-friendly layouts
        "conv_w_mat": jnp.transpose(conv_w, (0, 2, 3, 1)).reshape(
            HIDDEN_CH, 9 * CHANNEL_N),
        "conv_b_col": conv_b[:, None],
        "fc0_wt": fc0_w.T, "fc0_b_row": fc0_b[None, :],
        "fc1_wt": fc1_w.T, "fc1_b_row": fc1_b[None, :],
        # raw torch-layout copies (for the pure-JAX reference)
        "conv_w": conv_w, "conv_b": conv_b,
        "fc0_w": fc0_w, "fc0_b": fc0_b,
        "fc1_w": fc1_w, "fc1_b": fc1_b,
    }


def init_params(key):
    k = jax.random.split(key, 5)
    b_conv = 1.0 / jnp.sqrt(16.0 * 9.0)
    b_fc0 = 1.0 / jnp.sqrt(float(HIDDEN_CH))
    b_fc1 = 1.0 / jnp.sqrt(float(HIDDEN_SIZE))
    conv_w = jax.random.uniform(k[0], (HIDDEN_CH, 16, 3, 3), jnp.float32,
                                -b_conv, b_conv)
    conv_b = jax.random.uniform(k[1], (HIDDEN_CH,), jnp.float32, -b_conv, b_conv)
    fc0_w = jax.random.uniform(k[2], (HIDDEN_SIZE, HIDDEN_CH), jnp.float32,
                               -b_fc0, b_fc0)
    fc0_b = jax.random.uniform(k[3], (HIDDEN_SIZE,), jnp.float32, -b_fc0, b_fc0)
    fc1_w = jnp.zeros((CHANNEL_N, HIDDEN_SIZE), jnp.float32)  # fc1.weight.zero_()
    fc1_b = jax.random.uniform(k[4], (CHANNEL_N,), jnp.float32, -b_fc1, b_fc1)
    return make_param_dict(conv_w, conv_b, fc0_w, fc0_b, fc1_w, fc1_b)


# ----------------------------------------------------------------------------
# Pure-JAX reference (faithful to the torch forward)
# ----------------------------------------------------------------------------
def ref_update(x, p):
    hp = jax.lax.Precision.HIGHEST
    xt = jnp.transpose(x, (0, 3, 2, 1))
    B, C, s, _ = xt.shape
    dx = jax.lax.conv_general_dilated(
        xt, p["conv_w"], window_strides=(1, 1), padding="SAME",
        dimension_numbers=("NCHW", "OIHW", "NCHW"),
        precision=hp) + p["conv_b"][None, :, None, None]
    dx = dx.reshape(s * s * B, HIDDEN_CH)
    dx = jnp.maximum(jnp.dot(dx, p["fc0_w"].T, precision=hp) + p["fc0_b"], 0.0)
    dx = jnp.dot(dx, p["fc1_w"].T, precision=hp) + p["fc1_b"]
    dx = dx.reshape(B, CHANNEL_N, s, s)
    xn = (xt + dx) * (dx[:, 4:5] > 0.05).astype(xt.dtype)
    return jnp.transpose(xn, (0, 3, 2, 1))


def ref_forward(x, p, steps):
    for _ in range(steps):
        x = ref_update(x, p)
    return x


if __name__ == "__main__":
    key = jax.random.PRNGKey(0)
    kp, kx, kw = jax.random.split(key, 3)
    params = init_params(kp)
    B, steps = 2, 2
    x = 0.3 * jax.random.normal(kx, (B, S, S, CHANNEL_N), jnp.float32)

    # 1) faithful module parameters (fc1 weight zeroed, as in torch __init__)
    out = jax.block_until_ready(ca_forward(x, params, steps=steps))
    ref = jax.block_until_ready(ref_forward(x, params, steps))
    assert out.shape == (B, S, S, CHANNEL_N)
    err = float(jnp.max(jnp.abs(out - ref)))
    assert jnp.allclose(out, ref, atol=1e-3, rtol=1e-3), err

    # 2) stronger numerics check with a non-zero fc1 weight (module init zeroes
    #    it, so test 1 barely exercises the conv/MLP path).  The life-mask
    #    channel (4) is kept exact so the >0.05 threshold cannot flake.
    fc1_w_t = 0.03 * jax.random.normal(kw, (CHANNEL_N, HIDDEN_SIZE), jnp.float32)
    fc1_w_t = fc1_w_t.at[4, :].set(0.0)
    fc1_b_t = params["fc1_b"].at[4].set(0.3)
    params2 = make_param_dict(params["conv_w"], params["conv_b"],
                              params["fc0_w"], params["fc0_b"],
                              fc1_w_t, fc1_b_t)
    out2 = jax.block_until_ready(ca_forward(x, params2, steps=steps))
    ref2 = jax.block_until_ready(ref_forward(x, params2, steps))
    err2 = float(jnp.max(jnp.abs(out2 - ref2)))
    assert jnp.allclose(out2, ref2, atol=1e-3, rtol=1e-3), err2

    print("KERNEL_OK")
</pallas_src>

<mosaic_0001>
module attributes {stable_mosaic.version = 11 : i64} {
  func.func @_ca_fused_kernel(%arg0: i32, %arg1: memref<1x16x256xf32, #tpu.memory_space<vmem>>, %arg2: memref<16x144xf32, #tpu.memory_space<vmem>>, %arg3: memref<16x1xf32, #tpu.memory_space<vmem>>, %arg4: memref<16x128xf32, #tpu.memory_space<vmem>>, %arg5: memref<1x128xf32, #tpu.memory_space<vmem>>, %arg6: memref<128x16xf32, #tpu.memory_space<vmem>>, %arg7: memref<1x16xf32, #tpu.memory_space<vmem>>, %arg8: memref<1x16x256xf32, #tpu.memory_space<vmem>>, %arg9: memref<16x362xf32, #tpu.memory_space<vmem>>, %arg10: memref<144x324xf32, #tpu.memory_space<vmem>>, %arg11: memref<16x324xf32, #tpu.memory_space<vmem>>, %arg12: memref<16x16x16xf32, #tpu.memory_space<vmem>>, %arg13: memref<16x16x16xf32, #tpu.memory_space<vmem>>) attributes {dimension_semantics = [#tpu.dimension_semantics<parallel>], iteration_bounds = array<i64: 2>, scalar_prefetch = 0 : i64, scratch_operands = 5 : i64, tpu.core_type = #tpu.core_type<tc>, window_params = [{transform_indices = @transform_0, window_bounds = array<i64: 1, 16, 256>}, {pipeline_mode = #tpu.pipeline_mode<synchronous>, transform_indices = @transform_1, window_bounds = array<i64: 16, 144>}, {pipeline_mode = #tpu.pipeline_mode<synchronous>, transform_indices = @transform_2, window_bounds = array<i64: 16, 1>}, {pipeline_mode = #tpu.pipeline_mode<synchronous>, transform_indices = @transform_3, window_bounds = array<i64: 16, 128>}, {pipeline_mode = #tpu.pipeline_mode<synchronous>, transform_indices = @transform_4, window_bounds = array<i64: 1, 128>}, {pipeline_mode = #tpu.pipeline_mode<synchronous>, transform_indices = @transform_5, window_bounds = array<i64: 128, 16>}, {pipeline_mode = #tpu.pipeline_mode<synchronous>, transform_indices = @transform_6, window_bounds = array<i64: 1, 16>}, {transform_indices = @transform_7, window_bounds = array<i64: 1, 16, 256>}]} {
    %c0 = arith.constant 0 : index
    %c0_0 = arith.constant 0 : index
    %0 = vector.load %arg2[%c0, %c0_0] : memref<16x144xf32, #tpu.memory_space<vmem>>, vector<16x144xf32>
    %c0_1 = arith.constant 0 : index
    %c0_2 = arith.constant 0 : index
    %1 = vector.load %arg3[%c0_1, %c0_2] : memref<16x1xf32, #tpu.memory_space<vmem>>, vector<16x1xf32>
    %c0_3 = arith.constant 0 : index
    %c0_4 = arith.constant 0 : index
    %2 = vector.load %arg4[%c0_3, %c0_4] : memref<16x128xf32, #tpu.memory_space<vmem>>, vector<16x128xf32>
    %c0_5 = arith.constant 0 : index
    %c0_6 = arith.constant 0 : index
    %3 = vector.load %arg5[%c0_5, %c0_6] : memref<1x128xf32, #tpu.memory_space<vmem>>, vector<1x128xf32>
    %c0_7 = arith.constant 0 : index
    %c0_8 = arith.constant 0 : index
    %4 = vector.load %arg6[%c0_7, %c0_8] : memref<128x16xf32, #tpu.memory_space<vmem>>, vector<128x16xf32>
    %c0_9 = arith.constant 0 : index
    %c0_10 = arith.constant 0 : index
    %5 = vector.load %arg7[%c0_9, %c0_10] : memref<1x16xf32, #tpu.memory_space<vmem>>, vector<1x16xf32>
    %cst = arith.constant 0.000000e+00 : f32
    %6 = vector.broadcast %cst : f32 to vector<16x362xf32>
    %c0_11 = arith.constant 0 : index
    %c0_12 = arith.constant 0 : index
    %7 = vector.load %arg9[%c0_11, %c0_12] : memref<16x362xf32, #tpu.memory_space<vmem>>, vector<16x362xf32>
    tpu.vector_store %arg9[%c0_11, %c0_12], %6 {strides = array<i32>} : memref<16x362xf32, #tpu.memory_space<vmem>>, vector<16x362xf32>,
    %c0_13 = arith.constant 0 : index
    %c0_14 = arith.constant 0 : index
    %c0_15 = arith.constant 0 : index
    %8 = vector.load %arg1[%c0_13, %c0_14, %c0_15] : memref<1x16x256xf32, #tpu.memory_space<vmem>>, vector<1x16x16xf32>
    %9 = vector.shape_cast %8 : vector<1x16x16xf32> to vector<16x16xf32>
    %c0_16 = arith.constant 0 : index
    %c38 = arith.constant 38 : index
    %10 = vector.load %arg9[%c0_16, %c38] : memref<16x362xf32, #tpu.memory_space<vmem>>, vector<16x16xf32>
    tpu.vector_store %arg9[%c0_16, %c38], %9 {strides = array<i32>} : memref<16x362xf32, #tpu.memory_space<vmem>>, vector<16x16xf32>,
    %c0_17 = arith.constant 0 : index
    %c0_18 = arith.constant 0 : index
    %c16 = arith.constant 16 : index
    %11 = vector.load %arg1[%c0_17, %c0_18, %c16] : memref<1x16x256xf32, #tpu.memory_space<vmem>>, vector<1x16x16xf32>
    %12 = vector.shape_cast %11 : vector<1x16x16xf32> to vector<16x16xf32>
    %c0_19 = arith.constant 0 : index
    %c56 = arith.constant 56 : index
    %13 = vector.load %arg9[%c0_19, %c56] : memref<16x362xf32, #tpu.memory_space<vmem>>, vector<16x16xf32>
    tpu.vector_store %arg9[%c0_19, %c56], %12 {strides = array<i32>} : memref<16x362xf32, #tpu.memory_space<vmem>>, vector<16x16xf32>,
    %c0_20 = arith.constant 0 : index
    %c0_21 = arith.constant 0 : index
    %c32 = arith.constant 32 : index
    %14 = vector.load %arg1[%c0_20, %c0_21, %c32] : memref<1x16x256xf32, #tpu.memory_space<vmem>>, vector<1x16x16xf32>
    %15 = vector.shape_cast %14 : vector<1x16x16xf32> to vector<16x16xf32>
    %c0_22 = arith.constant 0 : index
    %c74 = arith.constant 74 : index
    %16 = vector.load %arg9[%c0_22, %c74] : memref<16x362xf32, #tpu.memory_space<vmem>>, vector<16x16xf32>
    tpu.vector_store %arg9[%c0_22, %c74], %15 {strides = array<i32>} : memref<16x362xf32, #tpu.memory_space<vmem>>, vector<16x16xf32>,
    %c0_23 = arith.constant 0 : index
    %c0_24 = arith.constant 0 : index
    %c48 = arith.constant 48 : index
    %17 = vector.load %arg1[%c0_23, %c0_24, %c48] : memref<1x16x256xf32, #tpu.memory_space<vmem>>, vector<1x16x16xf32>
    %18 = vector.shape_cast %17 : vector<1x16x16xf32> to vector<16x16xf32>
    %c0_25 = arith.constant 0 : index
    %c92 = arith.constant 92 : index
    %19 = vector.load %arg9[%c0_25, %c92] : memref<16x362xf32, #tpu.memory_space<vmem>>, vector<16x16xf32>
    tpu.vector_store %arg9[%c0_25, %c92], %18 {strides = array<i32>} : memref<16x362xf32, #tpu.memory_space<vmem>>, vector<16x16xf32>,
    %c0_26 = arith.constant 0 : index
    %c0_27 = arith.constant 0 : index
    %c64 = arith.constant 64 : index
    %20 = vector.load %arg1[%c0_26, %c0_27, %c64] : memref<1x16x256xf32, #tpu.memory_space<vmem>>, vector<1x16x16xf32>
    %21 = vector.shape_cast %20 : vector<1x16x16xf32> to vector<16x16xf32>
    %c0_28 = arith.constant 0 : index
    %c110 = arith.constant 110 : index
    %22 = vector.load %arg9[%c0_28, %c110] : memref<16x362xf32, #tpu.memory_space<vmem>>, vector<16x16xf32>
    tpu.vector_store %arg9[%c0_28, %c110], %21 {strides = array<i32>} : memref<16x362xf32, #tpu.memory_space<vmem>>, vector<16x16xf32>,
    %c0_29 = arith.constant 0 : index
    %c0_30 = arith.constant 0 : index
    %c80 = arith.constant 80 : index
    %23 = vector.load %arg1[%c0_29, %c0_30, %c80] : memref<1x16x256xf32, #tpu.memory_space<vmem>>, vector<1x16x16xf32>
    %24 = vector.shape_cast %23 : vector<1x16x16xf32> to vector<16x16xf32>
    %c0_31 = arith.constant 0 : index
    %c128 = arith.constant 128 : index
    %25 = vector.load %arg9[%c0_31, %c128] : memref<16x362xf32, #tpu.memory_space<vmem>>, vector<16x16xf32>
    tpu.vector_store %arg9[%c0_31, %c128], %24 {strides = array<i32>} : memref<16x362xf32, #tpu.memory_space<vmem>>, vector<16x16xf32>,
    %c0_32 = arith.constant 0 : index
    %c0_33 = arith.constant 0 : index
    %c96 = arith.constant 96 : index
    %26 = vector.load %arg1[%c0_32, %c0_33, %c96] : memref<1x16x256xf32, #tpu.memory_space<vmem>>, vector<1x16x16xf32>
    %27 = vector.shape_cast %26 : vector<1x16x16xf32> to vector<16x16xf32>
    %c0_34 = arith.constant 0 : index
    %c146 = arith.constant 146 : index
    %28 = vector.load %arg9[%c0_34, %c146] : memref<16x362xf32, #tpu.memory_space<vmem>>, vector<16x16xf32>
    tpu.vector_store %arg9[%c0_34, %c146], %27 {strides = array<i32>} : memref<16x362xf32, #tpu.memory_space<vmem>>, vector<16x16xf32>,
    %c0_35 = arith.constant 0 : index
    %c0_36 = arith.constant 0 : index
    %c112 = arith.constant 112 : index
    %29 = vector.load %arg1[%c0_35, %c0_36, %c112] : memref<1x16x256xf32, #tpu.memory_space<vmem>>, vector<1x16x16xf32>
    %30 = vector.shape_cast %29 : vector<1x16x16xf32> to vector<16x16xf32>
    %c0_37 = arith.constant 0 : index
    %c164 = arith.constant 164 : index
    %31 = vector.load %arg9[%c0_37, %c164] : memref<16x362xf32, #tpu.memory_space<vmem>>, vector<16x16xf32>
    tpu.vector_store %arg9[%c0_37, %c164], %30 {strides = array<i32>} : memref<16x362xf32, #tpu.memory_space<vmem>>, vector<16x16xf32>,
    %c0_38 = arith.constant 0 : index
    %c0_39 = arith.constant 0 : index
    %c128_40 = arith.constant 128 : index
    %32 = vector.load %arg1[%c0_38, %c0_39, %c128_40] : memref<1x16x256xf32, #tpu.memory_space<vmem>>, vector<1x16x16xf32>
    %33 = vector.shape_cast %32 : vector<1x16x16xf32> to vector<16x16xf32>
    %c0_41 = arith.constant 0 : index
    %c182 = arith.constant 182 : index
    %34 = vector.load %arg9[%c0_41, %c182] : memref<16x362xf32, #tpu.memory_space<vmem>>, vector<16x16xf32>
    tpu.vector_store %arg9[%c0_41, %c182], %33 {strides = array<i32>} : memref<16x362xf32, #tpu.memory_space<vmem>>, vector<16x16xf32>,
    %c0_42 = arith.constant 0 : index
    %c0_43 = arith.constant 0 : index
    %c144 = arith.constant 144 : index
    %35 = vector.load %arg1[%c0_42, %c0_43, %c144] : memref<1x16x256xf32, #tpu.memory_space<vmem>>, vector<1x16x16xf32>
    %36 = vector.shape_cast %35 : vector<1x16x16xf32> to vector<16x16xf32>
    %c0_44 = arith.constant 0 : index
    %c200 = arith.constant 200 : index
    %37 = vector.load %arg9[%c0_44, %c200] : memref<16x362xf32, #tpu.memory_space<vmem>>, vector<16x16xf32>
    tpu.vector_store %arg9[%c0_44, %c200], %36 {strides = array<i32>} : memref<16x362xf32, #tpu.memory_space<vmem>>, vector<16x16xf32>,
    %c0_45 = arith.constant 0 : index
    %c0_46 = arith.constant 0 : index
    %c160 = arith.constant 160 : index
    %38 = vector.load %arg1[%c0_45, %c0_46, %c160] : memref<1x16x256xf32, #tpu.memory_space<vmem>>, vector<1x16x16xf32>
    %39 = vector.shape_cast %38 : vector<1x16x16xf32> to vector<16x16xf32>
    %c0_47 = arith.constant 0 : index
    %c218 = arith.constant 218 : index
    %40 = vector.load %arg9[%c0_47, %c218] : memref<16x362xf32, #tpu.memory_space<vmem>>, vector<16x16xf32>
    tpu.vector_store %arg9[%c0_47, %c218], %39 {strides = array<i32>} : memref<16x362xf32, #tpu.memory_space<vmem>>, vector<16x16xf32>,
    %c0_48 = arith.constant 0 : index
    %c0_49 = arith.constant 0 : index
    %c176 = arith.constant 176 : index
    %41 = vector.load %arg1[%c0_48, %c0_49, %c176] : memref<1x16x256xf32, #tpu.memory_space<vmem>>, vector<1x16x16xf32>
    %42 = vector.shape_cast %41 : vector<1x16x16xf32> to vector<16x16xf32>
    %c0_50 = arith.constant 0 : index
    %c236 = arith.constant 236 : index
    %43 = vector.load %arg9[%c0_50, %c236] : memref<16x362xf32, #tpu.memory_space<vmem>>, vector<16x16xf32>
    tpu.vector_store %arg9[%c0_50, %c236], %42 {strides = array<i32>} : memref<16x362xf32, #tpu.memory_space<vmem>>, vector<16x16xf32>,
    %c0_51 = arith.constant 0 : index
    %c0_52 = arith.constant 0 : index
    %c192 = arith.constant 192 : index
    %44 = vector.load %arg1[%c0_51, %c0_52, %c192] : memref<1x16x256xf32, #tpu.memory_space<vmem>>, vector<1x16x16xf32>
    %45 = vector.shape_cast %44 : vector<1x16x16xf32> to vector<16x16xf32>
    %c0_53 = arith.constant 0 : index
    %c254 = arith.constant 254 : index
    %46 = vector.load %arg9[%c0_53, %c254] : memref<16x362xf32, #tpu.memory_space<vmem>>, vector<16x16xf32>
    tpu.vector_store %arg9[%c0_53, %c254], %45 {strides = array<i32>} : memref<16x362xf32, #tpu.memory_space<vmem>>, vector<16x16xf32>,
    %c0_54 = arith.constant 0 : index
    %c0_55 = arith.constant 0 : index
    %c208 = arith.constant 208 : index
    %47 = vector.load %arg1[%c0_54, %c0_55, %c208] : memref<1x16x256xf32, #tpu.memory_space<vmem>>, vector<1x16x16xf32>
    %48 = vector.shape_cast %47 : vector<1x16x16xf32> to vector<16x16xf32>
    %c0_56 = arith.constant 0 : index
    %c272 = arith.constant 272 : index
    %49 = vector.load %arg9[%c0_56, %c272] : memref<16x362xf32, #tpu.memory_space<vmem>>, vector<16x16xf32>
    tpu.vector_store %arg9[%c0_56, %c272], %48 {strides = array<i32>} : memref<16x362xf32, #tpu.memory_space<vmem>>, vector<16x16xf32>,
    %c0_57 = arith.constant 0 : index
    %c0_58 = arith.constant 0 : index
    %c224 = arith.constant 224 : index
    %50 = vector.load %arg1[%c0_57, %c0_58, %c224] : memref<1x16x256xf32, #tpu.memory_space<vmem>>, vector<1x16x16xf32>
    %51 = vector.shape_cast %50 : vector<1x16x16xf32> to vector<16x16xf32>
    %c0_59 = arith.constant 0 : index
    %c290 = arith.constant 290 : index
    %52 = vector.load %arg9[%c0_59, %c290] : memref<16x362xf32, #tpu.memory_space<vmem>>, vector<16x16xf32>
    tpu.vector_store %arg9[%c0_59, %c290], %51 {strides = array<i32>} : memref<16x362xf32, #tpu.memory_space<vmem>>, vector<16x16xf32>,
    %c0_60 = arith.constant 0 : index
    %c0_61 = arith.constant 0 : index
    %c240 = arith.constant 240 : index
    %53 = vector.load %arg1[%c0_60, %c0_61, %c240] : memref<1x16x256xf32, #tpu.memory_space<vmem>>, vector<1x16x16xf32>
    %54 = vector.shape_cast %53 : vector<1x16x16xf32> to vector<16x16xf32>
    %c0_62 = arith.constant 0 : index
    %c308 = arith.constant 308 : index
    %55 = vector.load %arg9[%c0_62, %c308] : memref<16x362xf32, #tpu.memory_space<vmem>>, vector<16x16xf32>
    tpu.vector_store %arg9[%c0_62, %c308], %54 {strides = array<i32>} : memref<16x362xf32, #tpu.memory_space<vmem>>, vector<16x16xf32>,
    %c0_i32 = arith.constant 0 : i32
    %c2_i32 = arith.constant 2 : i32
    %56 = arith.addi %c0_i32, %c2_i32 : i32
    %c1_i32 = arith.constant 1 : i32
    scf.for %arg14 = %c0_i32 to %56 step %c1_i32  : i32 {
      %c0_143 = arith.constant 0 : index
      %c0_144 = arith.constant 0 : index
      %121 = vector.load %arg9[%c0_143, %c0_144] : memref<16x362xf32, #tpu.memory_space<vmem>>, vector<16x324xf32>
      %c0_145 = arith.constant 0 : index
      %c0_146 = arith.constant 0 : index
      %122 = vector.load %arg10[%c0_145, %c0_146] : memref<144x324xf32, #tpu.memory_space<vmem>>, vector<16x324xf32>
      tpu.vector_store %arg10[%c0_145, %c0_146], %121 {strides = array<i32>} : memref<144x324xf32, #tpu.memory_space<vmem>>, vector<16x324xf32>,
      %c0_147 = arith.constant 0 : index
      %c1 = arith.constant 1 : index
      %123 = vector.load %arg9[%c0_147, %c1] : memref<16x362xf32, #tpu.memory_space<vmem>>, vector<16x324xf32>
      %c16_148 = arith.constant 16 : index
      %c0_149 = arith.constant 0 : index
      %124 = vector.load %arg10[%c16_148, %c0_149] : memref<144x324xf32, #tpu.memory_space<vmem>>, vector<16x324xf32>
      tpu.vector_store %arg10[%c16_148, %c0_149], %123 {strides = array<i32>} : memref<144x324xf32, #tpu.memory_space<vmem>>, vector<16x324xf32>,
      %c0_150 = arith.constant 0 : index
      %c2 = arith.constant 2 : index
      %125 = vector.load %arg9[%c0_150, %c2] : memref<16x362xf32, #tpu.memory_space<vmem>>, vector<16x324xf32>
      %c32_151 = arith.constant 32 : index
      %c0_152 = arith.constant 0 : index
      %126 = vector.load %arg10[%c32_151, %c0_152] : memref<144x324xf32, #tpu.memory_space<vmem>>, vector<16x324xf32>
      tpu.vector_store %arg10[%c32_151, %c0_152], %125 {strides = array<i32>} : memref<144x324xf32, #tpu.memory_space<vmem>>, vector<16x324xf32>,
      %c0_153 = arith.constant 0 : index
      %c18 = arith.constant 18 : index
      %127 = vector.load %arg9[%c0_153, %c18] : memref<16x362xf32, #tpu.memory_space<vmem>>, vector<16x324xf32>
      %c48_154 = arith.constant 48 : index
      %c0_155 = arith.constant 0 : index
      %128 = vector.load %arg10[%c48_154, %c0_155] : memref<144x324xf32, #tpu.memory_space<vmem>>, vector<16x324xf32>
      tpu.vector_store %arg10[%c48_154, %c0_155], %127 {strides = array<i32>} : memref<144x324xf32, #tpu.memory_space<vmem>>, vector<16x324xf32>,
      %c0_156 = arith.constant 0 : index
      %c19 = arith.constant 19 : index
      %129 = vector.load %arg9[%c0_156, %c19] : memref<16x362xf32, #tpu.memory_space<vmem>>, vector<16x324xf32>
      %c64_157 = arith.constant 64 : index
      %c0_158 = arith.constant 0 : index
      %130 = vector.load %arg10[%c64_157, %c0_158] : memref<144x324xf32, #tpu.memory_space<vmem>>, vector<16x324xf32>
      tpu.vector_store %arg10[%c64_157, %c0_158], %129 {strides = array<i32>} : memref<144x324xf32, #tpu.memory_space<vmem>>, vector<16x324xf32>,
      %c0_159 = arith.constant 0 : index
      %c20 = arith.constant 20 : index
      %131 = vector.load %arg9[%c0_159, %c20] : memref<16x362xf32, #tpu.memory_space<vmem>>, vector<16x324xf32>
      %c80_160 = arith.constant 80 : index
      %c0_161 = arith.constant 0 : index
      %132 = vector.load %arg10[%c80_160, %c0_161] : memref<144x324xf32, #tpu.memory_space<vmem>>, vector<16x324xf32>
      tpu.vector_store %arg10[%c80_160, %c0_161], %131 {strides = array<i32>} : memref<144x324xf32, #tpu.memory_space<vmem>>, vector<16x324xf32>,
      %c0_162 = arith.constant 0 : index
      %c36 = arith.constant 36 : index
      %133 = vector.load %arg9[%c0_162, %c36] : memref<16x362xf32, #tpu.memory_space<vmem>>, vector<16x324xf32>
      %c96_163 = arith.constant 96 : index
      %c0_164 = arith.constant 0 : index
      %134 = vector.load %arg10[%c96_163, %c0_164] : memref<144x324xf32, #tpu.memory_space<vmem>>, vector<16x324xf32>
      tpu.vector_store %arg10[%c96_163, %c0_164], %133 {strides = array<i32>} : memref<144x324xf32, #tpu.memory_space<vmem>>, vector<16x324xf32>,
      %c0_165 = arith.constant 0 : index
      %c37 = arith.constant 37 : index
      %135 = vector.load %arg9[%c0_165, %c37] : memref<16x362xf32, #tpu.memory_space<vmem>>, vector<16x324xf32>
      %c112_166 = arith.constant 112 : index
      %c0_167 = arith.constant 0 : index
      %136 = vector.load %arg10[%c112_166, %c0_167] : memref<144x324xf32, #tpu.memory_space<vmem>>, vector<16x324xf32>
      tpu.vector_store %arg10[%c112_166, %c0_167], %135 {strides = array<i32>} : memref<144x324xf32, #tpu.memory_space<vmem>>, vector<16x324xf32>,
      %c0_168 = arith.constant 0 : index
      %c38_169 = arith.constant 38 : index
      %137 = vector.load %arg9[%c0_168, %c38_169] : memref<16x362xf32, #tpu.memory_space<vmem>>, vector<16x324xf32>
      %c128_170 = arith.constant 128 : index
      %c0_171 = arith.constant 0 : index
      %138 = vector.load %arg10[%c128_170, %c0_171] : memref<144x324xf32, #tpu.memory_space<vmem>>, vector<16x324xf32>
      tpu.vector_store %arg10[%c128_170, %c0_171], %137 {strides = array<i32>} : memref<144x324xf32, #tpu.memory_space<vmem>>, vector<16x324xf32>,
      %c0_172 = arith.constant 0 : index
      %c0_173 = arith.constant 0 : index
      %139 = vector.load %arg10[%c0_172, %c0_173] : memref<144x324xf32, #tpu.memory_space<vmem>>, vector<144x324xf32>
      %cst_174 = arith.constant dense<0.000000e+00> : vector<16x324xf32>
      %140 = tpu.matmul %0, %139, %cst_174 {dimension_numbers = #tpu.dot_dimension_numbers<[1], [0], [0], [1], [0, 0, 1, 1], [], []>} : vector<16x144xf32>, vector<144x324xf32>, vector<16x324xf32> -> vector<16x324xf32>
      %141 = vector.broadcast %1 : vector<16x1xf32> to vector<16x324xf32>
      %142 = arith.addf %140, %141 : vector<16x324xf32>
      %c0_175 = arith.constant 0 : index
      %c0_176 = arith.constant 0 : index
      %143 = vector.load %arg11[%c0_175, %c0_176] : memref<16x324xf32, #tpu.memory_space<vmem>>, vector<16x324xf32>
      tpu.vector_store %arg11[%c0_175, %c0_176], %142 {strides = array<i32>} : memref<16x324xf32, #tpu.memory_space<vmem>>, vector<16x324xf32>,
      %c0_177 = arith.constant 0 : index
      %c19_178 = arith.constant 19 : index
      %144 = vector.load %arg11[%c0_177, %c19_178] : memref<16x324xf32, #tpu.memory_space<vmem>>, vector<16x16xf32>
      %c0_179 = arith.constant 0 : index
      %c0_180 = arith.constant 0 : index
      %c0_181 = arith.constant 0 : index
      %145 = vector.load %arg12[%c0_179, %c0_180, %c0_181] : memref<16x16x16xf32, #tpu.memory_space<vmem>>, vector<16x1x16xf32>
      %146 = vector.shape_cast %145 : vector<16x1x16xf32> to vector<16x16xf32>
      %147 = vector.shape_cast %144 : vector<16x16xf32> to vector<16x1x16xf32>
      tpu.vector_store %arg12[%c0_179, %c0_180, %c0_181], %147 {strides = array<i32>} : memref<16x16x16xf32, #tpu.memory_space<vmem>>, vector<16x1x16xf32>,
      %c0_182 = arith.constant 0 : index
      %c37_183 = arith.constant 37 : index
      %148 = vector.load %arg11[%c0_182, %c37_183] : memref<16x324xf32, #tpu.memory_space<vmem>>, vector<16x16xf32>
      %c0_184 = arith.constant 0 : index
      %c1_185 = arith.constant 1 : index
      %c0_186 = arith.constant 0 : index
      %149 = vector.load %arg12[%c0_184, %c1_185, %c0_186] : memref<16x16x16xf32, #tpu.memory_space<vmem>>, vector<16x1x16xf32>
      %150 = vector.shape_cast %149 : vector<16x1x16xf32> to vector<16x16xf32>
      %151 = vector.shape_cast %148 : vector<16x16xf32> to vector<16x1x16xf32>
      tpu.vector_store %arg12[%c0_184, %c1_185, %c0_186], %151 {strides = array<i32>} : memref<16x16x16xf32, #tpu.memory_space<vmem>>, vector<16x1x16xf32>,
      %c0_187 = arith.constant 0 : index
      %c55 = arith.constant 55 : index
      %152 = vector.load %arg11[%c0_187, %c55] : memref<16x324xf32, #tpu.memory_space<vmem>>, vector<16x16xf32>
      %c0_188 = arith.constant 0 : index
      %c2_189 = arith.constant 2 : index
      %c0_190 = arith.constant 0 : index
      %153 = vector.load %arg12[%c0_188, %c2_189, %c0_190] : memref<16x16x16xf32, #tpu.memory_space<vmem>>, vector<16x1x16xf32>
      %154 = vector.shape_cast %153 : vector<16x1x16xf32> to vector<16x16xf32>
      %155 = vector.shape_cast %152 : vector<16x16xf32> to vector<16x1x16xf32>
      tpu.vector_store %arg12[%c0_188, %c2_189, %c0_190], %155 {strides = array<i32>} : memref<16x16x16xf32, #tpu.memory_space<vmem>>, vector<16x1x16xf32>,
      %c0_191 = arith.constant 0 : index
      %c73 = arith.constant 73 : index
      %156 = vector.load %arg11[%c0_191, %c73] : memref<16x324xf32, #tpu.memory_space<vmem>>, vector<16x16xf32>
      %c0_192 = arith.constant 0 : index
      %c3 = arith.constant 3 : index
      %c0_193 = arith.constant 0 : index
      %157 = vector.load %arg12[%c0_192, %c3, %c0_193] : memref<16x16x16xf32, #tpu.memory_space<vmem>>, vector<16x1x16xf32>
      %158 = vector.shape_cast %157 : vector<16x1x16xf32> to vector<16x16xf32>
      %159 = vector.shape_cast %156 : vector<16x16xf32> to vector<16x1x16xf32>
      tpu.vector_store %arg12[%c0_192, %c3, %c0_193], %159 {strides = array<i32>} : memref<16x16x16xf32, #tpu.memory_space<vmem>>, vector<16x1x16xf32>,
      %c0_194 = arith.constant 0 : index
      %c91 = arith.constant 91 : index
      %160 = vector.load %arg11[%c0_194, %c91] : memref<16x324xf32, #tpu.memory_space<vmem>>, vector<16x16xf32>
      %c0_195 = arith.constant 0 : index
      %c4 = arith.constant 4 : index
      %c0_196 = arith.constant 0 : index
      %161 = vector.load %arg12[%c0_195, %c4, %c0_196] : memref<16x16x16xf32, #tpu.memory_space<vmem>>, vector<16x1x16xf32>
      %162 = vector.shape_cast %161 : vector<16x1x16xf32> to vector<16x16xf32>
      %163 = vector.shape_cast %160 : vector<16x16xf32> to vector<16x1x16xf32>
      tpu.vector_store %arg12[%c0_195, %c4, %c0_196], %163 {strides = array<i32>} : memref<16x16x16xf32, #tpu.memory_space<vmem>>, vector<16x1x16xf32>,
      %c0_197 = arith.constant 0 : index
      %c109 = arith.constant 109 : index
      %164 = vector.load %arg11[%c0_197, %c109] : memref<16x324xf32, #tpu.memory_space<vmem>>, vector<16x16xf32>
      %c0_198 = arith.constant 0 : index
      %c5 = arith.constant 5 : index
      %c0_199 = arith.constant 0 : index
      %165 = vector.load %arg12[%c0_198, %c5, %c0_199] : memref<16x16x16xf32, #tpu.memory_space<vmem>>, vector<16x1x16xf32>
      %166 = vector.shape_cast %165 : vector<16x1x16xf32> to vector<16x16xf32>
      %167 = vector.shape_cast %164 : vector<16x16xf32> to vector<16x1x16xf32>
      tpu.vector_store %arg12[%c0_198, %c5, %c0_199], %167 {strides = array<i32>} : memref<16x16x16xf32, #tpu.memory_space<vmem>>, vector<16x1x16xf32>,
      %c0_200 = arith.constant 0 : index
      %c127 = arith.constant 127 : index
      %168 = vector.load %arg11[%c0_200, %c127] : memref<16x324xf32, #tpu.memory_space<vmem>>, vector<16x16xf32>
      %c0_201 = arith.constant 0 : index
      %c6 = arith.constant 6 : index
      %c0_202 = arith.constant 0 : index
      %169 = vector.load %arg12[%c0_201, %c6, %c0_202] : memref<16x16x16xf32, #tpu.memory_space<vmem>>, vector<16x1x16xf32>
      %170 = vector.shape_cast %169 : vector<16x1x16xf32> to vector<16x16xf32>
      %171 = vector.shape_cast %168 : vector<16x16xf32> to vector<16x1x16xf32>
      tpu.vector_store %arg12[%c0_201, %c6, %c0_202], %171 {strides = array<i32>} : memref<16x16x16xf32, #tpu.memory_space<vmem>>, vector<16x1x16xf32>,
      %c0_203 = arith.constant 0 : index
      %c145 = arith.constant 145 : index
      %172 = vector.load %arg11[%c0_203, %c145] : memref<16x324xf32, #tpu.memory_space<vmem>>, vector<16x16xf32>
      %c0_204 = arith.constant 0 : index
      %c7 = arith.constant 7 : index
      %c0_205 = arith.constant 0 : index
      %173 = vector.load %arg12[%c0_204, %c7, %c0_205] : memref<16x16x16xf32, #tpu.memory_space<vmem>>, vector<16x1x16xf32>
      %174 = vector.shape_cast %173 : vector<16x1x16xf32> to vector<16x16xf32>
      %175 = vector.shape_cast %172 : vector<16x16xf32> to vector<16x1x16xf32>
      tpu.vector_store %arg12[%c0_204, %c7, %c0_205], %175 {strides = array<i32>} : memref<16x16x16xf32, #tpu.memory_space<vmem>>, vector<16x1x16xf32>,
      %c0_206 = arith.constant 0 : index
      %c163 = arith.constant 163 : index
      %176 = vector.load %arg11[%c0_206, %c163] : memref<16x324xf32, #tpu.memory_space<vmem>>, vector<16x16xf32>
      %c0_207 = arith.constant 0 : index
      %c8 = arith.constant 8 : index
      %c0_208 = arith.constant 0 : index
      %177 = vector.load %arg12[%c0_207, %c8, %c0_208] : memref<16x16x16xf32, #tpu.memory_space<vmem>>, vector<16x1x16xf32>
      %178 = vector.shape_cast %177 : vector<16x1x16xf32> to vector<16x16xf32>
      %179 = vector.shape_cast %176 : vector<16x16xf32> to vector<16x1x16xf32>
      tpu.vector_store %arg12[%c0_207, %c8, %c0_208], %179 {strides = array<i32>} : memref<16x16x16xf32, #tpu.memory_space<vmem>>, vector<16x1x16xf32>,
      %c0_209 = arith.constant 0 : index
      %c181 = arith.constant 181 : index
      %180 = vector.load %arg11[%c0_209, %c181] : memref<16x324xf32, #tpu.memory_space<vmem>>, vector<16x16xf32>
      %c0_210 = arith.constant 0 : index
      %c9 = arith.constant 9 : index
      %c0_211 = arith.constant 0 : index
      %181 = vector.load %arg12[%c0_210, %c9, %c0_211] : memref<16x16x16xf32, #tpu.memory_space<vmem>>, vector<16x1x16xf32>
      %182 = vector.shape_cast %181 : vector<16x1x16xf32> to vector<16x16xf32>
      %183 = vector.shape_cast %180 : vector<16x16xf32> to vector<16x1x16xf32>
      tpu.vector_store %arg12[%c0_210, %c9, %c0_211], %183 {strides = array<i32>} : memref<16x16x16xf32, #tpu.memory_space<vmem>>, vector<16x1x16xf32>,
      %c0_212 = arith.constant 0 : index
      %c199 = arith.constant 199 : index
      %184 = vector.load %arg11[%c0_212, %c199] : memref<16x324xf32, #tpu.memory_space<vmem>>, vector<16x16xf32>
      %c0_213 = arith.constant 0 : index
      %c10 = arith.constant 10 : index
      %c0_214 = arith.constant 0 : index
      %185 = vector.load %arg12[%c0_213, %c10, %c0_214] : memref<16x16x16xf32, #tpu.memory_space<vmem>>, vector<16x1x16xf32>
      %186 = vector.shape_cast %185 : vector<16x1x16xf32> to vector<16x16xf32>
      %187 = vector.shape_cast %184 : vector<16x16xf32> to vector<16x1x16xf32>
      tpu.vector_store %arg12[%c0_213, %c10, %c0_214], %187 {strides = array<i32>} : memref<16x16x16xf32, #tpu.memory_space<vmem>>, vector<16x1x16xf32>,
      %c0_215 = arith.constant 0 : index
      %c217 = arith.constant 217 : index
      %188 = vector.load %arg11[%c0_215, %c217] : memref<16x324xf32, #tpu.memory_space<vmem>>, vector<16x16xf32>
      %c0_216 = arith.constant 0 : index
      %c11 = arith.constant 11 : index
      %c0_217 = arith.constant 0 : index
      %189 = vector.load %arg12[%c0_216, %c11, %c0_217] : memref<16x16x16xf32, #tpu.memory_space<vmem>>, vector<16x1x16xf32>
      %190 = vector.shape_cast %189 : vector<16x1x16xf32> to vector<16x16xf32>
      %191 = vector.shape_cast %188 : vector<16x16xf32> to vector<16x1x16xf32>
      tpu.vector_store %arg12[%c0_216, %c11, %c0_217], %191 {strides = array<i32>} : memref<16x16x16xf32, #tpu.memory_space<vmem>>, vector<16x1x16xf32>,
      %c0_218 = arith.constant 0 : index
      %c235 = arith.constant 235 : index
      %192 = vector.load %arg11[%c0_218, %c235] : memref<16x324xf32, #tpu.memory_space<vmem>>, vector<16x16xf32>
      %c0_219 = arith.constant 0 : index
      %c12 = arith.constant 12 : index
      %c0_220 = arith.constant 0 : index
      %193 = vector.load %arg12[%c0_219, %c12, %c0_220] : memref<16x16x16xf32, #tpu.memory_space<vmem>>, vector<16x1x16xf32>
      %194 = vector.shape_cast %193 : vector<16x1x16xf32> to vector<16x16xf32>
      %195 = vector.shape_cast %192 : vector<16x16xf32> to vector<16x1x16xf32>
      tpu.vector_store %arg12[%c0_219, %c12, %c0_220], %195 {strides = array<i32>} : memref<16x16x16xf32, #tpu.memory_space<vmem>>, vector<16x1x16xf32>,
      %c0_221 = arith.constant 0 : index
      %c253 = arith.constant 253 : index
      %196 = vector.load %arg11[%c0_221, %c253] : memref<16x324xf32, #tpu.memory_space<vmem>>, vector<16x16xf32>
      %c0_222 = arith.constant 0 : index
      %c13 = arith.constant 13 : index
      %c0_223 = arith.constant 0 : index
      %197 = vector.load %arg12[%c0_222, %c13, %c0_223] : memref<16x16x16xf32, #tpu.memory_space<vmem>>, vector<16x1x16xf32>
      %198 = vector.shape_cast %197 : vector<16x1x16xf32> to vector<16x16xf32>
      %199 = vector.shape_cast %196 : vector<16x16xf32> to vector<16x1x16xf32>
      tpu.vector_store %arg12[%c0_222, %c13, %c0_223], %199 {strides = array<i32>} : memref<16x16x16xf32, #tpu.memory_space<vmem>>, vector<16x1x16xf32>,
      %c0_224 = arith.constant 0 : index
      %c271 = arith.constant 271 : index
      %200 = vector.load %arg11[%c0_224, %c271] : memref<16x324xf32, #tpu.memory_space<vmem>>, vector<16x16xf32>
      %c0_225 = arith.constant 0 : index
      %c14 = arith.constant 14 : index
      %c0_226 = arith.constant 0 : index
      %201 = vector.load %arg12[%c0_225, %c14, %c0_226] : memref<16x16x16xf32, #tpu.memory_space<vmem>>, vector<16x1x16xf32>
      %202 = vector.shape_cast %201 : vector<16x1x16xf32> to vector<16x16xf32>
      %203 = vector.shape_cast %200 : vector<16x16xf32> to vector<16x1x16xf32>
      tpu.vector_store %arg12[%c0_225, %c14, %c0_226], %203 {strides = array<i32>} : memref<16x16x16xf32, #tpu.memory_space<vmem>>, vector<16x1x16xf32>,
      %c0_227 = arith.constant 0 : index
      %c289 = arith.constant 289 : index
      %204 = vector.load %arg11[%c0_227, %c289] : memref<16x324xf32, #tpu.memory_space<vmem>>, vector<16x16xf32>
      %c0_228 = arith.constant 0 : index
      %c15 = arith.constant 15 : index
      %c0_229 = arith.constant 0 : index
      %205 = vector.load %arg12[%c0_228, %c15, %c0_229] : memref<16x16x16xf32, #tpu.memory_space<vmem>>, vector<16x1x16xf32>
      %206 = vector.shape_cast %205 : vector<16x1x16xf32> to vector<16x16xf32>
      %207 = vector.shape_cast %204 : vector<16x16xf32> to vector<16x1x16xf32>
      tpu.vector_store %arg12[%c0_228, %c15, %c0_229], %207 {strides = array<i32>} : memref<16x16x16xf32, #tpu.memory_space<vmem>>, vector<16x1x16xf32>,
      %c0_230 = arith.constant 0 : index
      %c0_231 = arith.constant 0 : index
      %c0_232 = arith.constant 0 : index
      %208 = vector.load %arg12[%c0_230, %c0_231, %c0_232] : memref<16x16x16xf32, #tpu.memory_space<vmem>>, vector<16x16x16xf32>
      %209 = vector.shape_cast %208 : vector<16x16x16xf32> to vector<256x16xf32>
      %cst_233 = arith.constant dense<0.000000e+00> : vector<256x128xf32>
      %210 = tpu.matmul %209, %2, %cst_233 {dimension_numbers = #tpu.dot_dimension_numbers<[1], [0], [0], [1], [0, 0, 1, 1], [], []>} : vector<256x16xf32>, vector<16x128xf32>, vector<256x128xf32> -> vector<256x128xf32>
      %211 = vector.broadcast %3 : vector<1x128xf32> to vector<256x128xf32>
      %212 = arith.addf %210, %211 : vector<256x128xf32>
      %cst_234 = arith.constant 0.000000e+00 : f32
      %213 = vector.broadcast %cst_234 : f32 to vector<256x128xf32>
      %214 = arith.maximumf %212, %213 : vector<256x128xf32>
      %cst_235 = arith.constant dense<0.000000e+00> : vector<256x16xf32>
      %215 = tpu.matmul %214, %4, %cst_235 {dimension_numbers = #tpu.dot_dimension_numbers<[1], [0], [0], [1], [0, 0, 1, 1], [], []>} : vector<256x128xf32>, vector<128x16xf32>, vector<256x16xf32> -> vector<256x16xf32>
      %216 = vector.broadcast %5 : vector<1x16xf32> to vector<256x16xf32>
      %217 = arith.addf %215, %216 : vector<256x16xf32>
      %218 = vector.extract_strided_slice %217 {offsets = [0, 0], sizes = [16, 16], strides = [1, 1]} : vector<256x16xf32> to vector<16x16xf32>
      %c0_236 = arith.constant 0 : index
      %c0_237 = arith.constant 0 : index
      %c0_238 = arith.constant 0 : index
      %219 = vector.load %arg13[%c0_236, %c0_237, %c0_238] : memref<16x16x16xf32, #tpu.memory_space<vmem>>, vector<1x16x16xf32>
      %220 = vector.shape_cast %219 : vector<1x16x16xf32> to vector<16x16xf32>
      %221 = vector.shape_cast %218 : vector<16x16xf32> to vector<1x16x16xf32>
      tpu.vector_store %arg13[%c0_236, %c0_237, %c0_238], %221 {strides = array<i32>} : memref<16x16x16xf32, #tpu.memory_space<vmem>>, vector<1x16x16xf32>,
      %222 = vector.extract_strided_slice %217 {offsets = [16, 0], sizes = [16, 16], strides = [1, 1]} : vector<256x16xf32> to vector<16x16xf32>
      %c1_239 = arith.constant 1 : index
      %c0_240 = arith.constant 0 : index
      %c0_241 = arith.constant 0 : index
      %223 = vector.load %arg13[%c1_239, %c0_240, %c0_241] : memref<16x16x16xf32, #tpu.memory_space<vmem>>, vector<1x16x16xf32>
      %224 = vector.shape_cast %223 : vector<1x16x16xf32> to vector<16x16xf32>
      %225 = vector.shape_cast %222 : vector<16x16xf32> to vector<1x16x16xf32>
      tpu.vector_store %arg13[%c1_239, %c0_240, %c0_241], %225 {strides = array<i32>} : memref<16x16x16xf32, #tpu.memory_space<vmem>>, vector<1x16x16xf32>,
      %226 = vector.extract_strided_slice %217 {offsets = [32, 0], sizes = [16, 16], strides = [1, 1]} : vector<256x16xf32> to vector<16x16xf32>
      %c2_242 = arith.constant 2 : index
      %c0_243 = arith.constant 0 : index
      %c0_244 = arith.constant 0 : index
      %227 = vector.load %arg13[%c2_242, %c0_243, %c0_244] : memref<16x16x16xf32, #tpu.memory_space<vmem>>, vector<1x16x16xf32>
      %228 = vector.shape_cast %227 : vector<1x16x16xf32> to vector<16x16xf32>
      %229 = vector.shape_cast %226 : vector<16x16xf32> to vector<1x16x16xf32>
      tpu.vector_store %arg13[%c2_242, %c0_243, %c0_244], %229 {strides = array<i32>} : memref<16x16x16xf32, #tpu.memory_space<vmem>>, vector<1x16x16xf32>,
      %230 = vector.extract_strided_slice %217 {offsets = [48, 0], sizes = [16, 16], strides = [1, 1]} : vector<256x16xf32> to vector<16x16xf32>
      %c3_245 = arith.constant 3 : index
      %c0_246 = arith.constant 0 : index
      %c0_247 = arith.constant 0 : index
      %231 = vector.load %arg13[%c3_245, %c0_246, %c0_247] : memref<16x16x16xf32, #tpu.memory_space<vmem>>, vector<1x16x16xf32>
      %232 = vector.shape_cast %231 : vector<1x16x16xf32> to vector<16x16xf32>
      %233 = vector.shape_cast %230 : vector<16x16xf32> to vector<1x16x16xf32>
      tpu.vector_store %arg13[%c3_245, %c0_246, %c0_247], %233 {strides = array<i32>} : memref<16x16x16xf32, #tpu.memory_space<vmem>>, vector<1x16x16xf32>,
      %234 = vector.extract_strided_slice %217 {offsets = [64, 0], sizes = [16, 16], strides = [1, 1]} : vector<256x16xf32> to vector<16x16xf32>
      %c4_248 = arith.constant 4 : index
      %c0_249 = arith.constant 0 : index
      %c0_250 = arith.constant 0 : index
      %235 = vector.load %arg13[%c4_248, %c0_249, %c0_250] : memref<16x16x16xf32, #tpu.memory_space<vmem>>, vector<1x16x16xf32>
      %236 = vector.shape_cast %235 : vector<1x16x16xf32> to vector<16x16xf32>
      %237 = vector.shape_cast %234 : vector<16x16xf32> to vector<1x16x16xf32>
      tpu.vector_store %arg13[%c4_248, %c0_249, %c0_250], %237 {strides = array<i32>} : memref<16x16x16xf32, #tpu.memory_space<vmem>>, vector<1x16x16xf32>,
      %238 = vector.extract_strided_slice %217 {offsets = [80, 0], sizes = [16, 16], strides = [1, 1]} : vector<256x16xf32> to vector<16x16xf32>
      %c5_251 = arith.constant 5 : index
      %c0_252 = arith.constant 0 : index
      %c0_253 = arith.constant 0 : index
      %239 = vector.load %arg13[%c5_251, %c0_252, %c0_253] : memref<16x16x16xf32, #tpu.memory_space<vmem>>, vector<1x16x16xf32>
      %240 = vector.shape_cast %239 : vector<1x16x16xf32> to vector<16x16xf32>
      %241 = vector.shape_cast %238 : vector<16x16xf32> to vector<1x16x16xf32>
      tpu.vector_store %arg13[%c5_251, %c0_252, %c0_253], %241 {strides = array<i32>} : memref<16x16x16xf32, #tpu.memory_space<vmem>>, vector<1x16x16xf32>,
      %242 = vector.extract_strided_slice %217 {offsets = [96, 0], sizes = [16, 16], strides = [1, 1]} : vector<256x16xf32> to vector<16x16xf32>
      %c6_254 = arith.constant 6 : index
      %c0_255 = arith.constant 0 : index
      %c0_256 = arith.constant 0 : index
      %243 = vector.load %arg13[%c6_254, %c0_255, %c0_256] : memref<16x16x16xf32, #tpu.memory_space<vmem>>, vector<1x16x16xf32>
      %244 = vector.shape_cast %243 : vector<1x16x16xf32> to vector<16x16xf32>
      %245 = vector.shape_cast %242 : vector<16x16xf32> to vector<1x16x16xf32>
      tpu.vector_store %arg13[%c6_254, %c0_255, %c0_256], %245 {strides = array<i32>} : memref<16x16x16xf32, #tpu.memory_space<vmem>>, vector<1x16x16xf32>,
      %246 = vector.extract_strided_slice %217 {offsets = [112, 0], sizes = [16, 16], strides = [1, 1]} : vector<256x16xf32> to vector<16x16xf32>
      %c7_257 = arith.constant 7 : index
      %c0_258 = arith.constant 0 : index
      %c0_259 = arith.constant 0 : index
      %247 = vector.load %arg13[%c7_257, %c0_258, %c0_259] : memref<16x16x16xf32, #tpu.memory_space<vmem>>, vector<1x16x16xf32>
      %248 = vector.shape_cast %247 : vector<1x16x16xf32> to vector<16x16xf32>
      %249 = vector.shape_cast %246 : vector<16x16xf32> to vector<1x16x16xf32>
      tpu.vector_store %arg13[%c7_257, %c0_258, %c0_259], %249 {strides = array<i32>} : memref<16x16x16xf32, #tpu.memory_space<vmem>>, vector<1x16x16xf32>,
      %250 = vector.extract_strided_slice %217 {offsets = [128, 0], sizes = [16, 16], strides = [1, 1]} : vector<256x16xf32> to vector<16x16xf32>
      %c8_260 = arith.constant 8 : index
      %c0_261 = arith.constant 0 : index
      %c0_262 = arith.constant 0 : index
      %251 = vector.load %arg13[%c8_260, %c0_261, %c0_262] : memref<16x16x16xf32, #tpu.memory_space<vmem>>, vector<1x16x16xf32>
      %252 = vector.shape_cast %251 : vector<1x16x16xf32> to vector<16x16xf32>
      %253 = vector.shape_cast %250 : vector<16x16xf32> to vector<1x16x16xf32>
      tpu.vector_store %arg13[%c8_260, %c0_261, %c0_262], %253 {strides = array<i32>} : memref<16x16x16xf32, #tpu.memory_space<vmem>>, vector<1x16x16xf32>,
      %254 = vector.extract_strided_slice %217 {offsets = [144, 0], sizes = [16, 16], strides = [1, 1]} : vector<256x16xf32> to vector<16x16xf32>
      %c9_263 = arith.constant 9 : index
      %c0_264 = arith.constant 0 : index
      %c0_265 = arith.constant 0 : index
      %255 = vector.load %arg13[%c9_263, %c0_264, %c0_265] : memref<16x16x16xf32, #tpu.memory_space<vmem>>, vector<1x16x16xf32>
      %256 = vector.shape_cast %255 : vector<1x16x16xf32> to vector<16x16xf32>
      %257 = vector.shape_cast %254 : vector<16x16xf32> to vector<1x16x16xf32>
      tpu.vector_store %arg13[%c9_263, %c0_264, %c0_265], %257 {strides = array<i32>} : memref<16x16x16xf32, #tpu.memory_space<vmem>>, vector<1x16x16xf32>,
      %258 = vector.extract_strided_slice %217 {offsets = [160, 0], sizes = [16, 16], strides = [1, 1]} : vector<256x16xf32> to vector<16x16xf32>
      %c10_266 = arith.constant 10 : index
      %c0_267 = arith.constant 0 : index
      %c0_268 = arith.constant 0 : index
      %259 = vector.load %arg13[%c10_266, %c0_267, %c0_268] : memref<16x16x16xf32, #tpu.memory_space<vmem>>, vector<1x16x16xf32>
      %260 = vector.shape_cast %259 : vector<1x16x16xf32> to vector<16x16xf32>
      %261 = vector.shape_cast %258 : vector<16x16xf32> to vector<1x16x16xf32>
      tpu.vector_store %arg13[%c10_266, %c0_267, %c0_268], %261 {strides = array<i32>} : memref<16x16x16xf32, #tpu.memory_space<vmem>>, vector<1x16x16xf32>,
      %262 = vector.extract_strided_slice %217 {offsets = [176, 0], sizes = [16, 16], strides = [1, 1]} : vector<256x16xf32> to vector<16x16xf32>
      %c11_269 = arith.constant 11 : index
      %c0_270 = arith.constant 0 : index
      %c0_271 = arith.constant 0 : index
      %263 = vector.load %arg13[%c11_269, %c0_270, %c0_271] : memref<16x16x16xf32, #tpu.memory_space<vmem>>, vector<1x16x16xf32>
      %264 = vector.shape_cast %263 : vector<1x16x16xf32> to vector<16x16xf32>
      %265 = vector.shape_cast %262 : vector<16x16xf32> to vector<1x16x16xf32>
      tpu.vector_store %arg13[%c11_269, %c0_270, %c0_271], %265 {strides = array<i32>} : memref<16x16x16xf32, #tpu.memory_space<vmem>>, vector<1x16x16xf32>,
      %266 = vector.extract_strided_slice %217 {offsets = [192, 0], sizes = [16, 16], strides = [1, 1]} : vector<256x16xf32> to vector<16x16xf32>
      %c12_272 = arith.constant 12 : index
      %c0_273 = arith.constant 0 : index
      %c0_274 = arith.constant 0 : index
      %267 = vector.load %arg13[%c12_272, %c0_273, %c0_274] : memref<16x16x16xf32, #tpu.memory_space<vmem>>, vector<1x16x16xf32>
      %268 = vector.shape_cast %267 : vector<1x16x16xf32> to vector<16x16xf32>
      %269 = vector.shape_cast %266 : vector<16x16xf32> to vector<1x16x16xf32>
      tpu.vector_store %arg13[%c12_272, %c0_273, %c0_274], %269 {strides = array<i32>} : memref<16x16x16xf32, #tpu.memory_space<vmem>>, vector<1x16x16xf32>,
      %270 = vector.extract_strided_slice %217 {offsets = [208, 0], sizes = [16, 16], strides = [1, 1]} : vector<256x16xf32> to vector<16x16xf32>
      %c13_275 = arith.constant 13 : index
      %c0_276 = arith.constant 0 : index
      %c0_277 = arith.constant 0 : index
      %271 = vector.load %arg13[%c13_275, %c0_276, %c0_277] : memref<16x16x16xf32, #tpu.memory_space<vmem>>, vector<1x16x16xf32>
      %272 = vector.shape_cast %271 : vector<1x16x16xf32> to vector<16x16xf32>
      %273 = vector.shape_cast %270 : vector<16x16xf32> to vector<1x16x16xf32>
      tpu.vector_store %arg13[%c13_275, %c0_276, %c0_277], %273 {strides = array<i32>} : memref<16x16x16xf32, #tpu.memory_space<vmem>>, vector<1x16x16xf32>,
      %274 = vector.extract_strided_slice %217 {offsets = [224, 0], sizes = [16, 16], strides = [1, 1]} : vector<256x16xf32> to vector<16x16xf32>
      %c14_278 = arith.constant 14 : index
      %c0_279 = arith.constant 0 : index
      %c0_280 = arith.constant 0 : index
      %275 = vector.load %arg13[%c14_278, %c0_279, %c0_280] : memref<16x16x16xf32, #tpu.memory_space<vmem>>, vector<1x16x16xf32>
      %276 = vector.shape_cast %275 : vector<1x16x16xf32> to vector<16x16xf32>
      %277 = vector.shape_cast %274 : vector<16x16xf32> to vector<1x16x16xf32>
      tpu.vector_store %arg13[%c14_278, %c0_279, %c0_280], %277 {strides = array<i32>} : memref<16x16x16xf32, #tpu.memory_space<vmem>>, vector<1x16x16xf32>,
      %278 = vector.extract_strided_slice %217 {offsets = [240, 0], sizes = [16, 16], strides = [1, 1]} : vector<256x16xf32> to vector<16x16xf32>
      %c15_281 = arith.constant 15 : index
      %c0_282 = arith.constant 0 : index
      %c0_283 = arith.constant 0 : index
      %279 = vector.load %arg13[%c15_281, %c0_282, %c0_283] : memref<16x16x16xf32, #tpu.memory_space<vmem>>, vector<1x16x16xf32>
      %280 = vector.shape_cast %279 : vector<1x16x16xf32> to vector<16x16xf32>
      %281 = vector.shape_cast %278 : vector<16x16xf32> to vector<1x16x16xf32>
      tpu.vector_store %arg13[%c15_281, %c0_282, %c0_283], %281 {strides = array<i32>} : memref<16x16x16xf32, #tpu.memory_space<vmem>>, vector<1x16x16xf32>,
      %c0_284 = arith.constant 0 : index
      %c38_285 = arith.constant 38 : index
      %282 = vector.load %arg9[%c0_284, %c38_285] : memref<16x362xf32, #tpu.memory_space<vmem>>, vector<16x16xf32>
      %c0_286 = arith.constant 0 : index
      %c0_287 = arith.constant 0 : index
      %c0_288 = arith.constant 0 : index
      %283 = vector.load %arg13[%c0_286, %c0_287, %c0_288] : memref<16x16x16xf32, #tpu.memory_space<vmem>>, vector<16x1x16xf32>
      %284 = vector.shape_cast %283 : vector<16x1x16xf32> to vector<16x16xf32>
      %285 = vector.extract_strided_slice %284 {offsets = [4, 0], sizes = [1, 16], strides = [1, 1]} : vector<16x16xf32> to vector<1x16xf32>
      %cst_289 = arith.constant 5.000000e-02 : f32
      %286 = vector.broadcast %cst_289 : f32 to vector<1x16xf32>
      %287 = arith.cmpf ogt, %285, %286 : vector<1x16xf32>
      %288 = arith.extui %287 : vector<1x16xi1> to vector<1x16xi32>
      %289 = arith.sitofp %288 : vector<1x16xi32> to vector<1x16xf32>
      %290 = arith.addf %282, %284 : vector<16x16xf32>
      %291 = vector.broadcast %289 : vector<1x16xf32> to vector<16x16xf32>
      %292 = arith.mulf %290, %291 : vector<16x16xf32>
      %c0_290 = arith.constant 0 : index
      %c38_291 = arith.constant 38 : index
      %293 = vector.load %arg9[%c0_290, %c38_291] : memref<16x362xf32, #tpu.memory_space<vmem>>, vector<16x16xf32>
      tpu.vector_store %arg9[%c0_290, %c38_291], %292 {strides = array<i32>} : memref<16x362xf32, #tpu.memory_space<vmem>>, vector<16x16xf32>,
      %c0_292 = arith.constant 0 : index
      %c56_293 = arith.constant 56 : index
      %294 = vector.load %arg9[%c0_292, %c56_293] : memref<16x362xf32, #tpu.memory_space<vmem>>, vector<16x16xf32>
      %c0_294 = arith.constant 0 : index
      %c1_295 = arith.constant 1 : index
      %c0_296 = arith.constant 0 : index
      %295 = vector.load %arg13[%c0_294, %c1_295, %c0_296] : memref<16x16x16xf32, #tpu.memory_space<vmem>>, vector<16x1x16xf32>
      %296 = vector.shape_cast %295 : vector<16x1x16xf32> to vector<16x16xf32>
      %297 = vector.extract_strided_slice %296 {offsets = [4, 0], sizes = [1, 16], strides = [1, 1]} : vector<16x16xf32> to vector<1x16xf32>
      %cst_297 = arith.constant 5.000000e-02 : f32
      %298 = vector.broadcast %cst_297 : f32 to vector<1x16xf32>
      %299 = arith.cmpf ogt, %297, %298 : vector<1x16xf32>
      %300 = arith.extui %299 : vector<1x16xi1> to vector<1x16xi32>
      %301 = arith.sitofp %300 : vector<1x16xi32> to vector<1x16xf32>
      %302 = arith.addf %294, %296 : vector<16x16xf32>
      %303 = vector.broadcast %301 : vector<1x16xf32> to vector<16x16xf32>
      %304 = arith.mulf %302, %303 : vector<16x16xf32>
      %c0_298 = arith.constant 0 : index
      %c56_299 = arith.constant 56 : index
      %305 = vector.load %arg9[%c0_298, %c56_299] : memref<16x362xf32, #tpu.memory_space<vmem>>, vector<16x16xf32>
      tpu.vector_store %arg9[%c0_298, %c56_299], %304 {strides = array<i32>} : memref<16x362xf32, #tpu.memory_space<vmem>>, vector<16x16xf32>,
      %c0_300 = arith.constant 0 : index
      %c74_301 = arith.constant 74 : index
      %306 = vector.load %arg9[%c0_300, %c74_301] : memref<16x362xf32, #tpu.memory_space<vmem>>, vector<16x16xf32>
      %c0_302 = arith.constant 0 : index
      %c2_303 = arith.constant 2 : index
      %c0_304 = arith.constant 0 : index
      %307 = vector.load %arg13[%c0_302, %c2_303, %c0_304] : memref<16x16x16xf32, #tpu.memory_space<vmem>>, vector<16x1x16xf32>
      %308 = vector.shape_cast %307 : vector<16x1x16xf32> to vector<16x16xf32>
      %309 = vector.extract_strided_slice %308 {offsets = [4, 0], sizes = [1, 16], strides = [1, 1]} : vector<16x16xf32> to vector<1x16xf32>
      %cst_305 = arith.constant 5.000000e-02 : f32
      %310 = vector.broadcast %cst_305 : f32 to vector<1x16xf32>
      %311 = arith.cmpf ogt, %309, %310 : vector<1x16xf32>
      %312 = arith.extui %311 : vector<1x16xi1> to vector<1x16xi32>
      %313 = arith.sitofp %312 : vector<1x16xi32> to vector<1x16xf32>
      %314 = arith.addf %306, %308 : vector<16x16xf32>
      %315 = vector.broadcast %313 : vector<1x16xf32> to vector<16x16xf32>
      %316 = arith.mulf %314, %315 : vector<16x16xf32>
      %c0_306 = arith.constant 0 : index
      %c74_307 = arith.constant 74 : index
      %317 = vector.load %arg9[%c0_306, %c74_307] : memref<16x362xf32, #tpu.memory_space<vmem>>, vector<16x16xf32>
      tpu.vector_store %arg9[%c0_306, %c74_307], %316 {strides = array<i32>} : memref<16x362xf32, #tpu.memory_space<vmem>>, vector<16x16xf32>,
      %c0_308 = arith.constant 0 : index
      %c92_309 = arith.constant 92 : index
      %318 = vector.load %arg9[%c0_308, %c92_309] : memref<16x362xf32, #tpu.memory_space<vmem>>, vector<16x16xf32>
      %c0_310 = arith.constant 0 : index
      %c3_311 = arith.constant 3 : index
      %c0_312 = arith.constant 0 : index
      %319 = vector.load %arg13[%c0_310, %c3_311, %c0_312] : memref<16x16x16xf32, #tpu.memory_space<vmem>>, vector<16x1x16xf32>
      %320 = vector.shape_cast %319 : vector<16x1x16xf32> to vector<16x16xf32>
      %321 = vector.extract_strided_slice %320 {offsets = [4, 0], sizes = [1, 16], strides = [1, 1]} : vector<16x16xf32> to vector<1x16xf32>
      %cst_313 = arith.constant 5.000000e-02 : f32
      %322 = vector.broadcast %cst_313 : f32 to vector<1x16xf32>
      %323 = arith.cmpf ogt, %321, %322 : vector<1x16xf32>
      %324 = arith.extui %323 : vector<1x16xi1> to vector<1x16xi32>
      %325 = arith.sitofp %324 : vector<1x16xi32> to vector<1x16xf32>
      %326 = arith.addf %318, %320 : vector<16x16xf32>
      %327 = vector.broadcast %325 : vector<1x16xf32> to vector<16x16xf32>
      %328 = arith.mulf %326, %327 : vector<16x16xf32>
      %c0_314 = arith.constant 0 : index
      %c92_315 = arith.constant 92 : index
      %329 = vector.load %arg9[%c0_314, %c92_315] : memref<16x362xf32, #tpu.memory_space<vmem>>, vector<16x16xf32>
      tpu.vector_store %arg9[%c0_314, %c92_315], %328 {strides = array<i32>} : memref<16x362xf32, #tpu.memory_space<vmem>>, vector<16x16xf32>,
      %c0_316 = arith.constant 0 : index
      %c110_317 = arith.constant 110 : index
      %330 = vector.load %arg9[%c0_316, %c110_317] : memref<16x362xf32, #tpu.memory_space<vmem>>, vector<16x16xf32>
      %c0_318 = arith.constant 0 : index
      %c4_319 = arith.constant 4 : index
      %c0_320 = arith.constant 0 : index
      %331 = vector.load %arg13[%c0_318, %c4_319, %c0_320] : memref<16x16x16xf32, #tpu.memory_space<vmem>>, vector<16x1x16xf32>
      %332 = vector.shape_cast %331 : vector<16x1x16xf32> to vector<16x16xf32>
      %333 = vector.extract_strided_slice %332 {offsets = [4, 0], sizes = [1, 16], strides = [1, 1]} : vector<16x16xf32> to vector<1x16xf32>
      %cst_321 = arith.constant 5.000000e-02 : f32
      %334 = vector.broadcast %cst_321 : f32 to vector<1x16xf32>
      %335 = arith.cmpf ogt, %333, %334 : vector<1x16xf32>
      %336 = arith.extui %335 : vector<1x16xi1> to vector<1x16xi32>
      %337 = arith.sitofp %336 : vector<1x16xi32> to vector<1x16xf32>
      %338 = arith.addf %330, %332 : vector<16x16xf32>
      %339 = vector.broadcast %337 : vector<1x16xf32> to vector<16x16xf32>
      %340 = arith.mulf %338, %339 : vector<16x16xf32>
      %c0_322 = arith.constant 0 : index
      %c110_323 = arith.constant 110 : index
      %341 = vector.load %arg9[%c0_322, %c110_323] : memref<16x362xf32, #tpu.memory_space<vmem>>, vector<16x16xf32>
      tpu.vector_store %arg9[%c0_322, %c110_323], %340 {strides = array<i32>} : memref<16x362xf32, #tpu.memory_space<vmem>>, vector<16x16xf32>,
      %c0_324 = arith.constant 0 : index
      %c128_325 = arith.constant 128 : index
      %342 = vector.load %arg9[%c0_324, %c128_325] : memref<16x362xf32, #tpu.memory_space<vmem>>, vector<16x16xf32>
      %c0_326 = arith.constant 0 : index
      %c5_327 = arith.constant 5 : index
      %c0_328 = arith.constant 0 : index
      %343 = vector.load %arg13[%c0_326, %c5_327, %c0_328] : memref<16x16x16xf32, #tpu.memory_space<vmem>>, vector<16x1x16xf32>
      %344 = vector.shape_cast %343 : vector<16x1x16xf32> to vector<16x16xf32>
      %345 = vector.extract_strided_slice %344 {offsets = [4, 0], sizes = [1, 16], strides = [1, 1]} : vector<16x16xf32> to vector<1x16xf32>
      %cst_329 = arith.constant 5.000000e-02 : f32
      %346 = vector.broadcast %cst_329 : f32 to vector<1x16xf32>
      %347 = arith.cmpf ogt, %345, %346 : vector<1x16xf32>
      %348 = arith.extui %347 : vector<1x16xi1> to vector<1x16xi32>
      %349 = arith.sitofp %348 : vector<1x16xi32> to vector<1x16xf32>
      %350 = arith.addf %342, %344 : vector<16x16xf32>
      %351 = vector.broadcast %349 : vector<1x16xf32> to vector<16x16xf32>
      %352 = arith.mulf %350, %351 : vector<16x16xf32>
      %c0_330 = arith.constant 0 : index
      %c128_331 = arith.constant 128 : index
      %353 = vector.load %arg9[%c0_330, %c128_331] : memref<16x362xf32, #tpu.memory_space<vmem>>, vector<16x16xf32>
      tpu.vector_store %arg9[%c0_330, %c128_331], %352 {strides = array<i32>} : memref<16x362xf32, #tpu.memory_space<vmem>>, vector<16x16xf32>,
      %c0_332 = arith.constant 0 : index
      %c146_333 = arith.constant 146 : index
      %354 = vector.load %arg9[%c0_332, %c146_333] : memref<16x362xf32, #tpu.memory_space<vmem>>, vector<16x16xf32>
      %c0_334 = arith.constant 0 : index
      %c6_335 = arith.constant 6 : index
      %c0_336 = arith.constant 0 : index
      %355 = vector.load %arg13[%c0_334, %c6_335, %c0_336] : memref<16x16x16xf32, #tpu.memory_space<vmem>>, vector<16x1x16xf32>
      %356 = vector.shape_cast %355 : vector<16x1x16xf32> to vector<16x16xf32>
      %357 = vector.extract_strided_slice %356 {offsets = [4, 0], sizes = [1, 16], strides = [1, 1]} : vector<16x16xf32> to vector<1x16xf32>
      %cst_337 = arith.constant 5.000000e-02 : f32
      %358 = vector.broadcast %cst_337 : f32 to vector<1x16xf32>
      %359 = arith.cmpf ogt, %357, %358 : vector<1x16xf32>
      %360 = arith.extui %359 : vector<1x16xi1> to vector<1x16xi32>
      %361 = arith.sitofp %360 : vector<1x16xi32> to vector<1x16xf32>
      %362 = arith.addf %354, %356 : vector<16x16xf32>
      %363 = vector.broadcast %361 : vector<1x16xf32> to vector<16x16xf32>
      %364 = arith.mulf %362, %363 : vector<16x16xf32>
      %c0_338 = arith.constant 0 : index
      %c146_339 = arith.constant 146 : index
      %365 = vector.load %arg9[%c0_338, %c146_339] : memref<16x362xf32, #tpu.memory_space<vmem>>, vector<16x16xf32>
      tpu.vector_store %arg9[%c0_338, %c146_339], %364 {strides = array<i32>} : memref<16x362xf32, #tpu.memory_space<vmem>>, vector<16x16xf32>,
      %c0_340 = arith.constant 0 : index
      %c164_341 = arith.constant 164 : index
      %366 = vector.load %arg9[%c0_340, %c164_341] : memref<16x362xf32, #tpu.memory_space<vmem>>, vector<16x16xf32>
      %c0_342 = arith.constant 0 : index
      %c7_343 = arith.constant 7 : index
      %c0_344 = arith.constant 0 : index
      %367 = vector.load %arg13[%c0_342, %c7_343, %c0_344] : memref<16x16x16xf32, #tpu.memory_space<vmem>>, vector<16x1x16xf32>
      %368 = vector.shape_cast %367 : vector<16x1x16xf32> to vector<16x16xf32>
      %369 = vector.extract_strided_slice %368 {offsets = [4, 0], sizes = [1, 16], strides = [1, 1]} : vector<16x16xf32> to vector<1x16xf32>
      %cst_345 = arith.constant 5.000000e-02 : f32
      %370 = vector.broadcast %cst_345 : f32 to vector<1x16xf32>
      %371 = arith.cmpf ogt, %369, %370 : vector<1x16xf32>
      %372 = arith.extui %371 : vector<1x16xi1> to vector<1x16xi32>
      %373 = arith.sitofp %372 : vector<1x16xi32> to vector<1x16xf32>
      %374 = arith.addf %366, %368 : vector<16x16xf32>
      %375 = vector.broadcast %373 : vector<1x16xf32> to vector<16x16xf32>
      %376 = arith.mulf %374, %375 : vector<16x16xf32>
      %c0_346 = arith.constant 0 : index
      %c164_347 = arith.constant 164 : index
      %377 = vector.load %arg9[%c0_346, %c164_347] : memref<16x362xf32, #tpu.memory_space<vmem>>, vector<16x16xf32>
      tpu.vector_store %arg9[%c0_346, %c164_347], %376 {strides = array<i32>} : memref<16x362xf32, #tpu.memory_space<vmem>>, vector<16x16xf32>,
      %c0_348 = arith.constant 0 : index
      %c182_349 = arith.constant 182 : index
      %378 = vector.load %arg9[%c0_348, %c182_349] : memref<16x362xf32, #tpu.memory_space<vmem>>, vector<16x16xf32>
      %c0_350 = arith.constant 0 : index
      %c8_351 = arith.constant 8 : index
      %c0_352 = arith.constant 0 : index
      %379 = vector.load %arg13[%c0_350, %c8_351, %c0_352] : memref<16x16x16xf32, #tpu.memory_space<vmem>>, vector<16x1x16xf32>
      %380 = vector.shape_cast %379 : vector<16x1x16xf32> to vector<16x16xf32>
      %381 = vector.extract_strided_slice %380 {offsets = [4, 0], sizes = [1, 16], strides = [1, 1]} : vector<16x16xf32> to vector<1x16xf32>
      %cst_353 = arith.constant 5.000000e-02 : f32
      %382 = vector.broadcast %cst_353 : f32 to vector<1x16xf32>
      %383 = arith.cmpf ogt, %381, %382 : vector<1x16xf32>
      %384 = arith.extui %383 : vector<1x16xi1> to vector<1x16xi32>
      %385 = arith.sitofp %384 : vector<1x16xi32> to vector<1x16xf32>
      %386 = arith.addf %378, %380 : vector<16x16xf32>
      %387 = vector.broadcast %385 : vector<1x16xf32> to vector<16x16xf32>
      %388 = arith.mulf %386, %387 : vector<16x16xf32>
      %c0_354 = arith.constant 0 : index
      %c182_355 = arith.constant 182 : index
      %389 = vector.load %arg9[%c0_354, %c182_355] : memref<16x362xf32, #tpu.memory_space<vmem>>, vector<16x16xf32>
      tpu.vector_store %arg9[%c0_354, %c182_355], %388 {strides = array<i32>} : memref<16x362xf32, #tpu.memory_space<vmem>>, vector<16x16xf32>,
      %c0_356 = arith.constant 0 : index
      %c200_357 = arith.constant 200 : index
      %390 = vector.load %arg9[%c0_356, %c200_357] : memref<16x362xf32, #tpu.memory_space<vmem>>, vector<16x16xf32>
      %c0_358 = arith.constant 0 : index
      %c9_359 = arith.constant 9 : index
      %c0_360 = arith.constant 0 : index
      %391 = vector.load %arg13[%c0_358, %c9_359, %c0_360] : memref<16x16x16xf32, #tpu.memory_space<vmem>>, vector<16x1x16xf32>
      %392 = vector.shape_cast %391 : vector<16x1x16xf32> to vector<16x16xf32>
      %393 = vector.extract_strided_slice %392 {offsets = [4, 0], sizes = [1, 16], strides = [1, 1]} : vector<16x16xf32> to vector<1x16xf32>
      %cst_361 = arith.constant 5.000000e-02 : f32
      %394 = vector.broadcast %cst_361 : f32 to vector<1x16xf32>
      %395 = arith.cmpf ogt, %393, %394 : vector<1x16xf32>
      %396 = arith.extui %395 : vector<1x16xi1> to vector<1x16xi32>
      %397 = arith.sitofp %396 : vector<1x16xi32> to vector<1x16xf32>
      %398 = arith.addf %390, %392 : vector<16x16xf32>
      %399 = vector.broadcast %397 : vector<1x16xf32> to vector<16x16xf32>
      %400 = arith.mulf %398, %399 : vector<16x16xf32>
      %c0_362 = arith.constant 0 : index
      %c200_363 = arith.constant 200 : index
      %401 = vector.load %arg9[%c0_362, %c200_363] : memref<16x362xf32, #tpu.memory_space<vmem>>, vector<16x16xf32>
      tpu.vector_store %arg9[%c0_362, %c200_363], %400 {strides = array<i32>} : memref<16x362xf32, #tpu.memory_space<vmem>>, vector<16x16xf32>,
      %c0_364 = arith.constant 0 : index
      %c218_365 = arith.constant 218 : index
      %402 = vector.load %arg9[%c0_364, %c218_365] : memref<16x362xf32, #tpu.memory_space<vmem>>, vector<16x16xf32>
      %c0_366 = arith.constant 0 : index
      %c10_367 = arith.constant 10 : index
      %c0_368 = arith.constant 0 : index
      %403 = vector.load %arg13[%c0_366, %c10_367, %c0_368] : memref<16x16x16xf32, #tpu.memory_space<vmem>>, vector<16x1x16xf32>
      %404 = vector.shape_cast %403 : vector<16x1x16xf32> to vector<16x16xf32>
      %405 = vector.extract_strided_slice %404 {offsets = [4, 0], sizes = [1, 16], strides = [1, 1]} : vector<16x16xf32> to vector<1x16xf32>
      %cst_369 = arith.constant 5.000000e-02 : f32
      %406 = vector.broadcast %cst_369 : f32 to vector<1x16xf32>
      %407 = arith.cmpf ogt, %405, %406 : vector<1x16xf32>
      %408 = arith.extui %407 : vector<1x16xi1> to vector<1x16xi32>
      %409 = arith.sitofp %408 : vector<1x16xi32> to vector<1x16xf32>
      %410 = arith.addf %402, %404 : vector<16x16xf32>
      %411 = vector.broadcast %409 : vector<1x16xf32> to vector<16x16xf32>
      %412 = arith.mulf %410, %411 : vector<16x16xf32>
      %c0_370 = arith.constant 0 : index
      %c218_371 = arith.constant 218 : index
      %413 = vector.load %arg9[%c0_370, %c218_371] : memref<16x362xf32, #tpu.memory_space<vmem>>, vector<16x16xf32>
      tpu.vector_store %arg9[%c0_370, %c218_371], %412 {strides = array<i32>} : memref<16x362xf32, #tpu.memory_space<vmem>>, vector<16x16xf32>,
      %c0_372 = arith.constant 0 : index
      %c236_373 = arith.constant 236 : index
      %414 = vector.load %arg9[%c0_372, %c236_373] : memref<16x362xf32, #tpu.memory_space<vmem>>, vector<16x16xf32>
      %c0_374 = arith.constant 0 : index
      %c11_375 = arith.constant 11 : index
      %c0_376 = arith.constant 0 : index
      %415 = vector.load %arg13[%c0_374, %c11_375, %c0_376] : memref<16x16x16xf32, #tpu.memory_space<vmem>>, vector<16x1x16xf32>
      %416 = vector.shape_cast %415 : vector<16x1x16xf32> to vector<16x16xf32>
      %417 = vector.extract_strided_slice %416 {offsets = [4, 0], sizes = [1, 16], strides = [1, 1]} : vector<16x16xf32> to vector<1x16xf32>
      %cst_377 = arith.constant 5.000000e-02 : f32
      %418 = vector.broadcast %cst_377 : f32 to vector<1x16xf32>
      %419 = arith.cmpf ogt, %417, %418 : vector<1x16xf32>
      %420 = arith.extui %419 : vector<1x16xi1> to vector<1x16xi32>
      %421 = arith.sitofp %420 : vector<1x16xi32> to vector<1x16xf32>
      %422 = arith.addf %414, %416 : vector<16x16xf32>
      %423 = vector.broadcast %421 : vector<1x16xf32> to vector<16x16xf32>
      %424 = arith.mulf %422, %423 : vector<16x16xf32>
      %c0_378 = arith.constant 0 : index
      %c236_379 = arith.constant 236 : index
      %425 = vector.load %arg9[%c0_378, %c236_379] : memref<16x362xf32, #tpu.memory_space<vmem>>, vector<16x16xf32>
      tpu.vector_store %arg9[%c0_378, %c236_379], %424 {strides = array<i32>} : memref<16x362xf32, #tpu.memory_space<vmem>>, vector<16x16xf32>,
      %c0_380 = arith.constant 0 : index
      %c254_381 = arith.constant 254 : index
      %426 = vector.load %arg9[%c0_380, %c254_381] : memref<16x362xf32, #tpu.memory_space<vmem>>, vector<16x16xf32>
      %c0_382 = arith.constant 0 : index
      %c12_383 = arith.constant 12 : index
      %c0_384 = arith.constant 0 : index
      %427 = vector.load %arg13[%c0_382, %c12_383, %c0_384] : memref<16x16x16xf32, #tpu.memory_space<vmem>>, vector<16x1x16xf32>
      %428 = vector.shape_cast %427 : vector<16x1x16xf32> to vector<16x16xf32>
      %429 = vector.extract_strided_slice %428 {offsets = [4, 0], sizes = [1, 16], strides = [1, 1]} : vector<16x16xf32> to vector<1x16xf32>
      %cst_385 = arith.constant 5.000000e-02 : f32
      %430 = vector.broadcast %cst_385 : f32 to vector<1x16xf32>
      %431 = arith.cmpf ogt, %429, %430 : vector<1x16xf32>
      %432 = arith.extui %431 : vector<1x16xi1> to vector<1x16xi32>
      %433 = arith.sitofp %432 : vector<1x16xi32> to vector<1x16xf32>
      %434 = arith.addf %426, %428 : vector<16x16xf32>
      %435 = vector.broadcast %433 : vector<1x16xf32> to vector<16x16xf32>
      %436 = arith.mulf %434, %435 : vector<16x16xf32>
      %c0_386 = arith.constant 0 : index
      %c254_387 = arith.constant 254 : index
      %437 = vector.load %arg9[%c0_386, %c254_387] : memref<16x362xf32, #tpu.memory_space<vmem>>, vector<16x16xf32>
      tpu.vector_store %arg9[%c0_386, %c254_387], %436 {strides = array<i32>} : memref<16x362xf32, #tpu.memory_space<vmem>>, vector<16x16xf32>,
      %c0_388 = arith.constant 0 : index
      %c272_389 = arith.constant 272 : index
      %438 = vector.load %arg9[%c0_388, %c272_389] : memref<16x362xf32, #tpu.memory_space<vmem>>, vector<16x16xf32>
      %c0_390 = arith.constant 0 : index
      %c13_391 = arith.constant 13 : index
      %c0_392 = arith.constant 0 : index
      %439 = vector.load %arg13[%c0_390, %c13_391, %c0_392] : memref<16x16x16xf32, #tpu.memory_space<vmem>>, vector<16x1x16xf32>
      %440 = vector.shape_cast %439 : vector<16x1x16xf32> to vector<16x16xf32>
      %441 = vector.extract_strided_slice %440 {offsets = [4, 0], sizes = [1, 16], strides = [1, 1]} : vector<16x16xf32> to vector<1x16xf32>
      %cst_393 = arith.constant 5.000000e-02 : f32
      %442 = vector.broadcast %cst_393 : f32 to vector<1x16xf32>
      %443 = arith.cmpf ogt, %441, %442 : vector<1x16xf32>
      %444 = arith.extui %443 : vector<1x16xi1> to vector<1x16xi32>
      %445 = arith.sitofp %444 : vector<1x16xi32> to vector<1x16xf32>
      %446 = arith.addf %438, %440 : vector<16x16xf32>
      %447 = vector.broadcast %445 : vector<1x16xf32> to vector<16x16xf32>
      %448 = arith.mulf %446, %447 : vector<16x16xf32>
      %c0_394 = arith.constant 0 : index
      %c272_395 = arith.constant 272 : index
      %449 = vector.load %arg9[%c0_394, %c272_395] : memref<16x362xf32, #tpu.memory_space<vmem>>, vector<16x16xf32>
      tpu.vector_store %arg9[%c0_394, %c272_395], %448 {strides = array<i32>} : memref<16x362xf32, #tpu.memory_space<vmem>>, vector<16x16xf32>,
      %c0_396 = arith.constant 0 : index
      %c290_397 = arith.constant 290 : index
      %450 = vector.load %arg9[%c0_396, %c290_397] : memref<16x362xf32, #tpu.memory_space<vmem>>, vector<16x16xf32>
      %c0_398 = arith.constant 0 : index
      %c14_399 = arith.constant 14 : index
      %c0_400 = arith.constant 0 : index
      %451 = vector.load %arg13[%c0_398, %c14_399, %c0_400] : memref<16x16x16xf32, #tpu.memory_space<vmem>>, vector<16x1x16xf32>
      %452 = vector.shape_cast %451 : vector<16x1x16xf32> to vector<16x16xf32>
      %453 = vector.extract_strided_slice %452 {offsets = [4, 0], sizes = [1, 16], strides = [1, 1]} : vector<16x16xf32> to vector<1x16xf32>
      %cst_401 = arith.constant 5.000000e-02 : f32
      %454 = vector.broadcast %cst_401 : f32 to vector<1x16xf32>
      %455 = arith.cmpf ogt, %453, %454 : vector<1x16xf32>
      %456 = arith.extui %455 : vector<1x16xi1> to vector<1x16xi32>
      %457 = arith.sitofp %456 : vector<1x16xi32> to vector<1x16xf32>
      %458 = arith.addf %450, %452 : vector<16x16xf32>
      %459 = vector.broadcast %457 : vector<1x16xf32> to vector<16x16xf32>
      %460 = arith.mulf %458, %459 : vector<16x16xf32>
      %c0_402 = arith.constant 0 : index
      %c290_403 = arith.constant 290 : index
      %461 = vector.load %arg9[%c0_402, %c290_403] : memref<16x362xf32, #tpu.memory_space<vmem>>, vector<16x16xf32>
      tpu.vector_store %arg9[%c0_402, %c290_403], %460 {strides = array<i32>} : memref<16x362xf32, #tpu.memory_space<vmem>>, vector<16x16xf32>,
      %c0_404 = arith.constant 0 : index
      %c308_405 = arith.constant 308 : index
      %462 = vector.load %arg9[%c0_404, %c308_405] : memref<16x362xf32, #tpu.memory_space<vmem>>, vector<16x16xf32>
      %c0_406 = arith.constant 0 : index
      %c15_407 = arith.constant 15 : index
      %c0_408 = arith.constant 0 : index
      %463 = vector.load %arg13[%c0_406, %c15_407, %c0_408] : memref<16x16x16xf32, #tpu.memory_space<vmem>>, vector<16x1x16xf32>
      %464 = vector.shape_cast %463 : vector<16x1x16xf32> to vector<16x16xf32>
      %465 = vector.extract_strided_slice %464 {offsets = [4, 0], sizes = [1, 16], strides = [1, 1]} : vector<16x16xf32> to vector<1x16xf32>
      %cst_409 = arith.constant 5.000000e-02 : f32
      %466 = vector.broadcast %cst_409 : f32 to vector<1x16xf32>
      %467 = arith.cmpf ogt, %465, %466 : vector<1x16xf32>
      %468 = arith.extui %467 : vector<1x16xi1> to vector<1x16xi32>
      %469 = arith.sitofp %468 : vector<1x16xi32> to vector<1x16xf32>
      %470 = arith.addf %462, %464 : vector<16x16xf32>
      %471 = vector.broadcast %469 : vector<1x16xf32> to vector<16x16xf32>
      %472 = arith.mulf %470, %471 : vector<16x16xf32>
      %c0_410 = arith.constant 0 : index
      %c308_411 = arith.constant 308 : index
      %473 = vector.load %arg9[%c0_410, %c308_411] : memref<16x362xf32, #tpu.memory_space<vmem>>, vector<16x16xf32>
      tpu.vector_store %arg9[%c0_410, %c308_411], %472 {strides = array<i32>} : memref<16x362xf32, #tpu.memory_space<vmem>>, vector<16x16xf32>,
    }
    %c0_63 = arith.constant 0 : index
    %c38_64 = arith.constant 38 : index
    %57 = vector.load %arg9[%c0_63, %c38_64] : memref<16x362xf32, #tpu.memory_space<vmem>>, vector<16x16xf32>
    %c0_65 = arith.constant 0 : index
    %c0_66 = arith.constant 0 : index
    %c0_67 = arith.constant 0 : index
    %58 = vector.load %arg8[%c0_65, %c0_66, %c0_67] : memref<1x16x256xf32, #tpu.memory_space<vmem>>, vector<1x16x16xf32>
    %59 = vector.shape_cast %58 : vector<1x16x16xf32> to vector<16x16xf32>
    %60 = vector.shape_cast %57 : vector<16x16xf32> to vector<1x16x16xf32>
    tpu.vector_store %arg8[%c0_65, %c0_66, %c0_67], %60 {strides = array<i32>} : memref<1x16x256xf32, #tpu.memory_space<vmem>>, vector<1x16x16xf32>,
    %c0_68 = arith.constant 0 : index
    %c56_69 = arith.constant 56 : index
    %61 = vector.load %arg9[%c0_68, %c56_69] : memref<16x362xf32, #tpu.memory_space<vmem>>, vector<16x16xf32>
    %c0_70 = arith.constant 0 : index
    %c0_71 = arith.constant 0 : index
    %c16_72 = arith.constant 16 : index
    %62 = vector.load %arg8[%c0_70, %c0_71, %c16_72] : memref<1x16x256xf32, #tpu.memory_space<vmem>>, vector<1x16x16xf32>
    %63 = vector.shape_cast %62 : vector<1x16x16xf32> to vector<16x16xf32>
    %64 = vector.shape_cast %61 : vector<16x16xf32> to vector<1x16x16xf32>
    tpu.vector_store %arg8[%c0_70, %c0_71, %c16_72], %64 {strides = array<i32>} : memref<1x16x256xf32, #tpu.memory_space<vmem>>, vector<1x16x16xf32>,
    %c0_73 = arith.constant 0 : index
    %c74_74 = arith.constant 74 : index
    %65 = vector.load %arg9[%c0_73, %c74_74] : memref<16x362xf32, #tpu.memory_space<vmem>>, vector<16x16xf32>
    %c0_75 = arith.constant 0 : index
    %c0_76 = arith.constant 0 : index
    %c32_77 = arith.constant 32 : index
    %66 = vector.load %arg8[%c0_75, %c0_76, %c32_77] : memref<1x16x256xf32, #tpu.memory_space<vmem>>, vector<1x16x16xf32>
    %67 = vector.shape_cast %66 : vector<1x16x16xf32> to vector<16x16xf32>
    %68 = vector.shape_cast %65 : vector<16x16xf32> to vector<1x16x16xf32>
    tpu.vector_store %arg8[%c0_75, %c0_76, %c32_77], %68 {strides = array<i32>} : memref<1x16x256xf32, #tpu.memory_space<vmem>>, vector<1x16x16xf32>,
    %c0_78 = arith.constant 0 : index
    %c92_79 = arith.constant 92 : index
    %69 = vector.load %arg9[%c0_78, %c92_79] : memref<16x362xf32, #tpu.memory_space<vmem>>, vector<16x16xf32>
    %c0_80 = arith.constant 0 : index
    %c0_81 = arith.constant 0 : index
    %c48_82 = arith.constant 48 : index
    %70 = vector.load %arg8[%c0_80, %c0_81, %c48_82] : memref<1x16x256xf32, #tpu.memory_space<vmem>>, vector<1x16x16xf32>
    %71 = vector.shape_cast %70 : vector<1x16x16xf32> to vector<16x16xf32>
    %72 = vector.shape_cast %69 : vector<16x16xf32> to vector<1x16x16xf32>
    tpu.vector_store %arg8[%c0_80, %c0_81, %c48_82], %72 {strides = array<i32>} : memref<1x16x256xf32, #tpu.memory_space<vmem>>, vector<1x16x16xf32>,
    %c0_83 = arith.constant 0 : index
    %c110_84 = arith.constant 110 : index
    %73 = vector.load %arg9[%c0_83, %c110_84] : memref<16x362xf32, #tpu.memory_space<vmem>>, vector<16x16xf32>
    %c0_85 = arith.constant 0 : index
    %c0_86 = arith.constant 0 : index
    %c64_87 = arith.constant 64 : index
    %74 = vector.load %arg8[%c0_85, %c0_86, %c64_87] : memref<1x16x256xf32, #tpu.memory_space<vmem>>, vector<1x16x16xf32>
    %75 = vector.shape_cast %74 : vector<1x16x16xf32> to vector<16x16xf32>
    %76 = vector.shape_cast %73 : vector<16x16xf32> to vector<1x16x16xf32>
    tpu.vector_store %arg8[%c0_85, %c0_86, %c64_87], %76 {strides = array<i32>} : memref<1x16x256xf32, #tpu.memory_space<vmem>>, vector<1x16x16xf32>,
    %c0_88 = arith.constant 0 : index
    %c128_89 = arith.constant 128 : index
    %77 = vector.load %arg9[%c0_88, %c128_89] : memref<16x362xf32, #tpu.memory_space<vmem>>, vector<16x16xf32>
    %c0_90 = arith.constant 0 : index
    %c0_91 = arith.constant 0 : index
    %c80_92 = arith.constant 80 : index
    %78 = vector.load %arg8[%c0_90, %c0_91, %c80_92] : memref<1x16x256xf32, #tpu.memory_space<vmem>>, vector<1x16x16xf32>
    %79 = vector.shape_cast %78 : vector<1x16x16xf32> to vector<16x16xf32>
    %80 = vector.shape_cast %77 : vector<16x16xf32> to vector<1x16x16xf32>
    tpu.vector_store %arg8[%c0_90, %c0_91, %c80_92], %80 {strides = array<i32>} : memref<1x16x256xf32, #tpu.memory_space<vmem>>, vector<1x16x16xf32>,
    %c0_93 = arith.constant 0 : index
    %c146_94 = arith.constant 146 : index
    %81 = vector.load %arg9[%c0_93, %c146_94] : memref<16x362xf32, #tpu.memory_space<vmem>>, vector<16x16xf32>
    %c0_95 = arith.constant 0 : index
    %c0_96 = arith.constant 0 : index
    %c96_97 = arith.constant 96 : index
    %82 = vector.load %arg8[%c0_95, %c0_96, %c96_97] : memref<1x16x256xf32, #tpu.memory_space<vmem>>, vector<1x16x16xf32>
    %83 = vector.shape_cast %82 : vector<1x16x16xf32> to vector<16x16xf32>
    %84 = vector.shape_cast %81 : vector<16x16xf32> to vector<1x16x16xf32>
    tpu.vector_store %arg8[%c0_95, %c0_96, %c96_97], %84 {strides = array<i32>} : memref<1x16x256xf32, #tpu.memory_space<vmem>>, vector<1x16x16xf32>,
    %c0_98 = arith.constant 0 : index
    %c164_99 = arith.constant 164 : index
    %85 = vector.load %arg9[%c0_98, %c164_99] : memref<16x362xf32, #tpu.memory_space<vmem>>, vector<16x16xf32>
    %c0_100 = arith.constant 0 : index
    %c0_101 = arith.constant 0 : index
    %c112_102 = arith.constant 112 : index
    %86 = vector.load %arg8[%c0_100, %c0_101, %c112_102] : memref<1x16x256xf32, #tpu.memory_space<vmem>>, vector<1x16x16xf32>
    %87 = vector.shape_cast %86 : vector<1x16x16xf32> to vector<16x16xf32>
    %88 = vector.shape_cast %85 : vector<16x16xf32> to vector<1x16x16xf32>
    tpu.vector_store %arg8[%c0_100, %c0_101, %c112_102], %88 {strides = array<i32>} : memref<1x16x256xf32, #tpu.memory_space<vmem>>, vector<1x16x16xf32>,
    %c0_103 = arith.constant 0 : index
    %c182_104 = arith.constant 182 : index
    %89 = vector.load %arg9[%c0_103, %c182_104] : memref<16x362xf32, #tpu.memory_space<vmem>>, vector<16x16xf32>
    %c0_105 = arith.constant 0 : index
    %c0_106 = arith.constant 0 : index
    %c128_107 = arith.constant 128 : index
    %90 = vector.load %arg8[%c0_105, %c0_106, %c128_107] : memref<1x16x256xf32, #tpu.memory_space<vmem>>, vector<1x16x16xf32>
    %91 = vector.shape_cast %90 : vector<1x16x16xf32> to vector<16x16xf32>
    %92 = vector.shape_cast %89 : vector<16x16xf32> to vector<1x16x16xf32>
    tpu.vector_store %arg8[%c0_105, %c0_106, %c128_107], %92 {strides = array<i32>} : memref<1x16x256xf32, #tpu.memory_space<vmem>>, vector<1x16x16xf32>,
    %c0_108 = arith.constant 0 : index
    %c200_109 = arith.constant 200 : index
    %93 = vector.load %arg9[%c0_108, %c200_109] : memref<16x362xf32, #tpu.memory_space<vmem>>, vector<16x16xf32>
    %c0_110 = arith.constant 0 : index
    %c0_111 = arith.constant 0 : index
    %c144_112 = arith.constant 144 : index
    %94 = vector.load %arg8[%c0_110, %c0_111, %c144_112] : memref<1x16x256xf32, #tpu.memory_space<vmem>>, vector<1x16x16xf32>
    %95 = vector.shape_cast %94 : vector<1x16x16xf32> to vector<16x16xf32>
    %96 = vector.shape_cast %93 : vector<16x16xf32> to vector<1x16x16xf32>
    tpu.vector_store %arg8[%c0_110, %c0_111, %c144_112], %96 {strides = array<i32>} : memref<1x16x256xf32, #tpu.memory_space<vmem>>, vector<1x16x16xf32>,
    %c0_113 = arith.constant 0 : index
    %c218_114 = arith.constant 218 : index
    %97 = vector.load %arg9[%c0_113, %c218_114] : memref<16x362xf32, #tpu.memory_space<vmem>>, vector<16x16xf32>
    %c0_115 = arith.constant 0 : index
    %c0_116 = arith.constant 0 : index
    %c160_117 = arith.constant 160 : index
    %98 = vector.load %arg8[%c0_115, %c0_116, %c160_117] : memref<1x16x256xf32, #tpu.memory_space<vmem>>, vector<1x16x16xf32>
    %99 = vector.shape_cast %98 : vector<1x16x16xf32> to vector<16x16xf32>
    %100 = vector.shape_cast %97 : vector<16x16xf32> to vector<1x16x16xf32>
    tpu.vector_store %arg8[%c0_115, %c0_116, %c160_117], %100 {strides = array<i32>} : memref<1x16x256xf32, #tpu.memory_space<vmem>>, vector<1x16x16xf32>,
    %c0_118 = arith.constant 0 : index
    %c236_119 = arith.constant 236 : index
    %101 = vector.load %arg9[%c0_118, %c236_119] : memref<16x362xf32, #tpu.memory_space<vmem>>, vector<16x16xf32>
    %c0_120 = arith.constant 0 : index
    %c0_121 = arith.constant 0 : index
    %c176_122 = arith.constant 176 : index
    %102 = vector.load %arg8[%c0_120, %c0_121, %c176_122] : memref<1x16x256xf32, #tpu.memory_space<vmem>>, vector<1x16x16xf32>
    %103 = vector.shape_cast %102 : vector<1x16x16xf32> to vector<16x16xf32>
    %104 = vector.shape_cast %101 : vector<16x16xf32> to vector<1x16x16xf32>
    tpu.vector_store %arg8[%c0_120, %c0_121, %c176_122], %104 {strides = array<i32>} : memref<1x16x256xf32, #tpu.memory_space<vmem>>, vector<1x16x16xf32>,
    %c0_123 = arith.constant 0 : index
    %c254_124 = arith.constant 254 : index
    %105 = vector.load %arg9[%c0_123, %c254_124] : memref<16x362xf32, #tpu.memory_space<vmem>>, vector<16x16xf32>
    %c0_125 = arith.constant 0 : index
    %c0_126 = arith.constant 0 : index
    %c192_127 = arith.constant 192 : index
    %106 = vector.load %arg8[%c0_125, %c0_126, %c192_127] : memref<1x16x256xf32, #tpu.memory_space<vmem>>, vector<1x16x16xf32>
    %107 = vector.shape_cast %106 : vector<1x16x16xf32> to vector<16x16xf32>
    %108 = vector.shape_cast %105 : vector<16x16xf32> to vector<1x16x16xf32>
    tpu.vector_store %arg8[%c0_125, %c0_126, %c192_127], %108 {strides = array<i32>} : memref<1x16x256xf32, #tpu.memory_space<vmem>>, vector<1x16x16xf32>,
    %c0_128 = arith.constant 0 : index
    %c272_129 = arith.constant 272 : index
    %109 = vector.load %arg9[%c0_128, %c272_129] : memref<16x362xf32, #tpu.memory_space<vmem>>, vector<16x16xf32>
    %c0_130 = arith.constant 0 : index
    %c0_131 = arith.constant 0 : index
    %c208_132 = arith.constant 208 : index
    %110 = vector.load %arg8[%c0_130, %c0_131, %c208_132] : memref<1x16x256xf32, #tpu.memory_space<vmem>>, vector<1x16x16xf32>
    %111 = vector.shape_cast %110 : vector<1x16x16xf32> to vector<16x16xf32>
    %112 = vector.shape_cast %109 : vector<16x16xf32> to vector<1x16x16xf32>
    tpu.vector_store %arg8[%c0_130, %c0_131, %c208_132], %112 {strides = array<i32>} : memref<1x16x256xf32, #tpu.memory_space<vmem>>, vector<1x16x16xf32>,
    %c0_133 = arith.constant 0 : index
    %c290_134 = arith.constant 290 : index
    %113 = vector.load %arg9[%c0_133, %c290_134] : memref<16x362xf32, #tpu.memory_space<vmem>>, vector<16x16xf32>
    %c0_135 = arith.constant 0 : index
    %c0_136 = arith.constant 0 : index
    %c224_137 = arith.constant 224 : index
    %114 = vector.load %arg8[%c0_135, %c0_136, %c224_137] : memref<1x16x256xf32, #tpu.memory_space<vmem>>, vector<1x16x16xf32>
    %115 = vector.shape_cast %114 : vector<1x16x16xf32> to vector<16x16xf32>
    %116 = vector.shape_cast %113 : vector<16x16xf32> to vector<1x16x16xf32>
    tpu.vector_store %arg8[%c0_135, %c0_136, %c224_137], %116 {strides = array<i32>} : memref<1x16x256xf32, #tpu.memory_space<vmem>>, vector<1x16x16xf32>,
    %c0_138 = arith.constant 0 : index
    %c308_139 = arith.constant 308 : index
    %117 = vector.load %arg9[%c0_138, %c308_139] : memref<16x362xf32, #tpu.memory_space<vmem>>, vector<16x16xf32>
    %c0_140 = arith.constant 0 : index
    %c0_141 = arith.constant 0 : index
    %c240_142 = arith.constant 240 : index
    %118 = vector.load %arg8[%c0_140, %c0_141, %c240_142] : memref<1x16x256xf32, #tpu.memory_space<vmem>>, vector<1x16x16xf32>
    %119 = vector.shape_cast %118 : vector<1x16x16xf32> to vector<16x16xf32>
    %120 = vector.shape_cast %117 : vector<16x16xf32> to vector<1x16x16xf32>
    tpu.vector_store %arg8[%c0_140, %c0_141, %c240_142], %120 {strides = array<i32>} : memref<1x16x256xf32, #tpu.memory_space<vmem>>, vector<1x16x16xf32>,
    return
  }
  func.func @transform_0(%arg0: i32) -> (i32, i32, i32) {
    %c0_i32 = arith.constant 0 : i32
    %c0_i32_0 = arith.constant 0 : i32
    %c0_i32_1 = arith.constant 0 : i32
    return %arg0, %c0_i32, %c0_i32_0 : i32, i32, i32
  }
  func.func @transform_1(%arg0: i32) -> (i32, i32) {
    %c0_i32 = arith.constant 0 : i32
    %c0_i32_0 = arith.constant 0 : i32
    %c0_i32_1 = arith.constant 0 : i32
    return %c0_i32, %c0_i32_0 : i32, i32
  }
  func.func @transform_2(%arg0: i32) -> (i32, i32) {
    %c0_i32 = arith.constant 0 : i32
    %c0_i32_0 = arith.constant 0 : i32
    %c0_i32_1 = arith.constant 0 : i32
    return %c0_i32, %c0_i32_0 : i32, i32
  }
  func.func @transform_3(%arg0: i32) -> (i32, i32) {
    %c0_i32 = arith.constant 0 : i32
    %c0_i32_0 = arith.constant 0 : i32
    %c0_i32_1 = arith.constant 0 : i32
    return %c0_i32, %c0_i32_0 : i32, i32
  }
  func.func @transform_4(%arg0: i32) -> (i32, i32) {
    %c0_i32 = arith.constant 0 : i32
    %c0_i32_0 = arith.constant 0 : i32
    %c0_i32_1 = arith.constant 0 : i32
    return %c0_i32, %c0_i32_0 : i32, i32
  }
  func.func @transform_5(%arg0: i32) -> (i32, i32) {
    %c0_i32 = arith.constant 0 : i32
    %c0_i32_0 = arith.constant 0 : i32
    %c0_i32_1 = arith.constant 0 : i32
    return %c0_i32, %c0_i32_0 : i32, i32
  }
  func.func @transform_6(%arg0: i32) -> (i32, i32) {
    %c0_i32 = arith.constant 0 : i32
    %c0_i32_0 = arith.constant 0 : i32
    %c0_i32_1 = arith.constant 0 : i32
    return %c0_i32, %c0_i32_0 : i32, i32
  }
  func.func @transform_7(%arg0: i32) -> (i32, i32, i32) {
    %c0_i32 = arith.constant 0 : i32
    %c0_i32_0 = arith.constant 0 : i32
    %c0_i32_1 = arith.constant 0 : i32
    return %arg0, %c0_i32, %c0_i32_0 : i32, i32, i32
  }
}

</mosaic_0001>

<bundles_post_ra>
// kernel: ca_forward.1
= control target key start
LH: loop header
LB: loop body
LE: loop exit
PB: predicated region body
PF: predicated region fallthrough
CT: control target
= control target key end

     0   :  { %s5160_s24 = smov 0   ;;  %s7538_s0 = inlined_call_operand.vmem [shape: f32[2,16,256], index: 0, kind: input, shape index: {}]   ;;  %s7539_s1 = inlined_call_operand.vmem [shape: f32[16,144], index: 1, kind: input, shape index: {}]   ;;  %s7540_s2 = inlined_call_operand.vmem [shape: f32[16,1], index: 2, kind: input, shape index: {}]   ;;  %s7541_s3 = inlined_call_operand.vmem [shape: f32[16,128], index: 3, kind: input, shape index: {}]   ;;  %s7542_s4 = inlined_call_operand.vmem [shape: f32[1,128], index: 4, kind: input, shape index: {}]   ;;  %s7543_s5 = inlined_call_operand.vmem [shape: f32[128,16], index: 5, kind: input, shape index: {}]   ;;  %s7544_s6 = inlined_call_operand.vmem [shape: f32[1,16], index: 6, kind: input, shape index: {}]   ;;  %s7545_s7 = inlined_call_operand.vmem [shape: f32[2,16,256], index: 7, kind: output, shape index: {}]  }
   0x1 LB: > { %s4856_s25 = sadd.s32 4294967295, %s5052_s24   ;;  %p4860_p0 = scmp.ge.s32.totalorder %s5052_s24, 1  ;;  %s5052_s24 = sphi %s5160_s24, %s17_s24  }
   0x2   : > { %p237_p1 = scmp.lt.s32.totalorder %s5052_s24, 3 }
   0x4   : > { %p238_p2 = pnand %p4860_p0, %p237_p1 }
   0x6   : > { %241 = sbr.rel (%p238_p2) target bundleno = 2202 (0x89a), region = 48 }
   0xb   : > { %p269_p3 = scmp.lt.s32.totalorder %s4856_s25, 1  ;;  %s5058_s10 = smov 40   ;;  %v5074_v4 = vmov 0.0   ;;  %vm322_vm0 = vcmask 441648   ;;  %vm335_vm1 = vcmask 589248   ;;  %vm348_vm2 = vcmask 736848  }
   0xc   : > { %s5059_s11 = smov 38   ;;  %s5060_s12 = smov 42   ;;  %305 = vst [vmem:[#allocation2] sm:$0xff] %v5074_v4  ;;  %vm387_vm3 = vcmask 130048   ;;  %vm307_vm4 = vcmask 867328   ;;  %vm7554_vm5 = vcmask 884448  }
   0xd   : > { %s7704_s25 = smov (!%p269_p3, %s4856_s25), 1  ;;  %s5061_s13 = smov 44   ;;  %306 = vst [vmem:[#allocation2 + $0x8] sm:$0xff] %v5074_v4  ;;  %vm7546_vm6 = vcmask 1032048   ;;  %vm7558_vm7 = vcmask 113664   ;;  %vm400_vm8 = vcmask 277648  }
   0xe   : > { %s4921_s26 = sshll.u32 %s7704_s25, 5  ;;  %s5062_s14 = smov 46   ;;  %309 = vst [vmem:[#allocation2 + $0x18] sm:$0xff] %v5074_v4  ;;  %vm413_vm9 = vcmask 425248   ;;  %vm7571_vm10 = vcmask 572848   ;;  %vm7557_vm11 = vcmask 720448  }
   0xf   : > { %s5171_s29 = scalar_lea.vmem %s7538_s0, %s4921_s26  ;;  %s5176_s9 = scalar_lea.vmem %s7545_s7, %s4921_s26  ;;  %310 = vst [vmem:[#allocation2 + $0x20] sm:$0xff] %v5074_v4  ;;  %vm7555_vm12 = vcmask 868048   ;;  %v5216_v27 = vld [vmem:[%s7539_s1] sm:$0xff]  ;;  %v5221_v28 = vld [vmem:[%s7539_s1 + $0x8] sm:$0xff]  ;;  %v5226_v29 = vld [vmem:[%s7539_s1 + $0x10] sm:$0xff]  ;;  %vm7549_vm13 = vcmask 1015648  }
  0x10   : > { %v325_v0 = vld [vmem:[%s5171_s29] sm:$0xff]  ;;  %v326_v1 = vld [vmem:[%s5171_s29 + $0x10] sm:$0xff]  ;;  %s5063_s15 = smov 48   ;;  %s5064_s16 = smov 50   ;;  %v416_v2 = vld [vmem:[%s5171_s29 + $0x8] sm:$0xff]  ;;  %308 = vst.msk [vmem:[#allocation2 + $0x10] sm:$0xff] %vm307_vm4, %v5074_v4 }
  0x11   : > { %329 = vrot.lane.b32.xlu1 %v325_v0, %s5058_s10  ;;  %316 = vrot.lane.b32.xlu0 %v325_v0, %s5059_s11  ;;  %s5065_s17 = smov 52   ;;  %s5066_s18 = smov 54   ;;  %v430_v3 = vld [vmem:[%s5171_s29 + $0x18] sm:$0xff]  ;;  %311 = vst.msk [vmem:[#allocation2 + $0x28] sm:$0xff] %vm307_vm4, %v5074_v4  ;;  %v5237_v31 = vld [vmem:[%s7540_s2] sm:$0xff]  ;;  %vm7547_vm14 = vcmask 1048560  }
  0x12   : > { %342 = vrot.lane.b32.xlu2 %v325_v0, %s5060_s12  ;;  %s5067_s19 = smov 56   ;;  %s5068_s20 = smov 62   ;;  %7583 = vst [vmem:[#allocation7_spill] sm:$0xff] %v5216_v27  ;;  %v5232_v30 = vld [vmem:[%s7539_s1 + $0x18] sm:$0xff]  ;;  %v5242_v32 = vld [vmem:[%s7540_s2 + $0x8] sm:$0xff]  ;;  %v5247_v33 = vld [vmem:[%s7541_s3] sm:$0xff] }
  0x13   : > { %s5069_s21 = smov 58   ;;  %s5070_s22 = smov 64   ;;  %7584 = vst [vmem:[#allocation8_spill] sm:$0xff] %v5221_v28  ;;  %v5252_v34 = vld [vmem:[%s7541_s3 + $0x8] sm:$0xff]  ;;  %v5257_v35 = vld [vmem:[%s7542_s4] sm:$0x1] }
  0x14   : > { %s5071_s23 = smov 60   ;;  %s5072_s25 = smov 66   ;;  %7585 = vst [vmem:[#allocation9_spill] sm:$0xff] %v5226_v29  ;;  %v5262_v36 = vld [vmem:[%s7543_s5] sm:$0xff]  ;;  %v5267_v37 = vld [vmem:[%s7543_s5 + $0x8] sm:$0xff]  ;;  %v5272_v38 = vld [vmem:[%s7543_s5 + $0x10] sm:$0xff] }
  0x15   : > { %s5073_s26 = smov 68   ;;  %7586 = vst [vmem:[#allocation10_spill] sm:$0xff] %v5232_v30  ;;  %v5277_v39 = vld [vmem:[%s7543_s5 + $0x18] sm:$0xff]  ;;  %v5282_v40 = vld [vmem:[%s7543_s5 + $0x20] sm:$0xff]  ;;  %v5287_v41 = vld [vmem:[%s7543_s5 + $0x28] sm:$0xff]  ;;  %vm7556_vm15 = vcmask 261248  }
  0x16   : > { %7587 = vst [vmem:[#allocation11_spill] sm:$0xff] %v5237_v31  ;;  %v5292_v43 = vld [vmem:[%s7543_s5 + $0x30] sm:$0xff]  ;;  %v5297_v44 = vld [vmem:[%s7543_s5 + $0x38] sm:$0xff]  ;;  %v5302_v45 = vld [vmem:[%s7543_s5 + $0x40] sm:$0xff]  ;;  %vm7550_vm4 = vcmask 408848   ;;  %s5356_s8 = smov 0  }
  0x17   : > { %7588 = vst [vmem:[#allocation12_spill] sm:$0xff] %v5242_v32  ;;  %v5307_v48 = vld [vmem:[%s7543_s5 + $0x48] sm:$0xff]  ;;  %v5312_v49 = vld [vmem:[%s7543_s5 + $0x50] sm:$0xff]  ;;  %v5317_v50 = vld [vmem:[%s7543_s5 + $0x58] sm:$0xff] }
  0x18   : > { %7589 = vst [vmem:[#allocation13_spill] sm:$0xff] %v5247_v33  ;;  %v5323_v51 = vld [vmem:[%s7543_s5 + $0x60] sm:$0xff]  ;;  %v5328_v52 = vld [vmem:[%s7543_s5 + $0x68] sm:$0xff]  ;;  %v5333_v53 = vld [vmem:[%s7543_s5 + $0x70] sm:$0xff] }
  0x19   : > { %331 = vrot.lane.b32.xlu1 %v326_v1, %s5058_s10  ;;  %318 = vrot.lane.b32.xlu0 %v326_v1, %s5059_s11  ;;  %7590 = vst [vmem:[#allocation14_spill] sm:$0xff] %v5252_v34  ;;  %v5339_v54 = vld [vmem:[%s7543_s5 + $0x78] sm:$0xff]  ;;  %v5344_v55 = vld [vmem:[%s7544_s6] sm:$0x1] }
  0x1a   : > { %344 = vrot.lane.b32.xlu2 %v326_v1, %s5060_s12  ;;  %7591 = vst [vmem:[#allocation15_spill] sm:$0xff] %v5257_v35 }
  0x1b   : > { %7592 = vst [vmem:[#allocation16_spill] sm:$0xff] %v5262_v36 }
  0x1c   : > { %7593 = vst [vmem:[#allocation17_spill] sm:$0xff] %v5267_v37 }
  0x1d   : > { %7594 = vst [vmem:[#allocation18_spill] sm:$0xff] %v5272_v38 }
  0x1e   : > { %7595 = vst [vmem:[#allocation19_spill] sm:$0xff] %v5277_v39 }
  0x1f   : > { %7596 = vst [vmem:[#allocation20_spill] sm:$0xff] %v5282_v40 }
  0x20   : > { %7597 = vst [vmem:[#allocation21_spill] sm:$0xff] %v5287_v41 }
  0x21   : > { %357 = vrot.lane.b32.xlu1 %v326_v1, %s5061_s13  ;;  %355 = vrot.lane.b32.xlu0 %v325_v0, %s5061_s13  ;;  %7598 = vst [vmem:[#allocation22_spill] sm:$0xff] %v5292_v43 }
  0x22   : > { %368 = vrot.lane.b32.xlu2 %v325_v0, %s5062_s14  ;;  %7599 = vst [vmem:[#allocation23_spill] sm:$0xff] %v5297_v44 }
  0x23   : > { %7600 = vst [vmem:[#allocation24_spill] sm:$0xff] %v5302_v45 }
  0x24   : > { %7601 = vst [vmem:[#allocation25_spill] sm:$0xff] %v5307_v48 }
  0x25   : > { %7602 = vst [vmem:[#allocation26_spill] sm:$0xff] %v5312_v49 }
  0x26   : > { %7603 = vst [vmem:[#allocation27_spill] sm:$0xff] %v5317_v50 }
  0x27   : > { %7604 = vst [vmem:[#allocation28_spill] sm:$0xff] %v5323_v51 }
  0x28   : > { %7605 = vst [vmem:[#allocation29_spill] sm:$0xff] %v5328_v52 }
  0x29   : > { %381 = vrot.lane.b32.xlu1 %v325_v0, %s5063_s15  ;;  %370 = vrot.lane.b32.xlu0 %v326_v1, %s5062_s14  ;;  %7606 = vst [vmem:[#allocation30_spill] sm:$0xff] %v5333_v53 }
  0x2a   : > { %383 = vrot.lane.b32.xlu2 %v326_v1, %s5063_s15  ;;  %7607 = vst [vmem:[#allocation31_spill] sm:$0xff] %v5339_v54 }
  0x2b   : > { %7608 = vst [vmem:[#allocation32_spill] sm:$0xff] %v5344_v55 }
  0x31   : > { %396 = vrot.lane.b32.xlu1 %v326_v1, %s5064_s16  ;;  %394 = vrot.lane.b32.xlu0 %v325_v0, %s5064_s16 }
  0x32   : > { %407 = vrot.lane.b32.xlu2 %v325_v0, %s5065_s17 }
  0x39   : > { %420 = vrot.lane.b32.xlu1 %v416_v2, %s5066_s18  ;;  %409 = vrot.lane.b32.xlu0 %v326_v1, %s5065_s17 }
  0x3a   : > { %422 = vrot.lane.b32.xlu2 %v430_v3, %s5066_s18 }
  0x41   : > { %435 = vrot.lane.b32.xlu1 %v430_v3, %s5067_s19  ;;  %433 = vrot.lane.b32.xlu0 %v416_v2, %s5067_s19 }
  0x42   : > { %472 = vrot.lane.b32.xlu2 %v416_v2, %s5068_s20 }
  0x49   : > { %446 = vrot.lane.b32.xlu1 %v416_v2, %s5069_s21  ;;  %474 = vrot.lane.b32.xlu0 %v430_v3, %s5068_s20 }
  0x4a   : > { %448 = vrot.lane.b32.xlu2 %v430_v3, %s5069_s21 }
  0x51   : > { %490 = vrot.lane.b32.xlu1 %v430_v3, %s5070_s22  ;;  %488 = vrot.lane.b32.xlu0 %v416_v2, %s5070_s22 }
  0x52   : > { %459 = vrot.lane.b32.xlu2 %v416_v2, %s5071_s23 }
  0x59   : > { %501 = vrot.lane.b32.xlu1 %v416_v2, %s5072_s25  ;;  %461 = vrot.lane.b32.xlu0 %v430_v3, %s5071_s23 }
  0x5a   : > { %503 = vrot.lane.b32.xlu2 %v430_v3, %s5072_s25 }
  0x61   : > { %516 = vrot.lane.b32.xlu1 %v430_v3, %s5073_s26  ;;  %514 = vrot.lane.b32.xlu0 %v416_v2, %s5073_s26 }
  0x6c   : > { %v343_v5 = vpop.permute.xlu2 %342 }
  0x74   : > { %v345_v6 = vpop.permute.xlu2 %344 }
  0x7c   : > { %v369_v7 = vpop.permute.xlu2 %368 }
  0x83   : > { %v330_v8 = vpop.permute.xlu1 %329  ;;  %v317_v9 = vpop.permute.xlu0 %316 }
  0x84   : > { %323 = vst.msk [vmem:[#allocation2] sm:$0xff] %vm322_vm0, %v317_v9  ;;  %v384_v10 = vpop.permute.xlu2 %383 }
  0x85   : > { %336 = vst.msk [vmem:[#allocation2] sm:$0xff] %vm335_vm1, %v330_v8 }
  0x86   : > { %349 = vst.msk [vmem:[#allocation2] sm:$0xff] %vm348_vm2, %v343_v5 }
  0x87   : > { %389 = vst.msk [vmem:[#allocation2 + $0x20] sm:$0xff] %vm387_vm3, %v384_v10 }
  0x8b   : > { %v332_v11 = vpop.permute.xlu1 %331  ;;  %v319_v12 = vpop.permute.xlu0 %318 }
  0x8c   : > { %324 = vst.msk [vmem:[#allocation2 + $0x18] sm:$0xff] %vm322_vm0, %v319_v12  ;;  %v408_v13 = vpop.permute.xlu2 %407 }
  0x8d   : > { %337 = vst.msk [vmem:[#allocation2 + $0x18] sm:$0xff] %vm335_vm1, %v332_v11 }
  0x8e   : > { %350 = vst.msk [vmem:[#allocation2 + $0x18] sm:$0xff] %vm348_vm2, %v345_v6 }
  0x93   : > { %v358_v14 = vpop.permute.xlu1 %357  ;;  %v356_v15 = vpop.permute.xlu0 %355 }
  0x94   : > { %363 = vst.msk [vmem:[#allocation2 + $0x18] sm:$0xff] %vm7554_vm5, %v358_v14  ;;  %v423_v16 = vpop.permute.xlu2 %422 }
  0x95   : > { %362 = vst.msk [vmem:[#allocation2] sm:$0xff] %vm7554_vm5, %v356_v15 }
  0x96   : > { %375 = vst.msk [vmem:[#allocation2] sm:$0xff] %vm7546_vm6, %v369_v7 }
  0x9b   : > { %v382_v17 = vpop.permute.xlu1 %381  ;;  %v371_v18 = vpop.permute.xlu0 %370 }
  0x9c   : > { %388 = vst.msk [vmem:[#allocation2 + $0x8] sm:$0xff] %vm387_vm3, %v382_v17  ;;  %v473_v19 = vpop.permute.xlu2 %472 }
  0x9d   : > { %376 = vst.msk [vmem:[#allocation2 + $0x18] sm:$0xff] %vm7546_vm6, %v371_v18  ;;  %vm7548_vm6 = vcmask 556448  }
  0x9e   : > { %481 = vst.msk [vmem:[#allocation2 + $0x10] sm:$0xff] %vm7558_vm7, %v473_v19 }
  0xa3   : > { %v397_v20 = vpop.permute.xlu1 %396  ;;  %v395_v21 = vpop.permute.xlu0 %394 }
  0xa4   : > { %402 = vst.msk [vmem:[#allocation2 + $0x20] sm:$0xff] %vm400_vm8, %v397_v20  ;;  %v449_v24 = vpop.permute.xlu2 %448 }
  0xa5   : > { %401 = vst.msk [vmem:[#allocation2 + $0x8] sm:$0xff] %vm400_vm8, %v395_v21 }
  0xa6   : > { %414 = vst.msk [vmem:[#allocation2 + $0x8] sm:$0xff] %vm413_vm9, %v408_v13 }
  0xab   : > { %v421_v22 = vpop.permute.xlu1 %420  ;;  %v410_v23 = vpop.permute.xlu0 %409 }
  0xac   : > { %427 = vst.msk [vmem:[#allocation2 + $0x8] sm:$0xff] %vm7571_vm10, %v421_v22  ;;  %v460_v42 = vpop.permute.xlu2 %459 }
  0xad   : > { %415 = vst.msk [vmem:[#allocation2 + $0x20] sm:$0xff] %vm413_vm9, %v410_v23 }
  0xae   : > { %428 = vst.msk [vmem:[#allocation2 + $0x20] sm:$0xff] %vm7571_vm10, %v423_v16 }
  0xb3   : > { %v436_v25 = vpop.permute.xlu1 %435  ;;  %v434_v26 = vpop.permute.xlu0 %433 }
  0xb4   : > { %441 = vst.msk [vmem:[#allocation2 + $0x20] sm:$0xff] %vm7557_vm11, %v436_v25  ;;  %v504_v56 = vpop.permute.xlu2 %503 }
  0xb5   : > { %440 = vst.msk [vmem:[#allocation2 + $0x8] sm:$0xff] %vm7557_vm11, %v434_v26 }
  0xb6   : > { %454 = vst.msk [vmem:[#allocation2 + $0x20] sm:$0xff] %vm7555_vm12, %v449_v24 }
  0xbb   : > { %v447_v46 = vpop.permute.xlu1 %446  ;;  %v475_v47 = vpop.permute.xlu0 %474 }
  0xbc   : > { %453 = vst.msk [vmem:[#allocation2 + $0x8] sm:$0xff] %vm7555_vm12, %v447_v46 }
  0xbd   : > { %483 = vst.msk [vmem:[#allocation2 + $0x28] sm:$0xff] %vm7558_vm7, %v475_v47 }
  0xbe   : > { %466 = vst.msk [vmem:[#allocation2 + $0x8] sm:$0xff] %vm7549_vm13, %v460_v42 }
  0xbf   : > { %479 = vst.msk [vmem:[#allocation2 + $0x8] sm:$0xff] %vm7547_vm14, %v473_v19 }
  0xc3   : > { %v491_v57 = vpop.permute.xlu1 %490  ;;  %v489_v58 = vpop.permute.xlu0 %488 }
  0xc4   : > { %496 = vst.msk [vmem:[#allocation2 + $0x28] sm:$0xff] %vm7556_vm15, %v491_v57 }
  0xc5   : > { %495 = vst.msk [vmem:[#allocation2 + $0x10] sm:$0xff] %vm7556_vm15, %v489_v58 }
  0xc6   : > { %509 = vst.msk [vmem:[#allocation2 + $0x28] sm:$0xff] %vm7550_vm4, %v504_v56 }
  0xcb   : > { %v502_v59 = vpop.permute.xlu1 %501  ;;  %v462_v60 = vpop.permute.xlu0 %461 }
  0xcc   : > { %508 = vst.msk [vmem:[#allocation2 + $0x10] sm:$0xff] %vm7550_vm4, %v502_v59 }
  0xcd   : > { %467 = vst.msk [vmem:[#allocation2 + $0x20] sm:$0xff] %vm7549_vm13, %v462_v60 }
  0xce   : > { %482 = vst.msk [vmem:[#allocation2 + $0x20] sm:$0xff] %vm7547_vm14, %v475_v47 }
  0xd3   : > { %v517_v61 = vpop.permute.xlu1 %516  ;;  %v515_v62 = vpop.permute.xlu0 %514 }
  0xd4   : > { %522 = vst.msk [vmem:[#allocation2 + $0x28] sm:$0xff] %vm7548_vm6, %v517_v61 }
  0xd5   : > { %521 = vst.msk [vmem:[#allocation2 + $0x10] sm:$0xff] %vm7548_vm6, %v515_v62 }
  0xd6 LB: >> { %v7609_v54 = vld [vmem:[#allocation31_spill] sm:$0xff]  ;;  %v7610_v53 = vld [vmem:[#allocation30_spill] sm:$0xff]  ;;  %v7611_v52 = vld [vmem:[#allocation29_spill] sm:$0xff]  ;;  %s5075_s10 = smov 127   ;;  %s5076_s11 = smov 126   ;;  %vm537_vm14 = vcmask 556032   ;;  %s5056_s8 = sphi %s5356_s8, %s528_s8  }
  0xd7   : >> { %v7612_v51 = vld [vmem:[#allocation28_spill] sm:$0xff]  ;;  %v7613_v50 = vld [vmem:[#allocation27_spill] sm:$0xff]  ;;  %v7614_v49 = vld [vmem:[#allocation26_spill] sm:$0xff]  ;;  %s5077_s12 = smov 110   ;;  %s5078_s13 = smov 109   ;;  %vm566_vm6 = vcmask 1039360  }
  0xd8   : >> { %v7615_v48 = vld [vmem:[#allocation25_spill] sm:$0xff]  ;;  %v7616_v45 = vld [vmem:[#allocation24_spill] sm:$0xff]  ;;  %v7617_v44 = vld [vmem:[#allocation23_spill] sm:$0xff]  ;;  %s5079_s14 = smov 108   ;;  %s5080_s15 = smov 92   ;;  %vm607_vm13 = vcmask 1031168  }
  0xd9   : >> { %v7618_v43 = vld [vmem:[#allocation22_spill] sm:$0xff]  ;;  %v7619_v41 = vld [vmem:[#allocation21_spill] sm:$0xff]  ;;  %v7620_v40 = vld [vmem:[#allocation20_spill] sm:$0xff]  ;;  %s5081_s16 = smov 91   ;;  %s5082_s17 = smov 90   ;;  %vm771_vm4 = vcmask 752640  }
  0xda   : >> { %v7621_v39 = vld [vmem:[#allocation19_spill] sm:$0xff]  ;;  %v7622_v34 = vld [vmem:[#allocation14_spill] sm:$0xff]  ;;  %v7623_v33 = vld [vmem:[#allocation13_spill] sm:$0xff]  ;;  %s5084_s18 = smov 55   ;;  %vm1688_vm5 = vcmask 1042434   ;;  %vm1694_vm12 = vcmask 1044484  }
  0xdb   : >> { %v7624_v30 = vld [vmem:[#allocation10_spill] sm:$0xff]  ;;  %v7625_v29 = vld [vmem:[#allocation9_spill] sm:$0xff]  ;;  %v7626_v28 = vld [vmem:[#allocation8_spill] sm:$0xff]  ;;  %vm1700_vm15 = vcmask 1046534   ;;  %vm1697_vm11 = vcmask 1045509   ;;  %s5085_s19 = smov 37  }
  0xdc   : >> { %v7627_v27 = vld [vmem:[#allocation7_spill] sm:$0xff]  ;;  %v5363_v0 = vld [vmem:[#allocation2] sm:$0xff]  ;;  %v5365_v1 = vld [vmem:[#allocation2 + $0x18] sm:$0xff]  ;;  %s5086_s21 = smov 73   ;;  %vm1703_vm7 = vcmask 1046528   ;;  %s5087_s27 = smov 19  }
  0xdd   : >> { %v5361_v63 = vld [vmem:[#allocation2 + $0x10] sm:$0xff]  ;;  %554 = vrot.lane.b32.xlu0 %v5363_v0, %s5075_s10  ;;  %v5369_v2 = vld [vmem:[#allocation2 + $0x20] sm:$0xff]  ;;  %v5372_v3 = vld [vmem:[#allocation2 + $0x8] sm:$0xff]  ;;  %s5088_s28 = smov 1   ;;  %s5089_s29 = smov 111   ;;  %vm1817_vm10 = vcmask 7168  }
  0xde   : >> { %558 = vrot.lane.b32.xlu1 %v5361_v63, %s5075_s10  ;;  %562 = vrot.lane.b32.xlu2 %v5369_v2, %s5075_s10  ;;  %v5374_v4 = vld [vmem:[#allocation2 + $0x28] sm:$0xff]  ;;  %538 = vst.msk [vmem:[#allocation3 + $0x10] sm:$0xff] %vm537_vm14, %v5361_v63  ;;  %v7628_v31 = vld [vmem:[#allocation11_spill] sm:$0xff]  ;;  %v7629_v32 = vld [vmem:[#allocation12_spill] sm:$0xff]  ;;  %s5090_s30 = smov 3   ;;  %s528_s8 = sadd.s32 1, %s5056_s8  }
  0xdf   : >> { %541 = vst.msk [vmem:[#allocation3 + $0x28] sm:$0xff] %vm537_vm14, %v5374_v4  ;;  %p525_p4 = scmp.ge.s32.totalorder %s528_s8, 2  }
  0xe0   : > { %s5115_s8 = smov (%p525_p4), 78  }
  0xe5   : >> { %556 = vrot.lane.b32.xlu0 %v5372_v3, %s5075_s10 }
  0xe6   : >> { %560 = vrot.lane.b32.xlu1 %v5365_v1, %s5075_s10  ;;  %564 = vrot.lane.b32.xlu2 %v5374_v4, %s5075_s10  ;;  %s5091_s10 = smov 57  }
  0xed   : >> { %595 = vrot.lane.b32.xlu0 %v5363_v0, %s5076_s11 }
  0xee   : >> { %597 = vrot.lane.b32.xlu1 %v5372_v3, %s5076_s11  ;;  %599 = vrot.lane.b32.xlu2 %v5361_v63, %s5076_s11 }
  0xf5   : >> { %601 = vrot.lane.b32.xlu0 %v5365_v1, %s5076_s11 }
  0xf6   : >> { %603 = vrot.lane.b32.xlu1 %v5369_v2, %s5076_s11  ;;  %605 = vrot.lane.b32.xlu2 %v5374_v4, %s5076_s11 }
  0xfd   : >> { %636 = vrot.lane.b32.xlu0 %v5363_v0, %s5077_s12 }
  0xfe   : >> { %638 = vrot.lane.b32.xlu1 %v5372_v3, %s5077_s12  ;;  %640 = vrot.lane.b32.xlu2 %v5361_v63, %s5077_s12 }
 0x105   : >> { %642 = vrot.lane.b32.xlu0 %v5365_v1, %s5077_s12 }
 0x106   : >> { %644 = vrot.lane.b32.xlu1 %v5369_v2, %s5077_s12  ;;  %646 = vrot.lane.b32.xlu2 %v5374_v4, %s5077_s12 }
 0x10d   : >> { %677 = vrot.lane.b32.xlu0 %v5363_v0, %s5078_s13 }
 0x10e   : >> { %679 = vrot.lane.b32.xlu1 %v5372_v3, %s5078_s13  ;;  %681 = vrot.lane.b32.xlu2 %v5361_v63, %s5078_s13 }
 0x115   : >> { %683 = vrot.lane.b32.xlu0 %v5365_v1, %s5078_s13 }
 0x116   : >> { %685 = vrot.lane.b32.xlu1 %v5369_v2, %s5078_s13  ;;  %687 = vrot.lane.b32.xlu2 %v5374_v4, %s5078_s13 }
 0x11d   : >> { %718 = vrot.lane.b32.xlu0 %v5363_v0, %s5079_s14 }
 0x11e   : >> { %720 = vrot.lane.b32.xlu1 %v5372_v3, %s5079_s14  ;;  %722 = vrot.lane.b32.xlu2 %v5361_v63, %s5079_s14 }
 0x125   : >> { %724 = vrot.lane.b32.xlu0 %v5365_v1, %s5079_s14 }
 0x126   : >> { %726 = vrot.lane.b32.xlu1 %v5369_v2, %s5079_s14  ;;  %728 = vrot.lane.b32.xlu2 %v5374_v4, %s5079_s14 }
 0x12d   : >> { %759 = vrot.lane.b32.xlu0 %v5363_v0, %s5080_s15 }
 0x12e   : >> { %761 = vrot.lane.b32.xlu1 %v5372_v3, %s5080_s15  ;;  %763 = vrot.lane.b32.xlu2 %v5361_v63, %s5080_s15 }
 0x135   : >> { %765 = vrot.lane.b32.xlu0 %v5365_v1, %s5080_s15 }
 0x136   : >> { %767 = vrot.lane.b32.xlu1 %v5369_v2, %s5080_s15  ;;  %769 = vrot.lane.b32.xlu2 %v5374_v4, %s5080_s15 }
 0x138   : >> { %v563_v5 = vpop.permute.xlu2 %562 }
 0x13d   : >> { %800 = vrot.lane.b32.xlu0 %v5363_v0, %s5081_s16 }
 0x13e   : >> { %802 = vrot.lane.b32.xlu1 %v5372_v3, %s5081_s16  ;;  %804 = vrot.lane.b32.xlu2 %v5361_v63, %s5081_s16 }
 0x140   : >> { %v565_v6 = vpop.permute.xlu2 %564 }
 0x141   : >> { %v5450_v7 = vsel %vm566_vm6, %v563_v5, %v565_v6  ;;  %582 = vst.msk [vmem:[#allocation3 + $0x58] sm:$0xff] %vm537_vm14, %v565_v6 }
 0x145   : >> { %806 = vrot.lane.b32.xlu0 %v5365_v1, %s5081_s16 }
 0x146   : >> { %808 = vrot.lane.b32.xlu1 %v5369_v2, %s5081_s16  ;;  %810 = vrot.lane.b32.xlu2 %v5374_v4, %s5081_s16 }
 0x148   : >> { %v600_v8 = vpop.permute.xlu2 %599 }
 0x149   : >> { %620 = vst.msk [vmem:[#allocation3 + $0x70] sm:$0xff] %vm537_vm14, %v600_v8 }
 0x14d   : >> { %841 = vrot.lane.b32.xlu0 %v5363_v0, %s5082_s17 }
 0x14e   : >> { %843 = vrot.lane.b32.xlu1 %v5372_v3, %s5082_s17  ;;  %845 = vrot.lane.b32.xlu2 %v5361_v63, %s5082_s17 }
 0x14f   : >> { %v555_v10 = vpop.permute.xlu0 %554 }
 0x150   : >> { %v559_v9 = vpop.permute.xlu1 %558  ;;  %v606_v11 = vpop.permute.xlu2 %605 }
 0x151   : >> { %579 = vst.msk [vmem:[#allocation3 + $0x40] sm:$0xff] %vm537_vm14, %v559_v9 }
 0x152   : >> { %623 = vst.msk [vmem:[#allocation3 + $0x88] sm:$0xff] %vm537_vm14, %v606_v11 }
 0x155   : >> { %847 = vrot.lane.b32.xlu0 %v5365_v1, %s5082_s17 }
 0x156   : >> { %849 = vrot.lane.b32.xlu1 %v5369_v2, %s5082_s17  ;;  %851 = vrot.lane.b32.xlu2 %v5374_v4, %s5082_s17 }
 0x157   : >> { %v557_v13 = vpop.permute.xlu0 %556 }
 0x158   : >> { %v561_v12 = vpop.permute.xlu1 %560  ;;  %v5478_v15 = vsel %vm566_vm6, %v555_v10, %v557_v13  ;;  %v5481_v16 = vsel %vm566_vm6, %v557_v13, %v559_v9  ;;  %v641_v17 = vpop.permute.xlu2 %640 }
 0x159   : >> { %v5475_v14 = vsel %vm566_vm6, %v561_v12, %v563_v5  ;;  %661 = vst.msk [vmem:[#allocation3 + $0xa0] sm:$0xff] %vm537_vm14, %v641_v17  ;;  %vm648_vm6 = vcmask 900096  }
 0x15f   : >> { %v596_v19 = vpop.permute.xlu0 %595 }
 0x160   : >> { %v598_v18 = vpop.permute.xlu1 %597  ;;  %v647_v22 = vpop.permute.xlu2 %646 }
 0x161   : >> { %v5484_v20 = vsel %vm607_vm13, %v598_v18, %v600_v8  ;;  %v5486_v21 = vsel %vm607_vm13, %v596_v19, %v598_v18  ;;  %664 = vst.msk [vmem:[#allocation3 + $0xb8] sm:$0xff] %vm537_vm14, %v647_v22 }
 0x167   : >> { %v602_v24 = vpop.permute.xlu0 %601 }
 0x168   : >> { %v604_v23 = vpop.permute.xlu1 %603  ;;  %v682_v42 = vpop.permute.xlu2 %681 }
 0x169   : >> { %v5489_v25 = vsel %vm607_vm13, %v604_v23, %v606_v11  ;;  %v5491_v26 = vsel %vm607_vm13, %v602_v24, %v604_v23  ;;  %702 = vst.msk [vmem:[#allocation3 + $0xd0] sm:$0xff] %vm537_vm14, %v682_v42  ;;  %vm689_vm13 = vcmask 891904  }
 0x16f   : >> { %v637_v47 = vpop.permute.xlu0 %636 }
 0x170   : >> { %v639_v46 = vpop.permute.xlu1 %638  ;;  %v688_v58 = vpop.permute.xlu2 %687 }
 0x171   : >> { %v5494_v56 = vsel %vm648_vm6, %v639_v46, %v641_v17  ;;  %v5496_v57 = vsel %vm648_vm6, %v637_v47, %v639_v46  ;;  %705 = vst.msk [vmem:[#allocation3 + $0xe8] sm:$0xff] %vm537_vm14, %v688_v58 }
 0x177   : >> { %v643_v60 = vpop.permute.xlu0 %642 }
 0x178   : >> { %v645_v59 = vpop.permute.xlu1 %644  ;;  %v723_v63 = vpop.permute.xlu2 %722 }
 0x179   : >> { %v5499_v61 = vsel %vm648_vm6, %v645_v59, %v647_v22  ;;  %v5501_v62 = vsel %vm648_vm6, %v643_v60, %v645_v59  ;;  %743 = vst.msk [vmem:[#allocation3 + $0x100] sm:$0xff] %vm537_vm14, %v723_v63  ;;  %vm730_vm6 = vcmask 883712  }
 0x17f   : >> { %v678_v5 = vpop.permute.xlu0 %677 }
 0x180   : >> { %v680_v4 = vpop.permute.xlu1 %679  ;;  %v729_v9 = vpop.permute.xlu2 %728 }
 0x181   : >> { %v5504_v6 = vsel %vm689_vm13, %v680_v4, %v682_v42  ;;  %v5506_v8 = vsel %vm689_vm13, %v678_v5, %v680_v4  ;;  %746 = vst.msk [vmem:[#allocation3 + $0x118] sm:$0xff] %vm537_vm14, %v729_v9 }
 0x187   : >> { %v684_v11 = vpop.permute.xlu0 %683 }
 0x188   : >> { %v686_v10 = vpop.permute.xlu1 %685  ;;  %v764_v17 = vpop.permute.xlu2 %763 }
 0x189   : >> { %v5509_v12 = vsel %vm689_vm13, %v686_v10, %v688_v58  ;;  %v692_v13 = vsel %vm689_vm13, %v684_v11, %v686_v10  ;;  %784 = vst.msk [vmem:[#allocation3 + $0x130] sm:$0xff] %vm537_vm14, %v764_v17  ;;  %vm812_vm13 = vcmask 744448  }
 0x18f   : >> { %v719_v19 = vpop.permute.xlu0 %718 }
 0x190   : >> { %v721_v18 = vpop.permute.xlu1 %720  ;;  %v770_v24 = vpop.permute.xlu2 %769 }
 0x191   : >> { %v732_v22 = vsel %vm730_vm6, %v721_v18, %v723_v63  ;;  %v731_v23 = vsel %vm730_vm6, %v719_v19, %v721_v18  ;;  %787 = vst.msk [vmem:[#allocation3 + $0x148] sm:$0xff] %vm537_vm14, %v770_v24 }
 0x197   : >> { %v725_v46 = vpop.permute.xlu0 %724 }
 0x198   : >> { %v727_v42 = vpop.permute.xlu1 %726  ;;  %v805_v60 = vpop.permute.xlu2 %804 }
 0x199   : >> { %v734_v47 = vsel %vm730_vm6, %v727_v42, %v729_v9  ;;  %v733_v59 = vsel %vm730_vm6, %v725_v46, %v727_v42  ;;  %825 = vst.msk [vmem:[#allocation3 + $0x160] sm:$0xff] %vm537_vm14, %v805_v60  ;;  %vm1683_vm6 = vcmask 1040384  }
 0x19f   : >> { %v760_v4 = vpop.permute.xlu0 %759 }
 0x1a0   : >> { %v762_v58 = vpop.permute.xlu1 %761  ;;  %v811_v11 = vpop.permute.xlu2 %810 }
 0x1a1   : >> { %v773_v5 = vsel %vm771_vm4, %v762_v58, %v764_v17  ;;  %v772_v10 = vsel %vm771_vm4, %v760_v4, %v762_v58  ;;  %828 = vst.msk [vmem:[#allocation3 + $0x178] sm:$0xff] %vm537_vm14, %v811_v11 }
 0x1a7   : >> { %v766_v18 = vpop.permute.xlu0 %765 }
 0x1a8   : >> { %v768_v63 = vpop.permute.xlu1 %767  ;;  %v846_v35 = vpop.permute.xlu2 %845 }
 0x1a9   : >> { %v775_v19 = vsel %vm771_vm4, %v768_v63, %v770_v24  ;;  %v774_v55 = vsel %vm771_vm4, %v766_v18, %v768_v63  ;;  %866 = vst.msk [vmem:[#allocation3 + $0x190] sm:$0xff] %vm537_vm14, %v846_v35  ;;  %vm853_vm4 = vcmask 736256  }
 0x1af   : >> { %v801_v42 = vpop.permute.xlu0 %800 }
 0x1b0   : >> { %v803_v9 = vpop.permute.xlu1 %802  ;;  %v852_v37 = vpop.permute.xlu2 %851 }
 0x1b1   : >> { %v814_v46 = vsel %vm812_vm13, %v803_v9, %v805_v60  ;;  %v813_v36 = vsel %vm812_vm13, %v801_v42, %v803_v9  ;;  %869 = vst.msk [vmem:[#allocation3 + $0x1a8] sm:$0xff] %vm537_vm14, %v852_v37  ;;  %v5083_v9 = vmov 0  }
 0x1b2   : >> { %5037 = vset.pattern.permute.xlu0 %v5083_v9  ;;  %5038 = vset.pattern.permute.xlu1 %v5083_v9 }
 0x1b3   : >> { %926 = vperm.xlu0 %5037, %v7628_v31   ;;  %931 = vperm.xlu1 %5038, %v7629_v32  }
 0x1b7   : >> { %v807_v58 = vpop.permute.xlu0 %806 }
 0x1b8   : >> { %v809_v17 = vpop.permute.xlu1 %808 }
 0x1b9   : >> { %v816_v4 = vsel %vm812_vm13, %v809_v17, %v811_v11  ;;  %v815_v38 = vsel %vm812_vm13, %v807_v58, %v809_v17  ;;  %vm1685_vm13 = vcmask 1041409  }
 0x1ba   : >> { %940 = vmatpush.msra.mxu0 %v815_v38  ;;  %986 = vmatpush.msra.mxu2 %v816_v4 }
 0x1bc   : >> { %941 = vmatpush.msra.mxu0 %v813_v36  ;;  %987 = vmatpush.msra.mxu2 %v814_v46 }
 0x1be   : >> { %942 = vmatpush.msra.mxu0 %v774_v55  ;;  %988 = vmatpush.msra.mxu2 %v775_v19 }
 0x1bf   : >> { %v842_v63 = vpop.permute.xlu0 %841 }
 0x1c0   : >> { %v844_v24 = vpop.permute.xlu1 %843  ;;  %989 = vmatpush.msra.mxu2 %v773_v5  ;;  %943 = vmatpush.msra.mxu0 %v772_v10 }
 0x1c1   : >> { %v854_v60 = vsel %vm853_vm4, %v842_v63, %v844_v24  ;;  %v855_v18 = vsel %vm853_vm4, %v844_v24, %v846_v35 }
 0x1c2   : >> { %944 = vmatpush.msra.mxu0 %v733_v59  ;;  %990 = vmatpush.msra.mxu2 %v734_v47 }
 0x1c4   : >> { %945 = vmatpush.msra.mxu0 %v731_v23  ;;  %991 = vmatpush.msra.mxu2 %v732_v22  ;;  %v917_v22 = vld [vmem:[#allocation3 + $0x178] sm:$0xff] }
 0x1c6   : >> { %946 = vmatpush.msra.mxu0 %v692_v13  ;;  %992 = vmatpush.msra.mxu2 %v5509_v12  ;;  %v914_v12 = vld [vmem:[#allocation3 + $0x160] sm:$0xff] }
 0x1c7   : >> { %v848_v38 = vpop.permute.xlu0 %847 }
 0x1c8   : >> { %v850_v36 = vpop.permute.xlu1 %849  ;;  %947 = vmatpush.msra.mxu0 %v5506_v8  ;;  %993 = vmatpush.msra.mxu2 %v5504_v6  ;;  %v911_v6 = vld [vmem:[#allocation3 + $0x148] sm:$0xff] }
 0x1c9   : >> { %v856_v35 = vsel %vm853_vm4, %v848_v38, %v850_v36  ;;  %v857_v55 = vsel %vm853_vm4, %v850_v36, %v852_v37  ;;  %v908_v37 = vld [vmem:[#allocation3 + $0x130] sm:$0xff]  ;;  %v7632_v8 = vld [vmem:[#allocation16_spill] sm:$0xff]  ;;  %vm1691_vm4 = vcmask 1043459  }
 0x1ca   : >> { %948 = vmatpush.msra.mxu0 %v5501_v62  ;;  %977 = vmatpush.msra.mxu1 %v856_v35  ;;  %v7631_v62 = vld [vmem:[#allocation17_spill] sm:$0xff] }
 0x1cb   : >> { %994 = vmatpush.msra.mxu2 %v5499_v61  ;;  %1023 = vmatpush.msra.mxu3 %v857_v55  ;;  %v7630_v61 = vld [vmem:[#allocation18_spill] sm:$0xff] }
 0x1cc   : >> { %949 = vmatpush.msra.mxu0 %v5496_v57  ;;  %978 = vmatpush.msra.mxu1 %v854_v60  ;;  %v872_v57 = vld [vmem:[#allocation3 + $0x10] sm:$0xff] }
 0x1cd   : >> { %995 = vmatpush.msra.mxu2 %v5494_v56  ;;  %1024 = vmatpush.msra.mxu3 %v855_v18  ;;  %v905_v56 = vld [vmem:[#allocation3 + $0x118] sm:$0xff] }
 0x1ce   : >> { %1032 = vmatpush.msrb.mxu1 %v917_v22  ;;  %950 = vmatpush.msra.mxu0 %v5491_v26  ;;  %v875_v26 = vld [vmem:[#allocation3 + $0x28] sm:$0xff] }
 0x1cf   : >> { %996 = vmatpush.msra.mxu2 %v5489_v25  ;;  %4865 = vmatmul.msk.f32.vlgmr.msra.gmra.mxu1 %vm387_vm3, %v7626_v28  ;;  %v902_v25 = vld [vmem:[#allocation3 + $0x100] sm:$0xff] }
 0x1d0   : >> { %1033 = vmatpush.msrb.mxu1 %v914_v12  ;;  %951 = vmatpush.msra.mxu0 %v5486_v21  ;;  %v923_v21 = vld [vmem:[#allocation3 + $0x1a8] sm:$0xff] }
 0x1d1   : >> { %997 = vmatpush.msra.mxu2 %v5484_v20  ;;  %4867 = vmatmul.msk.f32.vlgmr.msra.gmra.mxu3 %vm387_vm3, %v7626_v28  ;;  %v878_v20 = vld [vmem:[#allocation3 + $0x40] sm:$0xff] }
 0x1d2   : >> { %1034 = vmatpush.msrb.mxu1 %v911_v6  ;;  %952 = vmatpush.msra.mxu0 %v5475_v14  ;;  %v899_v14 = vld [vmem:[#allocation3 + $0xe8] sm:$0xff] }
 0x1d3   : >> { %998 = vmatpush.msra.mxu2 %v5450_v7  ;;  %4923 = vmatpush.msrb.mxu3 %v923_v21  ;;  %v896_v7 = vld [vmem:[#allocation3 + $0xd0] sm:$0xff] }
 0x1d4   : >> { %1035 = vmatpush.msrb.mxu1 %v908_v37  ;;  %953 = vmatpush.msra.mxu0 %v5478_v15  ;;  %v893_v15 = vld [vmem:[#allocation3 + $0xb8] sm:$0xff] }
 0x1d5   : >> { %999 = vmatpush.msra.mxu2 %v5481_v16  ;;  %v881_v16 = vld [vmem:[#allocation3 + $0x58] sm:$0xff] }
 0x1d6   : >> { %1036 = vmatpush.msrb.mxu1 %v905_v56  ;;  %954 = vmatpush.msra.mxu0 %v5365_v1  ;;  %v920_v1 = vld [vmem:[#allocation3 + $0x190] sm:$0xff] }
 0x1d7   : >> { %1000 = vmatpush.msra.mxu2 %v5369_v2  ;;  %4866 = vmatmul.msk.f32.gmra.mxu1 %vm387_vm3, %v7624_v30  ;;  %v887_v2 = vld [vmem:[#allocation3 + $0x88] sm:$0xff] }
 0x1d8   : >> { %1037 = vmatpush.msrb.mxu1 %v902_v25  ;;  %955 = vmatpush.msra.mxu0 %v5363_v0  ;;  %v890_v0 = vld [vmem:[#allocation3 + $0xa0] sm:$0xff] }
 0x1d9   : >> { %1001 = vmatpush.msra.mxu2 %v5372_v3  ;;  %956 = vmatmul.f32.vlgmr.msra.gmra.mxu0 %v7627_v27  ;;  %v884_v3 = vld [vmem:[#allocation3 + $0x70] sm:$0xff] }
 0x1da   : >> { %1002 = vmatmul.f32.vlgmr.msra.gmra.mxu2 %v7627_v27  ;;  %1038 = vmatpush.msrb.mxu1 %v899_v14 }
 0x1db   : >> { %4868 = vmatmul.msk.f32.gmra.mxu3 %vm387_vm3, %v7624_v30  ;;  %3114 = vmatpush.msrb.mxu0 %v7609_v54 }
 0x1dc   : >> { %1039 = vmatpush.msrb.mxu1 %v896_v7  ;;  %4924 = vmatpush.msrb.mxu3 %v920_v1 }
 0x1dd   : >> { %3115 = vmatpush.msrb.mxu0 %v7610_v53  ;;  %4928 = vmatpush.msrb.mxu2 %v7609_v54 }
 0x1de   : >> { %4925 = vmatpush.msra.mxu3 %v7622_v34  ;;  %1040 = vmatpush.msrb.mxu1 %v893_v15 }
 0x1df   : >> { %3116 = vmatpush.msrb.mxu0 %v7611_v52  ;;  %4930 = vmatpush.msrb.mxu2 %v7610_v53 }
 0x1e0   : >> { %4926 = vmatpush.msra.mxu3 %v7623_v33  ;;  %1041 = vmatpush.msrb.mxu1 %v890_v0 }
 0x1e1   : >> { %959 = vmatmul.f32.gmra.mxu0 %v7625_v29  ;;  %4932 = vmatpush.msrb.mxu2 %v7611_v52 }
 0x1e2   : >> { %1042 = vmatpush.msrb.mxu1 %v887_v2  ;;  %1005 = vmatmul.f32.gmra.mxu2 %v7625_v29 }
 0x1e3   : >> { %4870 = vmatmul.msk.f32.vlgmr.msrb.gmra.mxu3 %vm387_vm3, %v7624_v30  ;;  %3117 = vmatpush.msrb.mxu0 %v7612_v51 }
 0x1e4   : >> { %1043 = vmatpush.msrb.mxu1 %v884_v3  ;;  %4934 = vmatpush.msrb.mxu2 %v7612_v51 }
 0x1e5   : >> { %3118 = vmatpush.msrb.mxu0 %v7613_v50 }
 0x1e6   : >> { %1044 = vmatpush.msrb.mxu1 %v881_v16  ;;  %4936 = vmatpush.msrb.mxu2 %v7613_v50 }
 0x1e7   : >> { %3119 = vmatpush.msrb.mxu0 %v7614_v49 }
 0x1e8   : >> { %1045 = vmatpush.msrb.mxu1 %v878_v20  ;;  %4938 = vmatpush.msrb.mxu2 %v7614_v49 }
 0x1e9   : >> { %3120 = vmatpush.msrb.mxu0 %v7615_v48 }
 0x1ea   : >> { %1046 = vmatpush.msrb.mxu1 %v875_v26  ;;  %4940 = vmatpush.msrb.mxu2 %v7615_v48 }
 0x1eb   : >> { %3121 = vmatpush.msrb.mxu0 %v7616_v45 }
 0x1ec   : >> { %1047 = vmatpush.msrb.mxu1 %v872_v57  ;;  %4942 = vmatpush.msrb.mxu2 %v7616_v45 }
 0x1ed   : >> { %1048 = vmatmul.f32.vlgmr.msrb.gmra.mxu1 %v7627_v27  ;;  %3122 = vmatpush.msrb.mxu0 %v7617_v44 }
 0x1ee   : >> { %1069 = vmatpush.msra.mxu1 %v923_v21  ;;  %4944 = vmatpush.msrb.mxu2 %v7617_v44 }
 0x1ef   : >> { %3123 = vmatpush.msrb.mxu0 %v7618_v43 }
 0x1f0   : >> { %1070 = vmatpush.msra.mxu1 %v920_v1  ;;  %4946 = vmatpush.msrb.mxu2 %v7618_v43 }
 0x1f1   : >> { %3124 = vmatpush.msrb.mxu0 %v7619_v41 }
 0x1f2   : >> { %2980 = vmatpush.msrb.mxu1 %v7622_v34  ;;  %4948 = vmatpush.msrb.mxu2 %v7619_v41 }
 0x1f3   : >> { %3125 = vmatpush.msrb.mxu0 %v7620_v40 }
 0x1f4   : >> { %2981 = vmatpush.msrb.mxu1 %v7623_v33  ;;  %4950 = vmatpush.msrb.mxu2 %v7620_v40 }
 0x1f5   : >> { %1051 = vmatmul.f32.gmra.mxu1 %v7625_v29  ;;  %3126 = vmatpush.msrb.mxu0 %v7621_v39 }
 0x1f6   : >> { %4952 = vmatpush.msrb.mxu2 %v7621_v39 }
 0x1f7   : >> { %3127 = vmatpush.msrb.mxu0 %v7630_v61 }
 0x1f8   : >> { %4954 = vmatpush.msrb.mxu2 %v7630_v61 }
 0x1f9   : >> { %3128 = vmatpush.msrb.mxu0 %v7631_v62 }
 0x1fa   : >> { %4956 = vmatpush.msrb.mxu2 %v7631_v62 }
 0x1fb   : >> { %3129 = vmatpush.msrb.mxu0 %v7632_v8 }
 0x1fc   : >> { %4958 = vmatpush.msrb.mxu2 %v7632_v8 }
 0x1fd   : >> { %4869 = vmatmul.msk.f32.vlgmr.msra.gmra.mxu1 %vm387_vm3, %v7626_v28 }
 0x1fe   : >> { %4927 = vmatpush.msra.mxu1 %v7609_v54 }
 0x200   : >> { %4929 = vmatpush.msra.mxu1 %v7610_v53 }
 0x202   : >> { %4931 = vmatpush.msra.mxu1 %v7611_v52 }
 0x204   : >> { %4933 = vmatpush.msra.mxu1 %v7612_v51 }
 0x206   : >> { %4935 = vmatpush.msra.mxu1 %v7613_v50 }
 0x208   : >> { %4937 = vmatpush.msra.mxu1 %v7614_v49 }
 0x20a   : >> { %4939 = vmatpush.msra.mxu1 %v7615_v48 }
 0x20c   : >> { %4941 = vmatpush.msra.mxu1 %v7616_v45 }
 0x20e   : >> { %4943 = vmatpush.msra.mxu1 %v7617_v44 }
 0x210   : >> { %4945 = vmatpush.msra.mxu1 %v7618_v43 }
 0x212   : >> { %4947 = vmatpush.msra.mxu1 %v7619_v41 }
 0x214   : >> { %4949 = vmatpush.msra.mxu1 %v7620_v40 }
 0x216   : >> { %4951 = vmatpush.msra.mxu1 %v7621_v39 }
 0x218   : >> { %4953 = vmatpush.msra.mxu1 %v7630_v61 }
 0x21a   : >> { %4955 = vmatpush.msra.mxu1 %v7631_v62 }
 0x21c   : >> { %4957 = vmatpush.msra.mxu1 %v7632_v8 }
 0x225   : >> { %v927_v13 = vpop.permute.xlu0 %926 }
 0x24c   : >> { %v980_v47 = vpop.f32.mrf.mxu1 }
 0x254   : >> { %v1026_v19 = vpop.f32.mrf.mxu3  ;;  %v983_v58 = vpop.f32.mrf.mxu1 }
 0x256   : >> { %v957_v23 = vpop.f32.mrf.mxu0 }
 0x257   : >> { %v958_v59 = vadd.f32 %v957_v23, %v927_v13  ;;  %v932_v23 = vpop.permute.xlu1 %931 }
 0x259   : >> { %v981_v5 = vadd.f32 %v980_v47, %v958_v59 }
 0x25b   : >> { %v5612_v10 = vperm.slane %v981_v5, 0  ;;  %v1090_v46 = vrot.slane %v981_v5, 3  ;;  %v1093_v55 = vrot.slane %v981_v5, 6  ;;  %v1088_v22 = vrot.slane %v981_v5, 1 }
 0x25c   : >> { %v1089_v12 = vrot.slane %v981_v5, 2  ;;  %v1091_v14 = vrot.slane %v981_v5, 4  ;;  %v1092_v7 = vrot.slane %v981_v5, 5  ;;  %v1094_v2 = vrot.slane %v981_v5, 7 }
 0x25d   : >> { %v1003_v11 = vpop.f32.mrf.mxu2  ;;  %1413 = vrot.lane.b32.xlu0 %v5612_v10, %s5084_s18  ;;  %1217 = vrot.lane.b32.xlu1 %v5612_v10, %s5081_s16  ;;  %v5620_v24 = vperm.slane %v1090_v46, 0  ;;  %v5652_v56 = vperm.slane %v1093_v55, 0  ;;  %v5654_v25 = vperm.slane %v1088_v22, 0 }
 0x25e   : >> { %v1004_v42 = vadd.f32 %v1003_v11, %v927_v13  ;;  %1118 = vrot.lane.b32.xlu2 %v5612_v10, %s5078_s13  ;;  %v5656_v21 = vperm.slane %v1089_v12, 0  ;;  %v5664_v1 = vperm.slane %v1091_v14, 0  ;;  %v5666_v0 = vperm.slane %v1092_v7, 0  ;;  %v1029_v57 = vpop.f32.mrf.mxu3  ;;  %v960_v47 = vpop.f32.mrf.mxu0 }
 0x25f   : >> { %v5674_v26 = vperm.slane %v1094_v2, 0 }
 0x260   : >> { %v1027_v17 = vadd.f32 %v1026_v19, %v1004_v42 }
 0x262   : >> { %1079 = vst [vmem:[#allocation4 + $0x8] sm:$0xff] %v1027_v17  ;;  %v1681_v4 = vrot.slane %v1027_v17, 7 }
 0x264   : >> { %v5623_v63 = vsel %vm1683_vm6, %v981_v5, %v1681_v4  ;;  %v5626_v60 = vsel %vm1685_vm13, %v981_v5, %v1681_v4  ;;  %v5629_v18 = vsel %vm1691_vm4, %v981_v5, %v1681_v4  ;;  %v5632_v9 = vsel %vm1688_vm5, %v981_v5, %v1681_v4 }
 0x265   : >> { %1511 = vrot.lane.b32.xlu1 %v5612_v10, %s5085_s19  ;;  %1124 = vrot.lane.b32.xlu0 %v5620_v24, %s5078_s13  ;;  %v5641_v36 = vsel %vm1694_vm12, %v981_v5, %v1681_v4  ;;  %v5644_v38 = vsel %vm1700_vm15, %v981_v5, %v1681_v4  ;;  %v5647_v35 = vsel %vm1697_vm11, %v981_v5, %v1681_v4  ;;  %v1006_v59 = vpop.f32.mrf.mxu2 }
 0x266   : >> { %1315 = vrot.lane.b32.xlu2 %v5612_v10, %s5086_s21  ;;  %v5650_v6 = vsel %vm1703_vm7, %v1681_v4, %v981_v5  ;;  %v1007_v5 = vadd.f32 %v1006_v59, %v932_v23  ;;  %v1075_v4 = vpop.f32.mrf.mxu3 }
 0x268   : >> { %v1030_v19 = vadd.f32 %v1029_v57, %v1007_v5 }
 0x269   : >> { %v5693_v55 = vld [vmem:[#allocation4 + $0x8] sm:$0xff] }
 0x26a   : >> { %v1049_v37 = vpop.f32.mrf.mxu1  ;;  %1082 = vst [vmem:[#allocation4 + $0x20] sm:$0xff] %v1030_v19  ;;  %v1682_v2 = vrot.slane %v1030_v19, 7 }
 0x26b   : >> { %v1050_v3 = vadd.f32 %v1049_v37, %v927_v13  ;;  %v961_v13 = vadd.f32 %v960_v47, %v932_v23 }
 0x26d   : >> { %1130 = vrot.lane.b32.xlu0 %v5652_v56, %s5078_s13  ;;  %1120 = vrot.lane.b32.xlu1 %v5654_v25, %s5078_s13  ;;  %v5683_v11 = vadd.f32 %v983_v58, %v961_v13 }
 0x26e   : >> { %1122 = vrot.lane.b32.xlu2 %v5656_v21, %s5078_s13 }
 0x26f   : >> { %v5752_v57 = vsel %vm1694_vm12, %v5683_v11, %v1682_v2  ;;  %v5760_v47 = vsel %vm1697_vm11, %v5683_v11, %v1682_v2  ;;  %v5764_v59 = vsel %vm1703_vm7, %v1682_v2, %v5683_v11  ;;  %v5774_v5 = vsel %vm1700_vm15, %v5683_v11, %v1682_v2 }
 0x270   : >> { %v1095_v27 = vrot.slane %v5683_v11, 1  ;;  %v1098_v30 = vrot.slane %v5683_v11, 4  ;;  %v1096_v33 = vrot.slane %v5683_v11, 2  ;;  %v1099_v40 = vrot.slane %v5683_v11, 5 }
 0x271   : >> { %v1199_v44 = vrot.slane %v5683_v11, 6 }
 0x272   : >> { %v1052_v15 = vpop.f32.mrf.mxu1  ;;  %v5826_v29 = vperm.slane %v1095_v27, 0  ;;  %v5836_v32 = vperm.slane %v1098_v30, 0  ;;  %v1101_v27 = vrot.slane %v5683_v11, 7  ;;  %v5849_v30 = vperm.slane %v1096_v33, 0 }
 0x273   : >> { %v1053_v17 = vadd.f32 %v1052_v15, %v932_v23  ;;  %v5756_v23 = vsel %vm1691_vm4, %v5683_v11, %v1682_v2  ;;  %v5862_v33 = vperm.slane %v1099_v40, 0  ;;  %v5874_v40 = vperm.slane %v1199_v44, 0 }
 0x274   : >> { %v5847_v39 = vperm.slane %v1101_v27, 0 }
 0x275   : >> { %1221 = vrot.lane.b32.xlu0 %v5656_v21, %s5081_s16  ;;  %1126 = vrot.lane.b32.xlu1 %v5664_v1, %s5078_s13  ;;  %v1076_v58 = vadd.f32 %v1075_v4, %v1053_v17 }
 0x276   : >> { %1128 = vrot.lane.b32.xlu2 %v5666_v0, %s5078_s13 }
 0x277   : >> { %1083 = vst.msk [vmem:[#allocation4 + $0x28] sm:$0xff] %vm537_vm14, %v1076_v58  ;;  %v5797_v58 = vperm.slane %v5683_v11, 0 }
 0x27a   : >> { %v1072_v16 = vpop.f32.mrf.mxu1 }
 0x27b   : >> { %v1073_v20 = vadd.f32 %v1072_v16, %v1050_v3  ;;  %v5740_v3 = vsel %vm1685_vm13, %v5683_v11, %v1682_v2  ;;  %v5744_v16 = vsel %vm1683_vm6, %v5683_v11, %v1682_v2 }
 0x27d   : >> { %1080 = vst.msk [vmem:[#allocation4 + $0x10] sm:$0xff] %vm537_vm14, %v1073_v20  ;;  %1227 = vrot.lane.b32.xlu0 %v5666_v0, %s5081_s16  ;;  %1132 = vrot.lane.b32.xlu1 %v5674_v26, %s5078_s13  ;;  %v5748_v20 = vsel %vm1688_vm5, %v5683_v11, %v1682_v2  ;;  %vm1166_vm14 = vcmask 122880  }
 0x27e   : >> { %1219 = vrot.lane.b32.xlu2 %v5654_v25, %s5081_s16  ;;  %v2457_v13 = vld [vmem:[#allocation4 + $0x28] sm:$0xff] }
 0x27f   : >> { %v5776_v19 = vrot.slane %v2457_v13, 7 }
 0x284   : >> { %v2455_v42 = vld [vmem:[#allocation4 + $0x10] sm:$0xff] }
 0x285   : >> { %v5685_v46 = vrot.slane %v2455_v42, 7  ;;  %1317 = vrot.lane.b32.xlu0 %v5654_v25, %s5086_s21  ;;  %1223 = vrot.lane.b32.xlu1 %v5620_v24, %s5081_s16  ;;  %v5778_v42 = vld [vmem:[#allocation4 + $0x20] sm:$0xff] }
 0x286   : >> { %1225 = vrot.lane.b32.xlu2 %v5664_v1, %s5081_s16  ;;  %v5783_v17 = vsel %vm1688_vm5, %v5778_v42, %v5776_v19  ;;  %v5792_v4 = vsel %vm1691_vm4, %v5778_v42, %v5776_v19  ;;  %v5802_v2 = vsel %vm1694_vm12, %v5778_v42, %v5776_v19  ;;  %v5807_v13 = vsel %vm1697_vm11, %v5778_v42, %v5776_v19 }
 0x287   : >> { %v5698_v22 = vsel %vm1683_vm6, %v5693_v55, %v5685_v46  ;;  %v5703_v12 = vsel %vm1685_vm13, %v5693_v55, %v5685_v46  ;;  %v5709_v37 = vsel %vm1688_vm5, %v5693_v55, %v5685_v46  ;;  %v5714_v14 = vsel %vm1691_vm4, %v5693_v55, %v5685_v46 }
 0x288   : >> { %v5719_v7 = vsel %vm1694_vm12, %v5693_v55, %v5685_v46  ;;  %v5730_v15 = vsel %vm1697_vm11, %v5693_v55, %v5685_v46  ;;  %v5812_v8 = vsel %vm1700_vm15, %v5778_v42, %v5776_v19  ;;  %v5824_v28 = vsel %vm1703_vm7, %v5776_v19, %v5778_v42 }
 0x28d   : >> { %1323 = vrot.lane.b32.xlu0 %v5664_v1, %s5086_s21  ;;  %1229 = vrot.lane.b32.xlu1 %v5652_v56, %s5081_s16 }
 0x28e   : >> { %1231 = vrot.lane.b32.xlu2 %v5674_v26, %s5081_s16 }
 0x295   : >> { %1329 = vrot.lane.b32.xlu0 %v5674_v26, %s5086_s21  ;;  %1319 = vrot.lane.b32.xlu1 %v5656_v21, %s5086_s21 }
 0x296   : >> { %1321 = vrot.lane.b32.xlu2 %v5620_v24, %s5086_s21 }
 0x29d   : >> { %1419 = vrot.lane.b32.xlu0 %v5620_v24, %s5084_s18  ;;  %1325 = vrot.lane.b32.xlu1 %v5666_v0, %s5086_s21 }
 0x29e   : >> { %1327 = vrot.lane.b32.xlu2 %v5652_v56, %s5086_s21 }
 0x2a5   : >> { %1425 = vrot.lane.b32.xlu0 %v5652_v56, %s5084_s18  ;;  %1415 = vrot.lane.b32.xlu1 %v5654_v25, %s5084_s18 }
 0x2a6   : >> { %1417 = vrot.lane.b32.xlu2 %v5656_v21, %s5084_s18 }
 0x2ad   : >> { %1233 = vrot.lane.b32.xlu0 %v5797_v58, %s5081_s16  ;;  %1421 = vrot.lane.b32.xlu1 %v5664_v1, %s5084_s18 }
 0x2ae   : >> { %1423 = vrot.lane.b32.xlu2 %v5666_v0, %s5084_s18 }
 0x2b5   : >> { %1136 = vrot.lane.b32.xlu0 %v5826_v29, %s5078_s13  ;;  %1427 = vrot.lane.b32.xlu1 %v5674_v26, %s5084_s18 }
 0x2b6   : >> { %1513 = vrot.lane.b32.xlu2 %v5654_v25, %s5085_s19 }
 0x2b8   : >> { %v1119_v31 = vpop.permute.xlu2 %1118 }
 0x2b9   : >> { %1167 = vst.msk [vmem:[#allocation5] sm:$0x1] %vm1166_vm14, %v1119_v31  ;;  %v1196_v31 = vrot.slane %v5683_v11, 3 }
 0x2bd   : >> { %1142 = vrot.lane.b32.xlu0 %v5836_v32, %s5078_s13  ;;  %1331 = vrot.lane.b32.xlu1 %v5797_v58, %s5086_s21 }
 0x2be   : >> { %1134 = vrot.lane.b32.xlu2 %v5797_v58, %s5078_s13 }
 0x2c0   : >> { %v1316_v34 = vpop.permute.xlu2 %1315 }
 0x2c1   : >> { %1363 = vst.msk [vmem:[#allocation5 + $0x2] sm:$0x1] %vm1166_vm14, %v1316_v34  ;;  %v5860_v34 = vperm.slane %v1196_v31, 0 }
 0x2c5   : >> { %1148 = vrot.lane.b32.xlu0 %v5847_v39, %s5078_s13  ;;  %1138 = vrot.lane.b32.xlu1 %v5849_v30, %s5078_s13 }
 0x2c6   : >> { %1429 = vrot.lane.b32.xlu2 %v5797_v58, %s5084_s18 }
 0x2c8   : >> { %v1123_v41 = vpop.permute.xlu2 %1122 }
 0x2c9   : >> { %1169 = vst.msk [vmem:[#allocation5 + $0x20] sm:$0x1] %vm1166_vm14, %v1123_v41 }
 0x2cd   : >> { %1239 = vrot.lane.b32.xlu0 %v5860_v34, %s5081_s16  ;;  %1144 = vrot.lane.b32.xlu1 %v5862_v33, %s5078_s13 }
 0x2ce   : >> { %1140 = vrot.lane.b32.xlu2 %v5860_v34, %s5078_s13 }
 0x2cf   : >> { %v1414_v27 = vpop.permute.xlu0 %1413  ;;  %v1218_v43 = vpop.permute.xlu1 %1217 }
 0x2d0   : >> { %1461 = vst.msk [vmem:[#allocation5 + $0x3] sm:$0x1] %vm1166_vm14, %v1414_v27  ;;  %v1129_v41 = vpop.permute.xlu2 %1128 }
 0x2d1   : >> { %1265 = vst.msk [vmem:[#allocation5 + $0x1] sm:$0x1] %vm1166_vm14, %v1218_v43 }
 0x2d2   : >> { %1172 = vst.msk [vmem:[#allocation5 + $0x50] sm:$0x1] %vm1166_vm14, %v1129_v41 }
 0x2d5   : >> { %1245 = vrot.lane.b32.xlu0 %v5874_v40, %s5081_s16  ;;  %1235 = vrot.lane.b32.xlu1 %v5826_v29, %s5081_s16 }
 0x2d6   : >> { %1146 = vrot.lane.b32.xlu2 %v5874_v40, %s5078_s13  ;;  %s5092_s13 = smov 93  }
 0x2d7   : >> { %v1512_v31 = vpop.permute.xlu1 %1511  ;;  %v1125_v11 = vpop.permute.xlu0 %1124 }
 0x2d8   : >> { %1559 = vst.msk [vmem:[#allocation5 + $0x4] sm:$0x1] %vm1166_vm14, %v1512_v31  ;;  %v1220_v27 = vpop.permute.xlu2 %1219 }
 0x2d9   : >> { %1170 = vst.msk [vmem:[#allocation5 + $0x30] sm:$0x1] %vm1166_vm14, %v1125_v11 }
 0x2da   : >> { %1266 = vst.msk [vmem:[#allocation5 + $0x11] sm:$0x1] %vm1166_vm14, %v1220_v27 }
 0x2dd   : >> { %1335 = vrot.lane.b32.xlu0 %v5849_v30, %s5086_s21  ;;  %1241 = vrot.lane.b32.xlu1 %v5836_v32, %s5081_s16 }
 0x2de   : >> { %1237 = vrot.lane.b32.xlu2 %v5849_v30, %s5081_s16 }
 0x2df   : >> { %v1131_v43 = vpop.permute.xlu0 %1130  ;;  %v1121_v44 = vpop.permute.xlu1 %1120 }
 0x2e0   : >> { %1173 = vst.msk [vmem:[#allocation5 + $0x60] sm:$0x1] %vm1166_vm14, %v1131_v43  ;;  %v1226_v41 = vpop.permute.xlu2 %1225 }
 0x2e1   : >> { %1269 = vst.msk [vmem:[#allocation5 + $0x41] sm:$0x1] %vm1166_vm14, %v1226_v41 }
 0x2e2   : >> { %1168 = vst.msk [vmem:[#allocation5 + $0x10] sm:$0x1] %vm1166_vm14, %v1121_v44 }
 0x2e5   : >> { %1341 = vrot.lane.b32.xlu0 %v5862_v33, %s5086_s21  ;;  %1247 = vrot.lane.b32.xlu1 %v5847_v39, %s5081_s16 }
 0x2e6   : >> { %1243 = vrot.lane.b32.xlu2 %v5862_v33, %s5081_s16  ;;  %s5093_s16 = smov 113  }
 0x2e7   : >> { %v1222_v31 = vpop.permute.xlu0 %1221  ;;  %v1127_v11 = vpop.permute.xlu1 %1126 }
 0x2e8   : >> { %1267 = vst.msk [vmem:[#allocation5 + $0x21] sm:$0x1] %vm1166_vm14, %v1222_v31  ;;  %v1232_v27 = vpop.permute.xlu2 %1231 }
 0x2e9   : >> { %1272 = vst.msk [vmem:[#allocation5 + $0x71] sm:$0x1] %vm1166_vm14, %v1232_v27 }
 0x2ea   : >> { %1171 = vst.msk [vmem:[#allocation5 + $0x40] sm:$0x1] %vm1166_vm14, %v1127_v11 }
 0x2ed   : >> { %1431 = vrot.lane.b32.xlu0 %v5826_v29, %s5084_s18  ;;  %1337 = vrot.lane.b32.xlu1 %v5860_v34, %s5086_s21 }
 0x2ee   : >> { %1333 = vrot.lane.b32.xlu2 %v5826_v29, %s5086_s21 }
 0x2ef   : >> { %v1228_v43 = vpop.permute.xlu0 %1227  ;;  %v1133_v44 = vpop.permute.xlu1 %1132 }
 0x2f0   : >> { %1270 = vst.msk [vmem:[#allocation5 + $0x51] sm:$0x1] %vm1166_vm14, %v1228_v43  ;;  %v1322_v41 = vpop.permute.xlu2 %1321 }
 0x2f1   : >> { %1366 = vst.msk [vmem:[#allocation5 + $0x32] sm:$0x1] %vm1166_vm14, %v1322_v41 }
 0x2f2   : >> { %1174 = vst.msk [vmem:[#allocation5 + $0x70] sm:$0x1] %vm1166_vm14, %v1133_v44 }
 0x2f5   : >> { %1437 = vrot.lane.b32.xlu0 %v5836_v32, %s5084_s18  ;;  %1343 = vrot.lane.b32.xlu1 %v5874_v40, %s5086_s21 }
 0x2f6   : >> { %1339 = vrot.lane.b32.xlu2 %v5836_v32, %s5086_s21 }
 0x2f7   : >> { %v1318_v31 = vpop.permute.xlu0 %1317  ;;  %v1224_v11 = vpop.permute.xlu1 %1223 }
 0x2f8   : >> { %1364 = vst.msk [vmem:[#allocation5 + $0x12] sm:$0x1] %vm1166_vm14, %v1318_v31  ;;  %v1328_v27 = vpop.permute.xlu2 %1327 }
 0x2f9   : >> { %1369 = vst.msk [vmem:[#allocation5 + $0x62] sm:$0x1] %vm1166_vm14, %v1328_v27 }
 0x2fa   : >> { %1268 = vst.msk [vmem:[#allocation5 + $0x31] sm:$0x1] %vm1166_vm14, %v1224_v11 }
 0x2fd   : >> { %1443 = vrot.lane.b32.xlu0 %v5847_v39, %s5084_s18  ;;  %1433 = vrot.lane.b32.xlu1 %v5849_v30, %s5084_s18 }
 0x2fe   : >> { %1345 = vrot.lane.b32.xlu2 %v5847_v39, %s5086_s21  ;;  %s5096_s21 = smov 95  }
 0x2ff   : >> { %v1324_v43 = vpop.permute.xlu0 %1323  ;;  %v1230_v44 = vpop.permute.xlu1 %1229 }
 0x300   : >> { %1367 = vst.msk [vmem:[#allocation5 + $0x42] sm:$0x1] %vm1166_vm14, %v1324_v43  ;;  %v1418_v41 = vpop.permute.xlu2 %1417 }
 0x301   : >> { %1463 = vst.msk [vmem:[#allocation5 + $0x23] sm:$0x1] %vm1166_vm14, %v1418_v41 }
 0x302   : >> { %1271 = vst.msk [vmem:[#allocation5 + $0x61] sm:$0x1] %vm1166_vm14, %v1230_v44 }
 0x305   : >> { %1515 = vrot.lane.b32.xlu0 %v5656_v21, %s5085_s19  ;;  %1439 = vrot.lane.b32.xlu1 %v5862_v33, %s5084_s18 }
 0x306   : >> { %1435 = vrot.lane.b32.xlu2 %v5860_v34, %s5084_s18 }
 0x307   : >> { %v1330_v31 = vpop.permute.xlu0 %1329  ;;  %v1320_v11 = vpop.permute.xlu1 %1319 }
 0x308   : >> { %1370 = vst.msk [vmem:[#allocation5 + $0x72] sm:$0x1] %vm1166_vm14, %v1330_v31  ;;  %v1424_v27 = vpop.permute.xlu2 %1423 }
 0x309   : >> { %1466 = vst.msk [vmem:[#allocation5 + $0x53] sm:$0x1] %vm1166_vm14, %v1424_v27 }
 0x30a   : >> { %1365 = vst.msk [vmem:[#allocation5 + $0x22] sm:$0x1] %vm1166_vm14, %v1320_v11 }
 0x30d   : >> { %1521 = vrot.lane.b32.xlu0 %v5666_v0, %s5085_s19  ;;  %1517 = vrot.lane.b32.xlu1 %v5620_v24, %s5085_s19 }
 0x30e   : >> { %1441 = vrot.lane.b32.xlu2 %v5874_v40, %s5084_s18  ;;  %s5094_s18 = smov 39  }
 0x30f   : >> { %v1420_v43 = vpop.permute.xlu0 %1419  ;;  %v1326_v44 = vpop.permute.xlu1 %1325 }
 0x310   : >> { %1464 = vst.msk [vmem:[#allocation5 + $0x33] sm:$0x1] %vm1166_vm14, %v1420_v43  ;;  %v1514_v41 = vpop.permute.xlu2 %1513 }
 0x311   : >> { %1560 = vst.msk [vmem:[#allocation5 + $0x14] sm:$0x1] %vm1166_vm14, %v1514_v41 }
 0x312   : >> { %1368 = vst.msk [vmem:[#allocation5 + $0x52] sm:$0x1] %vm1166_vm14, %v1326_v44 }
 0x315   : >> { %1527 = vrot.lane.b32.xlu0 %v5797_v58, %s5085_s19  ;;  %1523 = vrot.lane.b32.xlu1 %v5652_v56, %s5085_s19 }
 0x316   : >> { %1519 = vrot.lane.b32.xlu2 %v5664_v1, %s5085_s19 }
 0x317   : >> { %v1426_v31 = vpop.permute.xlu0 %1425  ;;  %v1416_v11 = vpop.permute.xlu1 %1415 }
 0x318   : >> { %1467 = vst.msk [vmem:[#allocation5 + $0x63] sm:$0x1] %vm1166_vm14, %v1426_v31  ;;  %v1135_v27 = vpop.permute.xlu2 %1134 }
 0x319   : >> { %1175 = vst.msk [vmem:[#allocation5 + $0x80] sm:$0x1] %vm1166_vm14, %v1135_v27 }
 0x31a   : >> { %1462 = vst.msk [vmem:[#allocation5 + $0x13] sm:$0x1] %vm1166_vm14, %v1416_v11 }
 0x31d   : >> { %1533 = vrot.lane.b32.xlu0 %v5860_v34, %s5085_s19  ;;  %1529 = vrot.lane.b32.xlu1 %v5826_v29, %s5085_s19 }
 0x31e   : >> { %1525 = vrot.lane.b32.xlu2 %v5674_v26, %s5085_s19 }
 0x31f   : >> { %v1234_v43 = vpop.permute.xlu0 %1233  ;;  %v1422_v44 = vpop.permute.xlu1 %1421 }
 0x320   : >> { %1273 = vst.msk [vmem:[#allocation5 + $0x81] sm:$0x1] %vm1166_vm14, %v1234_v43  ;;  %v1430_v41 = vpop.permute.xlu2 %1429 }
 0x321   : >> { %1469 = vst.msk [vmem:[#allocation5 + $0x83] sm:$0x1] %vm1166_vm14, %v1430_v41 }
 0x322   : >> { %1465 = vst.msk [vmem:[#allocation5 + $0x43] sm:$0x1] %vm1166_vm14, %v1422_v44 }
 0x325   : >> { %1539 = vrot.lane.b32.xlu0 %v5874_v40, %s5085_s19  ;;  %1535 = vrot.lane.b32.xlu1 %v5836_v32, %s5085_s19 }
 0x326   : >> { %1531 = vrot.lane.b32.xlu2 %v5849_v30, %s5085_s19 }
 0x327   : >> { %v1137_v31 = vpop.permute.xlu0 %1136  ;;  %v1428_v11 = vpop.permute.xlu1 %1427 }
 0x328   : >> { %1176 = vst.msk [vmem:[#allocation5 + $0x90] sm:$0x1] %vm1166_vm14, %v1137_v31  ;;  %v1141_v27 = vpop.permute.xlu2 %1140 }
 0x329   : >> { %1178 = vst.msk [vmem:[#allocation5 + $0xb0] sm:$0x1] %vm1166_vm14, %v1141_v27  ;;  %v1721_v27 = vperm.slane %v5623_v63, 0 }
 0x32a   : >> { %1468 = vst.msk [vmem:[#allocation5 + $0x73] sm:$0x1] %vm1166_vm14, %v1428_v11 }
 0x32d   : >> { %1611 = vrot.lane.b32.xlu0 %v5654_v25, %s5087_s27  ;;  %1541 = vrot.lane.b32.xlu1 %v5847_v39, %s5085_s19 }
 0x32e   : >> { %1537 = vrot.lane.b32.xlu2 %v5862_v33, %s5085_s19  ;;  %s5095_s19 = smov 75  }
 0x32f   : >> { %v1143_v43 = vpop.permute.xlu0 %1142  ;;  %v1332_v44 = vpop.permute.xlu1 %1331 }
 0x330   : >> { %1179 = vst.msk [vmem:[#allocation5 + $0xc0] sm:$0x1] %vm1166_vm14, %v1143_v43  ;;  %v1147_v41 = vpop.permute.xlu2 %1146 }
 0x331   : >> { %1181 = vst.msk [vmem:[#allocation5 + $0xe0] sm:$0x1] %vm1166_vm14, %v1147_v41 }
 0x332   : >> { %1371 = vst.msk [vmem:[#allocation5 + $0x82] sm:$0x1] %vm1166_vm14, %v1332_v44  ;;  %v1722_v44 = vperm.slane %v5623_v63, 1 }
 0x335   : >> { %1617 = vrot.lane.b32.xlu0 %v5664_v1, %s5087_s27  ;;  %1613 = vrot.lane.b32.xlu1 %v5656_v21, %s5087_s27 }
 0x336   : >> { %1609 = vrot.lane.b32.xlu2 %v5612_v10, %s5087_s27 }
 0x337   : >> { %v1149_v25 = vpop.permute.xlu0 %1148  ;;  %v1139_v31 = vpop.permute.xlu1 %1138 }
 0x338   : >> { %1182 = vst.msk [vmem:[#allocation5 + $0xf0] sm:$0x1] %vm1166_vm14, %v1149_v25  ;;  %v1238_v11 = vpop.permute.xlu2 %1237  ;;  %v1690_v25 = vrot.slane %v5632_v9, 2  ;;  %v1696_v9 = vrot.slane %v5641_v36, 4  ;;  %v1702_v36 = vrot.slane %v5644_v38, 6 }
 0x339   : >> { %1275 = vst.msk [vmem:[#allocation5 + $0xa1] sm:$0x1] %vm1166_vm14, %v1238_v11 }
 0x33a   : >> { %1177 = vst.msk [vmem:[#allocation5 + $0xa0] sm:$0x1] %vm1166_vm14, %v1139_v31  ;;  %v1725_v11 = vperm.slane %v1690_v25, 0 }
 0x33d   : >> { %1623 = vrot.lane.b32.xlu0 %v5674_v26, %s5087_s27  ;;  %1619 = vrot.lane.b32.xlu1 %v5666_v0, %s5087_s27 }
 0x33e   : >> { %1615 = vrot.lane.b32.xlu2 %v5620_v24, %s5087_s27 }
 0x33f   : >> { %v1240_v21 = vpop.permute.xlu0 %1239  ;;  %v1145_v10 = vpop.permute.xlu1 %1144 }
 0x340   : >> { %1276 = vst.msk [vmem:[#allocation5 + $0xb1] sm:$0x1] %vm1166_vm14, %v1240_v21  ;;  %v1244_v1 = vpop.permute.xlu2 %1243 }
 0x341   : >> { %1278 = vst.msk [vmem:[#allocation5 + $0xd1] sm:$0x1] %vm1166_vm14, %v1244_v1  ;;  %v1730_v1 = vperm.slane %v1696_v9, 1 }
 0x342   : >> { %1180 = vst.msk [vmem:[#allocation5 + $0xd0] sm:$0x1] %vm1166_vm14, %v1145_v10 }
 0x345   : >> { %1629 = vrot.lane.b32.xlu0 %v5849_v30, %s5087_s27  ;;  %1625 = vrot.lane.b32.xlu1 %v5797_v58, %s5087_s27 }
 0x346   : >> { %1621 = vrot.lane.b32.xlu2 %v5652_v56, %s5087_s27 }
 0x347   : >> { %v1246_v0 = vpop.permute.xlu0 %1245  ;;  %v1236_v24 = vpop.permute.xlu1 %1235 }
 0x348   : >> { %1279 = vst.msk [vmem:[#allocation5 + $0xe1] sm:$0x1] %vm1166_vm14, %v1246_v0  ;;  %v1334_v26 = vpop.permute.xlu2 %1333 }
 0x349   : >> { %1372 = vst.msk [vmem:[#allocation5 + $0x92] sm:$0x1] %vm1166_vm14, %v1334_v26 }
 0x34a   : >> { %1274 = vst.msk [vmem:[#allocation5 + $0x91] sm:$0x1] %vm1166_vm14, %v1236_v24  ;;  %v1726_v24 = vperm.slane %v1690_v25, 1 }
 0x34d   : >> { %1635 = vrot.lane.b32.xlu0 %v5862_v33, %s5087_s27  ;;  %1631 = vrot.lane.b32.xlu1 %v5860_v34, %s5087_s27  ;;  %v1687_v33 = vrot.slane %v5626_v60, 1  ;;  %v1693_v60 = vrot.slane %v5629_v18, 3 }
 0x34e   : >> { %1627 = vrot.lane.b32.xlu2 %v5826_v29, %s5087_s27 }
 0x34f   : >> { %v1336_v58 = vpop.permute.xlu0 %1335  ;;  %v1242_v56 = vpop.permute.xlu1 %1241  ;;  %v1724_v41 = vperm.slane %v1687_v33, 1  ;;  %v1727_v63 = vperm.slane %v1693_v60, 0  ;;  %v1723_v21 = vperm.slane %v1687_v33, 0  ;;  %v1728_v0 = vperm.slane %v1693_v60, 1 }
 0x350   : >> { %1373 = vst.msk [vmem:[#allocation5 + $0xa2] sm:$0x1] %vm1166_vm14, %v1336_v58  ;;  %v1340_v30 = vpop.permute.xlu2 %1339 }
 0x351   : >> { %1375 = vst.msk [vmem:[#allocation5 + $0xc2] sm:$0x1] %vm1166_vm14, %v1340_v30 }
 0x352   : >> { %1277 = vst.msk [vmem:[#allocation5 + $0xc1] sm:$0x1] %vm1166_vm14, %v1242_v56  ;;  %v1699_v56 = vrot.slane %v5647_v35, 5  ;;  %v1705_v35 = vrot.slane %v5650_v6, 7  ;;  %v1708_v6 = vrot.slane %v5740_v3, 1  ;;  %v1710_v3 = vrot.slane %v5748_v20, 2 }
 0x353   : >> { %v1714_v20 = vrot.slane %v5752_v57, 4 }
 0x355   : >> { %1753 = vrot.lane.b32.xlu0 %v1721_v27, %s5088_s28  ;;  %1637 = vrot.lane.b32.xlu1 %v5874_v40, %s5087_s27  ;;  %v1733_v27 = vperm.slane %v1702_v36, 0 }
 0x356   : >> { %1633 = vrot.lane.b32.xlu2 %v5836_v32, %s5087_s27 }
 0x357   : >> { %v1342_v29 = vpop.permute.xlu0 %1341  ;;  %v1248_v34 = vpop.permute.xlu1 %1247 }
 0x358   : >> { %1376 = vst.msk [vmem:[#allocation5 + $0xd2] sm:$0x1] %vm1166_vm14, %v1342_v29  ;;  %v1346_v43 = vpop.permute.xlu2 %1345  ;;  %v1731_v29 = vperm.slane %v1699_v56, 0 }
 0x359   : >> { %1378 = vst.msk [vmem:[#allocation5 + $0xf2] sm:$0x1] %vm1166_vm14, %v1346_v43 }
 0x35a   : >> { %1280 = vst.msk [vmem:[#allocation5 + $0xf1] sm:$0x1] %vm1166_vm14, %v1248_v34  ;;  %v1729_v34 = vperm.slane %v1696_v9, 0  ;;  %v1742_v9 = vperm.slane %v1710_v3, 1 }
 0x35d   : >> { %1759 = vrot.lane.b32.xlu0 %v1724_v41, %s5088_s28  ;;  %1755 = vrot.lane.b32.xlu1 %v1722_v44, %s5088_s28  ;;  %v1736_v44 = vperm.slane %v1705_v35, 1  ;;  %v1734_v41 = vperm.slane %v1702_v36, 1 }
 0x35e   : >> { %1639 = vrot.lane.b32.xlu2 %v5847_v39, %s5087_s27  ;;  %s5097_s27 = smov 21  }
 0x35f   : >> { %v1432_v32 = vpop.permute.xlu0 %1431  ;;  %v1338_v40 = vpop.permute.xlu1 %1337 }
 0x360   : >> { %1470 = vst.msk [vmem:[#allocation5 + $0x93] sm:$0x1] %vm1166_vm14, %v1432_v32  ;;  %v1436_v31 = vpop.permute.xlu2 %1435  ;;  %v1732_v32 = vperm.slane %v1699_v56, 1  ;;  %v1741_v56 = vperm.slane %v1710_v3, 0  ;;  %v1871_v3 = vrot.slane %v5693_v55, 2 }
 0x361   : >> { %1472 = vst.msk [vmem:[#allocation5 + $0xb3] sm:$0x1] %vm1166_vm14, %v1436_v31  ;;  %v1739_v31 = vperm.slane %v1708_v6, 0 }
 0x362   : >> { %1374 = vst.msk [vmem:[#allocation5 + $0xb2] sm:$0x1] %vm1166_vm14, %v1338_v40 }
 0x365   : >> { %1765 = vrot.lane.b32.xlu0 %v1727_v63, %s5088_s28  ;;  %1761 = vrot.lane.b32.xlu1 %v1725_v11, %s5088_s28  ;;  %v1737_v63 = vperm.slane %v5744_v16, 0  ;;  %v1735_v11 = vperm.slane %v1705_v35, 0 }
 0x366   : >> { %1757 = vrot.lane.b32.xlu2 %v1723_v21, %s5088_s28 }
 0x367   : >> { %v1438_v39 = vpop.permute.xlu0 %1437  ;;  %v1344_v18 = vpop.permute.xlu1 %1343 }
 0x368   : >> { %1473 = vst.msk [vmem:[#allocation5 + $0xc3] sm:$0x1] %vm1166_vm14, %v1438_v39  ;;  %v1442_v10 = vpop.permute.xlu2 %1441 }
 0x369   : >> { %1475 = vst.msk [vmem:[#allocation5 + $0xe3] sm:$0x1] %vm1166_vm14, %v1442_v10  ;;  %v1740_v10 = vperm.slane %v1708_v6, 1 }
 0x36a   : >> { %1377 = vst.msk [vmem:[#allocation5 + $0xe2] sm:$0x1] %vm1166_vm14, %v1344_v18 }
 0x36d   : >> { %1771 = vrot.lane.b32.xlu0 %v1730_v1, %s5088_s28  ;;  %1767 = vrot.lane.b32.xlu1 %v1728_v0, %s5088_s28  ;;  %v1738_v1 = vperm.slane %v5744_v16, 1  ;;  %v1745_v16 = vperm.slane %v1714_v20, 0 }
 0x36e   : >> { %1763 = vrot.lane.b32.xlu2 %v1726_v24, %s5088_s28 }
 0x36f   : >> { %v1444_v26 = vpop.permute.xlu0 %1443  ;;  %v1434_v58 = vpop.permute.xlu1 %1433 }
 0x370   : >> { %1476 = vst.msk [vmem:[#allocation5 + $0xf3] sm:$0x1] %vm1166_vm14, %v1444_v26  ;;  %v1520_v30 = vpop.permute.xlu2 %1519  ;;  %v1712_v26 = vrot.slane %v5756_v23, 3  ;;  %v1716_v23 = vrot.slane %v5760_v47, 5  ;;  %v1720_v47 = vrot.slane %v5764_v59, 7 }
 0x371   : >> { %1563 = vst.msk [vmem:[#allocation5 + $0x44] sm:$0x1] %vm1166_vm14, %v1520_v30 }
 0x372   : >> { %1471 = vst.msk [vmem:[#allocation5 + $0xa3] sm:$0x1] %vm1166_vm14, %v1434_v58  ;;  %v1743_v36 = vperm.slane %v1712_v26, 0 }
 0x375   : >> { %1777 = vrot.lane.b32.xlu0 %v1733_v27, %s5088_s28  ;;  %1773 = vrot.lane.b32.xlu1 %v1731_v29, %s5088_s28  ;;  %v1748_v29 = vperm.slane %v1716_v23, 1 }
 0x376   : >> { %1769 = vrot.lane.b32.xlu2 %v1729_v34, %s5088_s28  ;;  %v1746_v34 = vperm.slane %v1714_v20, 1  ;;  %v1876_v20 = vrot.slane %v5693_v55, 7 }
 0x377   : >> { %v1516_v33 = vpop.permute.xlu0 %1515  ;;  %v1440_v38 = vpop.permute.xlu1 %1439 }
 0x378   : >> { %1561 = vst.msk [vmem:[#allocation5 + $0x24] sm:$0x1] %vm1166_vm14, %v1516_v33  ;;  %v1526_v43 = vpop.permute.xlu2 %1525  ;;  %v1744_v33 = vperm.slane %v1712_v26, 1  ;;  %v1874_v26 = vrot.slane %v5693_v55, 5 }
 0x379   : >> { %1566 = vst.msk [vmem:[#allocation5 + $0x74] sm:$0x1] %vm1166_vm14, %v1526_v43  ;;  %v1718_v43 = vrot.slane %v5774_v5, 6  ;;  %v1870_v5 = vrot.slane %v5693_v55, 1 }
 0x37a   : >> { %1474 = vst.msk [vmem:[#allocation5 + $0xd3] sm:$0x1] %vm1166_vm14, %v1440_v38 }
 0x37d   : >> { %1783 = vrot.lane.b32.xlu0 %v1736_v44, %s5088_s28  ;;  %1779 = vrot.lane.b32.xlu1 %v1734_v41, %s5088_s28  ;;  %v1751_v41 = vperm.slane %v1720_v47, 0 }
 0x37e   : >> { %1775 = vrot.lane.b32.xlu2 %v1732_v32, %s5088_s28  ;;  %v1749_v32 = vperm.slane %v1718_v43, 0 }
 0x37f   : >> { %v1522_v40 = vpop.permute.xlu0 %1521  ;;  %v1518_v60 = vpop.permute.xlu1 %1517 }
 0x380   : >> { %1564 = vst.msk [vmem:[#allocation5 + $0x54] sm:$0x1] %vm1166_vm14, %v1522_v40  ;;  %v1532_v25 = vpop.permute.xlu2 %1531  ;;  %v1747_v40 = vperm.slane %v1716_v23, 0 }
 0x381   : >> { %1569 = vst.msk [vmem:[#allocation5 + $0xa4] sm:$0x1] %vm1166_vm14, %v1532_v25  ;;  %v6108_v25 = vperm.slane %v1870_v5, 0 }
 0x382   : >> { %1562 = vst.msk [vmem:[#allocation5 + $0x34] sm:$0x1] %vm1166_vm14, %v1518_v60 }
 0x385   : >> { %1789 = vrot.lane.b32.xlu0 %v1739_v31, %s5088_s28  ;;  %1785 = vrot.lane.b32.xlu1 %v1737_v63, %s5088_s28  ;;  %v1752_v31 = vperm.slane %v1720_v47, 1  ;;  %v1750_v63 = vperm.slane %v1718_v43, 1  ;;  %v2475_v47 = vsel %vm1700_vm15, %v5693_v55, %v5685_v46 }
 0x386   : >> { %1781 = vrot.lane.b32.xlu2 %v1735_v11, %s5088_s28 }
 0x387   : >> { %v1528_v21 = vpop.permute.xlu0 %1527  ;;  %v1524_v39 = vpop.permute.xlu1 %1523 }
 0x388   : >> { %1567 = vst.msk [vmem:[#allocation5 + $0x84] sm:$0x1] %vm1166_vm14, %v1528_v21  ;;  %v1538_v18 = vpop.permute.xlu2 %1537 }
 0x389   : >> { %1572 = vst.msk [vmem:[#allocation5 + $0xd4] sm:$0x1] %vm1166_vm14, %v1538_v18 }
 0x38a   : >> { %1565 = vst.msk [vmem:[#allocation5 + $0x64] sm:$0x1] %vm1166_vm14, %v1524_v39  ;;  %v1873_v39 = vrot.slane %v5693_v55, 4 }
 0x38d   : >> { %1795 = vrot.lane.b32.xlu0 %v1742_v9, %s5088_s28  ;;  %1791 = vrot.lane.b32.xlu1 %v1740_v10, %s5088_s28  ;;  %v1888_v9 = vperm.slane %v1873_v39, 0  ;;  %v6119_v10 = vperm.slane %v1871_v3, 0 }
 0x38e   : >> { %1787 = vrot.lane.b32.xlu2 %v1738_v1, %s5088_s28  ;;  %v6122_v1 = vperm.slane %v5693_v55, 0 }
 0x38f   : >> { %v1534_v0 = vpop.permute.xlu0 %1533  ;;  %v1530_v24 = vpop.permute.xlu1 %1529 }
 0x390   : >> { %1570 = vst.msk [vmem:[#allocation5 + $0xb4] sm:$0x1] %vm1166_vm14, %v1534_v0  ;;  %v1610_v58 = vpop.permute.xlu2 %1609 }
 0x391   : >> { %1657 = vst.msk [vmem:[#allocation5 + $0x5] sm:$0x1] %vm1166_vm14, %v1610_v58 }
 0x392   : >> { %1568 = vst.msk [vmem:[#allocation5 + $0x94] sm:$0x1] %vm1166_vm14, %v1530_v24 }
 0x395   : >> { %1801 = vrot.lane.b32.xlu0 %v1745_v16, %s5088_s28  ;;  %1797 = vrot.lane.b32.xlu1 %v1743_v36, %s5088_s28  ;;  %v1872_v16 = vrot.slane %v5693_v55, 3  ;;  %v6135_v36 = vperm.slane %v1876_v20, 0 }
 0x396   : >> { %1793 = vrot.lane.b32.xlu2 %v1741_v56, %s5088_s28  ;;  %v1889_v56 = vperm.slane %v1874_v26, 0 }
 0x397   : >> { %v1540_v30 = vpop.permute.xlu0 %1539  ;;  %v1536_v57 = vpop.permute.xlu1 %1535 }
 0x398   : >> { %1573 = vst.msk [vmem:[#allocation5 + $0xe4] sm:$0x1] %vm1166_vm14, %v1540_v30  ;;  %v1616_v27 = vpop.permute.xlu2 %1615  ;;  %v6137_v30 = vperm.slane %v1872_v16, 0  ;;  %v2477_v16 = vsel %vm1703_vm7, %v5685_v46, %v5693_v55  ;;  %vm2590_vm7 = vcmask 23552  }
 0x399   : >> { %1660 = vst.msk [vmem:[#allocation5 + $0x35] sm:$0x1] %vm1166_vm14, %v1616_v27  ;;  %v1878_v27 = vrot.slane %v5778_v42, 2 }
 0x39a   : >> { %1571 = vst.msk [vmem:[#allocation5 + $0xc4] sm:$0x1] %vm1166_vm14, %v1536_v57 }
 0x39d   : >> { %1807 = vrot.lane.b32.xlu0 %v1748_v29, %s5088_s28  ;;  %1803 = vrot.lane.b32.xlu1 %v1746_v34, %s5088_s28  ;;  %v1875_v34 = vrot.slane %v5693_v55, 6 }
 0x39e   : >> { %1799 = vrot.lane.b32.xlu2 %v1744_v33, %s5088_s28  ;;  %v6148_v33 = vperm.slane %v1878_v27, 0 }
 0x39f   : >> { %v1612_v38 = vpop.permute.xlu0 %1611  ;;  %v1542_v35 = vpop.permute.xlu1 %1541 }
 0x3a0   : >> { %1658 = vst.msk [vmem:[#allocation5 + $0x15] sm:$0x1] %vm1166_vm14, %v1612_v38  ;;  %v1622_v44 = vpop.permute.xlu2 %1621  ;;  %v6151_v38 = vperm.slane %v5778_v42, 0 }
 0x3a1   : >> { %1663 = vst.msk [vmem:[#allocation5 + $0x65] sm:$0x1] %vm1166_vm14, %v1622_v44 }
 0x3a2   : >> { %1574 = vst.msk [vmem:[#allocation5 + $0xf4] sm:$0x1] %vm1166_vm14, %v1542_v35  ;;  %v1890_v35 = vperm.slane %v1875_v34, 0 }
 0x3a5   : >> { %1813 = vrot.lane.b32.xlu0 %v1751_v41, %s5088_s28  ;;  %1809 = vrot.lane.b32.xlu1 %v1749_v32, %s5088_s28  ;;  %v2476_v41 = vrot.slane %v2475_v47, 6  ;;  %v1879_v32 = vrot.slane %v5778_v42, 3 }
 0x3a6   : >> { %1805 = vrot.lane.b32.xlu2 %v1747_v40, %s5088_s28 }
 0x3a7   : >> { %v1618_v60 = vpop.permute.xlu0 %1617  ;;  %v1614_v59 = vpop.permute.xlu1 %1613  ;;  %v6164_v5 = vperm.slane %v1879_v32, 0  ;;  %v2506_v3 = vperm.slane %v2476_v41, 0 }
 0x3a8   : >> { %1661 = vst.msk [vmem:[#allocation5 + $0x45] sm:$0x1] %vm1166_vm14, %v1618_v60  ;;  %v1628_v6 = vpop.permute.xlu2 %1627  ;;  %v1877_v60 = vrot.slane %v5778_v42, 1 }
 0x3a9   : >> { %1666 = vst.msk [vmem:[#allocation5 + $0x95] sm:$0x1] %vm1166_vm14, %v1628_v6 }
 0x3aa   : >> { %1659 = vst.msk [vmem:[#allocation5 + $0x25] sm:$0x1] %vm1166_vm14, %v1614_v59  ;;  %v2507_v59 = vperm.slane %v2476_v41, 1  ;;  %v6166_v6 = vperm.slane %v1877_v60, 0 }
 0x3ad   : >> { %1902 = vrot.lane.b32.xlu0 %v6108_v25, %s5089_s29  ;;  %1815 = vrot.lane.b32.xlu1 %v1752_v31, %s5088_s28 }
 0x3ae   : >> { %1811 = vrot.lane.b32.xlu2 %v1750_v63, %s5088_s28  ;;  %s5099_s28 = smov 38  }
 0x3af   : >> { %v1624_v11 = vpop.permute.xlu0 %1623  ;;  %v1620_v21 = vpop.permute.xlu1 %1619 }
 0x3b0   : >> { %1664 = vst.msk [vmem:[#allocation5 + $0x75] sm:$0x1] %vm1166_vm14, %v1624_v11  ;;  %v1634_v18 = vpop.permute.xlu2 %1633 }
 0x3b1   : >> { %1669 = vst.msk [vmem:[#allocation5 + $0xc5] sm:$0x1] %vm1166_vm14, %v1634_v18  ;;  %v6177_v18 = vld [vmem:[#allocation4 + $0x10] sm:$0xff] }
 0x3b2   : >> { %1662 = vst.msk [vmem:[#allocation5 + $0x55] sm:$0x1] %vm1166_vm14, %v1620_v21 }
 0x3b5   : >> { %1908 = vrot.lane.b32.xlu0 %v1888_v9, %s5089_s29  ;;  %1904 = vrot.lane.b32.xlu1 %v6119_v10, %s5089_s29 }
 0x3b6   : >> { %1900 = vrot.lane.b32.xlu2 %v6122_v1, %s5089_s29 }
 0x3b7   : >> { %v1630_v0 = vpop.permute.xlu0 %1629  ;;  %v1626_v24 = vpop.permute.xlu1 %1625 }
 0x3b8   : >> { %1667 = vst.msk [vmem:[#allocation5 + $0xa5] sm:$0x1] %vm1166_vm14, %v1630_v0  ;;  %v1640_v58 = vpop.permute.xlu2 %1639 }
 0x3b9   : >> { %1672 = vst.msk [vmem:[#allocation5 + $0xf5] sm:$0x1] %vm1166_vm14, %v1640_v58 }
 0x3ba   : >> { %1665 = vst.msk [vmem:[#allocation5 + $0x85] sm:$0x1] %vm1166_vm14, %v1626_v24  ;;  %v2648_v24 = vrot.slane %v6177_v18, 6 }
 0x3bc   : >> { %v2663_v58 = vperm.slane %v2648_v24, 0 }
 0x3bd   : >> { %1914 = vrot.lane.b32.xlu0 %v6135_v36, %s5089_s29  ;;  %1910 = vrot.lane.b32.xlu1 %v1889_v56, %s5089_s29 }
 0x3be   : >> { %1906 = vrot.lane.b32.xlu2 %v6137_v30, %s5089_s29 }
 0x3bf   : >> { %v1636_v57 = vpop.permute.xlu0 %1635  ;;  %v1632_v23 = vpop.permute.xlu1 %1631 }
 0x3c0   : >> { %1670 = vst.msk [vmem:[#allocation5 + $0xd5] sm:$0x1] %vm1166_vm14, %v1636_v57  ;;  %v1758_v29 = vpop.permute.xlu2 %1757 }
 0x3c1   : >> { %1668 = vst.msk [vmem:[#allocation5 + $0xb5] sm:$0x1] %vm1166_vm14, %v1632_v23  ;;  %v2478_v23 = vrot.slane %v2477_v16, 7 }
 0x3c3   : >> { %v2509_v46 = vperm.slane %v2478_v23, 1  ;;  %v2508_v41 = vperm.slane %v2478_v23, 0 }
 0x3c5   : >> { %1920 = vrot.lane.b32.xlu0 %v6148_v33, %s5089_s29  ;;  %1916 = vrot.lane.b32.xlu1 %v6151_v38, %s5089_s29 }
 0x3c6   : >> { %1912 = vrot.lane.b32.xlu2 %v1890_v35, %s5089_s29 }
 0x3c7   : >> { %v1754_v43 = vpop.permute.xlu0 %1753  ;;  %v1638_v44 = vpop.permute.xlu1 %1637 }
 0x3c8   : >> { %v1764_v40 = vpop.permute.xlu2 %1763  ;;  %1671 = vst.msk [vmem:[#allocation5 + $0xe5] sm:$0x1] %vm1166_vm14, %v1638_v44 }
 0x3cd   : >> { %2552 = vrot.lane.b32.xlu0 %v2507_v59, %s5090_s30  ;;  %1922 = vrot.lane.b32.xlu1 %v6164_v5, %s5089_s29 }
 0x3ce   : >> { %1918 = vrot.lane.b32.xlu2 %v6166_v6, %s5089_s29 }
 0x3cf   : >> { %v1760_v31 = vpop.permute.xlu0 %1759  ;;  %v1756_v63 = vpop.permute.xlu1 %1755 }
 0x3d0   : >> { %v1819_v11 = vsel %vm1817_vm10, %v1758_v29, %v1760_v31  ;;  %v1770_v21 = vpop.permute.xlu2 %1769  ;;  %v1818_v39 = vsel %vm1817_vm10, %v1754_v43, %v1756_v63 }
 0x3d1   : >> { %1851 = vst.msk [vmem:[#allocation5 + $0x16] sm:$0x1] %vm1166_vm14, %v1819_v11 }
 0x3d2   : >> { %1850 = vst.msk [vmem:[#allocation5 + $0x6] sm:$0x1] %vm1166_vm14, %v1818_v39 }
 0x3d5   : >> { %2206 = vrot.lane.b32.xlu0 %v1890_v35, %s5091_s10  ;;  %2010 = vrot.lane.b32.xlu1 %v1890_v35, %s5092_s13 }
 0x3d6   : >> { %2550 = vrot.lane.b32.xlu2 %v2506_v3, %s5090_s30 }
 0x3d7   : >> { %v1766_v9 = vpop.permute.xlu0 %1765  ;;  %v1762_v0 = vpop.permute.xlu1 %1761 }
 0x3d8   : >> { %v1776_v20 = vpop.permute.xlu2 %1775  ;;  %v1820_v26 = vsel %vm1817_vm10, %v1762_v0, %v1764_v40 }
 0x3d9   : >> { %1852 = vst.msk [vmem:[#allocation5 + $0x26] sm:$0x1] %vm1166_vm14, %v1820_v26 }
 0x3dd   : >> { %2685 = vrot.lane.b32.xlu0 %v2663_v58, %s5093_s16  ;;  %2304 = vrot.lane.b32.xlu1 %v1890_v35, %s5094_s18 }
 0x3de   : >> { %2108 = vrot.lane.b32.xlu2 %v1890_v35, %s5095_s19 }
 0x3df   : >> { %v1772_v56 = vpop.permute.xlu0 %1771  ;;  %v1768_v57 = vpop.permute.xlu1 %1767 }
 0x3e0   : >> { %v1822_v27 = vsel %vm1817_vm10, %v1770_v21, %v1772_v56  ;;  %v1782_v29 = vpop.permute.xlu2 %1781  ;;  %v1821_v34 = vsel %vm1817_vm10, %v1766_v9, %v1768_v57  ;;  %v2479_v9 = vsel %vm1683_vm6, %v5778_v42, %v5776_v19 }
 0x3e1   : >> { %1854 = vst.msk [vmem:[#allocation5 + $0x46] sm:$0x1] %vm1166_vm14, %v1822_v27  ;;  %v2511_v0 = vperm.slane %v2479_v9, 1  ;;  %v2510_v42 = vperm.slane %v2479_v9, 0  ;;  %v6234_v27 = vld [vmem:[#allocation4 + $0x28] sm:$0xff] }
 0x3e2   : >> { %1853 = vst.msk [vmem:[#allocation5 + $0x36] sm:$0x1] %vm1166_vm14, %v1821_v34 }
 0x3e5   : >> { %2556 = vrot.lane.b32.xlu0 %v2509_v46, %s5090_s30  ;;  %2783 = vrot.lane.b32.xlu1 %v2663_v58, %s5096_s21 }
 0x3e6   : >> { %2402 = vrot.lane.b32.xlu2 %v1890_v35, %s5097_s27  ;;  %v2649_v35 = vrot.slane %v6177_v18, 7 }
 0x3e7   : >> { %v1778_v55 = vpop.permute.xlu0 %1777  ;;  %v1774_v47 = vpop.permute.xlu1 %1773 }
 0x3e8   : >> { %v1788_v43 = vpop.permute.xlu2 %1787  ;;  %v1823_v44 = vsel %vm1817_vm10, %v1774_v47, %v1776_v20  ;;  %v2664_v63 = vperm.slane %v2649_v35, 0 }
 0x3e9   : >> { %1855 = vst.msk [vmem:[#allocation5 + $0x56] sm:$0x1] %vm1166_vm14, %v1823_v44  ;;  %v2495_v44 = vperm.slane %v5698_v22, 1 }
 0x3ed   : >> { %2208 = vrot.lane.b32.xlu0 %v6135_v36, %s5091_s10  ;;  %2012 = vrot.lane.b32.xlu1 %v6135_v36, %s5092_s13 }
 0x3ee   : >> { %2554 = vrot.lane.b32.xlu2 %v2508_v41, %s5090_s30 }
 0x3ef   : >> { %v1784_v32 = vpop.permute.xlu0 %1783  ;;  %v1780_v40 = vpop.permute.xlu1 %1779 }
 0x3f0   : >> { %v1825_v60 = vsel %vm1817_vm10, %v1782_v29, %v1784_v32  ;;  %v1794_v59 = vpop.permute.xlu2 %1793  ;;  %v1824_v31 = vsel %vm1817_vm10, %v1778_v55, %v1780_v40  ;;  %v2665_v29 = vperm.slane %v6234_v27, 0 }
 0x3f1   : >> { %1857 = vst.msk [vmem:[#allocation5 + $0x76] sm:$0x1] %vm1166_vm14, %v1825_v60 }
 0x3f2   : >> { %1856 = vst.msk [vmem:[#allocation5 + $0x66] sm:$0x1] %vm1166_vm14, %v1824_v31 }
 0x3f5   : >> { %2687 = vrot.lane.b32.xlu0 %v2664_v63, %s5093_s16  ;;  %2306 = vrot.lane.b32.xlu1 %v6135_v36, %s5094_s18 }
 0x3f6   : >> { %2110 = vrot.lane.b32.xlu2 %v6135_v36, %s5095_s19 }
 0x3f7   : >> { %v1790_v11 = vpop.permute.xlu0 %1789  ;;  %v1786_v21 = vpop.permute.xlu1 %1785 }
 0x3f8   : >> { %v1800_v39 = vpop.permute.xlu2 %1799  ;;  %v1826_v3 = vsel %vm1817_vm10, %v1786_v21, %v1788_v43  ;;  %v6268_v21 = vld [vmem:[#allocation4 + $0x20] sm:$0xff] }
 0x3f9   : >> { %1858 = vst.msk [vmem:[#allocation5 + $0x86] sm:$0x1] %vm1166_vm14, %v1826_v3 }
 0x3fd   : >> { %2560 = vrot.lane.b32.xlu0 %v2511_v0, %s5090_s30  ;;  %2785 = vrot.lane.b32.xlu1 %v2664_v63, %s5096_s21 }
 0x3fe   : >> { %2404 = vrot.lane.b32.xlu2 %v6135_v36, %s5097_s27 }
 0x3ff   : >> { %v1796_v24 = vpop.permute.xlu0 %1795  ;;  %v1792_v20 = vpop.permute.xlu1 %1791 }
 0x400   : >> { %v1828_v26 = vsel %vm1817_vm10, %v1794_v59, %v1796_v24  ;;  %v1806_v58 = vpop.permute.xlu2 %1805  ;;  %v1827_v16 = vsel %vm1817_vm10, %v1790_v11, %v1792_v20  ;;  %v2494_v59 = vperm.slane %v5698_v22, 0  ;;  %v2657_v22 = vperm.slane %v6177_v18, 0 }
 0x401   : >> { %1860 = vst.msk [vmem:[#allocation5 + $0xa6] sm:$0x1] %vm1166_vm14, %v1828_v26 }
 0x402   : >> { %1859 = vst.msk [vmem:[#allocation5 + $0x96] sm:$0x1] %vm1166_vm14, %v1827_v16 }
 0x405   : >> { %2210 = vrot.lane.b32.xlu0 %v6151_v38, %s5091_s10  ;;  %2014 = vrot.lane.b32.xlu1 %v6151_v38, %s5092_s13 }
 0x406   : >> { %2558 = vrot.lane.b32.xlu2 %v2510_v42, %s5090_s30 }
 0x407   : >> { %v1802_v36 = vpop.permute.xlu0 %1801  ;;  %v1798_v56 = vpop.permute.xlu1 %1797 }
 0x408   : >> { %v1812_v57 = vpop.permute.xlu2 %1811  ;;  %v1829_v23 = vsel %vm1817_vm10, %v1798_v56, %v1800_v39  ;;  %v2480_v39 = vsel %vm1685_vm13, %v6268_v21, %v5776_v19 }
 0x409   : >> { %1861 = vst.msk [vmem:[#allocation5 + $0xb6] sm:$0x1] %vm1166_vm14, %v1829_v23  ;;  %v2481_v0 = vrot.slane %v2480_v39, 1 }
 0x40b   : >> { %v2513_v20 = vperm.slane %v2481_v0, 1  ;;  %v2512_v16 = vperm.slane %v2481_v0, 0 }
 0x40d   : >> { %2689 = vrot.lane.b32.xlu0 %v2665_v29, %s5093_s16  ;;  %2308 = vrot.lane.b32.xlu1 %v6151_v38, %s5094_s18 }
 0x40e   : >> { %2112 = vrot.lane.b32.xlu2 %v6151_v38, %s5095_s19 }
 0x40f   : >> { %v1808_v34 = vpop.permute.xlu0 %1807  ;;  %v1804_v46 = vpop.permute.xlu1 %1803 }
 0x410   : >> { %v1831_v55 = vsel %vm1817_vm10, %v1806_v58, %v1808_v34  ;;  %v1901_v47 = vpop.permute.xlu2 %1900  ;;  %v1830_v43 = vsel %vm1817_vm10, %v1802_v36, %v1804_v46  ;;  %v2466_v34 = vrot.slane %v5703_v12, 1 }
 0x411   : >> { %1863 = vst.msk [vmem:[#allocation5 + $0xd6] sm:$0x1] %vm1166_vm14, %v1831_v55 }
 0x412   : >> { %1948 = vst.msk [vmem:[#allocation5 + $0x7] sm:$0x1] %vm1166_vm14, %v1901_v47  ;;  %v2497_v47 = vperm.slane %v2466_v34, 1 }
 0x413   : >> { %1862 = vst.msk [vmem:[#allocation5 + $0xc6] sm:$0x1] %vm1166_vm14, %v1830_v43 }
 0x415   : >> { %2528 = vrot.lane.b32.xlu0 %v2495_v44, %s5090_s30  ;;  %2787 = vrot.lane.b32.xlu1 %v2665_v29, %s5096_s21 }
 0x416   : >> { %2406 = vrot.lane.b32.xlu2 %v6151_v38, %s5097_s27 }
 0x417   : >> { %v1814_v41 = vpop.permute.xlu0 %1813  ;;  %v1810_v32 = vpop.permute.xlu1 %1809 }
 0x418   : >> { %v1907_v40 = vpop.permute.xlu2 %1906  ;;  %v1832_v35 = vsel %vm1817_vm10, %v1810_v32, %v1812_v57 }
 0x419   : >> { %1951 = vst.msk [vmem:[#allocation5 + $0x37] sm:$0x1] %vm1166_vm14, %v1907_v40  ;;  %v2835_v60 = vld [vmem:[#allocation5] sm:$0xff] }
 0x41a   : >> { %1864 = vst.msk [vmem:[#allocation5 + $0xe6] sm:$0x1] %vm1166_vm14, %v1832_v35  ;;  %4871 = vmatmul.msk.f32.vlgmr.msrb.gmra.mxu1 %vm387_vm3, %v2835_v60 }
 0x41d   : >> { %2194 = vrot.lane.b32.xlu0 %v6122_v1, %s5091_s10  ;;  %1998 = vrot.lane.b32.xlu1 %v6122_v1, %s5092_s13 }
 0x41e   : >> { %2526 = vrot.lane.b32.xlu2 %v2494_v59, %s5090_s30 }
 0x41f   : >> { %v1903_v38 = vpop.permute.xlu0 %1902  ;;  %v1816_v31 = vpop.permute.xlu1 %1815 }
 0x420   : >> { %1949 = vst.msk [vmem:[#allocation5 + $0x17] sm:$0x1] %vm1166_vm14, %v1903_v38  ;;  %v1913_v63 = vpop.permute.xlu2 %1912  ;;  %v1833_v11 = vsel %vm1817_vm10, %v1814_v41, %v1816_v31  ;;  %v2496_v41 = vperm.slane %v2466_v34, 0  ;;  %v2483_v31 = vrot.slane %v5783_v17, 2 }
 0x421   : >> { %1954 = vst.msk [vmem:[#allocation5 + $0x67] sm:$0x1] %vm1166_vm14, %v1913_v63 }
 0x422   : >> { %1865 = vst.msk [vmem:[#allocation5 + $0xf6] sm:$0x1] %vm1166_vm14, %v1833_v11  ;;  %v2514_v0 = vperm.slane %v2483_v31, 0 }
 0x425   : >> { %2673 = vrot.lane.b32.xlu0 %v2657_v22, %s5093_s16  ;;  %2292 = vrot.lane.b32.xlu1 %v6122_v1, %s5094_s18 }
 0x426   : >> { %2096 = vrot.lane.b32.xlu2 %v6122_v1, %s5095_s19 }
 0x427   : >> { %v1909_v3 = vpop.permute.xlu0 %1908  ;;  %v1905_v9 = vpop.permute.xlu1 %1904 }
 0x428   : >> { %1952 = vst.msk [vmem:[#allocation5 + $0x47] sm:$0x1] %vm1166_vm14, %v1909_v3  ;;  %v1919_v24 = vpop.permute.xlu2 %1918 }
 0x429   : >> { %1957 = vst.msk [vmem:[#allocation5 + $0x97] sm:$0x1] %vm1166_vm14, %v1919_v24 }
 0x42a   : >> { %1950 = vst.msk [vmem:[#allocation5 + $0x27] sm:$0x1] %vm1166_vm14, %v1905_v9 }
 0x42d   : >> { %2564 = vrot.lane.b32.xlu0 %v2513_v20, %s5090_s30  ;;  %2771 = vrot.lane.b32.xlu1 %v2657_v22, %s5096_s21  ;;  %v2515_v22 = vperm.slane %v2483_v31, 1 }
 0x42e   : >> { %2390 = vrot.lane.b32.xlu2 %v6122_v1, %s5097_s27  ;;  %v2650_v1 = vrot.slane %v6234_v27, 1 }
 0x42f   : >> { %v1915_v19 = vpop.permute.xlu0 %1914  ;;  %v1911_v26 = vpop.permute.xlu1 %1910 }
 0x430   : >> { %1955 = vst.msk [vmem:[#allocation5 + $0x77] sm:$0x1] %vm1166_vm14, %v1915_v19  ;;  %v2551_v58 = vpop.permute.xlu2 %2550  ;;  %v2666_v57 = vperm.slane %v2650_v1, 0  ;;  %v2651_v19 = vrot.slane %v6234_v27, 2 }
 0x431   : >> { %1953 = vst.msk [vmem:[#allocation5 + $0x57] sm:$0x1] %vm1166_vm14, %v1911_v26 }
 0x435   : >> { %2212 = vrot.lane.b32.xlu0 %v6166_v6, %s5091_s10  ;;  %2016 = vrot.lane.b32.xlu1 %v6166_v6, %s5092_s13 }
 0x436   : >> { %2562 = vrot.lane.b32.xlu2 %v2512_v16, %s5090_s30 }
 0x437   : >> { %v1921_v42 = vpop.permute.xlu0 %1920  ;;  %v1917_v36 = vpop.permute.xlu1 %1916  ;;  %v2849_v20 = vld [vmem:[#allocation5 + $0x70] sm:$0xff] }
 0x438   : >> { %1958 = vst.msk [vmem:[#allocation5 + $0xa7] sm:$0x1] %vm1166_vm14, %v1921_v42  ;;  %v2109_v56 = vpop.permute.xlu2 %2108 }
 0x439   : >> { %2150 = vst.msk [vmem:[#allocation5 + $0x69] sm:$0x1] %vm1166_vm14, %v2109_v56 }
 0x43a   : >> { %1956 = vst.msk [vmem:[#allocation5 + $0x87] sm:$0x1] %vm1166_vm14, %v1917_v36  ;;  %v2468_v36 = vrot.slane %v5709_v37, 2 }
 0x43d   : >> { %2691 = vrot.lane.b32.xlu0 %v2666_v57, %s5093_s16  ;;  %2310 = vrot.lane.b32.xlu1 %v6166_v6, %s5094_s18 }
 0x43e   : >> { %2114 = vrot.lane.b32.xlu2 %v6166_v6, %s5095_s19 }
 0x43f   : >> { %v2553_v23 = vpop.permute.xlu0 %2552  ;;  %v1923_v29 = vpop.permute.xlu1 %1922 }
 0x440   : >> { %v2597_v46 = vsel %vm2590_vm7, %v2551_v58, %v2553_v23  ;;  %v2403_v55 = vpop.permute.xlu2 %2402  ;;  %1959 = vst.msk [vmem:[#allocation5 + $0xb7] sm:$0x1] %vm1166_vm14, %v1923_v29  ;;  %v2667_v58 = vperm.slane %v2651_v19, 0 }
 0x441   : >> { %2629 = vst.msk [vmem:[#allocation5 + $0x6d] sm:$0x1] %vm1166_vm14, %v2597_v46  ;;  %v2498_v46 = vperm.slane %v2468_v36, 0 }
 0x442   : >> { %2444 = vst.msk [vmem:[#allocation5 + $0x6c] sm:$0x1] %vm1166_vm14, %v2403_v55 }
 0x445   : >> { %2532 = vrot.lane.b32.xlu0 %v2497_v47, %s5090_s30  ;;  %2789 = vrot.lane.b32.xlu1 %v2666_v57, %s5096_s21  ;;  %v2499_v57 = vperm.slane %v2468_v36, 1  ;;  %v2851_v47 = vld [vmem:[#allocation5 + $0x80] sm:$0xff] }
 0x446   : >> { %2408 = vrot.lane.b32.xlu2 %v6166_v6, %s5097_s27  ;;  %v2643_v6 = vrot.slane %v6177_v18, 1 }
 0x447   : >> { %v2207_v43 = vpop.permute.xlu0 %2206  ;;  %v2011_v44 = vpop.permute.xlu1 %2010 }
 0x448   : >> { %2248 = vst.msk [vmem:[#allocation5 + $0x6a] sm:$0x1] %vm1166_vm14, %v2207_v43  ;;  %v2555_v12 = vpop.permute.xlu2 %2554  ;;  %v2658_v60 = vperm.slane %v2643_v6, 0  ;;  %v2644_v43 = vrot.slane %v6177_v18, 2 }
 0x449   : >> { %2052 = vst.msk [vmem:[#allocation5 + $0x68] sm:$0x1] %vm1166_vm14, %v2011_v44 }
 0x44d   : >> { %2196 = vrot.lane.b32.xlu0 %v6108_v25, %s5091_s10  ;;  %2000 = vrot.lane.b32.xlu1 %v6108_v25, %s5092_s13 }
 0x44e   : >> { %2530 = vrot.lane.b32.xlu2 %v2496_v41, %s5090_s30 }
 0x44f   : >> { %v2686_v32 = vpop.permute.xlu0 %2685  ;;  %v2305_v40 = vpop.permute.xlu1 %2304 }
 0x450   : >> { %2727 = vst.msk [vmem:[#allocation5 + $0x6e] sm:$0x1] %vm1166_vm14, %v2686_v32  ;;  %v2111_v35 = vpop.permute.xlu2 %2110 }
 0x451   : >> { %2151 = vst.msk [vmem:[#allocation5 + $0x79] sm:$0x1] %vm1166_vm14, %v2111_v35 }
 0x452   : >> { %2346 = vst.msk [vmem:[#allocation5 + $0x6b] sm:$0x1] %vm1166_vm14, %v2305_v40  ;;  %v2485_v40 = vrot.slane %v5792_v4, 3 }
 0x455   : >> { %2675 = vrot.lane.b32.xlu0 %v2658_v60, %s5093_s16  ;;  %2294 = vrot.lane.b32.xlu1 %v6108_v25, %s5094_s18 }
 0x456   : >> { %2098 = vrot.lane.b32.xlu2 %v6108_v25, %s5095_s19 }
 0x457   : >> { %v2557_v59 = vpop.permute.xlu0 %2556  ;;  %v2784_v38 = vpop.permute.xlu1 %2783 }
 0x458   : >> { %v2598_v63 = vsel %vm2590_vm7, %v2555_v12, %v2557_v59  ;;  %v2405_v11 = vpop.permute.xlu2 %2404  ;;  %2825 = vst.msk [vmem:[#allocation5 + $0x6f] sm:$0x1] %vm1166_vm14, %v2784_v38  ;;  %v2659_v12 = vperm.slane %v2644_v43, 0 }
 0x459   : >> { %2630 = vst.msk [vmem:[#allocation5 + $0x7d] sm:$0x1] %vm1166_vm14, %v2598_v63  ;;  %v2516_v63 = vperm.slane %v2485_v40, 0 }
 0x45a   : >> { %2445 = vst.msk [vmem:[#allocation5 + $0x7c] sm:$0x1] %vm1166_vm14, %v2405_v11  ;;  %v7633_v11 = vld [vmem:[#allocation15_spill] sm:$0xff] }
 0x45d   : >> { %2568 = vrot.lane.b32.xlu0 %v2515_v22, %s5090_s30  ;;  %2773 = vrot.lane.b32.xlu1 %v2658_v60, %s5096_s21  ;;  %v2517_v60 = vperm.slane %v2485_v40, 1  ;;  %v6393_v22 = vperm.slane %v7633_v11, 0 }
 0x45e   : >> { %2392 = vrot.lane.b32.xlu2 %v6108_v25, %s5097_s27 }
 0x45f   : >> { %v2209_v39 = vpop.permute.xlu0 %2208  ;;  %v2013_v3 = vpop.permute.xlu1 %2012  ;;  %v2848_v17 = vld [vmem:[#allocation5 + $0x68] sm:$0xff] }
 0x460   : >> { %2249 = vst.msk [vmem:[#allocation5 + $0x7a] sm:$0x1] %vm1166_vm14, %v2209_v39  ;;  %v2559_v9 = vpop.permute.xlu2 %2558  ;;  %4884 = vmatmul.msk.f32.vlgmr.msra.gmra.mxu3 %vm387_vm3, %v2848_v17  ;;  %v2652_v17 = vrot.slane %v6234_v27, 3 }
 0x461   : >> { %2053 = vst.msk [vmem:[#allocation5 + $0x78] sm:$0x1] %vm1166_vm14, %v2013_v3  ;;  %v2853_v3 = vld [vmem:[#allocation5 + $0x90] sm:$0xff] }
 0x465   : >> { %2214 = vrot.lane.b32.xlu0 %v6148_v33, %s5091_s10  ;;  %2018 = vrot.lane.b32.xlu1 %v6148_v33, %s5092_s13 }
 0x466   : >> { %2566 = vrot.lane.b32.xlu2 %v2514_v0, %s5090_s30 }
 0x467   : >> { %v2688_v25 = vpop.permute.xlu0 %2687  ;;  %v2307_v24 = vpop.permute.xlu1 %2306 }
 0x468   : >> { %2728 = vst.msk [vmem:[#allocation5 + $0x7e] sm:$0x1] %vm1166_vm14, %v2688_v25  ;;  %v2113_v26 = vpop.permute.xlu2 %2112  ;;  %4885 = vmatmul.msk.f32.gmra.mxu3 %vm387_vm3, %v2849_v20  ;;  %v2668_v20 = vperm.slane %v2652_v17, 0  ;;  %v2653_v17 = vrot.slane %v6234_v27, 4 }
 0x469   : >> { %2152 = vst.msk [vmem:[#allocation5 + $0x89] sm:$0x1] %vm1166_vm14, %v2113_v26  ;;  %v2470_v26 = vrot.slane %v5714_v14, 3 }
 0x46a   : >> { %2347 = vst.msk [vmem:[#allocation5 + $0x7b] sm:$0x1] %vm1166_vm14, %v2307_v24 }
 0x46b   : >> { %v2500_v36 = vperm.slane %v2470_v26, 0 }
 0x46d   : >> { %2693 = vrot.lane.b32.xlu0 %v2667_v58, %s5093_s16  ;;  %2312 = vrot.lane.b32.xlu1 %v6148_v33, %s5094_s18 }
 0x46e   : >> { %2116 = vrot.lane.b32.xlu2 %v6148_v33, %s5095_s19 }
 0x46f   : >> { %v2561_v16 = vpop.permute.xlu0 %2560  ;;  %v2786_v42 = vpop.permute.xlu1 %2785 }
 0x470   : >> { %v2599_v1 = vsel %vm2590_vm7, %v2559_v9, %v2561_v16  ;;  %v2407_v56 = vpop.permute.xlu2 %2406  ;;  %2826 = vst.msk [vmem:[#allocation5 + $0x7f] sm:$0x1] %vm1166_vm14, %v2786_v42 }
 0x471   : >> { %2631 = vst.msk [vmem:[#allocation5 + $0x8d] sm:$0x1] %vm1166_vm14, %v2599_v1 }
 0x472   : >> { %2446 = vst.msk [vmem:[#allocation5 + $0x8c] sm:$0x1] %vm1166_vm14, %v2407_v56 }
 0x475   : >> { %2536 = vrot.lane.b32.xlu0 %v2499_v57, %s5090_s30  ;;  %2791 = vrot.lane.b32.xlu1 %v2667_v58, %s5096_s21  ;;  %v1880_v57 = vrot.slane %v6268_v21, 4 }
 0x476   : >> { %2410 = vrot.lane.b32.xlu2 %v6148_v33, %s5097_s27 }
 0x477   : >> { %v2211_v23 = vpop.permute.xlu0 %2210  ;;  %v2015_v29 = vpop.permute.xlu1 %2014  ;;  %v2850_v37 = vld [vmem:[#allocation5 + $0x78] sm:$0xff] }
 0x478   : >> { %2250 = vst.msk [vmem:[#allocation5 + $0x8a] sm:$0x1] %vm1166_vm14, %v2211_v23  ;;  %v2527_v34 = vpop.permute.xlu2 %2526  ;;  %4886 = vmatmul.msk.f32.gmra.mxu3 %vm387_vm3, %v2850_v37  ;;  %v6424_v37 = vperm.slane %v1880_v57, 0 }
 0x479   : >> { %2054 = vst.msk [vmem:[#allocation5 + $0x88] sm:$0x1] %vm1166_vm14, %v2015_v29  ;;  %v2501_v29 = vperm.slane %v2470_v26, 1 }
 0x47d   : >> { %2198 = vrot.lane.b32.xlu0 %v6119_v10, %s5091_s10  ;;  %2002 = vrot.lane.b32.xlu1 %v6119_v10, %s5092_s13 }
 0x47e   : >> { %2534 = vrot.lane.b32.xlu2 %v2498_v46, %s5090_s30 }
 0x47f   : >> { %v2690_v33 = vpop.permute.xlu0 %2689  ;;  %v2309_v55 = vpop.permute.xlu1 %2308 }
 0x480   : >> { %2729 = vst.msk [vmem:[#allocation5 + $0x8e] sm:$0x1] %vm1166_vm14, %v2690_v33  ;;  %v2097_v44 = vpop.permute.xlu2 %2096  ;;  %4887 = vmatmul.msk.f32.gmra.mxu3 %vm387_vm3, %v2851_v47  ;;  %v2837_v47 = vld [vmem:[#allocation5 + $0x10] sm:$0xff] }
 0x481   : >> { %2144 = vst.msk [vmem:[#allocation5 + $0x9] sm:$0x1] %vm1166_vm14, %v2097_v44  ;;  %v2487_v44 = vrot.slane %v5802_v2, 4 }
 0x482   : >> { %2348 = vst.msk [vmem:[#allocation5 + $0x8b] sm:$0x1] %vm1166_vm14, %v2309_v55 }
 0x485   : >> { %2677 = vrot.lane.b32.xlu0 %v2659_v12, %s5093_s16  ;;  %2296 = vrot.lane.b32.xlu1 %v6119_v10, %s5094_s18 }
 0x486   : >> { %2100 = vrot.lane.b32.xlu2 %v6119_v10, %s5095_s19 }
 0x487   : >> { %v2529_v41 = vpop.permute.xlu0 %2528  ;;  %v2788_v32 = vpop.permute.xlu1 %2787 }
 0x488   : >> { %v2591_v6 = vsel %vm2590_vm7, %v2527_v34, %v2529_v41  ;;  %v2391_v35 = vpop.permute.xlu2 %2390  ;;  %2827 = vst.msk [vmem:[#allocation5 + $0x8f] sm:$0x1] %vm1166_vm14, %v2788_v32  ;;  %v6431_v34 = vld [vmem:[#allocation4 + $0x8] sm:$0xff] }
 0x489   : >> { %2623 = vst.msk [vmem:[#allocation5 + $0xd] sm:$0x1] %vm1166_vm14, %v2591_v6  ;;  %v2362_v46 = vrot.slane %v6431_v34, 3  ;;  %v2518_v6 = vperm.slane %v2487_v44, 0  ;;  %v1971_v26 = vrot.slane %v6431_v34, 4 }
 0x48a   : >> { %2438 = vst.msk [vmem:[#allocation5 + $0xc] sm:$0x1] %vm1166_vm14, %v2391_v35 }
 0x48d   : >> { %2572 = vrot.lane.b32.xlu0 %v2517_v60, %s5090_s30  ;;  %2775 = vrot.lane.b32.xlu1 %v2659_v12, %s5096_s21  ;;  %v2645_v12 = vrot.slane %v6177_v18, 3 }
 0x48e   : >> { %2394 = vrot.lane.b32.xlu2 %v6119_v10, %s5097_s27 }
 0x48f   : >> { %v2195_v59 = vpop.permute.xlu0 %2194  ;;  %v1999_v38 = vpop.permute.xlu1 %1998  ;;  %v2852_v4 = vld [vmem:[#allocation5 + $0x88] sm:$0xff]  ;;  %v2660_v35 = vperm.slane %v2645_v12, 0 }
 0x490   : >> { %2242 = vst.msk [vmem:[#allocation5 + $0xa] sm:$0x1] %vm1166_vm14, %v2195_v59  ;;  %v2563_v31 = vpop.permute.xlu2 %2562  ;;  %4888 = vmatmul.msk.f32.gmra.mxu3 %vm387_vm3, %v2852_v4  ;;  %v2519_v4 = vperm.slane %v2487_v44, 1  ;;  %v2489_v44 = vrot.slane %v5807_v13, 5 }
 0x491   : >> { %2046 = vst.msk [vmem:[#allocation5 + $0x8] sm:$0x1] %vm1166_vm14, %v1999_v38 }
 0x495   : >> { %2216 = vrot.lane.b32.xlu0 %v6164_v5, %s5091_s10  ;;  %2020 = vrot.lane.b32.xlu1 %v6164_v5, %s5092_s13 }
 0x496   : >> { %2570 = vrot.lane.b32.xlu2 %v2516_v63, %s5090_s30 }
 0x497   : >> { %v2983_v10 = vpop.f32.mrf.mxu1  ;;  %v2674_v39 = vpop.permute.xlu0 %2673 }
 0x498   : >> { %v2984_v9 = vadd.f32 %v2983_v10, %v6393_v22  ;;  %2721 = vst.msk [vmem:[#allocation5 + $0xe] sm:$0x1] %vm1166_vm14, %v2674_v39  ;;  %v2115_v0 = vpop.permute.xlu2 %2114  ;;  %v2293_v25 = vpop.permute.xlu1 %2292  ;;  %4889 = vmatmul.msk.f32.gmra.mxu3 %vm387_vm3, %v2853_v3  ;;  %v2855_v10 = vld [vmem:[#allocation5 + $0xa0] sm:$0xff]  ;;  %v1881_v3 = vrot.slane %v6268_v21, 5 }
 0x499   : >> { %2153 = vst.msk [vmem:[#allocation5 + $0x99] sm:$0x1] %vm1166_vm14, %v2115_v0 }
 0x49a   : >> { %v3079_v24 = vmax.f32 %v2984_v9, 0.0  ;;  %2340 = vst.msk [vmem:[#allocation5 + $0xb] sm:$0x1] %vm1166_vm14, %v2293_v25 }
 0x49c   : >> { %3130 = vmatmul.f32.vlgmr.msrb.gmra.mxu0 %v3079_v24  ;;  %v6473_v24 = vperm.slane %v1881_v3, 0 }
 0x49d   : >> { %2695 = vrot.lane.b32.xlu0 %v2668_v20, %s5093_s16  ;;  %2314 = vrot.lane.b32.xlu1 %v6164_v5, %s5094_s18 }
 0x49e   : >> { %2118 = vrot.lane.b32.xlu2 %v6164_v5, %s5095_s19 }
 0x49f   : >> { %v2565_v19 = vpop.permute.xlu0 %2564 }
 0x4a0   : >> { %v2600_v58 = vsel %vm2590_vm7, %v2563_v31, %v2565_v19  ;;  %v2409_v16 = vpop.permute.xlu2 %2408  ;;  %v2772_v42 = vpop.permute.xlu1 %2771 }
 0x4a1   : >> { %2632 = vst.msk [vmem:[#allocation5 + $0x9d] sm:$0x1] %vm1166_vm14, %v2600_v58  ;;  %v2472_v58 = vrot.slane %v5719_v7, 4 }
 0x4a2   : >> { %2447 = vst.msk [vmem:[#allocation5 + $0x9c] sm:$0x1] %vm1166_vm14, %v2409_v16 }
 0x4a3   : >> { %2819 = vst.msk [vmem:[#allocation5 + $0xf] sm:$0x1] %vm1166_vm14, %v2772_v42 }
 0x4a5   : >> { %2538 = vrot.lane.b32.xlu0 %v2500_v36, %s5090_s30  ;;  %2793 = vrot.lane.b32.xlu1 %v2668_v20, %s5096_s21  ;;  %v2669_v20 = vperm.slane %v2653_v17, 0  ;;  %v2474_v17 = vrot.slane %v5730_v15, 5 }
 0x4a6   : >> { %2412 = vrot.lane.b32.xlu2 %v6164_v5, %s5097_s27 }
 0x4a7   : >> { %v2213_v1 = vpop.permute.xlu0 %2212 }
 0x4a8   : >> { %2251 = vst.msk [vmem:[#allocation5 + $0x9a] sm:$0x1] %vm1166_vm14, %v2213_v1  ;;  %v2531_v14 = vpop.permute.xlu2 %2530  ;;  %v2017_v56 = vpop.permute.xlu1 %2016  ;;  %v1986_v1 = vperm.slane %v1971_v26, 0  ;;  %v2505_v26 = vperm.slane %v2474_v17, 1 }
 0x4a9   : >> { %2055 = vst.msk [vmem:[#allocation5 + $0x98] sm:$0x1] %vm1166_vm14, %v2017_v56 }
 0x4aa   : >> { %v2836_v23 = vld [vmem:[#allocation5 + $0x8] sm:$0xff] }
 0x4ab   : >> { %4872 = vmatmul.msk.f32.gmra.mxu1 %vm387_vm3, %v2836_v23  ;;  %v2839_v23 = vld [vmem:[#allocation5 + $0x20] sm:$0xff] }
 0x4ad   : >> { %2102 = vrot.lane.b32.xlu0 %v6137_v30, %s5095_s19  ;;  %2540 = vrot.lane.b32.xlu1 %v2501_v29, %s5090_s30  ;;  %v2377_v30 = vperm.slane %v2362_v46, 0  ;;  %v2503_v29 = vperm.slane %v2472_v58, 1 }
 0x4ae   : >> { %1924 = vrot.lane.b32.xlu2 %v6424_v37, %s5089_s29 }
 0x4af   : >> { %v2692_v5 = vpop.permute.xlu0 %2691 }
 0x4b0   : >> { %2730 = vst.msk [vmem:[#allocation5 + $0x9e] sm:$0x1] %vm1166_vm14, %v2692_v5  ;;  %v2099_v33 = vpop.permute.xlu2 %2098  ;;  %v2311_v55 = vpop.permute.xlu1 %2310  ;;  %v2744_v5 = vrot.slane %v6177_v18, 4 }
 0x4b1   : >> { %2145 = vst.msk [vmem:[#allocation5 + $0x19] sm:$0x1] %vm1166_vm14, %v2099_v33 }
 0x4b2   : >> { %2349 = vst.msk [vmem:[#allocation5 + $0x9b] sm:$0x1] %vm1166_vm14, %v2311_v55 }
 0x4b3   : >> { %4873 = vmatmul.msk.f32.gmra.mxu1 %vm387_vm3, %v2837_v47  ;;  %v2759_v47 = vperm.slane %v2744_v5, 0 }
 0x4b5   : >> { %2396 = vrot.lane.b32.xlu0 %v2377_v30, %s5097_s27  ;;  %2200 = vrot.lane.b32.xlu1 %v2377_v30, %s5091_s10 }
 0x4b6   : >> { %2004 = vrot.lane.b32.xlu2 %v2377_v30, %s5092_s13 }
 0x4b7   : >> { %v2533_v43 = vpop.permute.xlu0 %2532 }
 0x4b8   : >> { %v2592_v41 = vsel %vm2590_vm7, %v2531_v14, %v2533_v43  ;;  %v2393_v32 = vpop.permute.xlu2 %2392  ;;  %v2790_v40 = vpop.permute.xlu1 %2789  ;;  %v2502_v14 = vperm.slane %v2472_v58, 0  ;;  %v2168_v58 = vrot.slane %v6431_v34, 5 }
 0x4b9   : >> { %2624 = vst.msk [vmem:[#allocation5 + $0x1d] sm:$0x1] %vm1166_vm14, %v2592_v41 }
 0x4ba   : >> { %2439 = vst.msk [vmem:[#allocation5 + $0x1c] sm:$0x1] %vm1166_vm14, %v2393_v32 }
 0x4bb   : >> { %2828 = vst.msk [vmem:[#allocation5 + $0x9f] sm:$0x1] %vm1166_vm14, %v2790_v40  ;;  %v2520_v40 = vperm.slane %v2489_v44, 0 }
 0x4bd   : >> { %2574 = vrot.lane.b32.xlu0 %v2518_v6, %s5090_s30  ;;  %2679 = vrot.lane.b32.xlu1 %v2660_v35, %s5093_s16 }
 0x4be   : >> { %2298 = vrot.lane.b32.xlu2 %v2377_v30, %s5094_s18 }
 0x4bf   : >> { %v2197_v2 = vpop.permute.xlu0 %2196 }
 0x4c0   : >> { %2243 = vst.msk [vmem:[#allocation5 + $0x1a] sm:$0x1] %vm1166_vm14, %v2197_v2  ;;  %v2567_v60 = vpop.permute.xlu2 %2566  ;;  %v2001_v59 = vpop.permute.xlu1 %2000 }
 0x4c1   : >> { %2047 = vst.msk [vmem:[#allocation5 + $0x18] sm:$0x1] %vm1166_vm14, %v2001_v59  ;;  %v2521_v59 = vperm.slane %v2489_v44, 1 }
 0x4c2   : >> { %v2854_v38 = vld [vmem:[#allocation5 + $0x98] sm:$0xff] }
 0x4c3   : >> { %4890 = vmatmul.msk.f32.gmra.mxu3 %vm387_vm3, %v2854_v38 }
 0x4c5   : >> { %2120 = vrot.lane.b32.xlu0 %v6424_v37, %s5095_s19  ;;  %2576 = vrot.lane.b32.xlu1 %v2519_v4, %s5090_s30  ;;  %v2752_v4 = vrot.slane %v6234_v27, 5 }
 0x4c6   : >> { %2777 = vrot.lane.b32.xlu2 %v2660_v35, %s5096_s21 }
 0x4c7   : >> { %v2676_v31 = vpop.permute.xlu0 %2675 }
 0x4c8   : >> { %2722 = vst.msk [vmem:[#allocation5 + $0x1e] sm:$0x1] %vm1166_vm14, %v2676_v31  ;;  %v2117_v63 = vpop.permute.xlu2 %2116  ;;  %v2295_v11 = vpop.permute.xlu1 %2294 }
 0x4c9   : >> { %2154 = vst.msk [vmem:[#allocation5 + $0xa9] sm:$0x1] %vm1166_vm14, %v2117_v63 }
 0x4ca   : >> { %2341 = vst.msk [vmem:[#allocation5 + $0x1b] sm:$0x1] %vm1166_vm14, %v2295_v11 }
 0x4cb   : >> { %4891 = vmatmul.msk.f32.gmra.mxu3 %vm387_vm3, %v2855_v10 }
 0x4cd   : >> { %2414 = vrot.lane.b32.xlu0 %v6424_v37, %s5097_s27  ;;  %2218 = vrot.lane.b32.xlu1 %v6424_v37, %s5091_s10 }
 0x4ce   : >> { %2022 = vrot.lane.b32.xlu2 %v6424_v37, %s5092_s13 }
 0x4cf   : >> { %v2569_v39 = vpop.permute.xlu0 %2568 }
 0x4d0   : >> { %v2601_v9 = vsel %vm2590_vm7, %v2567_v60, %v2569_v39  ;;  %v2411_v0 = vpop.permute.xlu2 %2410  ;;  %v2774_v25 = vpop.permute.xlu1 %2773  ;;  %v2857_v60 = vld [vmem:[#allocation5 + $0xb0] sm:$0xff]  ;;  %v2768_v39 = vperm.slane %v2752_v4, 0 }
 0x4d1   : >> { %2633 = vst.msk [vmem:[#allocation5 + $0xad] sm:$0x1] %vm1166_vm14, %v2601_v9  ;;  %v1882_v9 = vrot.slane %v6268_v21, 6 }
 0x4d2   : >> { %2448 = vst.msk [vmem:[#allocation5 + $0xac] sm:$0x1] %vm1166_vm14, %v2411_v0 }
 0x4d3   : >> { %2820 = vst.msk [vmem:[#allocation5 + $0x1f] sm:$0x1] %vm1166_vm14, %v2774_v25 }
 0x4d5   : >> { %1926 = vrot.lane.b32.xlu0 %v6473_v24, %s5089_s29  ;;  %2697 = vrot.lane.b32.xlu1 %v2669_v20, %s5093_s16 }
 0x4d6   : >> { %2316 = vrot.lane.b32.xlu2 %v6424_v37, %s5094_s18 }
 0x4d7   : >> { %v2215_v19 = vpop.permute.xlu0 %2214 }
 0x4d8   : >> { %2252 = vst.msk [vmem:[#allocation5 + $0xaa] sm:$0x1] %vm1166_vm14, %v2215_v19  ;;  %v2535_v16 = vpop.permute.xlu2 %2534  ;;  %v2019_v42 = vpop.permute.xlu1 %2018 }
 0x4d9   : >> { %2056 = vst.msk [vmem:[#allocation5 + $0xa8] sm:$0x1] %vm1166_vm14, %v2019_v42 }
 0x4da   : >> { %v2838_v36 = vld [vmem:[#allocation5 + $0x18] sm:$0xff] }
 0x4db   : >> { %4874 = vmatmul.msk.f32.gmra.mxu1 %vm387_vm3, %v2838_v36  ;;  %v2841_v36 = vld [vmem:[#allocation5 + $0x30] sm:$0xff] }
 0x4dd   : >> { %2006 = vrot.lane.b32.xlu0 %v1986_v1, %s5092_s13  ;;  %2542 = vrot.lane.b32.xlu1 %v2502_v14, %s5090_s30  ;;  %v2183_v14 = vperm.slane %v2168_v58, 0 }
 0x4de   : >> { %2795 = vrot.lane.b32.xlu2 %v2669_v20, %s5096_s21 }
 0x4df   : >> { %v2694_v56 = vpop.permute.xlu0 %2693 }
 0x4e0   : >> { %2731 = vst.msk [vmem:[#allocation5 + $0xae] sm:$0x1] %vm1166_vm14, %v2694_v56  ;;  %v2101_v7 = vpop.permute.xlu2 %2100  ;;  %v2313_v57 = vpop.permute.xlu1 %2312 }
 0x4e1   : >> { %2146 = vst.msk [vmem:[#allocation5 + $0x29] sm:$0x1] %vm1166_vm14, %v2101_v7  ;;  %v2504_v7 = vperm.slane %v2474_v17, 0 }
 0x4e2   : >> { %2350 = vst.msk [vmem:[#allocation5 + $0xab] sm:$0x1] %vm1166_vm14, %v2313_v57  ;;  %v7634_v57 = vld [vmem:[#allocation32_spill] sm:$0xff] }
 0x4e3   : >> { %4875 = vmatmul.msk.f32.gmra.mxu1 %vm387_vm3, %v2839_v23  ;;  %v6503_v30 = vpop.f32.mrf.mxu3  ;;  %v6560_v23 = vperm.slane %v7634_v57, 0 }
 0x4e5   : >> { %2300 = vrot.lane.b32.xlu0 %v1986_v1, %s5094_s18  ;;  %2104 = vrot.lane.b32.xlu1 %v1986_v1, %s5095_s19 }
 0x4e6   : >> { %2544 = vrot.lane.b32.xlu2 %v2503_v29, %s5090_s30 }
 0x4e7   : >> { %v2537_v37 = vpop.permute.xlu0 %2536 }
 0x4e8   : >> { %v2593_v46 = vsel %vm2590_vm7, %v2535_v16, %v2537_v37  ;;  %v2395_v33 = vpop.permute.xlu2 %2394  ;;  %v2792_v55 = vpop.permute.xlu1 %2791  ;;  %v2647_v37 = vrot.slane %v6177_v18, 5 }
 0x4e9   : >> { %2625 = vst.msk [vmem:[#allocation5 + $0x2d] sm:$0x1] %vm1166_vm14, %v2593_v46 }
 0x4ea   : >> { %2440 = vst.msk [vmem:[#allocation5 + $0x2c] sm:$0x1] %vm1166_vm14, %v2395_v33 }
 0x4eb   : >> { %2829 = vst.msk [vmem:[#allocation5 + $0xaf] sm:$0x1] %vm1166_vm14, %v2792_v55  ;;  %v6514_v2 = vpop.f32.mrf.mxu3 }
 0x4ed   : >> { %2779 = vrot.lane.b32.xlu0 %v2759_v47, %s5096_s21  ;;  %2398 = vrot.lane.b32.xlu1 %v1986_v1, %s5097_s27 }
 0x4ee   : >> { %2202 = vrot.lane.b32.xlu2 %v1986_v1, %s5091_s10 }
 0x4ef   : >> { %v2199_v43 = vpop.permute.xlu0 %2198 }
 0x4f0   : >> { %2244 = vst.msk [vmem:[#allocation5 + $0x2a] sm:$0x1] %vm1166_vm14, %v2199_v43  ;;  %v2571_v12 = vpop.permute.xlu2 %2570  ;;  %v2003_v41 = vpop.permute.xlu1 %2002  ;;  %v2662_v43 = vperm.slane %v2647_v37, 0 }
 0x4f1   : >> { %2048 = vst.msk [vmem:[#allocation5 + $0x28] sm:$0x1] %vm1166_vm14, %v2003_v41  ;;  %v2491_v41 = vrot.slane %v5812_v8, 6 }
 0x4f2   : >> { %v2856_v32 = vld [vmem:[#allocation5 + $0xa8] sm:$0xff] }
 0x4f3   : >> { %4892 = vmatmul.msk.f32.gmra.mxu3 %vm387_vm3, %v2856_v32 }
 0x4f5   : >> { %2024 = vrot.lane.b32.xlu0 %v6473_v24, %s5092_s13  ;;  %2578 = vrot.lane.b32.xlu1 %v2520_v40, %s5090_s30 }
 0x4f6   : >> { %2681 = vrot.lane.b32.xlu2 %v2759_v47, %s5093_s16 }
 0x4f7   : >> { %v2678_v6 = vpop.permute.xlu0 %2677 }
 0x4f8   : >> { %2723 = vst.msk [vmem:[#allocation5 + $0x2e] sm:$0x1] %vm1166_vm14, %v2678_v6  ;;  %v2119_v13 = vpop.permute.xlu2 %2118  ;;  %v2297_v35 = vpop.permute.xlu1 %2296 }
 0x4f9   : >> { %2155 = vst.msk [vmem:[#allocation5 + $0xb9] sm:$0x1] %vm1166_vm14, %v2119_v13 }
 0x4fa   : >> { %2342 = vst.msk [vmem:[#allocation5 + $0x2b] sm:$0x1] %vm1166_vm14, %v2297_v35  ;;  %v2523_v35 = vperm.slane %v2491_v41, 1 }
 0x4fb   : >> { %4893 = vmatmul.msk.f32.gmra.mxu3 %vm387_vm3, %v2857_v60  ;;  %v6526_v10 = vpop.f32.mrf.mxu3 }
 0x4fd   : >> { %2318 = vrot.lane.b32.xlu0 %v6473_v24, %s5094_s18  ;;  %2122 = vrot.lane.b32.xlu1 %v6473_v24, %s5095_s19 }
 0x4fe   : >> { %2580 = vrot.lane.b32.xlu2 %v2521_v59, %s5090_s30 }
 0x4ff   : >> { %v2573_v38 = vpop.permute.xlu0 %2572 }
 0x500   : >> { %v2602_v31 = vsel %vm2590_vm7, %v2571_v12, %v2573_v38  ;;  %v2413_v63 = vpop.permute.xlu2 %2412  ;;  %v2776_v11 = vpop.permute.xlu1 %2775 }
 0x501   : >> { %2634 = vst.msk [vmem:[#allocation5 + $0xbd] sm:$0x1] %vm1166_vm14, %v2602_v31 }
 0x502   : >> { %2449 = vst.msk [vmem:[#allocation5 + $0xbc] sm:$0x1] %vm1166_vm14, %v2413_v63 }
 0x503   : >> { %2821 = vst.msk [vmem:[#allocation5 + $0x2f] sm:$0x1] %vm1166_vm14, %v2776_v11  ;;  %v6541_v19 = vpop.f32.mrf.mxu3  ;;  %v2522_v11 = vperm.slane %v2491_v41, 0 }
 0x505   : >> { %2797 = vrot.lane.b32.xlu0 %v2768_v39, %s5096_s21  ;;  %2416 = vrot.lane.b32.xlu1 %v6473_v24, %s5097_s27 }
 0x506   : >> { %2220 = vrot.lane.b32.xlu2 %v6473_v24, %s5091_s10  ;;  %v6544_v24 = vperm.slane %v1882_v9, 0 }
 0x507   : >> { %v2217_v3 = vpop.permute.xlu0 %2216 }
 0x508   : >> { %2253 = vst.msk [vmem:[#allocation5 + $0xba] sm:$0x1] %vm1166_vm14, %v2217_v3  ;;  %v1925_v0 = vpop.permute.xlu2 %1924  ;;  %v2021_v25 = vpop.permute.xlu1 %2020  ;;  %v2655_v3 = vrot.slane %v6234_v27, 6 }
 0x509   : >> { %1960 = vst.msk [vmem:[#allocation5 + $0xc7] sm:$0x1] %vm1166_vm14, %v1925_v0 }
 0x50a   : >> { %2057 = vst.msk [vmem:[#allocation5 + $0xb8] sm:$0x1] %vm1166_vm14, %v2021_v25  ;;  %v2840_v20 = vld [vmem:[#allocation5 + $0x28] sm:$0xff] }
 0x50b   : >> { %4876 = vmatmul.msk.f32.gmra.mxu1 %vm387_vm3, %v2840_v20 }
 0x50d   : >> { %2548 = vrot.lane.b32.xlu0 %v2505_v26, %s5090_s30  ;;  %1928 = vrot.lane.b32.xlu1 %v6544_v24, %s5089_s29  ;;  %v2671_v26 = vperm.slane %v2655_v3, 0 }
 0x50e   : >> { %2699 = vrot.lane.b32.xlu2 %v2768_v39, %s5093_s16 }
 0x50f   : >> { %v2696_v15 = vpop.permute.xlu0 %2695 }
 0x510   : >> { %2732 = vst.msk [vmem:[#allocation5 + $0xbe] sm:$0x1] %vm1166_vm14, %v2696_v15  ;;  %v2005_v16 = vpop.permute.xlu2 %2004  ;;  %v2315_v42 = vpop.permute.xlu1 %2314  ;;  %v2859_v31 = vld [vmem:[#allocation5 + $0xc0] sm:$0xff]  ;;  %v2493_v15 = vrot.slane %v5824_v28, 7 }
 0x511   : >> { %2049 = vst.msk [vmem:[#allocation5 + $0x38] sm:$0x1] %vm1166_vm14, %v2005_v16 }
 0x512   : >> { %2351 = vst.msk [vmem:[#allocation5 + $0xbb] sm:$0x1] %vm1166_vm14, %v2315_v42 }
 0x513   : >> { %4877 = vmatmul.msk.f32.gmra.mxu1 %vm387_vm3, %v2841_v36  ;;  %v3034_v1 = vpop.f32.mrf.mxu3 }
 0x514   : >> { %v3035_v56 = vadd.f32 %v3034_v1, %v6393_v22  ;;  %v2524_v1 = vperm.slane %v2493_v15, 0 }
 0x515   : >> { %2204 = vrot.lane.b32.xlu0 %v2183_v14, %s5091_s10  ;;  %2008 = vrot.lane.b32.xlu1 %v2183_v14, %s5092_s13 }
 0x516   : >> { %v3096_v34 = vmax.f32 %v3035_v56, 0.0  ;;  %2546 = vrot.lane.b32.xlu2 %v2504_v7, %s5090_s30 }
 0x517   : >> { %v2539_v29 = vpop.permute.xlu0 %2538 }
 0x518   : >> { %v2299_v5 = vpop.permute.xlu2 %2298  ;;  %v2794_v46 = vpop.permute.xlu1 %2793  ;;  %3181 = vmatmul.f32.vlgmr.msrb.gmra.mxu2 %v3096_v34  ;;  %v2843_v34 = vld [vmem:[#allocation5 + $0x40] sm:$0xff] }
 0x519   : >> { %2343 = vst.msk [vmem:[#allocation5 + $0x3b] sm:$0x1] %vm1166_vm14, %v2299_v5  ;;  %v3131_v33 = vpop.f32.mrf.mxu0 }
 0x51a   : >> { %v3132_v55 = vadd.f32 %v3131_v33, %v6560_v23  ;;  %2830 = vst.msk [vmem:[#allocation5 + $0xbf] sm:$0x1] %vm1166_vm14, %v2794_v46 }
 0x51b   : >> { %v3037_v47 = vpop.f32.mrf.mxu3 }
 0x51c   : >> { %3227 = vst.msk [vmem:[#allocation6] sm:$0xff] %vm387_vm3, %v3132_v55  ;;  %v3038_v44 = vadd.f32 %v3037_v47, %v6393_v22 }
 0x51d   : >> { %2683 = vrot.lane.b32.xlu0 %v2662_v43, %s5093_s16  ;;  %2302 = vrot.lane.b32.xlu1 %v2183_v14, %s5094_s18 }
 0x51e   : >> { %v3097_v18 = vmax.f32 %v3038_v44, 0.0  ;;  %2106 = vrot.lane.b32.xlu2 %v2183_v14, %s5095_s19 }
 0x51f   : >> { %v2103_v12 = vpop.permute.xlu0 %2102 }
 0x520   : >> { %2147 = vst.msk [vmem:[#allocation5 + $0x39] sm:$0x1] %vm1166_vm14, %v2103_v12  ;;  %v2778_v32 = vpop.permute.xlu2 %2777  ;;  %v2541_v40 = vpop.permute.xlu1 %2540  ;;  %3184 = vmatmul.f32.gmra.mxu2 %v3097_v18  ;;  %v5041_v18 = vld [vmem:[#allocation4 + $0x28] sm:$0xff] }
 0x521   : >> { %2822 = vst.msk [vmem:[#allocation5 + $0x3f] sm:$0x1] %vm1166_vm14, %v2778_v32  ;;  %v2594_v6 = vsel %vm2590_vm7, %v2539_v29, %v2541_v40  ;;  %v2858_v13 = vld [vmem:[#allocation5 + $0xb8] sm:$0xff]  ;;  %v2525_v29 = vperm.slane %v2493_v15, 1  ;;  %v2656_v12 = vrot.slane %v5041_v18, 7 }
 0x522   : >> { %2626 = vst.msk [vmem:[#allocation5 + $0x3d] sm:$0x1] %vm1166_vm14, %v2594_v6  ;;  %4894 = vmatmul.msk.f32.gmra.mxu3 %vm387_vm3, %v2858_v13 }
 0x523   : >> { %v2672_v13 = vperm.slane %v2656_v12, 0 }
 0x525   : >> { %2584 = vrot.lane.b32.xlu0 %v2523_v35, %s5090_s30  ;;  %2781 = vrot.lane.b32.xlu1 %v2662_v43, %s5096_s21 }
 0x526   : >> { %2400 = vrot.lane.b32.xlu2 %v2183_v14, %s5097_s27  ;;  %v2079_v14 = vrot.slane %v6268_v21, 7 }
 0x527   : >> { %v2397_v8 = vpop.permute.xlu0 %2396 }
 0x528   : >> { %v2986_v60 = vpop.f32.mrf.mxu1  ;;  %2441 = vst.msk [vmem:[#allocation5 + $0x3c] sm:$0x1] %vm1166_vm14, %v2397_v8  ;;  %v2023_v59 = vpop.permute.xlu2 %2022  ;;  %v2095_v57 = vperm.slane %v2079_v14, 0 }
 0x529   : >> { %v2987_v38 = vadd.f32 %v2986_v60, %v6393_v22  ;;  %2058 = vst.msk [vmem:[#allocation5 + $0xc8] sm:$0x1] %vm1166_vm14, %v2023_v59  ;;  %v2201_v4 = vpop.permute.xlu1 %2200 }
 0x52a   : >> { %2245 = vst.msk [vmem:[#allocation5 + $0x3a] sm:$0x1] %vm1166_vm14, %v2201_v4  ;;  %4895 = vmatmul.msk.f32.gmra.mxu3 %vm387_vm3, %v2859_v31 }
 0x52b   : >> { %v3080_v63 = vmax.f32 %v2987_v38, 0.0 }
 0x52d   : >> { %3133 = vmatmul.f32.gmra.mxu0 %v3080_v63  ;;  %2222 = vrot.lane.b32.xlu0 %v6544_v24, %s5091_s10 }
 0x52e   : >> { %2582 = vrot.lane.b32.xlu2 %v2522_v11, %s5090_s30  ;;  %2026 = vrot.lane.b32.xlu1 %v6544_v24, %s5092_s13 }
 0x52f   : >> { %v2575_v39 = vpop.permute.xlu0 %2574 }
 0x530   : >> { %v2989_v17 = vpop.f32.mrf.mxu1  ;;  %v2317_v9 = vpop.permute.xlu2 %2316 }
 0x531   : >> { %v2990_v0 = vadd.f32 %v2989_v17, %v6393_v22  ;;  %2352 = vst.msk [vmem:[#allocation5 + $0xcb] sm:$0x1] %vm1166_vm14, %v2317_v9  ;;  %v2680_v25 = vpop.permute.xlu1 %2679 }
 0x532   : >> { %2724 = vst.msk [vmem:[#allocation5 + $0x3e] sm:$0x1] %vm1166_vm14, %v2680_v25 }
 0x533   : >> { %v3081_v20 = vmax.f32 %v2990_v0, 0.0 }
 0x535   : >> { %3136 = vmatmul.f32.gmra.mxu0 %v3081_v20  ;;  %2701 = vrot.lane.b32.xlu0 %v2671_v26, %s5093_s16 }
 0x536   : >> { %2124 = vrot.lane.b32.xlu2 %v6544_v24, %s5095_s19  ;;  %2320 = vrot.lane.b32.xlu1 %v6544_v24, %s5094_s18 }
 0x537   : >> { %v2121_v27 = vpop.permute.xlu0 %2120 }
 0x538   : >> { %2156 = vst.msk [vmem:[#allocation5 + $0xc9] sm:$0x1] %vm1166_vm14, %v2121_v27  ;;  %v2796_v58 = vpop.permute.xlu2 %2795 }
 0x539   : >> { %2831 = vst.msk [vmem:[#allocation5 + $0xcf] sm:$0x1] %vm1166_vm14, %v2796_v58  ;;  %v2577_v16 = vpop.permute.xlu1 %2576  ;;  %v2842_v42 = vld [vmem:[#allocation5 + $0x38] sm:$0xff] }
 0x53a   : >> { %v2603_v36 = vsel %vm2590_vm7, %v2575_v39, %v2577_v16  ;;  %4878 = vmatmul.msk.f32.gmra.mxu1 %vm387_vm3, %v2842_v42  ;;  %v2845_v42 = vld [vmem:[#allocation5 + $0x50] sm:$0xff] }
 0x53b   : >> { %2635 = vst.msk [vmem:[#allocation5 + $0xcd] sm:$0x1] %vm1166_vm14, %v2603_v36 }
 0x53d   : >> { %2586 = vrot.lane.b32.xlu0 %v2524_v1, %s5090_s30 }
 0x53e   : >> { %2418 = vrot.lane.b32.xlu2 %v6544_v24, %s5097_s27  ;;  %2799 = vrot.lane.b32.xlu1 %v2671_v26, %s5096_s21 }
 0x53f   : >> { %v2415_v28 = vpop.permute.xlu0 %2414 }
 0x540   : >> { %2450 = vst.msk [vmem:[#allocation5 + $0xcc] sm:$0x1] %vm1166_vm14, %v2415_v28  ;;  %v2545_v56 = vpop.permute.xlu2 %2544 }
 0x541   : >> { %v2219_v7 = vpop.permute.xlu1 %2218 }
 0x542   : >> { %2254 = vst.msk [vmem:[#allocation5 + $0xca] sm:$0x1] %vm1166_vm14, %v2219_v7  ;;  %4879 = vmatmul.msk.f32.gmra.mxu1 %vm387_vm3, %v2843_v34 }
 0x545   : >> { %2126 = vrot.lane.b32.xlu0 %v2095_v57, %s5095_s19  ;;  %s5106_s19 = smov 16  }
 0x546   : >> { %v3040_v37 = vpop.f32.mrf.mxu3  ;;  %1930 = vrot.lane.b32.xlu2 %v2095_v57, %s5089_s29  ;;  %2588 = vrot.lane.b32.xlu1 %v2525_v29, %s5090_s30  ;;  %s5100_s29 = smov 56   ;;  %s5101_s30 = smov 74  }
 0x547   : >> { %v3041_v21 = vadd.f32 %v3040_v37, %v6393_v22  ;;  %v1927_v24 = vpop.permute.xlu0 %1926 }
 0x548   : >> { %1961 = vst.msk [vmem:[#allocation5 + $0xd7] sm:$0x1] %vm1166_vm14, %v1927_v24  ;;  %v2203_v5 = vpop.permute.xlu2 %2202 }
 0x549   : >> { %v3098_v46 = vmax.f32 %v3041_v21, 0.0  ;;  %2246 = vst.msk [vmem:[#allocation5 + $0x4a] sm:$0x1] %vm1166_vm14, %v2203_v5  ;;  %v2698_v33 = vpop.permute.xlu1 %2697 }
 0x54a   : >> { %2733 = vst.msk [vmem:[#allocation5 + $0xce] sm:$0x1] %vm1166_vm14, %v2698_v33 }
 0x54b   : >> { %3187 = vmatmul.f32.gmra.mxu2 %v3098_v46 }
 0x54d   : >> { %2420 = vrot.lane.b32.xlu0 %v2095_v57, %s5097_s27  ;;  %s5113_s27 = smov (%p525_p4), 82  }
 0x54e   : >> { %v3043_v55 = vpop.f32.mrf.mxu3  ;;  %2028 = vrot.lane.b32.xlu2 %v2095_v57, %s5092_s13  ;;  %2224 = vrot.lane.b32.xlu1 %v2095_v57, %s5091_s10  ;;  %s5102_s10 = smov 18   ;;  %s5103_s13 = smov 36  }
 0x54f   : >> { %v3044_v47 = vadd.f32 %v3043_v55, %v6393_v22  ;;  %v2007_v43 = vpop.permute.xlu0 %2006  ;;  %v2861_v4 = vld [vmem:[#allocation5 + $0xd0] sm:$0xff] }
 0x550   : >> { %2050 = vst.msk [vmem:[#allocation5 + $0x48] sm:$0x1] %vm1166_vm14, %v2007_v43  ;;  %v2682_v44 = vpop.permute.xlu2 %2681 }
 0x551   : >> { %v3099_v41 = vmax.f32 %v3044_v47, 0.0  ;;  %2725 = vst.msk [vmem:[#allocation5 + $0x4e] sm:$0x1] %vm1166_vm14, %v2682_v44  ;;  %v2543_v32 = vpop.permute.xlu1 %2542  ;;  %v2860_v40 = vld [vmem:[#allocation5 + $0xc8] sm:$0xff] }
 0x552   : >> { %v2595_v6 = vsel %vm2590_vm7, %v2543_v32, %v2545_v56  ;;  %4896 = vmatmul.msk.f32.gmra.mxu3 %vm387_vm3, %v2860_v40 }
 0x553   : >> { %2627 = vst.msk [vmem:[#allocation5 + $0x4d] sm:$0x1] %vm1166_vm14, %v2595_v6  ;;  %3190 = vmatmul.f32.gmra.mxu2 %v3099_v41 }
 0x556   : >> { %2322 = vrot.lane.b32.xlu2 %v2095_v57, %s5094_s18  ;;  %2703 = vrot.lane.b32.xlu1 %v2672_v13, %s5093_s16  ;;  %s5104_s16 = smov 54   ;;  %s5105_s18 = smov 72  }
 0x557   : >> { %v2301_v35 = vpop.permute.xlu0 %2300 }
 0x558   : >> { %v2992_v8 = vpop.f32.mrf.mxu1  ;;  %2344 = vst.msk [vmem:[#allocation5 + $0x4b] sm:$0x1] %vm1166_vm14, %v2301_v35  ;;  %v2581_v60 = vpop.permute.xlu2 %2580 }
 0x559   : >> { %v2993_v59 = vadd.f32 %v2992_v8, %v6393_v22  ;;  %v2105_v38 = vpop.permute.xlu1 %2104 }
 0x55a   : >> { %2148 = vst.msk [vmem:[#allocation5 + $0x49] sm:$0x1] %vm1166_vm14, %v2105_v38  ;;  %4897 = vmatmul.msk.f32.gmra.mxu3 %vm387_vm3, %v2861_v4 }
 0x55b   : >> { %v3082_v31 = vmax.f32 %v2993_v59, 0.0 }
 0x55d   : >> { %3139 = vmatmul.f32.gmra.mxu0 %v3082_v31 }
 0x55e   : >> { %2801 = vrot.lane.b32.xlu2 %v2672_v13, %s5096_s21  ;;  %s5112_s21 = smov (%p525_p4), 84  }
 0x55f   : >> { %v2780_v63 = vpop.permute.xlu0 %2779 }
 0x560   : >> { %v2995_v11 = vpop.f32.mrf.mxu1  ;;  %2823 = vst.msk [vmem:[#allocation5 + $0x4f] sm:$0x1] %vm1166_vm14, %v2780_v63  ;;  %v2221_v39 = vpop.permute.xlu2 %2220 }
 0x561   : >> { %v2996_v3 = vadd.f32 %v2995_v11, %v6393_v22  ;;  %2255 = vst.msk [vmem:[#allocation5 + $0xda] sm:$0x1] %vm1166_vm14, %v2221_v39  ;;  %v2399_v17 = vpop.permute.xlu1 %2398 }
 0x562   : >> { %2442 = vst.msk [vmem:[#allocation5 + $0x4c] sm:$0x1] %vm1166_vm14, %v2399_v17 }
 0x563   : >> { %v3083_v9 = vmax.f32 %v2996_v3, 0.0 }
 0x565   : >> { %3142 = vmatmul.f32.gmra.mxu0 %v3083_v9 }
 0x567   : >> { %v2025_v0 = vpop.permute.xlu0 %2024 }
 0x568   : >> { %2059 = vst.msk [vmem:[#allocation5 + $0xd8] sm:$0x1] %vm1166_vm14, %v2025_v0  ;;  %v2700_v25 = vpop.permute.xlu2 %2699 }
 0x569   : >> { %2734 = vst.msk [vmem:[#allocation5 + $0xde] sm:$0x1] %vm1166_vm14, %v2700_v25  ;;  %v2579_v20 = vpop.permute.xlu1 %2578  ;;  %v2844_v26 = vld [vmem:[#allocation5 + $0x48] sm:$0xff] }
 0x56a   : >> { %v2604_v27 = vsel %vm2590_vm7, %v2579_v20, %v2581_v60  ;;  %4880 = vmatmul.msk.f32.gmra.mxu1 %vm387_vm3, %v2844_v26 }
 0x56b   : >> { %2636 = vst.msk [vmem:[#allocation5 + $0xdd] sm:$0x1] %vm1166_vm14, %v2604_v27 }
 0x56f   : >> { %v2319_v15 = vpop.permute.xlu0 %2318 }
 0x570   : >> { %2353 = vst.msk [vmem:[#allocation5 + $0xdb] sm:$0x1] %vm1166_vm14, %v2319_v15  ;;  %v2547_v58 = vpop.permute.xlu2 %2546 }
 0x571   : >> { %v2123_v16 = vpop.permute.xlu1 %2122 }
 0x572   : >> { %2157 = vst.msk [vmem:[#allocation5 + $0xd9] sm:$0x1] %vm1166_vm14, %v2123_v16  ;;  %4881 = vmatmul.msk.f32.gmra.mxu1 %vm387_vm3, %v2845_v42  ;;  %v2847_v16 = vld [vmem:[#allocation5 + $0x60] sm:$0xff] }
 0x576   : >> { %v3046_v36 = vpop.f32.mrf.mxu3 }
 0x577   : >> { %v3047_v1 = vadd.f32 %v3046_v36, %v6393_v22  ;;  %v2798_v28 = vpop.permute.xlu0 %2797  ;;  %v3029_v36 = vadd.f32 %v6526_v10, %v6393_v22  ;;  %v3032_v10 = vadd.f32 %v6541_v19, %v6393_v22 }
 0x578   : >> { %2832 = vst.msk [vmem:[#allocation5 + $0xdf] sm:$0x1] %vm1166_vm14, %v2798_v28  ;;  %v2107_v14 = vpop.permute.xlu2 %2106 }
 0x579   : >> { %v3100_v56 = vmax.f32 %v3047_v1, 0.0  ;;  %2149 = vst.msk [vmem:[#allocation5 + $0x59] sm:$0x1] %vm1166_vm14, %v2107_v14  ;;  %v2417_v7 = vpop.permute.xlu1 %2416 }
 0x57a   : >> { %2451 = vst.msk [vmem:[#allocation5 + $0xdc] sm:$0x1] %vm1166_vm14, %v2417_v7 }
 0x57b   : >> { %3193 = vmatmul.f32.gmra.mxu2 %v3100_v56 }
 0x57e   : >> { %v3049_v34 = vpop.f32.mrf.mxu3 }
 0x57f   : >> { %v3050_v57 = vadd.f32 %v3049_v34, %v6393_v22  ;;  %v2549_v29 = vpop.permute.xlu0 %2548  ;;  %v3094_v34 = vmax.f32 %v3029_v36, 0.0 }
 0x580   : >> { %v2596_v37 = vsel %vm2590_vm7, %v2547_v58, %v2549_v29  ;;  %v2401_v21 = vpop.permute.xlu2 %2400 }
 0x581   : >> { %v3101_v24 = vmax.f32 %v3050_v57, 0.0  ;;  %2628 = vst.msk [vmem:[#allocation5 + $0x5d] sm:$0x1] %vm1166_vm14, %v2596_v37  ;;  %v1929_v5 = vpop.permute.xlu1 %1928  ;;  %v2862_v46 = vld [vmem:[#allocation5 + $0xd8] sm:$0xff] }
 0x582   : >> { %2443 = vst.msk [vmem:[#allocation5 + $0x5c] sm:$0x1] %vm1166_vm14, %v2401_v21  ;;  %4898 = vmatmul.msk.f32.gmra.mxu3 %vm387_vm3, %v2862_v46 }
 0x583   : >> { %1962 = vst.msk [vmem:[#allocation5 + $0xe7] sm:$0x1] %vm1166_vm14, %v1929_v5  ;;  %3196 = vmatmul.f32.gmra.mxu2 %v3101_v24 }
 0x587   : >> { %v2205_v33 = vpop.permute.xlu0 %2204 }
 0x588   : >> { %v2998_v55 = vpop.f32.mrf.mxu1  ;;  %2247 = vst.msk [vmem:[#allocation5 + $0x5a] sm:$0x1] %vm1166_vm14, %v2205_v33  ;;  %v2583_v47 = vpop.permute.xlu2 %2582  ;;  %v3095_v33 = vmax.f32 %v3032_v10, 0.0 }
 0x589   : >> { %v2999_v43 = vadd.f32 %v2998_v55, %v6393_v22  ;;  %v2009_v44 = vpop.permute.xlu1 %2008 }
 0x58a   : >> { %2051 = vst.msk [vmem:[#allocation5 + $0x58] sm:$0x1] %vm1166_vm14, %v2009_v44  ;;  %v2863_v18 = vld [vmem:[#allocation5 + $0xe0] sm:$0xff] }
 0x58b   : >> { %v3084_v12 = vmax.f32 %v2999_v43, 0.0  ;;  %4899 = vmatmul.msk.f32.gmra.mxu3 %vm387_vm3, %v2863_v18 }
 0x58d   : >> { %3145 = vmatmul.f32.gmra.mxu0 %v3084_v12 }
 0x58f   : >> { %v2684_v41 = vpop.permute.xlu0 %2683 }
 0x590   : >> { %v3001_v32 = vpop.f32.mrf.mxu1  ;;  %2726 = vst.msk [vmem:[#allocation5 + $0x5e] sm:$0x1] %vm1166_vm14, %v2684_v41  ;;  %v2125_v40 = vpop.permute.xlu2 %2124 }
 0x591   : >> { %v3002_v6 = vadd.f32 %v3001_v32, %v6393_v22  ;;  %2158 = vst.msk [vmem:[#allocation5 + $0xe9] sm:$0x1] %vm1166_vm14, %v2125_v40  ;;  %v2303_v13 = vpop.permute.xlu1 %2302 }
 0x592   : >> { %2345 = vst.msk [vmem:[#allocation5 + $0x5b] sm:$0x1] %vm1166_vm14, %v2303_v13 }
 0x593   : >> { %v3085_v35 = vmax.f32 %v3002_v6, 0.0 }
 0x595   : >> { %3148 = vmatmul.f32.gmra.mxu0 %v3085_v35 }
 0x597   : >> { %v2585_v8 = vpop.permute.xlu0 %2584 }
 0x598   : >> { %v2605_v60 = vsel %vm2590_vm7, %v2583_v47, %v2585_v8  ;;  %v2419_v59 = vpop.permute.xlu2 %2418 }
 0x599   : >> { %2637 = vst.msk [vmem:[#allocation5 + $0xed] sm:$0x1] %vm1166_vm14, %v2605_v60  ;;  %v2782_v38 = vpop.permute.xlu1 %2781 }
 0x59a   : >> { %2452 = vst.msk [vmem:[#allocation5 + $0xec] sm:$0x1] %vm1166_vm14, %v2419_v59 }
 0x59b   : >> { %2824 = vst.msk [vmem:[#allocation5 + $0x5f] sm:$0x1] %vm1166_vm14, %v2782_v38  ;;  %v3182_v4 = vpop.f32.mrf.mxu2 }
 0x59c   : >> { %v3183_v31 = vadd.f32 %v3182_v4, %v6560_v23 }
 0x59e   : >> { %3252 = vst.msk [vmem:[#allocation6 + $0x88] sm:$0xff] %vm387_vm3, %v3183_v31 }
 0x59f   : >> { %v2223_v63 = vpop.permute.xlu0 %2222 }
 0x5a0   : >> { %2256 = vst.msk [vmem:[#allocation5 + $0xea] sm:$0x1] %vm1166_vm14, %v2223_v63  ;;  %v1931_v11 = vpop.permute.xlu2 %1930 }
 0x5a1   : >> { %1963 = vst.msk [vmem:[#allocation5 + $0xf7] sm:$0x1] %vm1166_vm14, %v1931_v11  ;;  %v2027_v39 = vpop.permute.xlu1 %2026 }
 0x5a2   : >> { %2060 = vst.msk [vmem:[#allocation5 + $0xe8] sm:$0x1] %vm1166_vm14, %v2027_v39  ;;  %v2846_v3 = vld [vmem:[#allocation5 + $0x58] sm:$0xff] }
 0x5a3   : >> { %4882 = vmatmul.msk.f32.gmra.mxu1 %vm387_vm3, %v2846_v3  ;;  %v3185_v17 = vpop.f32.mrf.mxu2 }
 0x5a4   : >> { %v3186_v9 = vadd.f32 %v3185_v17, %v6560_v23 }
 0x5a5   : >> { %v3052_v0 = vpop.f32.mrf.mxu3 }
 0x5a6   : >> { %v3053_v25 = vadd.f32 %v3052_v0, %v6393_v22  ;;  %3254 = vst.msk [vmem:[#allocation6 + $0x90] sm:$0xff] %vm387_vm3, %v3186_v9 }
 0x5a7   : >> { %v2702_v20 = vpop.permute.xlu0 %2701 }
 0x5a8   : >> { %v3102_v26 = vmax.f32 %v3053_v25, 0.0  ;;  %2735 = vst.msk [vmem:[#allocation5 + $0xee] sm:$0x1] %vm1166_vm14, %v2702_v20  ;;  %v2029_v27 = vpop.permute.xlu2 %2028  ;;  %v2865_v32 = vld [vmem:[#allocation5 + $0xf0] sm:$0xff] }
 0x5a9   : >> { %2061 = vst.msk [vmem:[#allocation5 + $0xf8] sm:$0x1] %vm1166_vm14, %v2029_v27  ;;  %v2321_v15 = vpop.permute.xlu1 %2320 }
 0x5aa   : >> { %v3134_v58 = vpop.f32.mrf.mxu0  ;;  %2354 = vst.msk [vmem:[#allocation5 + $0xeb] sm:$0x1] %vm1166_vm14, %v2321_v15  ;;  %3199 = vmatmul.f32.gmra.mxu2 %v3102_v26 }
 0x5ab   : >> { %v3135_v42 = vadd.f32 %v3134_v58, %v6560_v23  ;;  %4883 = vmatmul.msk.f32.gmra.mxu1 %vm387_vm3, %v2847_v16 }
 0x5ad   : >> { %3228 = vst.msk [vmem:[#allocation6 + $0x8] sm:$0xff] %vm387_vm3, %v3135_v42  ;;  %v3055_v1 = vpop.f32.mrf.mxu3 }
 0x5ae   : >> { %v3056_v28 = vadd.f32 %v3055_v1, %v6393_v22 }
 0x5af   : >> { %v2587_v14 = vpop.permute.xlu0 %2586 }
 0x5b0   : >> { %v3103_v56 = vmax.f32 %v3056_v28, 0.0  ;;  %v2323_v7 = vpop.permute.xlu2 %2322 }
 0x5b1   : >> { %2355 = vst.msk [vmem:[#allocation5 + $0xfb] sm:$0x1] %vm1166_vm14, %v2323_v7  ;;  %v2800_v57 = vpop.permute.xlu1 %2799 }
 0x5b2   : >> { %v3137_v29 = vpop.f32.mrf.mxu0  ;;  %2833 = vst.msk [vmem:[#allocation5 + $0xef] sm:$0x1] %vm1166_vm14, %v2800_v57  ;;  %3202 = vmatmul.f32.gmra.mxu2 %v3103_v56 }
 0x5b3   : >> { %v3138_v37 = vadd.f32 %v3137_v29, %v6560_v23  ;;  %3175 = vmatmul.f32.vlgmr.msra.gmra.mxu1 %v3094_v34 }
 0x5b5   : >> { %3230 = vst.msk [vmem:[#allocation6 + $0x10] sm:$0xff] %vm387_vm3, %v3138_v37 }
 0x5b7   : >> { %v3004_v21 = vpop.f32.mrf.mxu1  ;;  %v2127_v24 = vpop.permute.xlu0 %2126 }
 0x5b8   : >> { %v3005_v5 = vadd.f32 %v3004_v21, %v6393_v22  ;;  %2159 = vst.msk [vmem:[#allocation5 + $0xf9] sm:$0x1] %vm1166_vm14, %v2127_v24  ;;  %v2802_v46 = vpop.permute.xlu2 %2801 }
 0x5b9   : >> { %2834 = vst.msk [vmem:[#allocation5 + $0xff] sm:$0x1] %vm1166_vm14, %v2802_v46  ;;  %v2589_v55 = vpop.permute.xlu1 %2588  ;;  %v2864_v47 = vld [vmem:[#allocation5 + $0xe8] sm:$0xff] }
 0x5ba   : >> { %v3086_v43 = vmax.f32 %v3005_v5, 0.0  ;;  %v2606_v44 = vsel %vm2590_vm7, %v2587_v14, %v2589_v55  ;;  %4900 = vmatmul.msk.f32.gmra.mxu3 %vm387_vm3, %v2864_v47  ;;  %vm3324_vm7 = vcmask 1047559  }
 0x5bb   : >> { %2638 = vst.msk [vmem:[#allocation5 + $0xfd] sm:$0x1] %vm1166_vm14, %v2606_v44  ;;  %3178 = vmatmul.f32.gmra.mxu1 %v3095_v33 }
 0x5bc   : >> { %3151 = vmatmul.f32.gmra.mxu0 %v3086_v43 }
 0x5bf   : >> { %v3007_v19 = vpop.f32.mrf.mxu1  ;;  %v2421_v18 = vpop.permute.xlu0 %2420 }
 0x5c0   : >> { %v3008_v12 = vadd.f32 %v3007_v19, %v6393_v22  ;;  %2453 = vst.msk [vmem:[#allocation5 + $0xfc] sm:$0x1] %vm1166_vm14, %v2421_v18  ;;  %v3023_v19 = vadd.f32 %v6503_v30, %v6393_v22 }
 0x5c1   : >> { %v2225_v41 = vpop.permute.xlu1 %2224 }
 0x5c2   : >> { %v3087_v40 = vmax.f32 %v3008_v12, 0.0  ;;  %2257 = vst.msk [vmem:[#allocation5 + $0xfa] sm:$0x1] %vm1166_vm14, %v2225_v41  ;;  %4901 = vmatmul.msk.f32.gmra.mxu3 %vm387_vm3, %v2865_v32  ;;  %v3092_v41 = vmax.f32 %v3023_v19, 0.0  ;;  %v6787_v19 = vld [vmem:[#allocation6 + $0x15] sm:$0x1] }
 0x5c4   : >> { %3154 = vmatmul.f32.gmra.mxu0 %v3087_v40 }
 0x5c9   : >> { %v2704_v6 = vpop.permute.xlu1 %2703 }
 0x5ca   : >> { %2736 = vst.msk [vmem:[#allocation5 + $0xfe] sm:$0x1] %vm1166_vm14, %v2704_v6  ;;  %v3026_v6 = vadd.f32 %v6514_v2, %v6393_v22 }
 0x5ce   : >> { %v3188_v13 = vpop.f32.mrf.mxu2 }
 0x5cf   : >> { %v3189_v35 = vadd.f32 %v3188_v13, %v6560_v23 }
 0x5d1   : >> { %3255 = vst.msk [vmem:[#allocation6 + $0x98] sm:$0xff] %vm387_vm3, %v3189_v35  ;;  %v2866_v8 = vld [vmem:[#allocation5 + $0xf8] sm:$0xff] }
 0x5d2   : >> { %4902 = vmatmul.msk.f32.gmra.mxu3 %vm387_vm3, %v2866_v8 }
 0x5d5   : >> { %v3058_v60 = vpop.f32.mrf.mxu3 }
 0x5d6   : >> { %v3059_v59 = vadd.f32 %v3058_v60, %v6393_v22  ;;  %v3191_v38 = vpop.f32.mrf.mxu2  ;;  %v3093_v60 = vmax.f32 %v3026_v6, 0.0  ;;  %v6799_v6 = vld [vmem:[#allocation6 + $0x17] sm:$0x1] }
 0x5d7   : >> { %v3192_v4 = vadd.f32 %v3191_v38, %v6560_v23 }
 0x5d8   : >> { %v3104_v31 = vmax.f32 %v3059_v59, 0.0 }
 0x5d9   : >> { %3257 = vst.msk [vmem:[#allocation6 + $0xa0] sm:$0xff] %vm387_vm3, %v3192_v4 }
 0x5da   : >> { %v3140_v63 = vpop.f32.mrf.mxu0  ;;  %3205 = vmatmul.f32.gmra.mxu2 %v3104_v31 }
 0x5db   : >> { %v3141_v11 = vadd.f32 %v3140_v63, %v6560_v23 }
 0x5dd   : >> { %3231 = vst.msk [vmem:[#allocation6 + $0x18] sm:$0xff] %vm387_vm3, %v3141_v11  ;;  %v3061_v39 = vpop.f32.mrf.mxu3 }
 0x5de   : >> { %v3062_v3 = vadd.f32 %v3061_v39, %v6393_v22 }
 0x5e0   : >> { %v3105_v17 = vmax.f32 %v3062_v3, 0.0 }
 0x5e2   : >> { %v3143_v9 = vpop.f32.mrf.mxu0  ;;  %3208 = vmatmul.f32.gmra.mxu2 %v3105_v17  ;;  %v7572_v17 = vmov 0.0  }
 0x5e3   : >> { %v3144_v0 = vadd.f32 %v3143_v9, %v6560_v23 }
 0x5e5   : >> { %3233 = vst.msk [vmem:[#allocation6 + $0x20] sm:$0xff] %vm387_vm3, %v3144_v0 }
 0x5e7   : >> { %v3010_v25 = vpop.f32.mrf.mxu1 }
 0x5e8   : >> { %v3011_v20 = vadd.f32 %v3010_v25, %v6393_v22 }
 0x5ea   : >> { %v3088_v26 = vmax.f32 %v3011_v20, 0.0 }
 0x5ec   : >> { %3157 = vmatmul.f32.gmra.mxu0 %v3088_v26  ;;  %v6886_v49 = vld [vmem:[#allocation6 + $0x26] sm:$0x1] }
 0x5ef   : >> { %v3013_v27 = vpop.f32.mrf.mxu1 }
 0x5f0   : >> { %v3014_v15 = vadd.f32 %v3013_v27, %v6393_v22 }
 0x5f2   : >> { %v3089_v58 = vmax.f32 %v3014_v15, 0.0 }
 0x5f4   : >> { %3160 = vmatmul.f32.gmra.mxu0 %v3089_v58 }
 0x5fe   : >> { %v3194_v16 = vpop.f32.mrf.mxu2 }
 0x5ff   : >> { %v3195_v42 = vadd.f32 %v3194_v16, %v6560_v23 }
 0x601   : >> { %3258 = vst.msk [vmem:[#allocation6 + $0xa8] sm:$0xff] %vm387_vm3, %v3195_v42 }
 0x605   : >> { %v3064_v36 = vpop.f32.mrf.mxu3 }
 0x606   : >> { %v3065_v1 = vadd.f32 %v3064_v36, %v6393_v22  ;;  %v3197_v28 = vpop.f32.mrf.mxu2 }
 0x607   : >> { %v3198_v14 = vadd.f32 %v3197_v28, %v6560_v23 }
 0x608   : >> { %v3106_v56 = vmax.f32 %v3065_v1, 0.0 }
 0x609   : >> { %3260 = vst.msk [vmem:[#allocation6 + $0xb0] sm:$0xff] %vm387_vm3, %v3198_v14 }
 0x60a   : >> { %v3146_v7 = vpop.f32.mrf.mxu0  ;;  %3211 = vmatmul.f32.gmra.mxu2 %v3106_v56 }
 0x60b   : >> { %v3147_v34 = vadd.f32 %v3146_v7, %v6560_v23 }
 0x60d   : >> { %3234 = vst.msk [vmem:[#allocation6 + $0x28] sm:$0xff] %vm387_vm3, %v3147_v34 }
 0x60e   : >> { %v3067_v57 = vpop.f32.mrf.mxu3 }
 0x60f   : >> { %v3068_v29 = vadd.f32 %v3067_v57, %v6393_v22 }
 0x610   : >> { %v6880_v48 = vld [vmem:[#allocation6 + $0xb5] sm:$0x1]  ;;  %v6889_v51 = vld [vmem:[#allocation6 + $0xb6] sm:$0x1]  ;;  %v6908_v53 = vld [vmem:[#allocation6 + $0xb0] sm:$0x1] }
 0x611   : >> { %v3107_v37 = vmax.f32 %v3068_v29, 0.0 }
 0x612   : >> { %v3149_v10 = vpop.f32.mrf.mxu0 }
 0x613   : >> { %v3150_v21 = vadd.f32 %v3149_v10, %v6560_v23  ;;  %3214 = vmatmul.f32.gmra.mxu2 %v3107_v37 }
 0x615   : >> { %3236 = vst.msk [vmem:[#allocation6 + $0x30] sm:$0xff] %vm387_vm3, %v3150_v21  ;;  %v6773_v21 = vld [vmem:[#allocation6 + $0x95] sm:$0x1] }
 0x620   : >> { %v3016_v24 = vpop.f32.mrf.mxu1 }
 0x621   : >> { %v3017_v5 = vadd.f32 %v3016_v24, %v6393_v22 }
 0x623   : >> { %v3090_v46 = vmax.f32 %v3017_v5, 0.0 }
 0x625   : >> { %3163 = vmatmul.f32.gmra.mxu0 %v3090_v46  ;;  %v6776_v46 = vld [vmem:[#allocation6 + $0x96] sm:$0x1] }
 0x628   : >> { %v3019_v33 = vpop.f32.mrf.mxu1 }
 0x629   : >> { %v3020_v55 = vadd.f32 %v3019_v33, %v6393_v22  ;;  %v6778_v33 = vld [vmem:[#allocation6 + $0x90] sm:$0x1] }
 0x62b   : >> { %v3091_v47 = vmax.f32 %v3020_v55, 0.0 }
 0x62d   : >> { %3166 = vmatmul.f32.gmra.mxu0 %v3091_v47  ;;  %v3200_v43 = vpop.f32.mrf.mxu2  ;;  %v6781_v47 = vld [vmem:[#allocation6 + $0x91] sm:$0x1] }
 0x62e   : >> { %v3201_v44 = vadd.f32 %v3200_v43, %v6560_v23  ;;  %v6783_v43 = vld [vmem:[#allocation6 + $0x97] sm:$0x1] }
 0x630   : >> { %3261 = vst.msk [vmem:[#allocation6 + $0xb8] sm:$0xff] %vm387_vm3, %v3201_v44  ;;  %v3176_v18 = vpop.f32.mrf.mxu1  ;;  %v6785_v44 = vld [vmem:[#allocation6 + $0x92] sm:$0x1] }
 0x631   : >> { %v3177_v12 = vadd.f32 %v3176_v18, %v6560_v23  ;;  %v6789_v18 = vld [vmem:[#allocation6 + $0x10] sm:$0x1] }
 0x633   : >> { %3249 = vst.msk [vmem:[#allocation6 + $0x78] sm:$0xff] %vm387_vm3, %v3177_v12  ;;  %v6791_v12 = vld [vmem:[#allocation6 + $0x93] sm:$0x1] }
 0x635   : >> { %3169 = vmatmul.f32.gmra.mxu0 %v3092_v41  ;;  %v3203_v32 = vpop.f32.mrf.mxu2  ;;  %v6794_v41 = vld [vmem:[#allocation6 + $0x11] sm:$0x1] }
 0x636   : >> { %v3204_v40 = vadd.f32 %v3203_v32, %v6560_v23  ;;  %v6796_v32 = vld [vmem:[#allocation6 + $0x12] sm:$0x1] }
 0x638   : >> { %3263 = vst.msk [vmem:[#allocation6 + $0xc0] sm:$0xff] %vm387_vm3, %v3204_v40  ;;  %v3179_v13 = vpop.f32.mrf.mxu1  ;;  %v3276_v40 = vld [vmem:[#allocation6] sm:$0x1] }
 0x639   : >> { %v3180_v30 = vadd.f32 %v3179_v13, %v6560_v23  ;;  %v3152_v35 = vpop.f32.mrf.mxu0  ;;  %v6801_v13 = vld [vmem:[#allocation6 + $0x16] sm:$0x1] }
 0x63a   : >> { %v3153_v8 = vadd.f32 %v3152_v35, %v6560_v23 }
 0x63b   : >> { %3251 = vst.msk [vmem:[#allocation6 + $0x80] sm:$0xff] %vm387_vm3, %v3180_v30  ;;  %v6803_v30 = vld [vmem:[#allocation6 + $0x13] sm:$0x1] }
 0x63c   : >> { %3237 = vst.msk [vmem:[#allocation6 + $0x38] sm:$0xff] %vm387_vm3, %v3153_v8  ;;  %v6875_v8 = vld [vmem:[#allocation6 + $0x27] sm:$0x1] }
 0x63d   : >> { %3172 = vmatmul.f32.gmra.mxu0 %v3093_v60  ;;  %v3070_v59 = vpop.f32.mrf.mxu3 }
 0x63e   : >> { %v3071_v38 = vadd.f32 %v3070_v59, %v6393_v22  ;;  %v3278_v59 = vld [vmem:[#allocation6 + $0x20] sm:$0x1] }
 0x63f   : >> { %v3313_v24 = vrot.slane %v3278_v59, 6  ;;  %v6929_v54 = vld [vmem:[#allocation6 + $0xc5] sm:$0x1] }
 0x640   : >> { %v3108_v4 = vmax.f32 %v3071_v38, 0.0 }
 0x641   : >> { %v3155_v31 = vpop.f32.mrf.mxu0 }
 0x642   : >> { %v3156_v2 = vadd.f32 %v3155_v31, %v6560_v23  ;;  %3217 = vmatmul.f32.gmra.mxu2 %v3108_v4  ;;  %v7636_v31 = vrot.slane %v6789_v18, 7  ;;  %v3284_v61 = vld [vmem:[#allocation6 + $0x80] sm:$0x1] }
 0x644   : >> { %3239 = vst.msk [vmem:[#allocation6 + $0x40] sm:$0xff] %vm387_vm3, %v3156_v2  ;;  %v6853_v2 = vld [vmem:[#allocation6 + $0xa7] sm:$0x1] }
 0x645   : >> { %v3073_v63 = vpop.f32.mrf.mxu3 }
 0x646   : >> { %v3074_v11 = vadd.f32 %v3073_v63, %v6393_v22  ;;  %v3279_v63 = vld [vmem:[#allocation6 + $0x30] sm:$0x1] }
 0x647   : >> { %v3315_v38 = vrot.slane %v3279_v63, 5 }
 0x648   : >> { %v3109_v39 = vmax.f32 %v3074_v11, 0.0 }
 0x64a   : >> { %3220 = vmatmul.f32.gmra.mxu2 %v3109_v39  ;;  %v6863_v39 = vld [vmem:[#allocation6 + $0x21] sm:$0x1] }
 0x64b   : >> { %v6748_v3 = vld [vmem:[#allocation6 + $0x40] sm:$0x1]  ;;  %v6752_v0 = vld [vmem:[#allocation6 + $0x41] sm:$0x1]  ;;  %v3691_v35 = vld [vmem:[#allocation6 + $0x45] sm:$0x1] }
 0x64c   : >> { %vm3292_vm10 = vcmp.gt.f32.partialorder %v6748_v3, 0.05  ;;  %vm3375_vm6 = vcmp.gt.f32.partialorder %v6752_v0, 0.05  ;;  %v3317_v59 = vrot.slane %v6748_v3, 4 }
 0x64d   : >> { %v4903_v9 = vsel %vm3292_vm10, 1.0, %v7572_v17  ;;  %v4904_v20 = vsel %vm3375_vm6, 1.0, %v7572_v17  ;;  %vm3703_vm14 = vcmp.gt.f32.partialorder %v3691_v35, 0.05 }
 0x64e   : >> { %v3348_v25 = vperm.slane %v4903_v9, 0  ;;  %v3430_v15 = vperm.slane %v4904_v20, 0 }
 0x650   : >> { %3350 = vrot.lane.b32.xlu2 %v3348_v25, %s5099_s28  ;;  %v6817_v25 = vld [vmem:[#allocation6 + $0x14] sm:$0x1] }
 0x655   : >> { %v3076_v26 = vpop.f32.mrf.mxu3 }
 0x656   : >> { %v3077_v27 = vadd.f32 %v3076_v26, %v6393_v22  ;;  %v6819_v26 = vld [vmem:[#allocation6 + $0x99] sm:$0x1] }
 0x658   : >> { %v3110_v58 = vmax.f32 %v3077_v27, 0.0  ;;  %3432 = vrot.lane.b32.xlu2 %v3430_v15, %s5100_s29  ;;  %v6821_v27 = vld [vmem:[#allocation6 + $0x98] sm:$0x1]  ;;  %v6823_v15 = vld [vmem:[#allocation6 + $0x9a] sm:$0x1] }
 0x65a   : >> { %3223 = vmatmul.f32.gmra.mxu2 %v3110_v58 }
 0x65d   : >> { %v3206_v16 = vpop.f32.mrf.mxu2 }
 0x65e   : >> { %v3207_v42 = vadd.f32 %v3206_v16, %v6560_v23  ;;  %v6826_v16 = vld [vmem:[#allocation6 + $0x9c] sm:$0x1] }
 0x660   : >> { %3264 = vst.msk [vmem:[#allocation6 + $0xc8] sm:$0xff] %vm387_vm3, %v3207_v42  ;;  %v6828_v42 = vld [vmem:[#allocation6 + $0x9b] sm:$0x1] }
 0x665   : >> { %v3209_v36 = vpop.f32.mrf.mxu2 }
 0x666   : >> { %v3210_v1 = vadd.f32 %v3209_v36, %v6560_v23  ;;  %v6830_v36 = vld [vmem:[#allocation6 + $0x9e] sm:$0x1] }
 0x668   : >> { %3266 = vst.msk [vmem:[#allocation6 + $0xd0] sm:$0xff] %vm387_vm3, %v3210_v1  ;;  %v6832_v1 = vld [vmem:[#allocation6 + $0xa5] sm:$0x1] }
 0x669   : >> { %v3158_v28 = vpop.f32.mrf.mxu0 }
 0x66a   : >> { %v3159_v14 = vadd.f32 %v3158_v28, %v6560_v23  ;;  %v6834_v28 = vld [vmem:[#allocation6 + $0xa6] sm:$0x1] }
 0x66c   : >> { %3240 = vst.msk [vmem:[#allocation6 + $0x48] sm:$0xff] %vm387_vm3, %v3159_v14  ;;  %v6836_v14 = vld [vmem:[#allocation6 + $0x9d] sm:$0x1] }
 0x671   : >> { %v3161_v22 = vpop.f32.mrf.mxu0 }
 0x672   : >> { %v3162_v56 = vadd.f32 %v3161_v22, %v6560_v23  ;;  %v3690_v22 = vld [vmem:[#allocation6 + $0x35] sm:$0x1] }
 0x673   : >> { %v3726_v11 = vrot.slane %v3690_v22, 5 }
 0x674   : >> { %3242 = vst.msk [vmem:[#allocation6 + $0x50] sm:$0xff] %vm387_vm3, %v3162_v56  ;;  %v3689_v56 = vld [vmem:[#allocation6 + $0x25] sm:$0x1] }
 0x67b   : >> { %v3692_v60 = vld [vmem:[#allocation6 + $0x55] sm:$0x1]  ;;  %v3281_v17 = vld [vmem:[#allocation6 + $0x50] sm:$0x1]  ;;  %v3364_v52 = vld [vmem:[#allocation6 + $0x51] sm:$0x1] }
 0x67c   : >> { %v3730_v50 = vrot.slane %v3692_v60, 3  ;;  %v3319_v63 = vrot.slane %v3281_v17, 3 }
 0x68d   : >> { %v3212_v7 = vpop.f32.mrf.mxu2 }
 0x68e   : >> { %v3213_v34 = vadd.f32 %v3212_v7, %v6560_v23  ;;  %v6855_v7 = vld [vmem:[#allocation6 + $0x18] sm:$0x1] }
 0x690   : >> { %3267 = vst.msk [vmem:[#allocation6 + $0xd8] sm:$0xff] %vm387_vm3, %v3213_v34  ;;  %v6857_v34 = vld [vmem:[#allocation6 + $0xa2] sm:$0x1] }
 0x696   : >> { %v3215_v57 = vpop.f32.mrf.mxu2 }
 0x697   : >> { %v3216_v29 = vadd.f32 %v3215_v57, %v6560_v23  ;;  %v6843_v57 = vld [vmem:[#allocation6 + $0xa0] sm:$0x1] }
 0x699   : >> { %3269 = vst.msk [vmem:[#allocation6 + $0xe0] sm:$0xff] %vm387_vm3, %v3216_v29  ;;  %v6845_v29 = vld [vmem:[#allocation6 + $0xa1] sm:$0x1] }
 0x6a2   : >> { %v3164_v37 = vpop.f32.mrf.mxu0 }
 0x6a3   : >> { %v3165_v10 = vadd.f32 %v3164_v37, %v6560_v23  ;;  %v7635_v37 = vrot.slane %v6787_v19, 7 }
 0x6a5   : >> { %3243 = vst.msk [vmem:[#allocation6 + $0x58] sm:$0xff] %vm387_vm3, %v3165_v10  ;;  %v6861_v10 = vld [vmem:[#allocation6 + $0x1c] sm:$0x1] }
 0x6aa   : >> { %v3167_v5 = vpop.f32.mrf.mxu0 }
 0x6ab   : >> { %v3168_v55 = vadd.f32 %v3167_v5, %v6560_v23  ;;  %v3687_v5 = vld [vmem:[#allocation6 + $0x5] sm:$0x1] }
 0x6ac   : >> { %v3723_v45 = vsel %vm1685_vm13, %v7635_v37, %v3687_v5 }
 0x6ad   : >> { %3245 = vst.msk [vmem:[#allocation6 + $0x60] sm:$0xff] %vm387_vm3, %v3168_v55  ;;  %v3724_v55 = vrot.slane %v3689_v56, 6 }
 0x6af   : >> { %v3725_v22 = vsel %vm1688_vm5, %v3724_v55, %v3723_v45 }
 0x6b0   : >> { %v3727_v18 = vsel %vm1691_vm4, %v3726_v11, %v3725_v22 }
 0x6b2   : >> { %v3170_v20 = vpop.f32.mrf.mxu0 }
 0x6b3   : >> { %v3171_v58 = vadd.f32 %v3170_v20, %v6560_v23  ;;  %v6865_v20 = vld [vmem:[#allocation6 + $0x22] sm:$0x1] }
 0x6b4   : >> { %v3693_v56 = vld [vmem:[#allocation6 + $0x65] sm:$0x1]  ;;  %v3282_v4 = vld [vmem:[#allocation6 + $0x60] sm:$0x1] }
 0x6b5   : >> { %3246 = vst.msk [vmem:[#allocation6 + $0x68] sm:$0xff] %vm387_vm3, %v3171_v58  ;;  %v3732_v19 = vrot.slane %v3693_v56, 2  ;;  %v3321_v5 = vrot.slane %v3282_v4, 2  ;;  %v6927_v4 = vld [vmem:[#allocation6 + $0x37] sm:$0x1] }
 0x6ba   : >> { %v3173_v9 = vpop.f32.mrf.mxu0 }
 0x6bb   : >> { %v3174_v58 = vadd.f32 %v3173_v9, %v6560_v23  ;;  %v3312_v9 = vsel %vm1685_vm13, %v7636_v31, %v3276_v40  ;;  %v3362_v31 = vld [vmem:[#allocation6 + $0x31] sm:$0x1] }
 0x6bc   : >> { %v3314_v37 = vsel %vm1688_vm5, %v3313_v24, %v3312_v9 }
 0x6bd   : >> { %3248 = vst.msk [vmem:[#allocation6 + $0x70] sm:$0xff] %vm387_vm3, %v3174_v58  ;;  %v3728_v58 = vrot.slane %v3691_v35, 4  ;;  %v3316_v40 = vsel %vm1691_vm4, %v3315_v38, %v3314_v37  ;;  %v7637_v35 = vmov 0.0  }
 0x6be   : >> { %v6898_v60 = vsel %vm3703_vm14, 1.0, %v7637_v35  ;;  %v3318_v24 = vsel %vm1694_vm12, %v3317_v59, %v3316_v40  ;;  %v3365_v40 = vld [vmem:[#allocation6 + $0x61] sm:$0x1] }
 0x6bf   : >> { %v3729_v17 = vsel %vm1694_vm12, %v3728_v58, %v3727_v18  ;;  %v3320_v38 = vsel %vm1697_vm11, %v3319_v63, %v3318_v24  ;;  %v3359_v18 = vld [vmem:[#allocation6 + $0x1] sm:$0x1]  ;;  %v3685_v63 = vld [vmem:[#allocation2 + $0x8] sm:$0xff]  ;;  %v3695_v24 = vld [vmem:[#allocation6 + $0x85] sm:$0x1] }
 0x6c0   : >> { %v3731_v9 = vsel %vm1697_vm11, %v3730_v50, %v3729_v17  ;;  %v3322_v58 = vsel %vm1700_vm15, %v3321_v5, %v3320_v38  ;;  %v3398_v17 = vrot.slane %v3362_v31, 5  ;;  %v3402_v31 = vrot.slane %v3364_v52, 3  ;;  %v3444_v38 = vld [vmem:[#allocation6 + $0x32] sm:$0x1] }
 0x6c1   : >> { %v3733_v37 = vsel %vm1700_vm15, %v3732_v19, %v3731_v9  ;;  %v3400_v19 = vrot.slane %v6752_v0, 4  ;;  %v7642_v52 = vrot.slane %v6776_v46, 7  ;;  %v7644_v46 = vrot.slane %v6832_v1, 6 }
 0x6c4   : >> { %v3694_v55 = vld [vmem:[#allocation6 + $0x75] sm:$0x1]  ;;  %v3283_v56 = vld [vmem:[#allocation6 + $0x70] sm:$0x1]  ;;  %v3366_v5 = vld [vmem:[#allocation6 + $0x71] sm:$0x1] }
 0x6c5   : >> { %v3734_v3 = vrot.slane %v3694_v55, 1  ;;  %v3218_v11 = vpop.f32.mrf.mxu2  ;;  %v3323_v22 = vrot.slane %v3283_v56, 1  ;;  %v6912_v55 = vld [vmem:[#allocation6 + $0xb1] sm:$0x1]  ;;  %v6917_v56 = vld [vmem:[#allocation6 + $0xb7] sm:$0x1] }
 0x6c6   : >> { %v3219_v45 = vadd.f32 %v3218_v11, %v6560_v23 }
 0x6c7   : >> { %v3735_v59 = vsel %vm3324_vm7, %v3734_v3, %v3733_v37  ;;  %v3325_v50 = vsel %vm3324_vm7, %v3323_v22, %v3322_v58  ;;  %v7638_v3 = vrot.slane %v6794_v41, 7  ;;  %v7639_v37 = vrot.slane %v6863_v39, 6  ;;  %v3769_v58 = vld [vmem:[#allocation6 + $0x86] sm:$0x1] }
 0x6c8   : >> { %3270 = vst.msk [vmem:[#allocation6 + $0xe8] sm:$0xff] %vm387_vm3, %v3219_v45  ;;  %3340 = vrot.lane.b32.xlu0 %v3325_v50, %s5099_s28  ;;  %v3752_v22 = vadd.f32 %v3735_v59, %v3685_v63  ;;  %v3404_v45 = vrot.slane %v3365_v40, 2  ;;  %v3330_v50 = vrot.slane %v6908_v53, 5  ;;  %v3406_v41 = vrot.slane %v3366_v5, 1  ;;  %v3441_v53 = vld [vmem:[#allocation6 + $0x2] sm:$0x1] }
 0x6c9   : >> { %v3395_v11 = vsel %vm1685_vm13, %v7638_v3, %v3359_v18  ;;  %v7640_v18 = vperm.slane %v6898_v60, 0  ;;  %v7641_v39 = vrot.slane %v6773_v21, 7  ;;  %v3480_v3 = vrot.slane %v3444_v38, 5  ;;  %v6941_v5 = vld [vmem:[#allocation6 + $0x42] sm:$0x1] }
 0x6ca   : >> { %v3397_v0 = vsel %vm1688_vm5, %v7639_v37, %v3395_v11  ;;  %v3446_v38 = vld [vmem:[#allocation6 + $0x52] sm:$0x1]  ;;  %v3367_v21 = vld [vmem:[#allocation6 + $0x81] sm:$0x1]  ;;  %vm3457_vm6 = vcmp.gt.f32.partialorder %v6941_v5, 0.05 }
 0x6cb   : >> { %v3399_v9 = vsel %vm1691_vm4, %v3398_v17, %v3397_v0  ;;  %v3755_v59 = vmul.f32 %v7640_v18, %v3752_v22  ;;  %v3737_v40 = vsel %vm1685_vm13, %v7641_v39, %v3695_v24  ;;  %v3773_v0 = vld [vmem:[#allocation6 + $0xc6] sm:$0x1]  ;;  %v3811_v22 = vsel %vm1685_vm13, %v7642_v52, %v3769_v58  ;;  %v3843_v18 = vld [vmem:[#allocation6 + $0x7] sm:$0x1]  ;;  %v3700_v52 = vld [vmem:[#allocation6 + $0xd5] sm:$0x1] }
 0x6cc   : >> { %v3401_v63 = vsel %vm1694_vm12, %v3400_v19, %v3399_v9  ;;  %v3742_v19 = vrot.slane %v6929_v54, 4  ;;  %v7643_v39 = vrot.slane %v6778_v33, 7  ;;  %v3739_v58 = vsel %vm1688_vm5, %v7644_v46, %v3737_v40  ;;  %v3448_v33 = vld [vmem:[#allocation6 + $0x72] sm:$0x1]  ;;  %v3774_v40 = vld [vmem:[#allocation6 + $0xd6] sm:$0x1] }
 0x6cd   : >> { %v3221_v37 = vpop.f32.mrf.mxu2  ;;  %v3403_v17 = vsel %vm1697_vm11, %v3402_v31, %v3401_v63  ;;  %3757 = vst.msk [vmem:[#allocation2 + $0x8] sm:$0xff] %vm387_vm3, %v3755_v59  ;;  %v3288_v31 = vld [vmem:[#allocation6 + $0xc0] sm:$0x1]  ;;  %v3447_v59 = vld [vmem:[#allocation6 + $0x62] sm:$0x1]  ;;  %v7645_v54 = vrot.slane %v6796_v32, 7 }
 0x6ce   : >> { %v3222_v24 = vadd.f32 %v3221_v37, %v6560_v23  ;;  %v3405_v9 = vsel %vm1700_vm15, %v3404_v45, %v3403_v17  ;;  %v3327_v63 = vsel %vm1685_vm13, %v7643_v39, %v3284_v61  ;;  %v7646_v61 = vrot.slane %v6865_v20, 6 }
 0x6cf   : >> { %v3407_v11 = vsel %vm3324_vm7, %v3406_v41, %v3405_v9  ;;  %v3477_v37 = vsel %vm1685_vm13, %v7645_v54, %v3441_v53  ;;  %v3482_v45 = vrot.slane %v6941_v5, 4  ;;  %v7647_v41 = vrot.slane %v6834_v28, 6  ;;  %v3701_v9 = vld [vmem:[#allocation6 + $0xe5] sm:$0x1] }
 0x6d0   : >> { %3272 = vst.msk [vmem:[#allocation6 + $0xf0] sm:$0xff] %vm387_vm3, %v3222_v24  ;;  %3422 = vrot.lane.b32.xlu0 %v3407_v11, %s5100_s29  ;;  %v3479_v1 = vsel %vm1688_vm5, %v7646_v61, %v3477_v37  ;;  %v7648_v32 = vrot.slane %v6799_v6, 7  ;;  %v3484_v24 = vrot.slane %v3446_v38, 3  ;;  %v3816_v39 = vrot.slane %v3773_v0, 4  ;;  %v3289_v11 = vld [vmem:[#allocation6 + $0xd0] sm:$0x1] }
 0x6d1   : >> { %v3813_v17 = vsel %vm1688_vm5, %v7647_v41, %v3811_v22  ;;  %v7649_v46 = vrot.slane %v6843_v57, 6  ;;  %v7650_v54 = vrot.slane %v6875_v8, 6  ;;  %v7651_v28 = vrot.slane %v6880_v48, 5  ;;  %v3290_v41 = vld [vmem:[#allocation6 + $0xe0] sm:$0x1] }
 0x6d2   : >> { %v3879_v53 = vsel %vm1685_vm13, %v7648_v32, %v3843_v18  ;;  %v3481_v6 = vsel %vm1691_vm4, %v3480_v3, %v3479_v1  ;;  %v3486_v61 = vrot.slane %v3447_v59, 2  ;;  %v3775_v18 = vld [vmem:[#allocation6 + $0xe6] sm:$0x1]  ;;  %v3332_v38 = vrot.slane %v3288_v31, 4 }
 0x6d3   : >> { %v3329_v20 = vsel %vm1688_vm5, %v7649_v46, %v3327_v63  ;;  %v3881_v37 = vsel %vm1688_vm5, %v7650_v54, %v3879_v53  ;;  %v3741_v22 = vsel %vm1691_vm4, %v7651_v28, %v3739_v58  ;;  %v3744_v0 = vrot.slane %v3700_v52, 3  ;;  %v6986_v8 = vld [vmem:[#allocation6 + $0x46] sm:$0x1]  ;;  %v3686_v54 = vld [vmem:[#allocation2 + $0x20] sm:$0xff] }
 0x6d4   : >> { %v3488_v32 = vrot.slane %v3448_v33, 1  ;;  %v7652_v57 = vrot.slane %v6889_v51, 5  ;;  %v3818_v46 = vrot.slane %v3774_v40, 3  ;;  %v3483_v53 = vsel %vm1694_vm12, %v3482_v45, %v3481_v6  ;;  %v6998_v45 = vld [vmem:[#allocation6 + $0x47] sm:$0x1] }
 0x6d5   : >> { %v3331_v48 = vsel %vm1691_vm4, %v3330_v50, %v3329_v20  ;;  %v3334_v58 = vrot.slane %v3289_v11, 3  ;;  %v7653_v3 = vrot.slane %v6781_v47, 7  ;;  %v3746_v1 = vrot.slane %v3701_v9, 2  ;;  %v3851_v50 = vld [vmem:[#allocation6 + $0x87] sm:$0x1] }
 0x6d6   : >> { %v3815_v63 = vsel %vm1691_vm4, %v7652_v57, %v3813_v17  ;;  %v3485_v31 = vsel %vm1697_vm11, %v3484_v24, %v3483_v53  ;;  %v3820_v52 = vrot.slane %v3775_v18, 2  ;;  %v3336_v33 = vrot.slane %v3290_v41, 2  ;;  %v3372_v57 = vld [vmem:[#allocation6 + $0xd1] sm:$0x1] }
 0x6d7   : >> { %v3409_v59 = vsel %vm1685_vm13, %v7653_v3, %v3367_v21  ;;  %v3743_v51 = vsel %vm1694_vm12, %v3742_v19, %v3741_v22  ;;  %v3487_v40 = vsel %vm1700_vm15, %v3486_v61, %v3485_v31  ;;  %v3817_v17 = vsel %vm1694_vm12, %v3816_v39, %v3815_v63  ;;  %v3702_v11 = vld [vmem:[#allocation6 + $0xf5] sm:$0x1]  ;;  %v3776_v9 = vld [vmem:[#allocation6 + $0xf6] sm:$0x1]  ;;  %v3291_v20 = vld [vmem:[#allocation6 + $0xf0] sm:$0x1] }
 0x6d8   : >> { %vm3777_vm10 = vcmp.gt.f32.partialorder %v6986_v8, 0.05  ;;  %v3745_v47 = vsel %vm1697_vm11, %v3744_v0, %v3743_v51  ;;  %v3489_v21 = vsel %vm3324_vm7, %v3488_v32, %v3487_v40  ;;  %v3819_v24 = vsel %vm1697_vm11, %v3818_v46, %v3817_v17  ;;  %v3848_v0 = vld [vmem:[#allocation6 + $0x57] sm:$0x1]  ;;  %v3371_v32 = vld [vmem:[#allocation6 + $0xc1] sm:$0x1] }
 0x6d9   : >> { %v3333_v19 = vsel %vm1694_vm12, %v3332_v38, %v3331_v48  ;;  %v3748_v28 = vrot.slane %v3702_v11, 1  ;;  %3504 = vrot.lane.b32.xlu0 %v3489_v21, %s5101_s30  ;;  %v3822_v39 = vrot.slane %v3776_v9, 1  ;;  %v3338_v6 = vrot.slane %v3291_v20, 1  ;;  %v3373_v3 = vld [vmem:[#allocation6 + $0xe1] sm:$0x1] }
 0x6da   : >> { %v3335_v22 = vsel %vm1697_vm11, %v3334_v58, %v3333_v19  ;;  %v3747_v61 = vsel %vm1700_vm15, %v3746_v1, %v3745_v47  ;;  %v3821_v18 = vsel %vm1700_vm15, %v3820_v52, %v3819_v24  ;;  %v7654_v38 = vrot.slane %v6845_v29, 6  ;;  %v3849_v58 = vld [vmem:[#allocation6 + $0x67] sm:$0x1]  ;;  %v3764_v52 = vld [vmem:[#allocation6 + $0x36] sm:$0x1] }
 0x6db   : >> { %v3337_v41 = vsel %vm1700_vm15, %v3336_v33, %v3335_v22  ;;  %v3749_v46 = vsel %vm3324_vm7, %v3748_v28, %v3747_v61  ;;  %v3823_v53 = vsel %vm3324_vm7, %v3822_v39, %v3821_v18  ;;  %v7655_v1 = vrot.slane %v6783_v43, 7  ;;  %v3374_v17 = vld [vmem:[#allocation6 + $0xf1] sm:$0x1]  ;;  %v3855_v24 = vld [vmem:[#allocation6 + $0xc7] sm:$0x1] }
 0x6dc   : >> { %v3411_v63 = vsel %vm1688_vm5, %v7654_v38, %v3409_v59  ;;  %v3339_v48 = vsel %vm3324_vm7, %v3338_v6, %v3337_v41  ;;  %v3753_v33 = vadd.f32 %v3749_v46, %v3686_v54  ;;  %3826 = vrot.lane.b32.xlu2 %v3823_v53, %s5102_s10  ;;  %v4909_v29 = vsel %vm3777_vm10, 1.0, %v7637_v35  ;;  %v3850_v59 = vld [vmem:[#allocation6 + $0x77] sm:$0x1]  ;;  %v3761_v22 = vld [vmem:[#allocation6 + $0x6] sm:$0x1] }
 0x6dd   : >> { %v3893_v31 = vsel %vm1685_vm13, %v7655_v1, %v3851_v50  ;;  %3342 = vrot.lane.b32.xlu1 %v3339_v48, %s5099_s28  ;;  %v7656_v51 = vrot.slane %v6927_v4, 5  ;;  %v3884_v43 = vrot.slane %v6998_v45, 4  ;;  %v3886_v50 = vrot.slane %v3848_v0, 3  ;;  %v3224_v54 = vpop.f32.mrf.mxu2  ;;  %v3856_v41 = vld [vmem:[#allocation6 + $0xd7] sm:$0x1]  ;;  %s5114_s28 = smov (%p525_p4), 80  }
 0x6de   : >> { %v7657_v47 = vrot.slane %v6912_v55, 5  ;;  %v3414_v21 = vrot.slane %v3371_v32, 4  ;;  %v3416_v9 = vrot.slane %v3372_v57, 3  ;;  %v7658_v20 = vperm.slane %v6898_v60, 0  ;;  %v3857_v32 = vld [vmem:[#allocation6 + $0xe7] sm:$0x1] }
 0x6df   : >> { %v3883_v40 = vsel %vm1691_vm4, %v7656_v51, %v3881_v37  ;;  %v3888_v28 = vrot.slane %v3849_v58, 2  ;;  %v3418_v39 = vrot.slane %v3373_v3, 2  ;;  %v7659_v4 = vrot.slane %v6853_v2, 6  ;;  %v3858_v46 = vld [vmem:[#allocation6 + $0xf7] sm:$0x1] }
 0x6e0   : >> { %v3413_v11 = vsel %vm1691_vm4, %v7657_v47, %v3411_v63  ;;  %v3756_v19 = vmul.f32 %v7658_v20, %v3753_v33  ;;  %v3225_v6 = vadd.f32 %v3224_v54, %v6560_v23  ;;  %v3832_v61 = vperm.slane %v4909_v29, 0  ;;  %v3927_v63 = vld [vmem:[#allocation6 + $0x28] sm:$0x1]  ;;  %v3928_v58 = vld [vmem:[#allocation6 + $0x38] sm:$0x1] }
 0x6e1   : >> { %v3895_v37 = vsel %vm1688_vm5, %v7659_v4, %v3893_v31  ;;  %v3890_v55 = vrot.slane %v3850_v59, 1  ;;  %v3420_v18 = vrot.slane %v3374_v17, 1  ;;  %v3885_v0 = vsel %vm1694_vm12, %v3884_v43, %v3883_v40  ;;  %v3766_v29 = vld [vmem:[#allocation6 + $0x56] sm:$0x1]  ;;  %v3449_v59 = vld [vmem:[#allocation6 + $0x82] sm:$0x1] }
 0x6e2   : >> { %3758 = vst.msk [vmem:[#allocation2 + $0x20] sm:$0xff] %vm387_vm3, %v3756_v19  ;;  %v3415_v60 = vsel %vm1694_vm12, %v3414_v21, %v3413_v11  ;;  %v3898_v57 = vrot.slane %v3855_v24, 4  ;;  %v3800_v38 = vrot.slane %v3764_v52, 5  ;;  %3834 = vrot.lane.b32.xlu0 %v3832_v61, %s5102_s10  ;;  %v3887_v23 = vsel %vm1697_vm11, %v3886_v50, %v3885_v0  ;;  %v3768_v50 = vld [vmem:[#allocation6 + $0x76] sm:$0x1] }
 0x6e3   : >> { %3273 = vst.msk [vmem:[#allocation6 + $0xf8] sm:$0xff] %vm387_vm3, %v3225_v6  ;;  %v3417_v2 = vsel %vm1697_vm11, %v3416_v9, %v3415_v60  ;;  %v7660_v53 = vrot.slane %v6801_v13, 7  ;;  %v3889_v3 = vsel %vm1700_vm15, %v3888_v28, %v3887_v23  ;;  %v7661_v31 = vrot.slane %v6917_v56, 5  ;;  %v3767_v13 = vld [vmem:[#allocation6 + $0x66] sm:$0x1] }
 0x6e4   : >> { %v3419_v1 = vsel %vm1700_vm15, %v3418_v39, %v3417_v2  ;;  %v3900_v33 = vrot.slane %v3856_v41, 3  ;;  %v3891_v51 = vsel %vm3324_vm7, %v3890_v55, %v3889_v3  ;;  %v3902_v43 = vrot.slane %v3857_v32, 2  ;;  %v3929_v21 = vld [vmem:[#allocation6 + $0x48] sm:$0x1]  ;;  %v3930_v19 = vld [vmem:[#allocation6 + $0x58] sm:$0x1] }
 0x6e5   : >> { %v3797_v48 = vsel %vm1685_vm13, %v7660_v53, %v3761_v22  ;;  %v3897_v52 = vsel %vm1691_vm4, %v7661_v31, %v3895_v37  ;;  %v3421_v40 = vsel %vm3324_vm7, %v3420_v18, %v3419_v1  ;;  %v3802_v17 = vrot.slane %v6986_v8, 4  ;;  %3906 = vrot.lane.b32.xlu2 %v3891_v51, %s5103_s13  ;;  %v3931_v39 = vld [vmem:[#allocation6 + $0x68] sm:$0x1]  ;;  %v3452_v37 = vld [vmem:[#allocation6 + $0xb2] sm:$0x1] }
 0x6e6   : >> { %3424 = vrot.lane.b32.xlu1 %v3421_v40, %s5100_s29  ;;  %v3904_v56 = vrot.slane %v3858_v46, 1  ;;  %v7662_v47 = vrot.slane %v6886_v49, 6  ;;  %v3899_v9 = vsel %vm1694_vm12, %v3898_v57, %v3897_v52  ;;  %v3804_v20 = vrot.slane %v3766_v29, 3  ;;  %v3925_v18 = vld [vmem:[#allocation6 + $0x8] sm:$0x1]  ;;  %s5116_s29 = smov (%p525_p4), 76  }
 0x6e7   : >> { %v3962_v54 = vrot.slane %v3927_v63, 6  ;;  %v3901_v8 = vsel %vm1697_vm11, %v3900_v33, %v3899_v9  ;;  %v3806_v28 = vrot.slane %v3767_v13, 2  ;;  %v3964_v4 = vrot.slane %v3928_v58, 5  ;;  %v7078_v2 = vld [vmem:[#allocation6 + $0x19] sm:$0x1] }
 0x6e8   : >> { %v3799_v11 = vsel %vm1688_vm5, %v7662_v47, %v3797_v48  ;;  %v7663_v22 = vrot.slane %v6785_v44, 7  ;;  %v3903_v6 = vsel %vm1700_vm15, %v3902_v43, %v3901_v8  ;;  %v4905_v61 = vsel %vm3457_vm6, 1.0, %v7637_v35  ;;  %v3454_v58 = vld [vmem:[#allocation6 + $0xd2] sm:$0x1]  ;;  %v3525_v1 = vld [vmem:[#allocation6 + $0x23] sm:$0x1] }
 0x6e9   : >> { %v3801_v24 = vsel %vm1691_vm4, %v3800_v38, %v3799_v11  ;;  %v3808_v55 = vrot.slane %v3768_v50, 1  ;;  %v3966_v41 = vrot.slane %v3929_v21, 4  ;;  %v3905_v0 = vsel %vm3324_vm7, %v3904_v56, %v3903_v6  ;;  %v7085_v31 = vld [vmem:[#allocation6 + $0x1d] sm:$0x1]  ;;  %v3932_v33 = vld [vmem:[#allocation6 + $0x78] sm:$0x1] }
 0x6ea   : >> { %v3491_v49 = vsel %vm1685_vm13, %v7663_v22, %v3449_v59  ;;  %v3803_v60 = vsel %vm1694_vm12, %v3802_v17, %v3801_v24  ;;  %v7664_v32 = vrot.slane %v6855_v7, 7  ;;  %v3968_v44 = vrot.slane %v3930_v19, 3  ;;  %3908 = vrot.lane.b32.xlu0 %v3905_v0, %s5103_s13  ;;  %v3453_v59 = vld [vmem:[#allocation6 + $0xc2] sm:$0x1]  ;;  %v4017_v43 = vld [vmem:[#allocation6 + $0xa9] sm:$0x1] }
 0x6eb   : >> { %v3805_v38 = vsel %vm1697_vm11, %v3804_v20, %v3803_v60  ;;  %v3970_v5 = vrot.slane %v3931_v39, 2  ;;  %v3494_v23 = vrot.slane %v3452_v37, 5  ;;  %v3512_v46 = vperm.slane %v4905_v61, 0  ;;  %v3455_v51 = vld [vmem:[#allocation6 + $0xe2] sm:$0x1] }
 0x6ec   : >> { %v3961_v57 = vsel %vm1685_vm13, %v7664_v32, %v3925_v18  ;;  %v3807_v53 = vsel %vm1700_vm15, %v3806_v28, %v3805_v38  ;;  %v7665_v7 = vrot.slane %v6857_v34, 6  ;;  %vm3941_vm14 = vcmp.gt.f32.partialorder %v3929_v21, 0.05  ;;  %v3456_v34 = vld [vmem:[#allocation6 + $0xf2] sm:$0x1] }
 0x6ed   : >> { %v3963_v63 = vsel %vm1688_vm5, %v3962_v54, %v3961_v57  ;;  %v3809_v52 = vsel %vm3324_vm7, %v3808_v55, %v3807_v53  ;;  %3514 = vrot.lane.b32.xlu2 %v3512_v46, %s5101_s30  ;;  %v3498_v56 = vrot.slane %v3454_v58, 3  ;;  %v3526_v50 = vld [vmem:[#allocation6 + $0x33] sm:$0x1]  ;;  %v4018_v47 = vld [vmem:[#allocation6 + $0xb9] sm:$0x1]  ;;  %v4042_v11 = vrot.slane %v7078_v2, 7 }
 0x6ee   : >> { %v3965_v48 = vsel %vm1691_vm4, %v3964_v4, %v3963_v63  ;;  %v3493_v3 = vsel %vm1688_vm5, %v7665_v7, %v3491_v49  ;;  %3824 = vrot.lane.b32.xlu1 %v3809_v52, %s5102_s10  ;;  %v3972_v9 = vrot.slane %v3932_v33, 1  ;;  %v3496_v24 = vrot.slane %v3453_v59, 4  ;;  %v7095_v19 = vld [vmem:[#allocation6 + $0x43] sm:$0x1]  ;;  %v3528_v28 = vld [vmem:[#allocation6 + $0x53] sm:$0x1] }
 0x6ef   : >> { %v3967_v29 = vsel %vm1694_vm12, %v3966_v41, %v3965_v48  ;;  %v3495_v17 = vsel %vm1691_vm4, %v3494_v23, %v3493_v3  ;;  %v3500_v20 = vrot.slane %v3455_v51, 2  ;;  %v4911_v54 = vsel %vm3941_vm14, 1.0, %v7637_v35  ;;  %v3523_v21 = vld [vmem:[#allocation6 + $0x3] sm:$0x1]  ;;  %v4257_v55 = vld [vmem:[#allocation6 + $0x2c] sm:$0x1] }
 0x6f0   : >> { %v3969_v40 = vsel %vm1697_vm11, %v3968_v44, %v3967_v29  ;;  %v3502_v8 = vrot.slane %v3456_v34, 1  ;;  %v3560_v39 = vrot.slane %v3525_v1, 6  ;;  %v4378_v4 = vrot.slane %v7085_v31, 7  ;;  %v3529_v49 = vld [vmem:[#allocation6 + $0x63] sm:$0x1]  ;;  %s5118_s10 = smov (%p525_p4), 72  }
 0x6f1   : >> { %v3971_v13 = vsel %vm1700_vm15, %v3970_v5, %v3969_v40  ;;  %v3497_v22 = vsel %vm1694_vm12, %v3496_v24, %v3495_v17  ;;  %v3562_v6 = vrot.slane %v3526_v50, 5  ;;  %v4058_v61 = vrot.slane %v4017_v43, 6  ;;  %v3530_v41 = vld [vmem:[#allocation6 + $0x73] sm:$0x1]  ;;  %v4015_v60 = vld [vmem:[#allocation6 + $0x89] sm:$0x1] }
 0x6f2   : >> { %v3973_v37 = vsel %vm3324_vm7, %v3972_v9, %v3971_v13  ;;  %v3499_v18 = vsel %vm1697_vm11, %v3498_v56, %v3497_v22  ;;  %v3564_v0 = vrot.slane %v7095_v19, 4  ;;  %v4019_v32 = vld [vmem:[#allocation6 + $0xc9] sm:$0x1]  ;;  %v4060_v57 = vrot.slane %v4018_v47, 5  ;;  %v4020_v46 = vld [vmem:[#allocation6 + $0xd9] sm:$0x1] }
 0x6f3   : >> { %3988 = vrot.lane.b32.xlu0 %v3973_v37, %s5104_s16  ;;  %v3996_v44 = vperm.slane %v4911_v54, 0  ;;  %v3501_v38 = vsel %vm1700_vm15, %v3500_v20, %v3499_v18  ;;  %v7666_v63 = vrot.slane %v6803_v30, 7  ;;  %v3566_v23 = vrot.slane %v3528_v28, 3  ;;  %v4258_v53 = vld [vmem:[#allocation6 + $0x3c] sm:$0x1] }
 0x6f4   : >> { %v3503_v48 = vsel %vm3324_vm7, %v3502_v8, %v3501_v38  ;;  %v3568_v7 = vrot.slane %v3529_v49, 2  ;;  %vm3859_vm10 = vcmp.gt.f32.partialorder %v6998_v45, 0.05  ;;  %v4021_v3 = vld [vmem:[#allocation6 + $0xe9] sm:$0x1]  ;;  %v3570_v30 = vrot.slane %v3530_v41, 1 }
 0x6f5   : >> { %v3559_v5 = vsel %vm1685_vm13, %v7666_v63, %v3523_v21  ;;  %3998 = vrot.lane.b32.xlu2 %v3996_v44, %s5104_s16  ;;  %v4022_v52 = vld [vmem:[#allocation6 + $0xf9] sm:$0x1]  ;;  %v7667_v33 = vrot.slane %v6819_v26, 7  ;;  %v4062_v59 = vrot.slane %v4019_v32, 4  ;;  %v7117_v51 = vld [vmem:[#allocation6 + $0x4c] sm:$0x1] }
 0x6f6   : >> { %v3561_v58 = vsel %vm1688_vm5, %v3560_v39, %v3559_v5  ;;  %3506 = vrot.lane.b32.xlu1 %v3503_v48, %s5101_s30  ;;  %v4064_v43 = vrot.slane %v4020_v46, 3  ;;  %v4255_v13 = vld [vmem:[#allocation6 + $0xc] sm:$0x1]  ;;  %v4260_v17 = vld [vmem:[#allocation6 + $0x5c] sm:$0x1]  ;;  %v4292_v56 = vrot.slane %v4257_v55, 6 }
 0x6f7   : >> { %v3563_v1 = vsel %vm1691_vm4, %v3562_v6, %v3561_v58  ;;  %v4057_v29 = vsel %vm1685_vm13, %v7667_v33, %v4015_v60  ;;  %v4066_v9 = vrot.slane %v4021_v3, 2  ;;  %v4261_v24 = vld [vmem:[#allocation6 + $0x6c] sm:$0x1]  ;;  %v4294_v26 = vrot.slane %v4258_v53, 5  ;;  %v3933_v20 = vld [vmem:[#allocation6 + $0x88] sm:$0x1] }
 0x6f8   : >> { %v3565_v40 = vsel %vm1694_vm12, %v3564_v0, %v3563_v1  ;;  %v4059_v34 = vsel %vm1688_vm5, %v4058_v61, %v4057_v29  ;;  %v7123_v54 = vld [vmem:[#allocation6 + $0xa3] sm:$0x1]  ;;  %v4910_v21 = vsel %vm3859_vm10, 1.0, %v7637_v35  ;;  %v4068_v28 = vrot.slane %v4022_v52, 1  ;;  %v3935_v37 = vld [vmem:[#allocation6 + $0xa8] sm:$0x1] }
 0x6f9   : >> { %v3567_v50 = vsel %vm1697_vm11, %v3566_v23, %v3565_v40  ;;  %v4061_v47 = vsel %vm1691_vm4, %v4060_v57, %v4059_v34  ;;  %v4296_v39 = vrot.slane %v7117_v51, 4  ;;  %v7130_v22 = vld [vmem:[#allocation6 + $0x1b] sm:$0x1]  ;;  %v7668_v61 = vrot.slane %v6861_v10, 7  ;;  %v3936_v41 = vld [vmem:[#allocation6 + $0xb8] sm:$0x1] }
 0x6fa   : >> { %v3569_v8 = vsel %vm1700_vm15, %v3568_v7, %v3567_v50  ;;  %v4063_v6 = vsel %vm1694_vm12, %v4062_v59, %v4061_v47  ;;  %v4298_v18 = vrot.slane %v4260_v17, 3  ;;  %v7137_v0 = vld [vmem:[#allocation6 + $0x1a] sm:$0x1]  ;;  %v7139_v45 = vld [vmem:[#allocation6 + $0x1f] sm:$0x1]  ;;  %v4300_v57 = vrot.slane %v4261_v24, 2 }
 0x6fb   : >> { %v3571_v49 = vsel %vm3324_vm7, %v3570_v30, %v3569_v8  ;;  %v4291_v55 = vsel %vm1685_vm13, %v7668_v61, %v4255_v13  ;;  %v4065_v60 = vsel %vm1697_vm11, %v4064_v43, %v4063_v6  ;;  %v7144_v44 = vld [vmem:[#allocation6 + $0x49] sm:$0x1]  ;;  %v3937_v38 = vld [vmem:[#allocation6 + $0xc8] sm:$0x1]  ;;  %v7669_v10 = vrot.slane %v6821_v27, 7  ;;  %s5117_s30 = smov (%p525_p4), 74  }
 0x6fc   : >> { %3586 = vrot.lane.b32.xlu0 %v3571_v49, %s5080_s15  ;;  %v4293_v32 = vsel %vm1688_vm5, %v4292_v56, %v4291_v55  ;;  %v3914_v5 = vperm.slane %v4910_v21, 0  ;;  %v4067_v23 = vsel %vm1700_vm15, %v4066_v9, %v4065_v60  ;;  %v3938_v53 = vld [vmem:[#allocation6 + $0xd8] sm:$0x1]  ;;  %v3976_v48 = vrot.slane %v3935_v37, 6  ;;  %v4009_v58 = vld [vmem:[#allocation6 + $0x29] sm:$0x1] }
 0x6fd   : >> { %v3975_v63 = vsel %vm1685_vm13, %v7669_v10, %v3933_v20  ;;  %v4295_v46 = vsel %vm1691_vm4, %v4294_v26, %v4293_v32  ;;  %v4069_v7 = vsel %vm3324_vm7, %v4068_v28, %v4067_v23  ;;  %v4262_v3 = vld [vmem:[#allocation6 + $0x7c] sm:$0x1]  ;;  %v3939_v30 = vld [vmem:[#allocation6 + $0xe8] sm:$0x1]  ;;  %v3978_v52 = vrot.slane %v3936_v41, 5 }
 0x6fe   : >> { %v4297_v1 = vsel %vm1694_vm12, %v4296_v39, %v4295_v46  ;;  %v3574_v33 = vrot.slane %v7123_v54, 6  ;;  %3916 = vrot.lane.b32.xlu1 %v3914_v5, %s5103_s13  ;;  %4072 = vrot.lane.b32.xlu2 %v4069_v7, %s5105_s18  ;;  %vm4023_vm6 = vcmp.gt.f32.partialorder %v7144_v44, 0.05  ;;  %v3940_v29 = vld [vmem:[#allocation6 + $0xf8] sm:$0x1]  ;;  %v3980_v59 = vrot.slane %v3937_v38, 4 }
 0x6ff   : >> { %v4299_v27 = vsel %vm1697_vm11, %v4298_v18, %v4297_v1  ;;  %v4206_v40 = vrot.slane %v7130_v22, 7  ;;  %v3982_v43 = vrot.slane %v3938_v53, 3  ;;  %v4097_v13 = vld [vmem:[#allocation6 + $0x8a] sm:$0x1]  ;;  %v4124_v17 = vrot.slane %v7137_v0, 7  ;;  %s5119_s13 = smov (%p525_p4), 70  }
 0x700   : >> { %v4301_v34 = vsel %vm1700_vm15, %v4300_v57, %v4299_v27  ;;  %v4542_v56 = vrot.slane %v7139_v45, 7  ;;  %v4302_v50 = vrot.slane %v4262_v3, 1  ;;  %v3977_v47 = vsel %vm1688_vm5, %v3976_v48, %v3975_v63  ;;  %v4099_v24 = vld [vmem:[#allocation6 + $0xaa] sm:$0x1]  ;;  %v4010_v26 = vld [vmem:[#allocation6 + $0x39] sm:$0x1] }
 0x701   : >> { %v3984_v9 = vrot.slane %v3939_v30, 2  ;;  %v4912_v20 = vsel %vm4023_vm6, 1.0, %v7637_v35  ;;  %v3979_v8 = vsel %vm1691_vm4, %v3978_v52, %v3977_v47  ;;  %v3986_v21 = vrot.slane %v3940_v29, 1  ;;  %v4100_v28 = vld [vmem:[#allocation6 + $0xba] sm:$0x1] }
 0x702   : >> { %v4044_v39 = vrot.slane %v4009_v58, 6  ;;  %v4303_v37 = vsel %vm3324_vm7, %v4302_v50, %v4301_v34  ;;  %v3981_v49 = vsel %vm1694_vm12, %v3980_v59, %v3979_v8  ;;  %v4101_v6 = vld [vmem:[#allocation6 + $0xca] sm:$0x1]  ;;  %v7670_v61 = vrot.slane %v6823_v15, 7  ;;  %v4007_v18 = vld [vmem:[#allocation6 + $0x9] sm:$0x1] }
 0x703   : >> { %v4012_v41 = vld [vmem:[#allocation6 + $0x59] sm:$0x1]  ;;  %v4345_v60 = vld [vmem:[#allocation6 + $0x2d] sm:$0x1]  ;;  %v3983_v32 = vsel %vm1697_vm11, %v3982_v43, %v3981_v49  ;;  %vm4271_vm14 = vcmp.gt.f32.partialorder %v7117_v51, 0.05  ;;  %v4043_v3 = vsel %vm1685_vm13, %v4042_v11, %v4007_v18 }
 0x704   : >> { %v4139_v55 = vsel %vm1685_vm13, %v7670_v61, %v4097_v13  ;;  %4318 = vrot.lane.b32.xlu0 %v4303_v37, %s5076_s11  ;;  %v4140_v57 = vrot.slane %v4099_v24, 6  ;;  %v4013_v38 = vld [vmem:[#allocation6 + $0x69] sm:$0x1]  ;;  %v4046_v10 = vrot.slane %v4010_v26, 5  ;;  %v4343_v63 = vld [vmem:[#allocation6 + $0xd] sm:$0x1]  ;;  %v3985_v15 = vsel %vm1700_vm15, %v3984_v9, %v3983_v32 }
 0x705   : >> { %v4048_v5 = vrot.slane %v7144_v44, 4  ;;  %v4078_v23 = vperm.slane %v4912_v20, 0  ;;  %v4102_v46 = vld [vmem:[#allocation6 + $0xda] sm:$0x1]  ;;  %v4142_v53 = vrot.slane %v4100_v28, 5  ;;  %v3987_v48 = vsel %vm3324_vm7, %v3986_v21, %v3985_v15 }
 0x706   : >> { %v4103_v58 = vld [vmem:[#allocation6 + $0xea] sm:$0x1]  ;;  %v4144_v7 = vrot.slane %v4101_v6, 4  ;;  %v4050_v1 = vrot.slane %v4012_v41, 3  ;;  %v4346_v30 = vld [vmem:[#allocation6 + $0x3d] sm:$0x1]  ;;  %3990 = vrot.lane.b32.xlu1 %v3987_v48, %s5104_s16  ;;  %v4045_v27 = vsel %vm1688_vm5, %v4044_v39, %v4043_v3  ;;  %v4379_v2 = vsel %vm1685_vm13, %v4378_v4, %v4343_v63 }
 0x707   : >> { %4080 = vrot.lane.b32.xlu2 %v4078_v23, %s5105_s18  ;;  %v4915_v44 = vsel %vm4271_vm14, 1.0, %v7637_v35  ;;  %v4104_v52 = vld [vmem:[#allocation6 + $0xfa] sm:$0x1]  ;;  %v4052_v29 = vrot.slane %v4013_v38, 2  ;;  %v7185_v59 = vld [vmem:[#allocation6 + $0x4d] sm:$0x1]  ;;  %v4141_v11 = vsel %vm1688_vm5, %v4140_v57, %v4139_v55  ;;  %v4047_v43 = vsel %vm1691_vm4, %v4046_v10, %v4045_v27 }
 0x708   : >> { %v4146_v34 = vrot.slane %v4102_v46, 3  ;;  %v4348_v13 = vld [vmem:[#allocation6 + $0x5d] sm:$0x1]  ;;  %v4380_v50 = vrot.slane %v4345_v60, 6  ;;  %v4265_v47 = vld [vmem:[#allocation6 + $0xac] sm:$0x1]  ;;  %v4143_v51 = vsel %vm1691_vm4, %v4142_v53, %v4141_v11  ;;  %v4049_v26 = vsel %vm1694_vm12, %v4048_v5, %v4047_v43 }
 0x709   : >> { %v4148_v9 = vrot.slane %v4103_v58, 2  ;;  %v4014_v24 = vld [vmem:[#allocation6 + $0x79] sm:$0x1]  ;;  %v4349_v20 = vld [vmem:[#allocation6 + $0x6d] sm:$0x1]  ;;  %v4382_v8 = vrot.slane %v4346_v30, 5  ;;  %v4051_v4 = vsel %vm1697_vm11, %v4050_v1, %v4049_v26  ;;  %v4145_v49 = vsel %vm1694_vm12, %v4144_v7, %v4143_v51 }
 0x70a   : >> { %v4328_v21 = vperm.slane %v4915_v44, 0  ;;  %v4150_v31 = vrot.slane %v4104_v52, 1  ;;  %v4384_v28 = vrot.slane %v7185_v59, 4  ;;  %v4263_v39 = vld [vmem:[#allocation6 + $0x8c] sm:$0x1]  ;;  %v4053_v6 = vsel %vm1700_vm15, %v4052_v29, %v4051_v4 }
 0x70b   : >> { %v7196_v37 = vld [vmem:[#allocation6 + $0x1e] sm:$0x1]  ;;  %v4386_v61 = vrot.slane %v4348_v13, 3  ;;  %v4266_v55 = vld [vmem:[#allocation6 + $0xbc] sm:$0x1]  ;;  %v4306_v18 = vrot.slane %v4265_v47, 6  ;;  %v4147_v60 = vsel %vm1697_vm11, %v4146_v34, %v4145_v49  ;;  %v4381_v57 = vsel %vm1688_vm5, %v4380_v50, %v4379_v2 }
 0x70c   : >> { %v7200_v41 = vld [vmem:[#allocation6 + $0x24] sm:$0x1]  ;;  %4330 = vrot.lane.b32.xlu0 %v4328_v21, %s5076_s11  ;;  %v4054_v32 = vrot.slane %v4014_v24, 1  ;;  %v4388_v38 = vrot.slane %v4349_v20, 2  ;;  %v7205_v10 = vld [vmem:[#allocation6 + $0x4a] sm:$0x1]  ;;  %v4149_v5 = vsel %vm1700_vm15, %v4148_v9, %v4147_v60  ;;  %v4383_v23 = vsel %vm1691_vm4, %v4382_v8, %v4381_v57 }
 0x70d   : >> { %v4267_v63 = vld [vmem:[#allocation6 + $0xcc] sm:$0x1]  ;;  %v4268_v15 = vld [vmem:[#allocation6 + $0xdc] sm:$0x1]  ;;  %v7671_v46 = vrot.slane %v6826_v16, 7  ;;  %v4151_v3 = vsel %vm3324_vm7, %v4150_v31, %v4149_v5  ;;  %v4385_v44 = vsel %vm1694_vm12, %v4384_v28, %v4383_v23  ;;  %v4308_v27 = vrot.slane %v4266_v55, 5 }
 0x70e   : >> { %v4173_v48 = vld [vmem:[#allocation6 + $0x2b] sm:$0x1]  ;;  %v7212_v58 = vld [vmem:[#allocation6 + $0x2a] sm:$0x1]  ;;  %v4055_v1 = vsel %vm3324_vm7, %v4054_v32, %v4053_v6  ;;  %v4350_v30 = vld [vmem:[#allocation6 + $0x7d] sm:$0x1]  ;;  %v4387_v16 = vsel %vm1697_vm11, %v4386_v61, %v4385_v44 }
 0x70f   : >> { %v4305_v53 = vsel %vm1685_vm13, %v7671_v46, %v4263_v39  ;;  %v4179_v7 = vld [vmem:[#allocation6 + $0x8b] sm:$0x1]  ;;  %v4269_v52 = vld [vmem:[#allocation6 + $0xec] sm:$0x1]  ;;  %4154 = vrot.lane.b32.xlu2 %v4151_v3, %s5082_s17  ;;  %4070 = vrot.lane.b32.xlu1 %v4055_v1, %s5105_s18  ;;  %vm4105_vm10 = vcmp.gt.f32.partialorder %v7205_v10, 0.05  ;;  %v4389_v34 = vsel %vm1700_vm15, %v4388_v38, %v4387_v16 }
 0x710   : >> { %v4270_v29 = vld [vmem:[#allocation6 + $0xfc] sm:$0x1]  ;;  %v4310_v2 = vrot.slane %v4267_v63, 4  ;;  %v4460_v11 = vrot.slane %v7196_v37, 7  ;;  %v4312_v43 = vrot.slane %v4268_v15, 3  ;;  %v7672_v47 = vrot.slane %v6828_v42, 7 }
 0x711   : >> { %v4174_v13 = vld [vmem:[#allocation6 + $0x3b] sm:$0x1]  ;;  %v4092_v50 = vld [vmem:[#allocation6 + $0x3a] sm:$0x1]  ;;  %v3642_v9 = vrot.slane %v7200_v41, 6  ;;  %v4390_v24 = vrot.slane %v4350_v30, 1  ;;  %v4307_v26 = vsel %vm1688_vm5, %v4306_v18, %v4305_v53 }
 0x712   : >> { %v7226_v51 = vsel %vm1685_vm13, %v7672_v47, %v4179_v7  ;;  %v4314_v20 = vrot.slane %v4269_v52, 2  ;;  %v4171_v8 = vld [vmem:[#allocation6 + $0xb] sm:$0x1]  ;;  %v4208_v21 = vrot.slane %v4173_v48, 6  ;;  %v4089_v31 = vld [vmem:[#allocation6 + $0xa] sm:$0x1]  ;;  %v4309_v28 = vsel %vm1691_vm4, %v4308_v27, %v4307_v26 }
 0x713   : >> { %v4913_v4 = vsel %vm4105_vm10, 1.0, %v7637_v35  ;;  %v4316_v39 = vrot.slane %v4270_v29, 1  ;;  %v7234_v42 = vld [vmem:[#allocation6 + $0x4b] sm:$0x1]  ;;  %v4126_v49 = vrot.slane %v7212_v58, 6  ;;  %v4391_v6 = vsel %vm3324_vm7, %v4390_v24, %v4389_v34 }
 0x714   : >> { %v4311_v61 = vsel %vm1694_vm12, %v4310_v2, %v4309_v28  ;;  %v4176_v55 = vld [vmem:[#allocation6 + $0x5b] sm:$0x1]  ;;  %v4210_v18 = vrot.slane %v4174_v13, 5  ;;  %v4094_v60 = vld [vmem:[#allocation6 + $0x5a] sm:$0x1]  ;;  %v4128_v32 = vrot.slane %v4092_v50, 5  ;;  %4406 = vrot.lane.b32.xlu0 %v4391_v6, %s5106_s19  ;;  %v4207_v5 = vsel %vm1685_vm13, %v4206_v40, %v4171_v8 }
 0x715   : >> { %v4181_v57 = vld [vmem:[#allocation6 + $0xab] sm:$0x1]  ;;  %v4313_v38 = vsel %vm1697_vm11, %v4312_v43, %v4311_v61  ;;  %vm4359_vm6 = vcmp.gt.f32.partialorder %v7185_v59, 0.05  ;;  %v4095_v23 = vld [vmem:[#allocation6 + $0x6a] sm:$0x1]  ;;  %v4125_v15 = vsel %vm1685_vm13, %v4124_v17, %v4089_v31  ;;  %v4209_v1 = vsel %vm1688_vm5, %v4208_v21, %v4207_v5 }
 0x716   : >> { %v4177_v63 = vld [vmem:[#allocation6 + $0x6b] sm:$0x1]  ;;  %v4130_v46 = vrot.slane %v7205_v10, 4  ;;  %v4160_v53 = vperm.slane %v4913_v4, 0  ;;  %v4315_v48 = vsel %vm1700_vm15, %v4314_v20, %v4313_v38  ;;  %v4212_v58 = vrot.slane %v7234_v42, 4 }
 0x717   : >> { %v4435_v7 = vld [vmem:[#allocation6 + $0xae] sm:$0x1]  ;;  %v4317_v3 = vsel %vm3324_vm7, %v4316_v39, %v4315_v48  ;;  %v4214_v22 = vrot.slane %v4176_v55, 3  ;;  %v4132_v30 = vrot.slane %v4094_v60, 3  ;;  %v7253_v40 = vld [vmem:[#allocation6 + $0xad] sm:$0x1]  ;;  %v4127_v52 = vsel %vm1688_vm5, %v4126_v49, %v4125_v15 }
 0x718   : >> { %v7255_v44 = vld [vmem:[#allocation6 + $0xb3] sm:$0x1]  ;;  %4162 = vrot.lane.b32.xlu2 %v4160_v53, %s5082_s17  ;;  %4320 = vrot.lane.b32.xlu1 %v4317_v3, %s5076_s11  ;;  %v4916_v0 = vsel %vm4359_vm6, 1.0, %v7637_v35  ;;  %v4178_v17 = vld [vmem:[#allocation6 + $0x7b] sm:$0x1]  ;;  %v4216_v10 = vrot.slane %v4177_v63, 2  ;;  %v4211_v16 = vsel %vm1691_vm4, %v4210_v18, %v4209_v1  ;;  %v4129_v2 = vsel %vm1691_vm4, %v4128_v32, %v4127_v52 }
 0x719   : >> { %v4134_v27 = vrot.slane %v4095_v23, 2  ;;  %v4096_v29 = vld [vmem:[#allocation6 + $0x7a] sm:$0x1]  ;;  %v4182_v34 = vld [vmem:[#allocation6 + $0xbb] sm:$0x1]  ;;  %v4222_v43 = vrot.slane %v4181_v57, 6  ;;  %v4213_v50 = vsel %vm1694_vm12, %v4212_v58, %v4211_v16  ;;  %v4131_v47 = vsel %vm1694_vm12, %v4130_v46, %v4129_v2 }
 0x71a   : >> { %v4476_v13 = vrot.slane %v4435_v7, 6  ;;  %v4183_v24 = vld [vmem:[#allocation6 + $0xcb] sm:$0x1]  ;;  %v4433_v59 = vld [vmem:[#allocation6 + $0x8e] sm:$0x1]  ;;  %v4394_v8 = vrot.slane %v7253_v40, 6  ;;  %v4215_v4 = vsel %vm1697_vm11, %v4214_v22, %v4213_v50  ;;  %v4133_v39 = vsel %vm1697_vm11, %v4132_v30, %v4131_v47 }
 0x71b   : >> { %v4436_v26 = vld [vmem:[#allocation6 + $0xbe] sm:$0x1]  ;;  %v4351_v20 = vld [vmem:[#allocation6 + $0x8d] sm:$0x1]  ;;  %v3576_v21 = vrot.slane %v7255_v44, 5  ;;  %v4414_v31 = vperm.slane %v4916_v0, 0  ;;  %v4217_v61 = vsel %vm1700_vm15, %v4216_v10, %v4215_v4  ;;  %v4135_v55 = vsel %vm1700_vm15, %v4134_v27, %v4133_v39 }
 0x71c   : >> { %v4218_v28 = vrot.slane %v4178_v17, 1  ;;  %v4184_v49 = vld [vmem:[#allocation6 + $0xdb] sm:$0x1]  ;;  %v4354_v6 = vld [vmem:[#allocation6 + $0xbd] sm:$0x1]  ;;  %v4136_v18 = vrot.slane %v4096_v29, 1  ;;  %v4223_v58 = vsel %vm1688_vm5, %v4222_v43, %v7226_v51 }
 0x71d   : >> { %v4185_v60 = vld [vmem:[#allocation6 + $0xeb] sm:$0x1]  ;;  %v4224_v32 = vrot.slane %v4182_v34, 5  ;;  %v4437_v57 = vld [vmem:[#allocation6 + $0xce] sm:$0x1]  ;;  %4416 = vrot.lane.b32.xlu0 %v4414_v31, %s5106_s19  ;;  %v4226_v63 = vrot.slane %v4183_v24, 4 }
 0x71e   : >> { %v4186_v38 = vld [vmem:[#allocation6 + $0xfb] sm:$0x1]  ;;  %v7673_v5 = vrot.slane %v6830_v36, 7  ;;  %v4478_v15 = vrot.slane %v4436_v26, 5  ;;  %v4355_v46 = vld [vmem:[#allocation6 + $0xcd] sm:$0x1]  ;;  %v4219_v36 = vsel %vm3324_vm7, %v4218_v28, %v4217_v61  ;;  %v4137_v0 = vsel %vm3324_vm7, %v4136_v18, %v4135_v55 }
 0x71f   : >> { %v7674_v53 = vrot.slane %v6836_v14, 7  ;;  %v4228_v7 = vrot.slane %v4184_v49, 3  ;;  %v4438_v3 = vld [vmem:[#allocation6 + $0xde] sm:$0x1]  ;;  %v4356_v22 = vld [vmem:[#allocation6 + $0xdd] sm:$0x1]  ;;  %v4225_v51 = vsel %vm1691_vm4, %v4224_v32, %v4223_v58 }
 0x720   : >> { %v4475_v23 = vsel %vm1685_vm13, %v7673_v5, %v4433_v59  ;;  %v4396_v30 = vrot.slane %v4354_v6, 5  ;;  %v3531_v40 = vld [vmem:[#allocation6 + $0x83] sm:$0x1]  ;;  %v4230_v17 = vrot.slane %v4185_v60, 2  ;;  %v4439_v10 = vld [vmem:[#allocation6 + $0xee] sm:$0x1]  ;;  %4234 = vrot.lane.b32.xlu2 %v4219_v36, %s5079_s14  ;;  %4152 = vrot.lane.b32.xlu1 %v4137_v0, %s5082_s17  ;;  %v4227_v43 = vsel %vm1694_vm12, %v4226_v63, %v4225_v51 }
 0x721   : >> { %v4393_v48 = vsel %vm1685_vm13, %v7674_v53, %v4351_v20  ;;  %v4477_v1 = vsel %vm1688_vm5, %v4476_v13, %v4475_v23  ;;  %v4480_v52 = vrot.slane %v4437_v57, 4  ;;  %v4357_v14 = vld [vmem:[#allocation6 + $0xed] sm:$0x1]  ;;  %v4232_v27 = vrot.slane %v4186_v38, 1  ;;  %v4440_v16 = vld [vmem:[#allocation6 + $0xfe] sm:$0x1] }
 0x722   : >> { %v4358_v29 = vld [vmem:[#allocation6 + $0xfd] sm:$0x1]  ;;  %v4395_v2 = vsel %vm1688_vm5, %v4394_v8, %v4393_v48  ;;  %v4398_v34 = vrot.slane %v4355_v46, 4  ;;  %v4479_v13 = vsel %vm1691_vm4, %v4478_v15, %v4477_v1  ;;  %v4482_v50 = vrot.slane %v4438_v3, 3  ;;  %v7293_v31 = vld [vmem:[#allocation6 + $0x2f] sm:$0x1] }
 0x723   : >> { %v4400_v47 = vrot.slane %v4356_v22, 3  ;;  %v4229_v24 = vsel %vm1697_vm11, %v4228_v7, %v4227_v43  ;;  %v4484_v59 = vrot.slane %v4439_v10, 2  ;;  %v4397_v26 = vsel %vm1691_vm4, %v4396_v30, %v4395_v2  ;;  %v4427_v18 = vld [vmem:[#allocation6 + $0x2e] sm:$0x1]  ;;  %v3535_v23 = vld [vmem:[#allocation6 + $0xc3] sm:$0x1] }
 0x724   : >> { %v4402_v20 = vrot.slane %v4357_v14, 2  ;;  %v4231_v4 = vsel %vm1700_vm15, %v4230_v17, %v4229_v24  ;;  %v4486_v28 = vrot.slane %v4440_v16, 1  ;;  %v4404_v39 = vrot.slane %v4358_v29, 1  ;;  %v7306_v57 = vld [vmem:[#allocation6 + $0x4e] sm:$0x1]  ;;  %s5107_s11 = smov 34  }
 0x725   : >> { %v7675_v8 = vrot.slane %v6791_v12, 7  ;;  %v4233_v6 = vsel %vm3324_vm7, %v4232_v27, %v4231_v4  ;;  %v4481_v61 = vsel %vm1694_vm12, %v4480_v52, %v4479_v13  ;;  %v4399_v55 = vsel %vm1694_vm12, %v4398_v34, %v4397_v26  ;;  %v7308_v12 = vld [vmem:[#allocation6 + $0x34] sm:$0x1]  ;;  %v3536_v15 = vld [vmem:[#allocation6 + $0xd3] sm:$0x1]  ;;  %v7332_v52 = vpop.permute.xlu2 %3350  ;;  %s5111_s17 = smov (%p525_p4), 86  }
 0x726   : >> { %vm3539_vm14 = vcmp.gt.f32.partialorder %v7095_v19, 0.05  ;;  %4236 = vrot.lane.b32.xlu0 %v4233_v6, %s5079_s14  ;;  %v4483_v60 = vsel %vm1697_vm11, %v4482_v50, %v4481_v61  ;;  %v4401_v32 = vsel %vm1697_vm11, %v4400_v47, %v4399_v55  ;;  %v4544_v38 = vrot.slane %v7293_v31, 6  ;;  %v7316_v53 = vld [vmem:[#allocation6 + $0x3f] sm:$0x1] }
 0x727   : >> { %v3573_v49 = vsel %vm1685_vm13, %v7675_v8, %v3531_v40  ;;  %v4485_v63 = vsel %vm1700_vm15, %v4484_v59, %v4483_v60  ;;  %v4403_v5 = vsel %vm1700_vm15, %v4402_v20, %v4401_v32  ;;  %v4906_v7 = vsel %vm3539_vm14, 1.0, %v7637_v35  ;;  %v3537_v3 = vld [vmem:[#allocation6 + $0xe3] sm:$0x1]  ;;  %v7323_v1 = vld [vmem:[#allocation6 + $0x44] sm:$0x1] }
 0x728   : >> { %v3575_v46 = vsel %vm1688_vm5, %v3574_v33, %v3573_v49  ;;  %v4487_v48 = vsel %vm3324_vm7, %v4486_v28, %v4485_v63  ;;  %v4405_v58 = vsel %vm3324_vm7, %v4404_v39, %v4403_v5  ;;  %v4462_v22 = vrot.slane %v4427_v18, 6  ;;  %v3538_v54 = vld [vmem:[#allocation6 + $0xf3] sm:$0x1]  ;;  %v4428_v33 = vld [vmem:[#allocation6 + $0x3e] sm:$0x1] }
 0x729   : >> { %4490 = vrot.lane.b32.xlu2 %v4487_v48, %s5107_s11  ;;  %4408 = vrot.lane.b32.xlu1 %v4405_v58, %s5106_s19  ;;  %vm4441_vm10 = vcmp.gt.f32.partialorder %v7306_v57, 0.05  ;;  %v3577_v30 = vsel %vm1691_vm4, %v3576_v21, %v3575_v46  ;;  %v3578_v40 = vrot.slane %v3535_v23, 4  ;;  %v3580_v19 = vrot.slane %v3536_v15, 3  ;;  %v3605_v36 = vld [vmem:[#allocation6 + $0x4] sm:$0x1] }
 0x72a   : >> { %v3644_v0 = vrot.slane %v7308_v12, 5  ;;  %v4507_v17 = vld [vmem:[#allocation6 + $0xf] sm:$0x1]  ;;  %v4425_v10 = vld [vmem:[#allocation6 + $0xe] sm:$0x1]  ;;  %v3594_v14 = vperm.slane %v4906_v7, 0 }
 0x72b   : >> { %v3582_v51 = vrot.slane %v3537_v3, 2  ;;  %v3610_v27 = vld [vmem:[#allocation6 + $0x54] sm:$0x1]  ;;  %v3646_v16 = vrot.slane %v7323_v1, 4  ;;  %v4546_v29 = vrot.slane %v7316_v53, 5  ;;  %v4917_v44 = vsel %vm4441_vm10, 1.0, %v7637_v35 }
 0x72c   : >> { %v4466_v21 = vrot.slane %v7306_v57, 4  ;;  %v3584_v2 = vrot.slane %v3538_v54, 1  ;;  %v7340_v34 = vld [vmem:[#allocation6 + $0x4f] sm:$0x1]  ;;  %v4464_v43 = vrot.slane %v4428_v33, 5  ;;  %v3579_v13 = vsel %vm1694_vm12, %v3578_v40, %v3577_v30 }
 0x72d   : >> { %v3611_v50 = vld [vmem:[#allocation6 + $0x64] sm:$0x1]  ;;  %v7676_v47 = vrot.slane %v6817_v25, 7  ;;  %v4512_v59 = vld [vmem:[#allocation6 + $0x5f] sm:$0x1]  ;;  %v4543_v26 = vsel %vm1685_vm13, %v4542_v56, %v4507_v17  ;;  %v4461_v31 = vsel %vm1685_vm13, %v4460_v11, %v4425_v10  ;;  %v3581_v4 = vsel %vm1697_vm11, %v3580_v19, %v3579_v13 }
 0x72e   : >> { %v4430_v20 = vld [vmem:[#allocation6 + $0x5e] sm:$0x1]  ;;  %3596 = vrot.lane.b32.xlu0 %v3594_v14, %s5080_s15  ;;  %v3612_v28 = vld [vmem:[#allocation6 + $0x74] sm:$0x1]  ;;  %v4513_v39 = vld [vmem:[#allocation6 + $0x6f] sm:$0x1]  ;;  %v4545_v8 = vsel %vm1688_vm5, %v4544_v38, %v4543_v26  ;;  %v4463_v56 = vsel %vm1688_vm5, %v4462_v22, %v4461_v31  ;;  %v3583_v37 = vsel %vm1700_vm15, %v3582_v51, %v3581_v4 }
 0x72f   : >> { %v3641_v24 = vsel %vm1685_vm13, %v7676_v47, %v3605_v36  ;;  %v4431_v45 = vld [vmem:[#allocation6 + $0x6e] sm:$0x1]  ;;  %v4496_v49 = vperm.slane %v4917_v44, 0  ;;  %v3648_v6 = vrot.slane %v3610_v27, 3  ;;  %v4548_v11 = vrot.slane %v7340_v34, 4  ;;  %v7374_v36 = vpop.permute.xlu2 %3432 }
 0x730   : >> { %v3643_v25 = vsel %vm1688_vm5, %v3642_v9, %v3641_v24  ;;  %v4516_v61 = vld [vmem:[#allocation6 + $0x9f] sm:$0x1]  ;;  %v3585_v55 = vsel %vm3324_vm7, %v3584_v2, %v3583_v37  ;;  %v3650_v18 = vrot.slane %v3611_v50, 2  ;;  %v4550_v60 = vrot.slane %v4512_v59, 3  ;;  %v4517_v38 = vld [vmem:[#allocation6 + $0xaf] sm:$0x1] }
 0x731   : >> { %v4468_v41 = vrot.slane %v4430_v20, 3  ;;  %4498 = vrot.lane.b32.xlu2 %v4496_v49, %s5107_s11  ;;  %3588 = vrot.lane.b32.xlu1 %v3585_v55, %s5080_s15  ;;  %v3645_v9 = vsel %vm1691_vm4, %v3644_v0, %v3643_v25  ;;  %v3652_v32 = vrot.slane %v3612_v28, 1  ;;  %v4552_v57 = vrot.slane %v4513_v39, 2  ;;  %v4518_v15 = vld [vmem:[#allocation6 + $0xbf] sm:$0x1]  ;;  %s5108_s15 = smov 52  }
 0x732   : >> { %v4470_v12 = vrot.slane %v4431_v45, 2  ;;  %v3647_v63 = vsel %vm1694_vm12, %v3646_v16, %v3645_v9  ;;  %v4547_v5 = vsel %vm1691_vm4, %v4546_v29, %v4545_v8  ;;  %v4465_v23 = vsel %vm1691_vm4, %v4464_v43, %v4463_v56  ;;  %v4514_v48 = vld [vmem:[#allocation6 + $0x7f] sm:$0x1]  ;;  %v4432_v7 = vld [vmem:[#allocation6 + $0x7e] sm:$0x1] }
 0x733   : >> { %v4556_v46 = vrot.slane %v4516_v61, 7  ;;  %v3649_v53 = vsel %vm1697_vm11, %v3648_v6, %v3647_v63  ;;  %v4549_v58 = vsel %vm1694_vm12, %v4548_v11, %v4547_v5  ;;  %v4467_v3 = vsel %vm1694_vm12, %v4466_v21, %v4465_v23  ;;  %v4519_v22 = vld [vmem:[#allocation6 + $0xcf] sm:$0x1]  ;;  %v4520_v40 = vld [vmem:[#allocation6 + $0xdf] sm:$0x1] }
 0x734   : >> { %v3651_v54 = vsel %vm1700_vm15, %v3650_v18, %v3649_v53  ;;  %v4551_v33 = vsel %vm1697_vm11, %v4550_v60, %v4549_v58  ;;  %v4469_v30 = vsel %vm1697_vm11, %v4468_v41, %v4467_v3  ;;  %v4558_v19 = vrot.slane %v4517_v38, 6  ;;  %v4515_v14 = vld [vmem:[#allocation6 + $0x8f] sm:$0x1]  ;;  %v4522_v44 = vld [vmem:[#allocation6 + $0xff] sm:$0x1] }
 0x735   : >> { %v3653_v0 = vsel %vm3324_vm7, %v3652_v32, %v3651_v54  ;;  %v4553_v17 = vsel %vm1700_vm15, %v4552_v57, %v4551_v33  ;;  %v4471_v10 = vsel %vm1700_vm15, %v4470_v12, %v4469_v30  ;;  %v4521_v51 = vld [vmem:[#allocation6 + $0xef] sm:$0x1]  ;;  %v4560_v27 = vrot.slane %v4518_v15, 5  ;;  %v3614_v13 = vld [vmem:[#allocation6 + $0x94] sm:$0x1] }
 0x736   : >> { %3668 = vrot.lane.b32.xlu0 %v3653_v0, %s5077_s12  ;;  %v4554_v16 = vrot.slane %v4514_v48, 1  ;;  %v4472_v29 = vrot.slane %v4432_v7, 1  ;;  %v4562_v21 = vrot.slane %v4519_v22, 4  ;;  %v4557_v2 = vsel %vm1685_vm13, %v4556_v46, %v4515_v14  ;;  %v3613_v26 = vld [vmem:[#allocation6 + $0x84] sm:$0x1]  ;;  %v3275_v14 = vld [vmem:[#allocation2 + $0x18] sm:$0xff] }
 0x737   : >> { %v4564_v43 = vrot.slane %v4520_v40, 3  ;;  %v4559_v24 = vsel %vm1688_vm5, %v4558_v19, %v4557_v2  ;;  %v4566_v59 = vrot.slane %v4521_v51, 2  ;;  %v4568_v31 = vrot.slane %v4522_v44, 1  ;;  %v3615_v28 = vld [vmem:[#allocation6 + $0xa4] sm:$0x1]  ;;  %v3827_v37 = vpop.permute.xlu2 %3826 }
 0x738   : >> { %v4555_v50 = vsel %vm3324_vm7, %v4554_v16, %v4553_v17  ;;  %v4473_v47 = vsel %vm3324_vm7, %v4472_v29, %v4471_v10  ;;  %v4561_v20 = vsel %vm1691_vm4, %v4560_v27, %v4559_v24  ;;  %vm4523_vm6 = vcmp.gt.f32.partialorder %v7340_v34, 0.05  ;;  %v3616_v34 = vld [vmem:[#allocation6 + $0xb4] sm:$0x1]  ;;  %v3617_v9 = vld [vmem:[#allocation6 + $0xc4] sm:$0x1] }
 0x739   : >> { %4570 = vrot.lane.b32.xlu2 %v4555_v50, %s5108_s15  ;;  %4488 = vrot.lane.b32.xlu1 %v4473_v47, %s5107_s11  ;;  %vm4187_vm14 = vcmp.gt.f32.partialorder %v7234_v42, 0.05  ;;  %v4563_v4 = vsel %vm1694_vm12, %v4562_v21, %v4561_v20  ;;  %v3654_v25 = vrot.slane %v3614_v13, 7  ;;  %v4918_v45 = vsel %vm4523_vm6, 1.0, %v7637_v35  ;;  %v3274_v42 = vld [vmem:[#allocation2] sm:$0xff] }
 0x73a   : >> { %v4565_v39 = vsel %vm1697_vm11, %v4564_v43, %v4563_v4  ;;  %v4914_v56 = vsel %vm4187_vm14, 1.0, %v7637_v35  ;;  %v3656_v11 = vrot.slane %v3615_v28, 6  ;;  %v4578_v61 = vperm.slane %v4918_v45, 0  ;;  %v3618_v18 = vld [vmem:[#allocation6 + $0xd4] sm:$0x1]  ;;  %v3341_v41 = vpop.permute.xlu0 %3340 }
 0x73b   : >> { %v4567_v8 = vsel %vm1700_vm15, %v4566_v59, %v4565_v39  ;;  %v3655_v49 = vsel %vm1685_vm13, %v3654_v25, %v3613_v26  ;;  %v4242_v55 = vperm.slane %v4914_v56, 0  ;;  %v3619_v32 = vld [vmem:[#allocation6 + $0xe4] sm:$0x1]  ;;  %v3658_v57 = vrot.slane %v3616_v34, 5  ;;  %v3620_v38 = vld [vmem:[#allocation6 + $0xf4] sm:$0x1] }
 0x73c   : >> { %v4569_v6 = vsel %vm3324_vm7, %v4568_v31, %v4567_v8  ;;  %v3657_v60 = vsel %vm1688_vm5, %v3656_v11, %v3655_v49  ;;  %v3346_v12 = vadd.f32 %v3341_v41, %v3274_v42  ;;  %v3662_v5 = vrot.slane %v3618_v18, 3  ;;  %v3760_v16 = vld [vmem:[#allocation2 + $0x20] sm:$0xff] }
 0x73d   : >> { %v3659_v63 = vsel %vm1691_vm4, %v3658_v57, %v3657_v60  ;;  %v3660_v15 = vrot.slane %v3617_v9, 4  ;;  %v3664_v46 = vrot.slane %v3619_v32, 2  ;;  %v3666_v53 = vrot.slane %v3620_v38, 1  ;;  %v4252_v9 = vld [vmem:[#allocation2 + $0x10] sm:$0xff] }
 0x73e   : >> { %4572 = vrot.lane.b32.xlu0 %v4569_v6, %s5108_s15  ;;  %v3353_v23 = vmul.f32 %v7332_v52, %v3346_v12  ;;  %vm3621_vm5 = vcmp.gt.f32.partialorder %v7323_v1, 0.05  ;;  %v3831_v1 = vadd.f32 %v3827_v37, %v3760_v16  ;;  %vm7680_vm13 = vcmask 720448  }
 0x73f   : >> { %v3661_v48 = vsel %vm1694_vm12, %v3660_v15, %v3659_v63  ;;  %v3907_v7 = vpop.permute.xlu2 %3906  ;;  %v4907_v30 = vsel %vm3621_vm5, 1.0, %v7637_v35  ;;  %vm7681_vm4 = vmmov %vm7680_vm13  ;;  %vm7683_vm10 = vcmask 261248   ;;  %vm7684_vm6 = vcmask 868048  }
 0x740   : >> { %3355 = vst.msk [vmem:[#allocation2] sm:$0xff] %vm322_vm0, %v3353_v23  ;;  %v3663_v58 = vsel %vm1697_vm11, %v3662_v5, %v3661_v48  ;;  %v3676_v0 = vperm.slane %v4907_v30, 0  ;;  %vm7677_vm11 = vcmask 572848   ;;  %vm7685_vm14 = vmmov %vm7684_vm6 }
 0x741   : >> { %4580 = vrot.lane.b32.xlu2 %v4578_v61, %s5108_s15  ;;  %4244 = vrot.lane.b32.xlu1 %v4242_v55, %s5079_s14  ;;  %v3665_v3 = vsel %vm1700_vm15, %v3664_v46, %v3663_v58  ;;  %vm7678_vm12 = vmmov %vm7677_vm11  ;;  %vm7679_vm15 = vcmask 113664   ;;  %s5110_s14 = smov (%p525_p4), 90  }
 0x742   : >> { %v3423_v22 = vpop.permute.xlu0 %3422  ;;  %v3667_v54 = vsel %vm3324_vm7, %v3666_v53, %v3665_v3  ;;  %v4254_v3 = vld [vmem:[#allocation2 + $0x28] sm:$0xff]  ;;  %vm7682_vm7 = vmmov %vm7679_vm15 }
 0x743   : >> { %vm7686_vm5 = vmmov %vm7683_vm10 }
 0x747   : >> { %v3357_v33 = vld [vmem:[#allocation2] sm:$0xff]  ;;  %v3515_v10 = vpop.permute.xlu2 %3514 }
 0x748   : >> { %v3428_v40 = vadd.f32 %v3423_v22, %v3357_v33 }
 0x749   : >> { %3670 = vrot.lane.b32.xlu1 %v3667_v54, %s5077_s12 }
 0x74a   : >> { %v3435_v19 = vmul.f32 %v7374_v36, %v3428_v40 }
 0x74b   : >> { %v3505_v17 = vpop.permute.xlu0 %3504 }
 0x74c   : >> { %3437 = vst.msk [vmem:[#allocation2] sm:$0xff] %vm335_vm1, %v3435_v19 }
 0x74f   : >> { %v3343_v51 = vpop.permute.xlu1 %3342  ;;  %v3999_v13 = vpop.permute.xlu2 %3998 }
 0x750   : >> { %v3347_v27 = vadd.f32 %v3343_v51, %v3275_v14 }
 0x751   : >> { %3678 = vrot.lane.b32.xlu1 %v3676_v0, %s5077_s12  ;;  %s5109_s12 = smov (%p525_p4), 88  }
 0x752   : >> { %v3354_v29 = vmul.f32 %v7332_v52, %v3347_v27  ;;  %v3759_v52 = vld [vmem:[#allocation2 + $0x8] sm:$0xff] }
 0x753   : >> { %v3439_v44 = vld [vmem:[#allocation2] sm:$0xff] }
 0x754   : >> { %3356 = vst.msk [vmem:[#allocation2 + $0x18] sm:$0xff] %vm322_vm0, %v3354_v29  ;;  %v3835_v35 = vpop.permute.xlu0 %3834  ;;  %v3510_v21 = vadd.f32 %v3505_v17, %v3439_v44  ;;  %vm4621_vm0 = vcmask (%p525_p4), 392448  }
 0x755   : >> { %v3838_v2 = vmul.f32 %v3835_v35, %v3831_v1 }
 0x756   : >> { %v3517_v43 = vmul.f32 %v3515_v10, %v3510_v21 }
 0x757   : >> { %3840 = vst.msk [vmem:[#allocation2 + $0x20] sm:$0xff] %vm400_vm8, %v3838_v2 }
 0x758   : >> { %v3425_v50 = vpop.permute.xlu1 %3424  ;;  %3519 = vst.msk [vmem:[#allocation2] sm:$0xff] %vm348_vm2, %v3517_v43  ;;  %v4073_v4 = vpop.permute.xlu2 %4072 }
 0x75b   : >> { %v3358_v47 = vld [vmem:[#allocation2 + $0x18] sm:$0xff] }
 0x75c   : >> { %v3429_v24 = vadd.f32 %v3425_v50, %v3358_v47  ;;  %v3909_v59 = vpop.permute.xlu0 %3908 }
 0x75e   : >> { %v3436_v26 = vmul.f32 %v7374_v36, %v3429_v24  ;;  %v3842_v49 = vld [vmem:[#allocation2 + $0x20] sm:$0xff] }
 0x75f   : >> { %v3913_v34 = vadd.f32 %v3909_v59, %v3842_v49 }
 0x760   : >> { %v3825_v20 = vpop.permute.xlu1 %3824  ;;  %3438 = vst.msk [vmem:[#allocation2 + $0x18] sm:$0xff] %vm335_vm1, %v3436_v26  ;;  %v3521_v26 = vld [vmem:[#allocation2] sm:$0xff]  ;;  %vm7699_vm1 = vcmask (%p525_p4), 261248  }
 0x761   : >> { %v3830_v31 = vadd.f32 %v3825_v20, %v3759_v52  ;;  %v4081_v37 = vpop.permute.xlu2 %4080 }
 0x763   : >> { %v3837_v28 = vmul.f32 %v3835_v35, %v3830_v31 }
 0x765   : >> { %3839 = vst.msk [vmem:[#allocation2 + $0x8] sm:$0xff] %vm400_vm8, %v3837_v28  ;;  %v3989_v25 = vpop.permute.xlu0 %3988  ;;  %vm4634_vm8 = vcmask (%p525_p4), 523648  }
 0x767   : >> { %v3440_v39 = vld [vmem:[#allocation2 + $0x18] sm:$0xff] }
 0x768   : >> { %v3507_v8 = vpop.permute.xlu1 %3506 }
 0x769   : >> { %v3511_v45 = vadd.f32 %v3507_v8, %v3440_v39  ;;  %v4155_v60 = vpop.permute.xlu2 %4154 }
 0x76b   : >> { %v3518_v56 = vmul.f32 %v3515_v10, %v3511_v45 }
 0x76c   : >> { %v3841_v6 = vld [vmem:[#allocation2 + $0x8] sm:$0xff] }
 0x76d   : >> { %3520 = vst.msk [vmem:[#allocation2 + $0x18] sm:$0xff] %vm348_vm2, %v3518_v56  ;;  %v3912_v11 = vadd.f32 %v3907_v7, %v3841_v6  ;;  %vm7700_vm2 = vmmov (%p525_p4), %vm7699_vm1 }
 0x76e   : >> { %v3587_v36 = vpop.permute.xlu0 %3586 }
 0x76f   : >> { %v3592_v20 = vadd.f32 %v3587_v36, %v3521_v26 }
 0x770   : >> { %v3917_v42 = vpop.permute.xlu1 %3916 }
 0x771   : >> { %v3919_v61 = vmul.f32 %v3917_v42, %v3912_v11  ;;  %v3920_v55 = vmul.f32 %v3917_v42, %v3913_v34 }
 0x772   : >> { %v4163_v53 = vpop.permute.xlu2 %4162 }
 0x773   : >> { %3921 = vst.msk [vmem:[#allocation2 + $0x8] sm:$0xff] %vm413_vm9, %v3919_v61 }
 0x774   : >> { %3922 = vst.msk [vmem:[#allocation2 + $0x20] sm:$0xff] %vm413_vm9, %v3920_v55  ;;  %vm4647_vm9 = vcmask (%p525_p4), 654848  }
 0x776   : >> { %v7420_v18 = vpop.permute.xlu0 %4318 }
 0x777   : >> { %v4325_v38 = vadd.f32 %v7420_v18, %v4252_v9 }
 0x778   : >> { %v3991_v41 = vpop.permute.xlu1 %3990 }
 0x77a   : >> { %v3923_v32 = vld [vmem:[#allocation2 + $0x8] sm:$0xff]  ;;  %v4235_v17 = vpop.permute.xlu2 %4234 }
 0x77b   : >> { %v3924_v57 = vld [vmem:[#allocation2 + $0x20] sm:$0xff]  ;;  %v3994_v12 = vadd.f32 %v3989_v25, %v3923_v32  ;;  %v3522_v25 = vld [vmem:[#allocation2 + $0x18] sm:$0xff] }
 0x77c   : >> { %v3995_v63 = vadd.f32 %v3991_v41, %v3924_v57 }
 0x77d   : >> { %v4001_v23 = vmul.f32 %v3999_v13, %v3994_v12 }
 0x77e   : >> { %v7423_v5 = vpop.permute.xlu0 %4330  ;;  %v4002_v15 = vmul.f32 %v3999_v13, %v3995_v63 }
 0x77f   : >> { %v4334_v46 = vmul.f32 %v7423_v5, %v4325_v38  ;;  %4003 = vst.msk [vmem:[#allocation2 + $0x8] sm:$0xff] %vm7677_vm11, %v4001_v23  ;;  %vm7687_vm11 = vcmask 884448  }
 0x780   : >> { %4004 = vst.msk [vmem:[#allocation2 + $0x20] sm:$0xff] %vm7678_vm12, %v4002_v15  ;;  %vm7688_vm12 = vmmov %vm7687_vm11 }
 0x781   : >> { %v4071_v48 = vpop.permute.xlu1 %4070  ;;  %4338 = vst.msk [vmem:[#allocation2 + $0x10] sm:$0xff] %vm7679_vm15, %v4334_v46  ;;  %vm7689_vm15 = vcmask 408848  }
 0x783   : >> { %v4491_v2 = vpop.permute.xlu2 %4490 }
 0x786   : >> { %v4407_v58 = vpop.permute.xlu0 %4406  ;;  %v4005_v7 = vld [vmem:[#allocation2 + $0x8] sm:$0xff] }
 0x787   : >> { %v4006_v22 = vld [vmem:[#allocation2 + $0x20] sm:$0xff]  ;;  %v4076_v54 = vadd.f32 %v4071_v48, %v4005_v7 }
 0x788   : >> { %v4077_v33 = vadd.f32 %v4073_v4, %v4006_v22  ;;  %v4341_v19 = vld [vmem:[#allocation2 + $0x10] sm:$0xff] }
 0x789   : >> { %v4083_v40 = vmul.f32 %v4081_v37, %v4076_v54  ;;  %v4412_v51 = vadd.f32 %v4407_v58, %v4341_v19 }
 0x78a   : >> { %v7429_v30 = vpop.permute.xlu1 %4320  ;;  %v4084_v10 = vmul.f32 %v4081_v37, %v4077_v33 }
 0x78b   : >> { %v4327_v0 = vadd.f32 %v7429_v30, %v4254_v3  ;;  %4085 = vst.msk [vmem:[#allocation2 + $0x8] sm:$0xff] %vm7680_vm13, %v4083_v40  ;;  %v4499_v4 = vpop.permute.xlu2 %4498  ;;  %vm7690_vm13 = vmmov %vm7689_vm15 }
 0x78c   : >> { %4086 = vst.msk [vmem:[#allocation2 + $0x20] sm:$0xff] %vm7681_vm4, %v4084_v10  ;;  %vm7691_vm4 = vcmask 1015648  }
 0x78d   : >> { %v4336_v14 = vmul.f32 %v7423_v5, %v4327_v0 }
 0x78f   : >> { %4340 = vst.msk [vmem:[#allocation2 + $0x28] sm:$0xff] %vm7682_vm7, %v4336_v14  ;;  %v4417_v27 = vpop.permute.xlu0 %4416  ;;  %vm7692_vm7 = vmmov %vm7691_vm4 }
 0x790   : >> { %v4419_v16 = vmul.f32 %v4417_v27, %v4412_v51 }
 0x792   : >> { %4421 = vst.msk [vmem:[#allocation2 + $0x10] sm:$0xff] %vm7683_vm10, %v4419_v16  ;;  %v4153_v29 = vpop.permute.xlu1 %4152  ;;  %v4087_v1 = vld [vmem:[#allocation2 + $0x8] sm:$0xff]  ;;  %vm7693_vm10 = vcmask 556448  }
 0x793   : >> { %v4088_v44 = vld [vmem:[#allocation2 + $0x20] sm:$0xff]  ;;  %v4158_v35 = vadd.f32 %v4153_v29, %v4087_v1  ;;  %v4571_v34 = vpop.permute.xlu2 %4570 }
 0x794   : >> { %v4159_v21 = vadd.f32 %v4155_v60, %v4088_v44 }
 0x795   : >> { %v4165_v43 = vmul.f32 %v4163_v53, %v4158_v35 }
 0x796   : >> { %v4166_v50 = vmul.f32 %v4163_v53, %v4159_v21  ;;  %v4342_v47 = vld [vmem:[#allocation2 + $0x28] sm:$0xff] }
 0x797   : >> { %4167 = vst.msk [vmem:[#allocation2 + $0x8] sm:$0xff] %vm7684_vm6, %v4165_v43  ;;  %vm7694_vm6 = vmmov %vm7693_vm10 }
 0x798   : >> { %v4237_v13 = vpop.permute.xlu0 %4236  ;;  %4168 = vst.msk [vmem:[#allocation2 + $0x20] sm:$0xff] %vm7685_vm14, %v4166_v50  ;;  %vm7695_vm14 = vcmask 1048560  }
 0x799   : >> { %v4423_v11 = vld [vmem:[#allocation2 + $0x10] sm:$0xff] }
 0x79b   : >> { %v4409_v24 = vpop.permute.xlu1 %4408  ;;  %v4581_v15 = vpop.permute.xlu2 %4580 }
 0x79c   : >> { %v4413_v59 = vadd.f32 %v4409_v24, %v4342_v47 }
 0x79e   : >> { %v4420_v52 = vmul.f32 %v4417_v27, %v4413_v59  ;;  %v4169_v60 = vld [vmem:[#allocation2 + $0x8] sm:$0xff] }
 0x79f   : >> { %v4170_v55 = vld [vmem:[#allocation2 + $0x20] sm:$0xff]  ;;  %v4240_v9 = vadd.f32 %v4235_v17, %v4169_v60 }
 0x7a0   : >> { %4422 = vst.msk [vmem:[#allocation2 + $0x28] sm:$0xff] %vm7686_vm5, %v4420_v52  ;;  %v3597_v31 = vpop.permute.xlu0 %3596  ;;  %v4241_v41 = vadd.f32 %v4237_v13, %v4170_v55  ;;  %vm7696_vm5 = vmmov %vm7695_vm14 }
 0x7a1   : >> { %v3599_v28 = vmul.f32 %v3597_v31, %v3592_v20 }
 0x7a3   : >> { %3601 = vst.msk [vmem:[#allocation2] sm:$0xff] %vm7687_vm11, %v3599_v28  ;;  %v3589_v39 = vpop.permute.xlu1 %3588  ;;  %vm7697_vm11 = vcmask 1032048  }
 0x7a4   : >> { %v3593_v8 = vadd.f32 %v3589_v39, %v3522_v25 }
 0x7a6   : >> { %v3600_v45 = vmul.f32 %v3597_v31, %v3593_v8 }
 0x7a7   : >> { %v4424_v56 = vld [vmem:[#allocation2 + $0x28] sm:$0xff] }
 0x7a8   : >> { %3602 = vst.msk [vmem:[#allocation2 + $0x18] sm:$0xff] %vm7688_vm12, %v3600_v45  ;;  %v4495_v49 = vadd.f32 %v4491_v2, %v4424_v56  ;;  %v3669_v37 = vpop.permute.xlu0 %3668  ;;  %vm7698_vm12 = vmmov %vm7697_vm11 }
 0x7aa   : >> { %v4502_v6 = vmul.f32 %v4499_v4, %v4495_v49  ;;  %v3603_v33 = vld [vmem:[#allocation2] sm:$0xff] }
 0x7ab   : >> { %v4489_v36 = vpop.permute.xlu1 %4488  ;;  %v3674_v10 = vadd.f32 %v3669_v37, %v3603_v33 }
 0x7ac   : >> { %v4494_v42 = vadd.f32 %v4489_v36, %v4423_v11  ;;  %4504 = vst.msk [vmem:[#allocation2 + $0x28] sm:$0xff] %vm7689_vm15, %v4502_v6  ;;  %vm4660_vm15 = vcmask (%p525_p4), 786048  }
 0x7ae   : >> { %v4501_v61 = vmul.f32 %v4499_v4, %v4494_v42 }
 0x7af   : >> { %v3604_v17 = vld [vmem:[#allocation2 + $0x18] sm:$0xff] }
 0x7b0   : >> { %4503 = vst.msk [vmem:[#allocation2 + $0x10] sm:$0xff] %vm7690_vm13, %v4501_v61  ;;  %v4573_v32 = vpop.permute.xlu0 %4572  ;;  %vm4673_vm13 = vcmask (%p525_p4), 917248  }
 0x7b3   : >> { %v4506_v57 = vld [vmem:[#allocation2 + $0x28] sm:$0xff]  ;;  %v4245_v12 = vpop.permute.xlu1 %4244 }
 0x7b4   : >> { %v4577_v38 = vadd.f32 %v4573_v32, %v4506_v57  ;;  %v4247_v63 = vmul.f32 %v4245_v12, %v4240_v9  ;;  %v4248_v23 = vmul.f32 %v4245_v12, %v4241_v41 }
 0x7b6   : >> { %v4584_v46 = vmul.f32 %v4581_v15, %v4577_v38  ;;  %4249 = vst.msk [vmem:[#allocation2 + $0x8] sm:$0xff] %vm7691_vm4, %v4247_v63  ;;  %vm4686_vm4 = vcmask (%p525_p4), 1048448  }
 0x7b7   : >> { %v4505_v53 = vld [vmem:[#allocation2 + $0x10] sm:$0xff]  ;;  %4250 = vst.msk [vmem:[#allocation2 + $0x20] sm:$0xff] %vm7692_vm7, %v4248_v23  ;;  %vm7701_vm7 = vmmov (%p525_p4), %vm7699_vm1 }
 0x7b8   : >> { %v4576_v48 = vadd.f32 %v4571_v34, %v4505_v53  ;;  %4586 = vst.msk [vmem:[#allocation2 + $0x28] sm:$0xff] %vm7693_vm10, %v4584_v46  ;;  %vm7702_vm10 = vmmov (%p525_p4), %vm7699_vm1 }
 0x7ba   : >> { %v4583_v58 = vmul.f32 %v4581_v15, %v4576_v48 }
 0x7bb   : >> { %v3671_v7 = vpop.permute.xlu1 %3670 }
 0x7bc   : >> { %4585 = vst.msk [vmem:[#allocation2 + $0x10] sm:$0xff] %vm7694_vm6, %v4583_v58  ;;  %v3675_v14 = vadd.f32 %v3671_v7, %v3604_v17 }
 0x7bd   : >> { %v4251_v3 = vld [vmem:[#allocation2 + $0x8] sm:$0xff] }
 0x7be   : >> { %v4253_v22 = vld [vmem:[#allocation2 + $0x20] sm:$0xff]  ;;  %v4324_v54 = vadd.f32 %v7420_v18, %v4251_v3 }
 0x7bf   : >> { %v4326_v40 = vadd.f32 %v7429_v30, %v4253_v22  ;;  %v4740_v1 = vld [vmem:[#allocation2 + $0x28] sm:$0xff] (%p525_p4) }
 0x7c0   : >> { %v4333_v19 = vmul.f32 %v7423_v5, %v4324_v54 }
 0x7c1   : >> { %v4335_v0 = vmul.f32 %v7423_v5, %v4326_v40 }
 0x7c2   : >> { %4337 = vst.msk [vmem:[#allocation2 + $0x8] sm:$0xff] %vm7695_vm14, %v4333_v19 }
 0x7c3   : >> { %4339 = vst.msk [vmem:[#allocation2 + $0x20] sm:$0xff] %vm7696_vm5, %v4335_v0  ;;  %v3679_v51 = vpop.permute.xlu1 %3678  ;;  %527 = sbr.rel (!%p525_p4) target bundleno = 214 (0xd6), region = 100  ;;  %v4738_v29 = vld [vmem:[#allocation2 + $0x10] sm:$0xff] (%p525_p4) }
 0x7c4   : >> { %v3681_v27 = vmul.f32 %v3679_v51, %v3674_v10  ;;  %v3682_v16 = vmul.f32 %v3679_v51, %v3675_v14 }
 0x7c6   : >> { %3683 = vst.msk [vmem:[#allocation2] sm:$0xff] %vm7697_vm11, %v3681_v27 }
 0x7c7   : >> { %3684 = vst.msk [vmem:[#allocation2 + $0x18] sm:$0xff] %vm7698_vm12, %v3682_v16 }
 0x7c9   : > { %v4650_v30 = vld [vmem:[#allocation2 + $0x8] sm:$0xff] }
 0x7ca   : > { %v4664_v62 = vld [vmem:[#allocation2 + $0x20] sm:$0xff] }
 0x7cd   : > { %v4599_v18 = vld [vmem:[#allocation2] sm:$0xff] }
 0x7ce   : > { %4603 = vrot.lane.b32.xlu1 %v4599_v18, %s5109_s12  ;;  %4591 = vrot.lane.b32.xlu0 %v4599_v18, %s5110_s14  ;;  %v4600_v5 = vld [vmem:[#allocation2 + $0x18] sm:$0xff] }
 0x7cf   : > { %4615 = vrot.lane.b32.xlu2 %v4599_v18, %s5111_s17 }
 0x7d6   : > { %4605 = vrot.lane.b32.xlu1 %v4600_v5, %s5109_s12  ;;  %4593 = vrot.lane.b32.xlu0 %v4600_v5, %s5110_s14 }
 0x7d7   : > { %4617 = vrot.lane.b32.xlu2 %v4600_v5, %s5111_s17 }
 0x7de   : > { %4630 = vrot.lane.b32.xlu1 %v4600_v5, %s5112_s21  ;;  %4628 = vrot.lane.b32.xlu0 %v4599_v18, %s5112_s21 }
 0x7df   : > { %4641 = vrot.lane.b32.xlu2 %v4599_v18, %s5113_s27 }
 0x7e6   : > { %4654 = vrot.lane.b32.xlu1 %v4650_v30, %s5114_s28  ;;  %4643 = vrot.lane.b32.xlu0 %v4600_v5, %s5113_s27 }
 0x7e7   : > { %4656 = vrot.lane.b32.xlu2 %v4664_v62, %s5114_s28 }
 0x7ee   : > { %4669 = vrot.lane.b32.xlu1 %v4664_v62, %s5115_s8  ;;  %4667 = vrot.lane.b32.xlu0 %v4650_v30, %s5115_s8 }
 0x7ef   : > { %4680 = vrot.lane.b32.xlu2 %v4650_v30, %s5116_s29 }
 0x7f6   : > { %4693 = vrot.lane.b32.xlu1 %v4650_v30, %s5117_s30  ;;  %4682 = vrot.lane.b32.xlu0 %v4664_v62, %s5116_s29 }
 0x7f7   : > { %4695 = vrot.lane.b32.xlu2 %v4664_v62, %s5117_s30 }
 0x7fe   : > { %4707 = vrot.lane.b32.xlu1 %v4664_v62, %s5118_s10  ;;  %4705 = vrot.lane.b32.xlu0 %v4650_v30, %s5118_s10 }
 0x7ff   : > { %4717 = vrot.lane.b32.xlu2 %v4650_v30, %s5119_s13 }
 0x806   : > { %4729 = vrot.lane.b32.xlu1 %v4650_v30, %s5073_s26  ;;  %4719 = vrot.lane.b32.xlu0 %v4664_v62, %s5119_s13 }
 0x807   : > { %4731 = vrot.lane.b32.xlu2 %v4664_v62, %s5073_s26 }
 0x80e   : > { %4747 = vrot.lane.b32.xlu1 %v4738_v29, %s5072_s25  ;;  %4745 = vrot.lane.b32.xlu0 %v4650_v30, %s5072_s25 }
 0x80f   : > { %4749 = vrot.lane.b32.xlu2 %v4664_v62, %s5072_s25 }
 0x816   : > { %4751 = vrot.lane.b32.xlu0 %v4740_v1, %s5072_s25  ;;  %4764 = vrot.lane.b32.xlu1 %v4738_v29, %s5070_s22 }
 0x817   : > { %4766 = vrot.lane.b32.xlu2 %v4740_v1, %s5070_s22 }
 0x81e   : > { %4776 = vrot.lane.b32.xlu0 %v4738_v29, %s5068_s20  ;;  %4778 = vrot.lane.b32.xlu1 %v4740_v1, %s5068_s20 }
 0x81f   : > { %4788 = vrot.lane.b32.xlu2 %v4738_v29, %s5071_s23 }
 0x826   : > { %4790 = vrot.lane.b32.xlu0 %v4740_v1, %s5071_s23 }
 0x829   : > { %v4616_v44 = vpop.permute.xlu2 %4615 }
 0x831   : > { %v4618_v35 = vpop.permute.xlu2 %4617 }
 0x839   : > { %v4642_v21 = vpop.permute.xlu2 %4641 }
 0x840   : > { %v4604_v2 = vpop.permute.xlu1 %4603  ;;  %v4592_v43 = vpop.permute.xlu0 %4591 }
 0x841   : > { %4597 = vst.msk [vmem:[%s5176_s9] sm:$0xff] %vm387_vm3, %v4592_v43  ;;  %v4657_v13 = vpop.permute.xlu2 %4656 }
 0x842   : > { %4609 = vst.msk [vmem:[%s5176_s9] sm:$0xff] %vm7699_vm1, %v4604_v2 }
 0x843   : > { %4622 = vst.msk [vmem:[%s5176_s9] sm:$0xff] %vm4621_vm0, %v4616_v44 }
 0x848   : > { %v4606_v50 = vpop.permute.xlu1 %4605  ;;  %v4594_v47 = vpop.permute.xlu0 %4593 }
 0x849   : > { %4598 = vst.msk [vmem:[%s5176_s9 + $0x10] sm:$0xff] %vm387_vm3, %v4594_v47  ;;  %v4681_v24 = vpop.permute.xlu2 %4680 }
 0x84a   : > { %4610 = vst.msk [vmem:[%s5176_s9 + $0x10] sm:$0xff] %vm7700_vm2, %v4606_v50 }
 0x84b   : > { %4623 = vst.msk [vmem:[%s5176_s9 + $0x10] sm:$0xff] %vm4621_vm0, %v4618_v35 }
 0x850   : > { %v4631_v59 = vpop.permute.xlu1 %4630  ;;  %v4629_v26 = vpop.permute.xlu0 %4628 }
 0x851   : > { %4636 = vst.msk [vmem:[%s5176_s9 + $0x10] sm:$0xff] %vm4634_vm8, %v4631_v59  ;;  %v4696_v52 = vpop.permute.xlu2 %4695 }
 0x852   : > { %4635 = vst.msk [vmem:[%s5176_s9] sm:$0xff] %vm4634_vm8, %v4629_v26 }
 0x853   : > { %4648 = vst.msk [vmem:[%s5176_s9] sm:$0xff] %vm4647_vm9, %v4642_v21 }
 0x854   : > { %4700 = vst.msk [vmem:[%s5176_s9 + $0x18] sm:$0xff] %vm387_vm3, %v4696_v52 }
 0x858   : > { %v4655_v20 = vpop.permute.xlu1 %4654  ;;  %v4644_v31 = vpop.permute.xlu0 %4643 }
 0x859   : > { %4661 = vst.msk [vmem:[%s5176_s9] sm:$0xff] %vm4660_vm15, %v4655_v20  ;;  %v4718_v25 = vpop.permute.xlu2 %4717 }
 0x85a   : > { %4649 = vst.msk [vmem:[%s5176_s9 + $0x10] sm:$0xff] %vm4647_vm9, %v4644_v31 }
 0x85b   : > { %4662 = vst.msk [vmem:[%s5176_s9 + $0x10] sm:$0xff] %vm4660_vm15, %v4657_v13 }
 0x860   : > { %v4670_v4 = vpop.permute.xlu1 %4669  ;;  %v4668_v28 = vpop.permute.xlu0 %4667 }
 0x861   : > { %4675 = vst.msk [vmem:[%s5176_s9 + $0x10] sm:$0xff] %vm4673_vm13, %v4670_v4  ;;  %v4732_v49 = vpop.permute.xlu2 %4731 }
 0x862   : > { %4674 = vst.msk [vmem:[%s5176_s9] sm:$0xff] %vm4673_vm13, %v4668_v28 }
 0x863   : > { %4687 = vst.msk [vmem:[%s5176_s9] sm:$0xff] %vm4686_vm4, %v4681_v24 }
 0x868   : > { %v4694_v39 = vpop.permute.xlu1 %4693  ;;  %v4683_v8 = vpop.permute.xlu0 %4682 }
 0x869   : > { %4699 = vst.msk [vmem:[%s5176_s9 + $0x8] sm:$0xff] %vm387_vm3, %v4694_v39  ;;  %v4750_v34 = vpop.permute.xlu2 %4749  ;;  %vm4753_vm3 = vcmask 539648  }
 0x86a   : > { %4688 = vst.msk [vmem:[%s5176_s9 + $0x10] sm:$0xff] %vm4686_vm4, %v4683_v8 }
 0x870   : > { %v4708_v45 = vpop.permute.xlu1 %4707  ;;  %v4706_v56 = vpop.permute.xlu0 %4705 }
 0x871   : > { %4712 = vst.msk [vmem:[%s5176_s9 + $0x18] sm:$0xff] %vm7701_vm7, %v4708_v45  ;;  %v4767_v61 = vpop.permute.xlu2 %4766 }
 0x872   : > { %4711 = vst.msk [vmem:[%s5176_s9 + $0x8] sm:$0xff] %vm7702_vm10, %v4706_v56 }
 0x873   : > { %4723 = vst.msk [vmem:[%s5176_s9 + $0x8] sm:$0xff] %vm4621_vm0, %v4718_v25 }
 0x878   : > { %v4730_v37 = vpop.permute.xlu1 %4729  ;;  %v4720_v6 = vpop.permute.xlu0 %4719 }
 0x879   : > { %4735 = vst.msk [vmem:[%s5176_s9 + $0x8] sm:$0xff] %vm4634_vm8, %v4730_v37  ;;  %v4789_v9 = vpop.permute.xlu2 %4788 }
 0x87a   : > { %4724 = vst.msk [vmem:[%s5176_s9 + $0x18] sm:$0xff] %vm4621_vm0, %v4720_v6 }
 0x87b   : > { %4736 = vst.msk [vmem:[%s5176_s9 + $0x18] sm:$0xff] %vm4634_vm8, %v4732_v49 }
 0x880   : > { %v4748_v11 = vpop.permute.xlu1 %4747  ;;  %v4746_v36 = vpop.permute.xlu0 %4745 }
 0x881   : > { %v4754_v42 = vsel %vm4753_vm3, %v4746_v36, %v4748_v11 }
 0x882   : > { %4758 = vst.msk [vmem:[%s5176_s9 + $0x8] sm:$0xff] %vm4647_vm9, %v4754_v42 }
 0x888   : > { %v4752_v55 = vpop.permute.xlu0 %4751  ;;  %v4765_v60 = vpop.permute.xlu1 %4764 }
 0x889   : > { %v4755_v41 = vsel %vm4753_vm3, %v4750_v34, %v4752_v55  ;;  %4770 = vst.msk [vmem:[%s5176_s9 + $0x8] sm:$0xff] %vm4660_vm15, %v4765_v60 }
 0x88a   : > { %4759 = vst.msk [vmem:[%s5176_s9 + $0x18] sm:$0xff] %vm4647_vm9, %v4755_v41 }
 0x88b   : > { %4771 = vst.msk [vmem:[%s5176_s9 + $0x18] sm:$0xff] %vm4660_vm15, %v4767_v61 }
 0x890   : > { %v4777_v32 = vpop.permute.xlu0 %4776  ;;  %v4779_v57 = vpop.permute.xlu1 %4778 }
 0x891   : > { %4782 = vst.msk [vmem:[%s5176_s9 + $0x8] sm:$0xff] %vm4673_vm13, %v4777_v32 }
 0x892   : > { %4783 = vst.msk [vmem:[%s5176_s9 + $0x18] sm:$0xff] %vm4673_vm13, %v4779_v57 }
 0x893   : > { %4794 = vst.msk [vmem:[%s5176_s9 + $0x8] sm:$0xff] %vm4686_vm4, %v4789_v9 }
 0x898   : > { %v4791_v12 = vpop.permute.xlu0 %4790 }
 0x899   : > { %4795 = vst.msk [vmem:[%s5176_s9 + $0x18] sm:$0xff] %vm4686_vm4, %v4791_v12 }
 0x89a PF: > { %s17_s24 = sadd.s32 1, %s5052_s24  }
 0x89b   : > { %p14_p5 = scmp.ge.s32.totalorder %s17_s24, 4  }
 0x89d   :  { %16 = sbr.rel (!%p14_p5) target bundleno = 1 (0x1), region = 111 }

</bundles_post_ra>
